<compile_context>
chip_gen: v6e
topology: v6e:2x2x1
jax: 0.10.0
libtpu: 0.0.40
codegen_flags: <defaults>
</compile_context>

<pallas_src>
import functools
import math

import jax
import jax.numpy as jnp
from jax.experimental import pallas as pl
from jax.experimental.pallas import tpu as pltpu

# TODO(synk): nn.Dropout(p=0.1) inside the TransformerEncoderLayer is treated
# as identity (inference semantics) -- there is no clean deterministic Pallas
# equivalent of torch's training-mode dropout RNG stream.

D_MODEL = 256
N_HEADS = 8
HEAD_DIM = D_MODEL // N_HEADS
D_FF = 512
N_LAYERS = 4

_VMEM_SPEC = pl.BlockSpec(memory_space=pltpu.MemorySpace.VMEM)


def _round_up(x, m):
    return ((x + m - 1) // m) * m


# ----------------------------------------------------------------------------
# Tiled matmul (+bias, +optional relu): bf16 inputs, f32 accumulation.
# ----------------------------------------------------------------------------
def _matmul_kernel(a_ref, b_ref, bias_ref, o_ref, acc_ref, *, relu):
    @pl.when(pl.program_id(2) == 0)
    def _():
        acc_ref[...] = jnp.zeros_like(acc_ref)

    acc_ref[...] += jnp.dot(a_ref[...], b_ref[...],
                            preferred_element_type=jnp.float32)

    @pl.when(pl.program_id(2) == pl.num_programs(2) - 1)
    def _():
        r = acc_ref[...] + bias_ref[...]          # bias block (1, tn) broadcasts
        if relu:
            r = jnp.maximum(r, 0.0)
        o_ref[...] = r.astype(o_ref.dtype)


def pallas_matmul(a, b, bias=None, relu=False, tm=256, tn=256, tk=512):
    """C = relu?(A @ B + bias).  A:(M,K) B:(K,N) bias:(N,).  bf16 MXU, f32 acc."""
    m, k = a.shape
    k2, n = b.shape
    assert k == k2
    if bias is None:
        bias = jnp.zeros((n,), jnp.float32)

    # MXU-aligned tiles (256 on M/N when possible), shrunk for small problems.
    tm = min(tm, _round_up(m, 8))
    tn = min(tn, _round_up(n, 128))
    tk = min(tk, _round_up(k, 128))
    mp, np_, kp = _round_up(m, tm), _round_up(n, tn), _round_up(k, tk)

    a = a.astype(jnp.bfloat16)
    b = b.astype(jnp.bfloat16)
    bias2d = bias.astype(jnp.float32).reshape(1, n)
    if (mp, kp) != (m, k):
        a = jnp.pad(a, ((0, mp - m), (0, kp - k)))
    if (kp, np_) != (k, n):
        b = jnp.pad(b, ((0, kp - k), (0, np_ - n)))
    if np_ != n:
        bias2d = jnp.pad(bias2d, ((0, 0), (0, np_ - n)))

    out = pl.pallas_call(
        functools.partial(_matmul_kernel, relu=relu),
        out_shape=jax.ShapeDtypeStruct((mp, np_), jnp.float32),
        grid=(mp // tm, np_ // tn, kp // tk),
        in_specs=[pl.BlockSpec((tm, tk), lambda i, j, kk: (i, kk)),
                  pl.BlockSpec((tk, tn), lambda i, j, kk: (kk, j)),
                  pl.BlockSpec((1, tn), lambda i, j, kk: (0, j))],
        out_specs=pl.BlockSpec((tm, tn), lambda i, j, kk: (i, j)),
        scratch_shapes=[pltpu.VMEM((tm, tn), jnp.float32)],
        compiler_params=pltpu.CompilerParams(
            dimension_semantics=("parallel", "parallel", "arbitrary"),
            vmem_limit_bytes=32 * 1024 * 1024),
    )(a, b, bias2d)

    if (mp, np_) != (m, n):
        out = out[:m, :n]
    return out


# ----------------------------------------------------------------------------
# 2x2 / stride-2 max pool: reads the feature map exactly once.
# ----------------------------------------------------------------------------
def _maxpool_kernel(x_ref, o_ref, *, c):
    v = x_ref[...]                                     # (B, H/2, 2, W/2, 2*C)
    m = jnp.maximum(v[:, :, 0], v[:, :, 1])            # max over the row pair
    o_ref[...] = jnp.maximum(m[..., :c], m[..., c:])   # max over the column pair


def maxpool2x2(x):
    b, h, w, c = x.shape
    xr = x.reshape(b, h // 2, 2, w // 2, 2 * c)        # free row-major reinterpretation
    return pl.pallas_call(
        functools.partial(_maxpool_kernel, c=c),
        out_shape=jax.ShapeDtypeStruct((b, h // 2, w // 2, c), x.dtype),
        in_specs=[_VMEM_SPEC],
        out_specs=_VMEM_SPEC,
    )(xr)


# ----------------------------------------------------------------------------
# 3x3 conv (padding=1) + relu via im2col GEMM.
# (im2col materialization kept in XLA -- tiny at these shapes; the GEMM itself
#  is tiled/pipelined/bf16 in pallas_matmul.)
# ----------------------------------------------------------------------------
def _im2col_3x3(x):
    b, h, w, c = x.shape
    xp = jnp.pad(x, ((0, 0), (1, 1), (1, 1), (0, 0)))
    cols = []
    for kh in range(3):
        for kw in range(3):
            cols.append(xp[:, kh:kh + h, kw:kw + w, :])
    return jnp.concatenate(cols, axis=-1).reshape(b * h * w, 9 * c)


def conv3x3_relu(x, wmat, bias):
    """x: NHWC; wmat: (9*Cin, Cout) pre-packed, rows ordered (kh, kw, ic)."""
    b, h, w, _ = x.shape
    cout = wmat.shape[1]
    y = pallas_matmul(_im2col_3x3(x), wmat, bias, relu=True)
    return y.reshape(b, h, w, cout)


# ----------------------------------------------------------------------------
# ConvTranspose2d(k=2, s=2) + relu, output written interleave-ready.
# Output array (B, H, 2, W, 2*Cout) indexed [b, h, kh, w, kw*Cout+oc] reshapes
# for free to the interleaved NHWC result (B, 2H, 2W, Cout).
# ----------------------------------------------------------------------------
def _upconv_kernel(x_ref, w_ref, b_ref, o_ref, *, hdim, wdim, cout):
    xv = x_ref[0].astype(jnp.bfloat16)                     # (H*W, Cin)
    y = jnp.dot(xv, w_ref[...], preferred_element_type=jnp.float32)
    y = jnp.maximum(y + b_ref[...], 0.0)                   # (H*W, 4*Cout) cols (kh,kw,oc)
    two_c = 2 * cout
    for hh in range(hdim):
        row = y[hh * wdim:(hh + 1) * wdim, :]              # (W, 4*Cout)
        o_ref[0, hh, 0] = row[:, :two_c]                   # kh = 0 -> output row 2h
        o_ref[0, hh, 1] = row[:, two_c:]                   # kh = 1 -> output row 2h+1


def upconv2x2_relu(x, wmat, bias4):
    """x NHWC; wmat: (Cin, 4*Cout) cols (kh, kw, oc); bias4: bias tiled x4."""
    b, h, w, cin = x.shape
    cout = wmat.shape[1] // 4
    x2 = x.reshape(b, h * w, cin)                          # free reshape
    out = pl.pallas_call(
        functools.partial(_upconv_kernel, hdim=h, wdim=w, cout=cout),
        out_shape=jax.ShapeDtypeStruct((b, h, 2, w, 2 * cout), jnp.float32),
        grid=(b,),
        in_specs=[pl.BlockSpec((1, h * w, cin), lambda i: (i, 0, 0)),
                  pl.BlockSpec((cin, 4 * cout), lambda i: (0, 0)),
                  pl.BlockSpec((1, 4 * cout), lambda i: (0, 0))],
        out_specs=pl.BlockSpec((1, h, 2, w, 2 * cout),
                               lambda i: (i, 0, 0, 0, 0)),
        compiler_params=pltpu.CompilerParams(dimension_semantics=("parallel",)),
    )(x2, wmat, bias4.reshape(1, -1))
    return out.reshape(b, 2 * h, 2 * w, cout)              # free interleave reshape


# ----------------------------------------------------------------------------
# Fully fused post-norm TransformerEncoderLayer (torch defaults), one
# pallas_call per layer, gridded over batch.
# ----------------------------------------------------------------------------
def _encoder_layer_kernel(x_ref, wqkv_ref, bqkv_ref, wo_ref, bo_ref,
                          g1_ref, be1_ref, w1_ref, b1_ref, w2_ref, b2_ref,
                          g2_ref, be2_ref, o_ref, *, n_heads, scale):
    def layernorm(v, g, b):
        mean = jnp.mean(v, axis=-1, keepdims=True)
        var = jnp.mean(jnp.square(v - mean), axis=-1, keepdims=True)
        return (v - mean) * jax.lax.rsqrt(var + 1e-5) * g + b

    x = x_ref[0]                                           # (S, E) f32
    s_len, e = x.shape
    dh = e // n_heads

    # ---- self attention ----
    qkv = jnp.dot(x.astype(jnp.bfloat16), wqkv_ref[...],
                  preferred_element_type=jnp.float32) + bqkv_ref[...]
    q, k, v = qkv[:, :e], qkv[:, e:2 * e], qkv[:, 2 * e:]

    attn = jnp.zeros((s_len, e), jnp.float32)
    for h in range(n_heads):
        qh = q[:, h * dh:(h + 1) * dh].astype(jnp.bfloat16)
        kh = k[:, h * dh:(h + 1) * dh].astype(jnp.bfloat16)
        vh = v[:, h * dh:(h + 1) * dh].astype(jnp.bfloat16)
        sc = jax.lax.dot_general(qh, kh, (((1,), (1,)), ((), ())),
                                 preferred_element_type=jnp.float32) * scale
        mx = jnp.max(sc, axis=-1, keepdims=True)
        p = jnp.exp(sc - mx)
        p = p * pl.reciprocal(jnp.sum(p, axis=-1, keepdims=True), approx=True)
        oh = jnp.dot(p.astype(jnp.bfloat16), vh,
                     preferred_element_type=jnp.float32)   # (S, Dh)
        # Fold the out-projection into the head loop: accumulation stays
        # lane-dense (S, E) and no concat is needed.
        attn = attn + jnp.dot(oh.astype(jnp.bfloat16),
                              wo_ref[h * dh:(h + 1) * dh, :],
                              preferred_element_type=jnp.float32)
    attn = attn + bo_ref[...]

    x = layernorm(x + attn, g1_ref[...], be1_ref[...])     # fused residual + LN1

    # ---- feed forward (lin1 + relu + lin2 fused) ----
    hdn = jnp.dot(x.astype(jnp.bfloat16), w1_ref[...],
                  preferred_element_type=jnp.float32) + b1_ref[...]
    hdn = jnp.maximum(hdn, 0.0)
    ff = jnp.dot(hdn.astype(jnp.bfloat16), w2_ref[...],
                 preferred_element_type=jnp.float32) + b2_ref[...]
    x = layernorm(x + ff, g2_ref[...], be2_ref[...])       # fused residual + LN2

    o_ref[0] = x


def transformer_layer(tokens, p):
    """tokens: (B, S, E) f32 -> (B, S, E) f32."""
    b, s, e = tokens.shape
    weights = [p['wqkv'], p['bqkv'], p['wo'], p['bo'],
               p['g1'], p['be1'], p['w1'], p['b1'],
               p['w2'], p['b2'], p['g2'], p['be2']]
    weight_specs = [pl.BlockSpec(wt.shape, lambda i: (0, 0)) for wt in weights]
    return pl.pallas_call(
        functools.partial(_encoder_layer_kernel, n_heads=N_HEADS,
                          scale=1.0 / math.sqrt(HEAD_DIM)),
        out_shape=jax.ShapeDtypeStruct((b, s, e), jnp.float32),
        grid=(b,),
        in_specs=[pl.BlockSpec((1, s, e), lambda i: (i, 0, 0))] + weight_specs,
        out_specs=pl.BlockSpec((1, s, e), lambda i: (i, 0, 0)),
        compiler_params=pltpu.CompilerParams(dimension_semantics=("parallel",)),
    )(tokens, *weights)


# ----------------------------------------------------------------------------
# Parameters: deterministic synthetic init, pre-packed into kernel-ready layout
# (weights pre-transposed once here, bf16 for everything that feeds the MXU).
# ----------------------------------------------------------------------------
def init_params(key, in_channels=3, out_channels=256):
    keys = iter(jax.random.split(key, 64))

    def rnd(shape, scale=0.05):
        return jax.random.normal(next(keys), shape, jnp.float32) * scale

    def conv_wmat(o, i):
        # torch (O, I, 3, 3) -> im2col GEMM matrix (9*I, O), rows (kh, kw, ic)
        w = rnd((o, i, 3, 3))
        return jnp.transpose(w, (2, 3, 1, 0)).reshape(9 * i, o).astype(jnp.bfloat16)

    def upconv_wmat(i, o):
        # torch (I, O, 2, 2) -> GEMM matrix (I, 4*O), cols (kh, kw, oc)
        w = rnd((i, o, 2, 2))
        return jnp.transpose(w, (0, 2, 3, 1)).reshape(i, 4 * o).astype(jnp.bfloat16)

    params = {
        'conv1_w': conv_wmat(64, in_channels),   'conv1_b': rnd((64,), 0.01),
        'conv2_w': conv_wmat(128, 64),           'conv2_b': rnd((128,), 0.01),
        'conv3_w': conv_wmat(256, 128),          'conv3_b': rnd((256,), 0.01),
        'up1_w': upconv_wmat(256, 128),
        'up1_b': jnp.tile(rnd((128,), 0.01), 4),
        'up2_w': upconv_wmat(128, 64),
        'up2_b': jnp.tile(rnd((64,), 0.01), 4),
        # final 1x1 conv: torch (O, I, 1, 1) -> (I, O)
        'final_w': jnp.transpose(
            rnd((out_channels, 64, 1, 1)).reshape(out_channels, 64)
        ).astype(jnp.bfloat16),
        'final_b': rnd((out_channels,), 0.01),
        'layers': [],
    }
    for _ in range(N_LAYERS):
        params['layers'].append({
            # torch weights are (out, in); stored pre-transposed (in, out), bf16
            'wqkv': rnd((3 * D_MODEL, D_MODEL)).T.astype(jnp.bfloat16),
            'bqkv': rnd((3 * D_MODEL,), 0.01).reshape(1, -1),
            'wo': rnd((D_MODEL, D_MODEL)).T.astype(jnp.bfloat16),
            'bo': rnd((D_MODEL,), 0.01).reshape(1, -1),
            'w1': rnd((D_FF, D_MODEL)).T.astype(jnp.bfloat16),
            'b1': rnd((D_FF,), 0.01).reshape(1, -1),
            'w2': rnd((D_MODEL, D_FF)).T.astype(jnp.bfloat16),
            'b2': rnd((D_MODEL,), 0.01).reshape(1, -1),
            'g1': jnp.ones((1, D_MODEL), jnp.float32),
            'be1': jnp.zeros((1, D_MODEL), jnp.float32),
            'g2': jnp.ones((1, D_MODEL), jnp.float32),
            'be2': jnp.zeros((1, D_MODEL), jnp.float32),
        })
    return params


# ----------------------------------------------------------------------------
# Full forward pass (NCHW in -> NCHW out, like the PyTorch module).
# ----------------------------------------------------------------------------
@jax.jit
def unter_forward(x_nchw, params):
    x = jnp.transpose(x_nchw, (0, 2, 3, 1)).astype(jnp.float32)     # -> NHWC

    x1 = conv3x3_relu(x, params['conv1_w'], params['conv1_b'])
    x2 = conv3x3_relu(maxpool2x2(x1), params['conv2_w'], params['conv2_b'])
    x3 = conv3x3_relu(maxpool2x2(x2), params['conv3_w'], params['conv3_b'])

    b, h, w, c = x3.shape
    tokens = x3.reshape(b, h * w, c)       # (B, S, E); same content as torch (S, B, E)
    for lp in params['layers']:
        tokens = transformer_layer(tokens, lp)
    x3_out = tokens.reshape(b, h, w, c)

    y = upconv2x2_relu(x3_out, params['up1_w'], params['up1_b'])
    y = upconv2x2_relu(y, params['up2_w'], params['up2_b'])

    bf, hf, wf, cf = y.shape
    out = pallas_matmul(y.reshape(bf * hf * wf, cf), params['final_w'],
                        params['final_b'], relu=False)               # 1x1 conv
    out = out.reshape(bf, hf, wf, -1)
    return jnp.transpose(out, (0, 3, 1, 2))                          # -> NCHW


if __name__ == "__main__":
    key_x = jax.random.PRNGKey(0)
    key_p = jax.random.PRNGKey(42)

    B, C_IN, H, W = 2, 3, 16, 16
    x = jax.random.normal(key_x, (B, C_IN, H, W), jnp.float32)
    params = init_params(key_p, in_channels=C_IN, out_channels=256)

    out = unter_forward(x, params)
    out = jax.block_until_ready(out)

    assert out.shape == (B, 256, H, W), out.shape
    assert out.dtype == jnp.float32
    assert bool(jnp.all(jnp.isfinite(out)))
    print("KERNEL_OK")
</pallas_src>

<mosaic_0001>
module attributes {stable_mosaic.version = 11 : i64} {
  func.func @_matmul_kernel(%arg0: i32, %arg1: i32, %arg2: i32, %arg3: memref<256x128xbf16, #tpu.memory_space<vmem>>, %arg4: memref<128x128xbf16, #tpu.memory_space<vmem>>, %arg5: memref<1x128xf32, #tpu.memory_space<vmem>>, %arg6: memref<256x128xf32, #tpu.memory_space<vmem>>, %arg7: memref<256x128xf32, #tpu.memory_space<vmem>>) attributes {dimension_semantics = [#tpu.dimension_semantics<parallel>, #tpu.dimension_semantics<parallel>, #tpu.dimension_semantics<arbitrary>], iteration_bounds = array<i64: 2, 1, 1>, scalar_prefetch = 0 : i64, scratch_operands = 1 : i64, tpu.core_type = #tpu.core_type<tc>, window_params = [{transform_indices = @transform_0, window_bounds = array<i64: 256, 128>}, {transform_indices = @transform_1, window_bounds = array<i64: 128, 128>}, {transform_indices = @transform_2, window_bounds = array<i64: 1, 128>}, {transform_indices = @transform_3, window_bounds = array<i64: 256, 128>}]} {
    %c0_i32 = arith.constant 0 : i32
    %0 = arith.cmpi eq, %arg2, %c0_i32 : i32
    %1 = arith.extui %0 : i1 to i32
    %c0_i32_0 = arith.constant 0 : i32
    %2 = arith.cmpi ne, %1, %c0_i32_0 : i32
    scf.if %2 {
      %cst_10 = arith.constant 0.000000e+00 : f32
      %12 = vector.broadcast %cst_10 : f32 to vector<256x128xf32>
      %c0_11 = arith.constant 0 : index
      %c0_12 = arith.constant 0 : index
      %13 = vector.load %arg7[%c0_11, %c0_12] : memref<256x128xf32, #tpu.memory_space<vmem>>, vector<256x128xf32>
      tpu.vector_store %arg7[%c0_11, %c0_12], %12 {strides = array<i32>} : memref<256x128xf32, #tpu.memory_space<vmem>>, vector<256x128xf32>,
    } else {
    }
    %c0 = arith.constant 0 : index
    %c0_1 = arith.constant 0 : index
    %3 = vector.load %arg7[%c0, %c0_1] : memref<256x128xf32, #tpu.memory_space<vmem>>, vector<256x128xf32>
    %c0_2 = arith.constant 0 : index
    %c0_3 = arith.constant 0 : index
    %4 = vector.load %arg3[%c0_2, %c0_3] : memref<256x128xbf16, #tpu.memory_space<vmem>>, vector<256x128xbf16>
    %c0_4 = arith.constant 0 : index
    %c0_5 = arith.constant 0 : index
    %5 = vector.load %arg4[%c0_4, %c0_5] : memref<128x128xbf16, #tpu.memory_space<vmem>>, vector<128x128xbf16>
    %cst = arith.constant dense<0.000000e+00> : vector<256x128xf32>
    %6 = tpu.matmul %4, %5, %cst {dimension_numbers = #tpu.dot_dimension_numbers<[1], [0], [0], [1], [0, 0, 1, 1], [], []>} : vector<256x128xbf16>, vector<128x128xbf16>, vector<256x128xf32> -> vector<256x128xf32>
    %7 = arith.addf %3, %6 : vector<256x128xf32>
    %c0_6 = arith.constant 0 : index
    %c0_7 = arith.constant 0 : index
    %8 = vector.load %arg7[%c0_6, %c0_7] : memref<256x128xf32, #tpu.memory_space<vmem>>, vector<256x128xf32>
    tpu.vector_store %arg7[%c0_6, %c0_7], %7 {strides = array<i32>} : memref<256x128xf32, #tpu.memory_space<vmem>>, vector<256x128xf32>,
    %c0_i32_8 = arith.constant 0 : i32
    %9 = arith.cmpi eq, %arg2, %c0_i32_8 : i32
    %10 = arith.extui %9 : i1 to i32
    %c0_i32_9 = arith.constant 0 : i32
    %11 = arith.cmpi ne, %10, %c0_i32_9 : i32
    scf.if %11 {
      %c0_10 = arith.constant 0 : index
      %c0_11 = arith.constant 0 : index
      %12 = vector.load %arg7[%c0_10, %c0_11] : memref<256x128xf32, #tpu.memory_space<vmem>>, vector<256x128xf32>
      %c0_12 = arith.constant 0 : index
      %c0_13 = arith.constant 0 : index
      %13 = vector.load %arg5[%c0_12, %c0_13] : memref<1x128xf32, #tpu.memory_space<vmem>>, vector<1x128xf32>
      %14 = vector.broadcast %13 : vector<1x128xf32> to vector<256x128xf32>
      %15 = arith.addf %12, %14 : vector<256x128xf32>
      %cst_14 = arith.constant 0.000000e+00 : f32
      %16 = vector.broadcast %cst_14 : f32 to vector<256x128xf32>
      %17 = arith.maximumf %15, %16 : vector<256x128xf32>
      %c0_15 = arith.constant 0 : index
      %c0_16 = arith.constant 0 : index
      %18 = vector.load %arg6[%c0_15, %c0_16] : memref<256x128xf32, #tpu.memory_space<vmem>>, vector<256x128xf32>
      tpu.vector_store %arg6[%c0_15, %c0_16], %17 {strides = array<i32>} : memref<256x128xf32, #tpu.memory_space<vmem>>, vector<256x128xf32>,
    } else {
    }
    return
  }
  func.func @transform_0(%arg0: i32, %arg1: i32, %arg2: i32) -> (i32, i32) {
    %c0_i32 = arith.constant 0 : i32
    return %arg0, %arg2 : i32, i32
  }
  func.func @transform_1(%arg0: i32, %arg1: i32, %arg2: i32) -> (i32, i32) {
    %c0_i32 = arith.constant 0 : i32
    return %arg2, %arg1 : i32, i32
  }
  func.func @transform_2(%arg0: i32, %arg1: i32, %arg2: i32) -> (i32, i32) {
    %c0_i32 = arith.constant 0 : i32
    %c0_i32_0 = arith.constant 0 : i32
    return %c0_i32, %arg1 : i32, i32
  }
  func.func @transform_3(%arg0: i32, %arg1: i32, %arg2: i32) -> (i32, i32) {
    %c0_i32 = arith.constant 0 : i32
    return %arg0, %arg1 : i32, i32
  }
}

module attributes {stable_mosaic.version = 11 : i64} {
  func.func @_maxpool_kernel(%arg0: memref<2x8x2x8x128xf32, #tpu.memory_space<vmem>>, %arg1: memref<2x8x8x64xf32, #tpu.memory_space<vmem>>) attributes {dimension_semantics = [], scalar_prefetch = 0 : i64, scratch_operands = 0 : i64, tpu.core_type = #tpu.core_type<tc>} {
    %c0 = arith.constant 0 : index
    %c0_0 = arith.constant 0 : index
    %c0_1 = arith.constant 0 : index
    %c0_2 = arith.constant 0 : index
    %c0_3 = arith.constant 0 : index
    %0 = vector.load %arg0[%c0, %c0_0, %c0_1, %c0_2, %c0_3] : memref<2x8x2x8x128xf32, #tpu.memory_space<vmem>>, vector<2x8x2x8x128xf32>
    %1 = vector.extract_strided_slice %0 {offsets = [0, 0, 0, 0, 0], sizes = [2, 8, 1, 8, 128], strides = [1, 1, 1, 1, 1]} : vector<2x8x2x8x128xf32> to vector<2x8x1x8x128xf32>
    %2 = vector.shape_cast %1 : vector<2x8x1x8x128xf32> to vector<2x8x8x128xf32>
    %3 = vector.extract_strided_slice %0 {offsets = [0, 0, 1, 0, 0], sizes = [2, 8, 1, 8, 128], strides = [1, 1, 1, 1, 1]} : vector<2x8x2x8x128xf32> to vector<2x8x1x8x128xf32>
    %4 = vector.shape_cast %3 : vector<2x8x1x8x128xf32> to vector<2x8x8x128xf32>
    %5 = arith.maximumf %2, %4 : vector<2x8x8x128xf32>
    %6 = vector.extract_strided_slice %5 {offsets = [0, 0, 0, 0], sizes = [2, 8, 8, 64], strides = [1, 1, 1, 1]} : vector<2x8x8x128xf32> to vector<2x8x8x64xf32>
    %7 = vector.extract_strided_slice %5 {offsets = [0, 0, 0, 64], sizes = [2, 8, 8, 64], strides = [1, 1, 1, 1]} : vector<2x8x8x128xf32> to vector<2x8x8x64xf32>
    %8 = arith.maximumf %6, %7 : vector<2x8x8x64xf32>
    %c0_4 = arith.constant 0 : index
    %c0_5 = arith.constant 0 : index
    %c0_6 = arith.constant 0 : index
    %c0_7 = arith.constant 0 : index
    %9 = vector.load %arg1[%c0_4, %c0_5, %c0_6, %c0_7] : memref<2x8x8x64xf32, #tpu.memory_space<vmem>>, vector<2x8x8x64xf32>
    tpu.vector_store %arg1[%c0_4, %c0_5, %c0_6, %c0_7], %8 {strides = array<i32>} : memref<2x8x8x64xf32, #tpu.memory_space<vmem>>, vector<2x8x8x64xf32>,
    return
  }
}

module attributes {stable_mosaic.version = 11 : i64} {
  func.func @_matmul_kernel(%arg0: i32, %arg1: i32, %arg2: i32, %arg3: memref<128x512xbf16, #tpu.memory_space<vmem>>, %arg4: memref<512x128xbf16, #tpu.memory_space<vmem>>, %arg5: memref<1x128xf32, #tpu.memory_space<vmem>>, %arg6: memref<128x128xf32, #tpu.memory_space<vmem>>, %arg7: memref<128x128xf32, #tpu.memory_space<vmem>>) attributes {dimension_semantics = [#tpu.dimension_semantics<parallel>, #tpu.dimension_semantics<parallel>, #tpu.dimension_semantics<arbitrary>], iteration_bounds = array<i64: 1, 1, 2>, scalar_prefetch = 0 : i64, scratch_operands = 1 : i64, tpu.core_type = #tpu.core_type<tc>, window_params = [{transform_indices = @transform_0, window_bounds = array<i64: 128, 512>}, {transform_indices = @transform_1, window_bounds = array<i64: 512, 128>}, {transform_indices = @transform_2, window_bounds = array<i64: 1, 128>}, {transform_indices = @transform_3, window_bounds = array<i64: 128, 128>}]} {
    %c0_i32 = arith.constant 0 : i32
    %0 = arith.cmpi eq, %arg2, %c0_i32 : i32
    %1 = arith.extui %0 : i1 to i32
    %c0_i32_0 = arith.constant 0 : i32
    %2 = arith.cmpi ne, %1, %c0_i32_0 : i32
    scf.if %2 {
      %cst_9 = arith.constant 0.000000e+00 : f32
      %12 = vector.broadcast %cst_9 : f32 to vector<128x128xf32>
      %c0_10 = arith.constant 0 : index
      %c0_11 = arith.constant 0 : index
      %13 = vector.load %arg7[%c0_10, %c0_11] : memref<128x128xf32, #tpu.memory_space<vmem>>, vector<128x128xf32>
      tpu.vector_store %arg7[%c0_10, %c0_11], %12 {strides = array<i32>} : memref<128x128xf32, #tpu.memory_space<vmem>>, vector<128x128xf32>,
    } else {
    }
    %c0 = arith.constant 0 : index
    %c0_1 = arith.constant 0 : index
    %3 = vector.load %arg7[%c0, %c0_1] : memref<128x128xf32, #tpu.memory_space<vmem>>, vector<128x128xf32>
    %c0_2 = arith.constant 0 : index
    %c0_3 = arith.constant 0 : index
    %4 = vector.load %arg3[%c0_2, %c0_3] : memref<128x512xbf16, #tpu.memory_space<vmem>>, vector<128x512xbf16>
    %c0_4 = arith.constant 0 : index
    %c0_5 = arith.constant 0 : index
    %5 = vector.load %arg4[%c0_4, %c0_5] : memref<512x128xbf16, #tpu.memory_space<vmem>>, vector<512x128xbf16>
    %cst = arith.constant dense<0.000000e+00> : vector<128x128xf32>
    %6 = tpu.matmul %4, %5, %cst {dimension_numbers = #tpu.dot_dimension_numbers<[1], [0], [0], [1], [0, 0, 1, 1], [], []>} : vector<128x512xbf16>, vector<512x128xbf16>, vector<128x128xf32> -> vector<128x128xf32>
    %7 = arith.addf %3, %6 : vector<128x128xf32>
    %c0_6 = arith.constant 0 : index
    %c0_7 = arith.constant 0 : index
    %8 = vector.load %arg7[%c0_6, %c0_7] : memref<128x128xf32, #tpu.memory_space<vmem>>, vector<128x128xf32>
    tpu.vector_store %arg7[%c0_6, %c0_7], %7 {strides = array<i32>} : memref<128x128xf32, #tpu.memory_space<vmem>>, vector<128x128xf32>,
    %c1_i32 = arith.constant 1 : i32
    %9 = arith.cmpi eq, %arg2, %c1_i32 : i32
    %10 = arith.extui %9 : i1 to i32
    %c0_i32_8 = arith.constant 0 : i32
    %11 = arith.cmpi ne, %10, %c0_i32_8 : i32
    scf.if %11 {
      %c0_9 = arith.constant 0 : index
      %c0_10 = arith.constant 0 : index
      %12 = vector.load %arg7[%c0_9, %c0_10] : memref<128x128xf32, #tpu.memory_space<vmem>>, vector<128x128xf32>
      %c0_11 = arith.constant 0 : index
      %c0_12 = arith.constant 0 : index
      %13 = vector.load %arg5[%c0_11, %c0_12] : memref<1x128xf32, #tpu.memory_space<vmem>>, vector<1x128xf32>
      %14 = vector.broadcast %13 : vector<1x128xf32> to vector<128x128xf32>
      %15 = arith.addf %12, %14 : vector<128x128xf32>
      %cst_13 = arith.constant 0.000000e+00 : f32
      %16 = vector.broadcast %cst_13 : f32 to vector<128x128xf32>
      %17 = arith.maximumf %15, %16 : vector<128x128xf32>
      %c0_14 = arith.constant 0 : index
      %c0_15 = arith.constant 0 : index
      %18 = vector.load %arg6[%c0_14, %c0_15] : memref<128x128xf32, #tpu.memory_space<vmem>>, vector<128x128xf32>
      tpu.vector_store %arg6[%c0_14, %c0_15], %17 {strides = array<i32>} : memref<128x128xf32, #tpu.memory_space<vmem>>, vector<128x128xf32>,
    } else {
    }
    return
  }
  func.func @transform_0(%arg0: i32, %arg1: i32, %arg2: i32) -> (i32, i32) {
    %c0_i32 = arith.constant 0 : i32
    return %arg0, %arg2 : i32, i32
  }
  func.func @transform_1(%arg0: i32, %arg1: i32, %arg2: i32) -> (i32, i32) {
    %c0_i32 = arith.constant 0 : i32
    return %arg2, %arg1 : i32, i32
  }
  func.func @transform_2(%arg0: i32, %arg1: i32, %arg2: i32) -> (i32, i32) {
    %c0_i32 = arith.constant 0 : i32
    %c0_i32_0 = arith.constant 0 : i32
    return %c0_i32, %arg1 : i32, i32
  }
  func.func @transform_3(%arg0: i32, %arg1: i32, %arg2: i32) -> (i32, i32) {
    %c0_i32 = arith.constant 0 : i32
    return %arg0, %arg1 : i32, i32
  }
}

module attributes {stable_mosaic.version = 11 : i64} {
  func.func @_maxpool_kernel(%arg0: memref<2x4x2x4x256xf32, #tpu.memory_space<vmem>>, %arg1: memref<2x4x4x128xf32, #tpu.memory_space<vmem>>) attributes {dimension_semantics = [], scalar_prefetch = 0 : i64, scratch_operands = 0 : i64, tpu.core_type = #tpu.core_type<tc>} {
    %c0 = arith.constant 0 : index
    %c0_0 = arith.constant 0 : index
    %c0_1 = arith.constant 0 : index
    %c0_2 = arith.constant 0 : index
    %c0_3 = arith.constant 0 : index
    %0 = vector.load %arg0[%c0, %c0_0, %c0_1, %c0_2, %c0_3] : memref<2x4x2x4x256xf32, #tpu.memory_space<vmem>>, vector<2x4x2x4x256xf32>
    %1 = vector.extract_strided_slice %0 {offsets = [0, 0, 0, 0, 0], sizes = [2, 4, 1, 4, 256], strides = [1, 1, 1, 1, 1]} : vector<2x4x2x4x256xf32> to vector<2x4x1x4x256xf32>
    %2 = vector.shape_cast %1 : vector<2x4x1x4x256xf32> to vector<2x4x4x256xf32>
    %3 = vector.extract_strided_slice %0 {offsets = [0, 0, 1, 0, 0], sizes = [2, 4, 1, 4, 256], strides = [1, 1, 1, 1, 1]} : vector<2x4x2x4x256xf32> to vector<2x4x1x4x256xf32>
    %4 = vector.shape_cast %3 : vector<2x4x1x4x256xf32> to vector<2x4x4x256xf32>
    %5 = arith.maximumf %2, %4 : vector<2x4x4x256xf32>
    %6 = vector.extract_strided_slice %5 {offsets = [0, 0, 0, 0], sizes = [2, 4, 4, 128], strides = [1, 1, 1, 1]} : vector<2x4x4x256xf32> to vector<2x4x4x128xf32>
    %7 = vector.extract_strided_slice %5 {offsets = [0, 0, 0, 128], sizes = [2, 4, 4, 128], strides = [1, 1, 1, 1]} : vector<2x4x4x256xf32> to vector<2x4x4x128xf32>
    %8 = arith.maximumf %6, %7 : vector<2x4x4x128xf32>
    %c0_4 = arith.constant 0 : index
    %c0_5 = arith.constant 0 : index
    %c0_6 = arith.constant 0 : index
    %c0_7 = arith.constant 0 : index
    %9 = vector.load %arg1[%c0_4, %c0_5, %c0_6, %c0_7] : memref<2x4x4x128xf32, #tpu.memory_space<vmem>>, vector<2x4x4x128xf32>
    tpu.vector_store %arg1[%c0_4, %c0_5, %c0_6, %c0_7], %8 {strides = array<i32>} : memref<2x4x4x128xf32, #tpu.memory_space<vmem>>, vector<2x4x4x128xf32>,
    return
  }
}

module attributes {stable_mosaic.version = 11 : i64} {
  func.func @_matmul_kernel(%arg0: i32, %arg1: i32, %arg2: i32, %arg3: memref<32x512xbf16, #tpu.memory_space<vmem>>, %arg4: memref<512x256xbf16, #tpu.memory_space<vmem>>, %arg5: memref<1x256xf32, #tpu.memory_space<vmem>>, %arg6: memref<32x256xf32, #tpu.memory_space<vmem>>, %arg7: memref<32x256xf32, #tpu.memory_space<vmem>>) attributes {dimension_semantics = [#tpu.dimension_semantics<parallel>, #tpu.dimension_semantics<parallel>, #tpu.dimension_semantics<arbitrary>], iteration_bounds = array<i64: 1, 1, 3>, scalar_prefetch = 0 : i64, scratch_operands = 1 : i64, tpu.core_type = #tpu.core_type<tc>, window_params = [{transform_indices = @transform_0, window_bounds = array<i64: 32, 512>}, {transform_indices = @transform_1, window_bounds = array<i64: 512, 256>}, {transform_indices = @transform_2, window_bounds = array<i64: 1, 256>}, {transform_indices = @transform_3, window_bounds = array<i64: 32, 256>}]} {
    %c0_i32 = arith.constant 0 : i32
    %0 = arith.cmpi eq, %arg2, %c0_i32 : i32
    %1 = arith.extui %0 : i1 to i32
    %c0_i32_0 = arith.constant 0 : i32
    %2 = arith.cmpi ne, %1, %c0_i32_0 : i32
    scf.if %2 {
      %cst_9 = arith.constant 0.000000e+00 : f32
      %12 = vector.broadcast %cst_9 : f32 to vector<32x256xf32>
      %c0_10 = arith.constant 0 : index
      %c0_11 = arith.constant 0 : index
      %13 = vector.load %arg7[%c0_10, %c0_11] : memref<32x256xf32, #tpu.memory_space<vmem>>, vector<32x256xf32>
      tpu.vector_store %arg7[%c0_10, %c0_11], %12 {strides = array<i32>} : memref<32x256xf32, #tpu.memory_space<vmem>>, vector<32x256xf32>,
    } else {
    }
    %c0 = arith.constant 0 : index
    %c0_1 = arith.constant 0 : index
    %3 = vector.load %arg7[%c0, %c0_1] : memref<32x256xf32, #tpu.memory_space<vmem>>, vector<32x256xf32>
    %c0_2 = arith.constant 0 : index
    %c0_3 = arith.constant 0 : index
    %4 = vector.load %arg3[%c0_2, %c0_3] : memref<32x512xbf16, #tpu.memory_space<vmem>>, vector<32x512xbf16>
    %c0_4 = arith.constant 0 : index
    %c0_5 = arith.constant 0 : index
    %5 = vector.load %arg4[%c0_4, %c0_5] : memref<512x256xbf16, #tpu.memory_space<vmem>>, vector<512x256xbf16>
    %cst = arith.constant dense<0.000000e+00> : vector<32x256xf32>
    %6 = tpu.matmul %4, %5, %cst {dimension_numbers = #tpu.dot_dimension_numbers<[1], [0], [0], [1], [0, 0, 1, 1], [], []>} : vector<32x512xbf16>, vector<512x256xbf16>, vector<32x256xf32> -> vector<32x256xf32>
    %7 = arith.addf %3, %6 : vector<32x256xf32>
    %c0_6 = arith.constant 0 : index
    %c0_7 = arith.constant 0 : index
    %8 = vector.load %arg7[%c0_6, %c0_7] : memref<32x256xf32, #tpu.memory_space<vmem>>, vector<32x256xf32>
    tpu.vector_store %arg7[%c0_6, %c0_7], %7 {strides = array<i32>} : memref<32x256xf32, #tpu.memory_space<vmem>>, vector<32x256xf32>,
    %c2_i32 = arith.constant 2 : i32
    %9 = arith.cmpi eq, %arg2, %c2_i32 : i32
    %10 = arith.extui %9 : i1 to i32
    %c0_i32_8 = arith.constant 0 : i32
    %11 = arith.cmpi ne, %10, %c0_i32_8 : i32
    scf.if %11 {
      %c0_9 = arith.constant 0 : index
      %c0_10 = arith.constant 0 : index
      %12 = vector.load %arg7[%c0_9, %c0_10] : memref<32x256xf32, #tpu.memory_space<vmem>>, vector<32x256xf32>
      %c0_11 = arith.constant 0 : index
      %c0_12 = arith.constant 0 : index
      %13 = vector.load %arg5[%c0_11, %c0_12] : memref<1x256xf32, #tpu.memory_space<vmem>>, vector<1x256xf32>
      %14 = vector.broadcast %13 : vector<1x256xf32> to vector<32x256xf32>
      %15 = arith.addf %12, %14 : vector<32x256xf32>
      %cst_13 = arith.constant 0.000000e+00 : f32
      %16 = vector.broadcast %cst_13 : f32 to vector<32x256xf32>
      %17 = arith.maximumf %15, %16 : vector<32x256xf32>
      %c0_14 = arith.constant 0 : index
      %c0_15 = arith.constant 0 : index
      %18 = vector.load %arg6[%c0_14, %c0_15] : memref<32x256xf32, #tpu.memory_space<vmem>>, vector<32x256xf32>
      tpu.vector_store %arg6[%c0_14, %c0_15], %17 {strides = array<i32>} : memref<32x256xf32, #tpu.memory_space<vmem>>, vector<32x256xf32>,
    } else {
    }
    return
  }
  func.func @transform_0(%arg0: i32, %arg1: i32, %arg2: i32) -> (i32, i32) {
    %c0_i32 = arith.constant 0 : i32
    return %arg0, %arg2 : i32, i32
  }
  func.func @transform_1(%arg0: i32, %arg1: i32, %arg2: i32) -> (i32, i32) {
    %c0_i32 = arith.constant 0 : i32
    return %arg2, %arg1 : i32, i32
  }
  func.func @transform_2(%arg0: i32, %arg1: i32, %arg2: i32) -> (i32, i32) {
    %c0_i32 = arith.constant 0 : i32
    %c0_i32_0 = arith.constant 0 : i32
    return %c0_i32, %arg1 : i32, i32
  }
  func.func @transform_3(%arg0: i32, %arg1: i32, %arg2: i32) -> (i32, i32) {
    %c0_i32 = arith.constant 0 : i32
    return %arg0, %arg1 : i32, i32
  }
}

module attributes {stable_mosaic.version = 11 : i64} {
  func.func @_encoder_layer_kernel(%arg0: i32, %arg1: memref<1x16x256xf32, #tpu.memory_space<vmem>>, %arg2: memref<256x768xbf16, #tpu.memory_space<vmem>>, %arg3: memref<1x768xf32, #tpu.memory_space<vmem>>, %arg4: memref<256x256xbf16, #tpu.memory_space<vmem>>, %arg5: memref<1x256xf32, #tpu.memory_space<vmem>>, %arg6: memref<1x256xf32, #tpu.memory_space<vmem>>, %arg7: memref<1x256xf32, #tpu.memory_space<vmem>>, %arg8: memref<256x512xbf16, #tpu.memory_space<vmem>>, %arg9: memref<1x512xf32, #tpu.memory_space<vmem>>, %arg10: memref<512x256xbf16, #tpu.memory_space<vmem>>, %arg11: memref<1x256xf32, #tpu.memory_space<vmem>>, %arg12: memref<1x256xf32, #tpu.memory_space<vmem>>, %arg13: memref<1x256xf32, #tpu.memory_space<vmem>>, %arg14: memref<1x16x256xf32, #tpu.memory_space<vmem>>) attributes {dimension_semantics = [#tpu.dimension_semantics<parallel>], iteration_bounds = array<i64: 2>, scalar_prefetch = 0 : i64, scratch_operands = 0 : i64, tpu.core_type = #tpu.core_type<tc>, window_params = [{transform_indices = @transform_0, window_bounds = array<i64: 1, 16, 256>}, {pipeline_mode = #tpu.pipeline_mode<synchronous>, transform_indices = @transform_1, window_bounds = array<i64: 256, 768>}, {pipeline_mode = #tpu.pipeline_mode<synchronous>, transform_indices = @transform_2, window_bounds = array<i64: 1, 768>}, {pipeline_mode = #tpu.pipeline_mode<synchronous>, transform_indices = @transform_3, window_bounds = array<i64: 256, 256>}, {pipeline_mode = #tpu.pipeline_mode<synchronous>, transform_indices = @transform_4, window_bounds = array<i64: 1, 256>}, {pipeline_mode = #tpu.pipeline_mode<synchronous>, transform_indices = @transform_5, window_bounds = array<i64: 1, 256>}, {pipeline_mode = #tpu.pipeline_mode<synchronous>, transform_indices = @transform_6, window_bounds = array<i64: 1, 256>}, {pipeline_mode = #tpu.pipeline_mode<synchronous>, transform_indices = @transform_7, window_bounds = array<i64: 256, 512>}, {pipeline_mode = #tpu.pipeline_mode<synchronous>, transform_indices = @transform_8, window_bounds = array<i64: 1, 512>}, {pipeline_mode = #tpu.pipeline_mode<synchronous>, transform_indices = @transform_9, window_bounds = array<i64: 512, 256>}, {pipeline_mode = #tpu.pipeline_mode<synchronous>, transform_indices = @transform_10, window_bounds = array<i64: 1, 256>}, {pipeline_mode = #tpu.pipeline_mode<synchronous>, transform_indices = @transform_11, window_bounds = array<i64: 1, 256>}, {pipeline_mode = #tpu.pipeline_mode<synchronous>, transform_indices = @transform_12, window_bounds = array<i64: 1, 256>}, {transform_indices = @transform_13, window_bounds = array<i64: 1, 16, 256>}]} {
    %c0 = arith.constant 0 : index
    %c0_0 = arith.constant 0 : index
    %c0_1 = arith.constant 0 : index
    %0 = vector.load %arg1[%c0, %c0_0, %c0_1] : memref<1x16x256xf32, #tpu.memory_space<vmem>>, vector<1x16x256xf32>
    %1 = vector.shape_cast %0 : vector<1x16x256xf32> to vector<16x256xf32>
    %2 = arith.truncf %1 : vector<16x256xf32> to vector<16x256xbf16>
    %c0_2 = arith.constant 0 : index
    %c0_3 = arith.constant 0 : index
    %3 = vector.load %arg2[%c0_2, %c0_3] : memref<256x768xbf16, #tpu.memory_space<vmem>>, vector<256x768xbf16>
    %cst = arith.constant dense<0.000000e+00> : vector<16x768xf32>
    %4 = tpu.matmul %2, %3, %cst {dimension_numbers = #tpu.dot_dimension_numbers<[1], [0], [0], [1], [0, 0, 1, 1], [], []>} : vector<16x256xbf16>, vector<256x768xbf16>, vector<16x768xf32> -> vector<16x768xf32>
    %c0_4 = arith.constant 0 : index
    %c0_5 = arith.constant 0 : index
    %5 = vector.load %arg3[%c0_4, %c0_5] : memref<1x768xf32, #tpu.memory_space<vmem>>, vector<1x768xf32>
    %6 = vector.broadcast %5 : vector<1x768xf32> to vector<16x768xf32>
    %7 = arith.addf %4, %6 : vector<16x768xf32>
    %8 = vector.extract_strided_slice %7 {offsets = [0, 0], sizes = [16, 256], strides = [1, 1]} : vector<16x768xf32> to vector<16x256xf32>
    %9 = vector.extract_strided_slice %7 {offsets = [0, 256], sizes = [16, 256], strides = [1, 1]} : vector<16x768xf32> to vector<16x256xf32>
    %10 = vector.extract_strided_slice %7 {offsets = [0, 512], sizes = [16, 256], strides = [1, 1]} : vector<16x768xf32> to vector<16x256xf32>
    %cst_6 = arith.constant 0.000000e+00 : f32
    %11 = vector.broadcast %cst_6 : f32 to vector<16x256xf32>
    %12 = vector.extract_strided_slice %8 {offsets = [0, 0], sizes = [16, 32], strides = [1, 1]} : vector<16x256xf32> to vector<16x32xf32>
    %13 = arith.truncf %12 : vector<16x32xf32> to vector<16x32xbf16>
    %14 = vector.extract_strided_slice %9 {offsets = [0, 0], sizes = [16, 32], strides = [1, 1]} : vector<16x256xf32> to vector<16x32xf32>
    %15 = arith.truncf %14 : vector<16x32xf32> to vector<16x32xbf16>
    %16 = vector.extract_strided_slice %10 {offsets = [0, 0], sizes = [16, 32], strides = [1, 1]} : vector<16x256xf32> to vector<16x32xf32>
    %17 = arith.truncf %16 : vector<16x32xf32> to vector<16x32xbf16>
    %cst_7 = arith.constant dense<0.000000e+00> : vector<16x16xf32>
    %18 = tpu.matmul %13, %15, %cst_7 {dimension_numbers = #tpu.dot_dimension_numbers<[1], [1], [0], [0], [0, 0, 1, 0], [], []>} : vector<16x32xbf16>, vector<16x32xbf16>, vector<16x16xf32> -> vector<16x16xf32>
    %cst_8 = arith.constant 0.176776692 : f32
    %19 = vector.broadcast %cst_8 : f32 to vector<16x16xf32>
    %20 = arith.mulf %18, %19 : vector<16x16xf32>
    %cst_9 = arith.constant dense<0xFF800000> : vector<16xf32>
    %21 = vector.multi_reduction <maximumf>, %20, %cst_9 [1] : vector<16x16xf32> to vector<16xf32>
    %22 = vector.shape_cast %21 : vector<16xf32> to vector<16x1xf32>
    %23 = vector.broadcast %22 : vector<16x1xf32> to vector<16x16xf32>
    %24 = arith.subf %20, %23 : vector<16x16xf32>
    %25 = math.exp %24 : vector<16x16xf32>
    %cst_10 = arith.constant dense<0.000000e+00> : vector<16xf32>
    %26 = vector.multi_reduction <add>, %25, %cst_10 [1] : vector<16x16xf32> to vector<16xf32>
    %27 = vector.shape_cast %26 : vector<16xf32> to vector<16x1xf32>
    %28 = tpu.reciprocal %27 {approx = true} : vector<16x1xf32> -> vector<16x1xf32>
    %29 = vector.broadcast %28 : vector<16x1xf32> to vector<16x16xf32>
    %30 = arith.mulf %25, %29 : vector<16x16xf32>
    %31 = arith.truncf %30 : vector<16x16xf32> to vector<16x16xbf16>
    %cst_11 = arith.constant dense<0.000000e+00> : vector<16x32xf32>
    %32 = tpu.matmul %31, %17, %cst_11 {dimension_numbers = #tpu.dot_dimension_numbers<[1], [0], [0], [1], [0, 0, 1, 1], [], []>} : vector<16x16xbf16>, vector<16x32xbf16>, vector<16x32xf32> -> vector<16x32xf32>
    %33 = arith.truncf %32 : vector<16x32xf32> to vector<16x32xbf16>
    %c0_12 = arith.constant 0 : index
    %c0_13 = arith.constant 0 : index
    %34 = vector.load %arg4[%c0_12, %c0_13] : memref<256x256xbf16, #tpu.memory_space<vmem>>, vector<32x256xbf16>
    %cst_14 = arith.constant dense<0.000000e+00> : vector<16x256xf32>
    %35 = tpu.matmul %33, %34, %cst_14 {dimension_numbers = #tpu.dot_dimension_numbers<[1], [0], [0], [1], [0, 0, 1, 1], [], []>} : vector<16x32xbf16>, vector<32x256xbf16>, vector<16x256xf32> -> vector<16x256xf32>
    %36 = arith.addf %11, %35 : vector<16x256xf32>
    %37 = vector.extract_strided_slice %8 {offsets = [0, 32], sizes = [16, 32], strides = [1, 1]} : vector<16x256xf32> to vector<16x32xf32>
    %38 = arith.truncf %37 : vector<16x32xf32> to vector<16x32xbf16>
    %39 = vector.extract_strided_slice %9 {offsets = [0, 32], sizes = [16, 32], strides = [1, 1]} : vector<16x256xf32> to vector<16x32xf32>
    %40 = arith.truncf %39 : vector<16x32xf32> to vector<16x32xbf16>
    %41 = vector.extract_strided_slice %10 {offsets = [0, 32], sizes = [16, 32], strides = [1, 1]} : vector<16x256xf32> to vector<16x32xf32>
    %42 = arith.truncf %41 : vector<16x32xf32> to vector<16x32xbf16>
    %cst_15 = arith.constant dense<0.000000e+00> : vector<16x16xf32>
    %43 = tpu.matmul %38, %40, %cst_15 {dimension_numbers = #tpu.dot_dimension_numbers<[1], [1], [0], [0], [0, 0, 1, 0], [], []>} : vector<16x32xbf16>, vector<16x32xbf16>, vector<16x16xf32> -> vector<16x16xf32>
    %cst_16 = arith.constant 0.176776692 : f32
    %44 = vector.broadcast %cst_16 : f32 to vector<16x16xf32>
    %45 = arith.mulf %43, %44 : vector<16x16xf32>
    %cst_17 = arith.constant dense<0xFF800000> : vector<16xf32>
    %46 = vector.multi_reduction <maximumf>, %45, %cst_17 [1] : vector<16x16xf32> to vector<16xf32>
    %47 = vector.shape_cast %46 : vector<16xf32> to vector<16x1xf32>
    %48 = vector.broadcast %47 : vector<16x1xf32> to vector<16x16xf32>
    %49 = arith.subf %45, %48 : vector<16x16xf32>
    %50 = math.exp %49 : vector<16x16xf32>
    %cst_18 = arith.constant dense<0.000000e+00> : vector<16xf32>
    %51 = vector.multi_reduction <add>, %50, %cst_18 [1] : vector<16x16xf32> to vector<16xf32>
    %52 = vector.shape_cast %51 : vector<16xf32> to vector<16x1xf32>
    %53 = tpu.reciprocal %52 {approx = true} : vector<16x1xf32> -> vector<16x1xf32>
    %54 = vector.broadcast %53 : vector<16x1xf32> to vector<16x16xf32>
    %55 = arith.mulf %50, %54 : vector<16x16xf32>
    %56 = arith.truncf %55 : vector<16x16xf32> to vector<16x16xbf16>
    %cst_19 = arith.constant dense<0.000000e+00> : vector<16x32xf32>
    %57 = tpu.matmul %56, %42, %cst_19 {dimension_numbers = #tpu.dot_dimension_numbers<[1], [0], [0], [1], [0, 0, 1, 1], [], []>} : vector<16x16xbf16>, vector<16x32xbf16>, vector<16x32xf32> -> vector<16x32xf32>
    %58 = arith.truncf %57 : vector<16x32xf32> to vector<16x32xbf16>
    %c32 = arith.constant 32 : index
    %c0_20 = arith.constant 0 : index
    %59 = vector.load %arg4[%c32, %c0_20] : memref<256x256xbf16, #tpu.memory_space<vmem>>, vector<32x256xbf16>
    %cst_21 = arith.constant dense<0.000000e+00> : vector<16x256xf32>
    %60 = tpu.matmul %58, %59, %cst_21 {dimension_numbers = #tpu.dot_dimension_numbers<[1], [0], [0], [1], [0, 0, 1, 1], [], []>} : vector<16x32xbf16>, vector<32x256xbf16>, vector<16x256xf32> -> vector<16x256xf32>
    %61 = arith.addf %36, %60 : vector<16x256xf32>
    %62 = vector.extract_strided_slice %8 {offsets = [0, 64], sizes = [16, 32], strides = [1, 1]} : vector<16x256xf32> to vector<16x32xf32>
    %63 = arith.truncf %62 : vector<16x32xf32> to vector<16x32xbf16>
    %64 = vector.extract_strided_slice %9 {offsets = [0, 64], sizes = [16, 32], strides = [1, 1]} : vector<16x256xf32> to vector<16x32xf32>
    %65 = arith.truncf %64 : vector<16x32xf32> to vector<16x32xbf16>
    %66 = vector.extract_strided_slice %10 {offsets = [0, 64], sizes = [16, 32], strides = [1, 1]} : vector<16x256xf32> to vector<16x32xf32>
    %67 = arith.truncf %66 : vector<16x32xf32> to vector<16x32xbf16>
    %cst_22 = arith.constant dense<0.000000e+00> : vector<16x16xf32>
    %68 = tpu.matmul %63, %65, %cst_22 {dimension_numbers = #tpu.dot_dimension_numbers<[1], [1], [0], [0], [0, 0, 1, 0], [], []>} : vector<16x32xbf16>, vector<16x32xbf16>, vector<16x16xf32> -> vector<16x16xf32>
    %cst_23 = arith.constant 0.176776692 : f32
    %69 = vector.broadcast %cst_23 : f32 to vector<16x16xf32>
    %70 = arith.mulf %68, %69 : vector<16x16xf32>
    %cst_24 = arith.constant dense<0xFF800000> : vector<16xf32>
    %71 = vector.multi_reduction <maximumf>, %70, %cst_24 [1] : vector<16x16xf32> to vector<16xf32>
    %72 = vector.shape_cast %71 : vector<16xf32> to vector<16x1xf32>
    %73 = vector.broadcast %72 : vector<16x1xf32> to vector<16x16xf32>
    %74 = arith.subf %70, %73 : vector<16x16xf32>
    %75 = math.exp %74 : vector<16x16xf32>
    %cst_25 = arith.constant dense<0.000000e+00> : vector<16xf32>
    %76 = vector.multi_reduction <add>, %75, %cst_25 [1] : vector<16x16xf32> to vector<16xf32>
    %77 = vector.shape_cast %76 : vector<16xf32> to vector<16x1xf32>
    %78 = tpu.reciprocal %77 {approx = true} : vector<16x1xf32> -> vector<16x1xf32>
    %79 = vector.broadcast %78 : vector<16x1xf32> to vector<16x16xf32>
    %80 = arith.mulf %75, %79 : vector<16x16xf32>
    %81 = arith.truncf %80 : vector<16x16xf32> to vector<16x16xbf16>
    %cst_26 = arith.constant dense<0.000000e+00> : vector<16x32xf32>
    %82 = tpu.matmul %81, %67, %cst_26 {dimension_numbers = #tpu.dot_dimension_numbers<[1], [0], [0], [1], [0, 0, 1, 1], [], []>} : vector<16x16xbf16>, vector<16x32xbf16>, vector<16x32xf32> -> vector<16x32xf32>
    %83 = arith.truncf %82 : vector<16x32xf32> to vector<16x32xbf16>
    %c64 = arith.constant 64 : index
    %c0_27 = arith.constant 0 : index
    %84 = vector.load %arg4[%c64, %c0_27] : memref<256x256xbf16, #tpu.memory_space<vmem>>, vector<32x256xbf16>
    %cst_28 = arith.constant dense<0.000000e+00> : vector<16x256xf32>
    %85 = tpu.matmul %83, %84, %cst_28 {dimension_numbers = #tpu.dot_dimension_numbers<[1], [0], [0], [1], [0, 0, 1, 1], [], []>} : vector<16x32xbf16>, vector<32x256xbf16>, vector<16x256xf32> -> vector<16x256xf32>
    %86 = arith.addf %61, %85 : vector<16x256xf32>
    %87 = vector.extract_strided_slice %8 {offsets = [0, 96], sizes = [16, 32], strides = [1, 1]} : vector<16x256xf32> to vector<16x32xf32>
    %88 = arith.truncf %87 : vector<16x32xf32> to vector<16x32xbf16>
    %89 = vector.extract_strided_slice %9 {offsets = [0, 96], sizes = [16, 32], strides = [1, 1]} : vector<16x256xf32> to vector<16x32xf32>
    %90 = arith.truncf %89 : vector<16x32xf32> to vector<16x32xbf16>
    %91 = vector.extract_strided_slice %10 {offsets = [0, 96], sizes = [16, 32], strides = [1, 1]} : vector<16x256xf32> to vector<16x32xf32>
    %92 = arith.truncf %91 : vector<16x32xf32> to vector<16x32xbf16>
    %cst_29 = arith.constant dense<0.000000e+00> : vector<16x16xf32>
    %93 = tpu.matmul %88, %90, %cst_29 {dimension_numbers = #tpu.dot_dimension_numbers<[1], [1], [0], [0], [0, 0, 1, 0], [], []>} : vector<16x32xbf16>, vector<16x32xbf16>, vector<16x16xf32> -> vector<16x16xf32>
    %cst_30 = arith.constant 0.176776692 : f32
    %94 = vector.broadcast %cst_30 : f32 to vector<16x16xf32>
    %95 = arith.mulf %93, %94 : vector<16x16xf32>
    %cst_31 = arith.constant dense<0xFF800000> : vector<16xf32>
    %96 = vector.multi_reduction <maximumf>, %95, %cst_31 [1] : vector<16x16xf32> to vector<16xf32>
    %97 = vector.shape_cast %96 : vector<16xf32> to vector<16x1xf32>
    %98 = vector.broadcast %97 : vector<16x1xf32> to vector<16x16xf32>
    %99 = arith.subf %95, %98 : vector<16x16xf32>
    %100 = math.exp %99 : vector<16x16xf32>
    %cst_32 = arith.constant dense<0.000000e+00> : vector<16xf32>
    %101 = vector.multi_reduction <add>, %100, %cst_32 [1] : vector<16x16xf32> to vector<16xf32>
    %102 = vector.shape_cast %101 : vector<16xf32> to vector<16x1xf32>
    %103 = tpu.reciprocal %102 {approx = true} : vector<16x1xf32> -> vector<16x1xf32>
    %104 = vector.broadcast %103 : vector<16x1xf32> to vector<16x16xf32>
    %105 = arith.mulf %100, %104 : vector<16x16xf32>
    %106 = arith.truncf %105 : vector<16x16xf32> to vector<16x16xbf16>
    %cst_33 = arith.constant dense<0.000000e+00> : vector<16x32xf32>
    %107 = tpu.matmul %106, %92, %cst_33 {dimension_numbers = #tpu.dot_dimension_numbers<[1], [0], [0], [1], [0, 0, 1, 1], [], []>} : vector<16x16xbf16>, vector<16x32xbf16>, vector<16x32xf32> -> vector<16x32xf32>
    %108 = arith.truncf %107 : vector<16x32xf32> to vector<16x32xbf16>
    %c96 = arith.constant 96 : index
    %c0_34 = arith.constant 0 : index
    %109 = vector.load %arg4[%c96, %c0_34] : memref<256x256xbf16, #tpu.memory_space<vmem>>, vector<32x256xbf16>
    %cst_35 = arith.constant dense<0.000000e+00> : vector<16x256xf32>
    %110 = tpu.matmul %108, %109, %cst_35 {dimension_numbers = #tpu.dot_dimension_numbers<[1], [0], [0], [1], [0, 0, 1, 1], [], []>} : vector<16x32xbf16>, vector<32x256xbf16>, vector<16x256xf32> -> vector<16x256xf32>
    %111 = arith.addf %86, %110 : vector<16x256xf32>
    %112 = vector.extract_strided_slice %8 {offsets = [0, 128], sizes = [16, 32], strides = [1, 1]} : vector<16x256xf32> to vector<16x32xf32>
    %113 = arith.truncf %112 : vector<16x32xf32> to vector<16x32xbf16>
    %114 = vector.extract_strided_slice %9 {offsets = [0, 128], sizes = [16, 32], strides = [1, 1]} : vector<16x256xf32> to vector<16x32xf32>
    %115 = arith.truncf %114 : vector<16x32xf32> to vector<16x32xbf16>
    %116 = vector.extract_strided_slice %10 {offsets = [0, 128], sizes = [16, 32], strides = [1, 1]} : vector<16x256xf32> to vector<16x32xf32>
    %117 = arith.truncf %116 : vector<16x32xf32> to vector<16x32xbf16>
    %cst_36 = arith.constant dense<0.000000e+00> : vector<16x16xf32>
    %118 = tpu.matmul %113, %115, %cst_36 {dimension_numbers = #tpu.dot_dimension_numbers<[1], [1], [0], [0], [0, 0, 1, 0], [], []>} : vector<16x32xbf16>, vector<16x32xbf16>, vector<16x16xf32> -> vector<16x16xf32>
    %cst_37 = arith.constant 0.176776692 : f32
    %119 = vector.broadcast %cst_37 : f32 to vector<16x16xf32>
    %120 = arith.mulf %118, %119 : vector<16x16xf32>
    %cst_38 = arith.constant dense<0xFF800000> : vector<16xf32>
    %121 = vector.multi_reduction <maximumf>, %120, %cst_38 [1] : vector<16x16xf32> to vector<16xf32>
    %122 = vector.shape_cast %121 : vector<16xf32> to vector<16x1xf32>
    %123 = vector.broadcast %122 : vector<16x1xf32> to vector<16x16xf32>
    %124 = arith.subf %120, %123 : vector<16x16xf32>
    %125 = math.exp %124 : vector<16x16xf32>
    %cst_39 = arith.constant dense<0.000000e+00> : vector<16xf32>
    %126 = vector.multi_reduction <add>, %125, %cst_39 [1] : vector<16x16xf32> to vector<16xf32>
    %127 = vector.shape_cast %126 : vector<16xf32> to vector<16x1xf32>
    %128 = tpu.reciprocal %127 {approx = true} : vector<16x1xf32> -> vector<16x1xf32>
    %129 = vector.broadcast %128 : vector<16x1xf32> to vector<16x16xf32>
    %130 = arith.mulf %125, %129 : vector<16x16xf32>
    %131 = arith.truncf %130 : vector<16x16xf32> to vector<16x16xbf16>
    %cst_40 = arith.constant dense<0.000000e+00> : vector<16x32xf32>
    %132 = tpu.matmul %131, %117, %cst_40 {dimension_numbers = #tpu.dot_dimension_numbers<[1], [0], [0], [1], [0, 0, 1, 1], [], []>} : vector<16x16xbf16>, vector<16x32xbf16>, vector<16x32xf32> -> vector<16x32xf32>
    %133 = arith.truncf %132 : vector<16x32xf32> to vector<16x32xbf16>
    %c128 = arith.constant 128 : index
    %c0_41 = arith.constant 0 : index
    %134 = vector.load %arg4[%c128, %c0_41] : memref<256x256xbf16, #tpu.memory_space<vmem>>, vector<32x256xbf16>
    %cst_42 = arith.constant dense<0.000000e+00> : vector<16x256xf32>
    %135 = tpu.matmul %133, %134, %cst_42 {dimension_numbers = #tpu.dot_dimension_numbers<[1], [0], [0], [1], [0, 0, 1, 1], [], []>} : vector<16x32xbf16>, vector<32x256xbf16>, vector<16x256xf32> -> vector<16x256xf32>
    %136 = arith.addf %111, %135 : vector<16x256xf32>
    %137 = vector.extract_strided_slice %8 {offsets = [0, 160], sizes = [16, 32], strides = [1, 1]} : vector<16x256xf32> to vector<16x32xf32>
    %138 = arith.truncf %137 : vector<16x32xf32> to vector<16x32xbf16>
    %139 = vector.extract_strided_slice %9 {offsets = [0, 160], sizes = [16, 32], strides = [1, 1]} : vector<16x256xf32> to vector<16x32xf32>
    %140 = arith.truncf %139 : vector<16x32xf32> to vector<16x32xbf16>
    %141 = vector.extract_strided_slice %10 {offsets = [0, 160], sizes = [16, 32], strides = [1, 1]} : vector<16x256xf32> to vector<16x32xf32>
    %142 = arith.truncf %141 : vector<16x32xf32> to vector<16x32xbf16>
    %cst_43 = arith.constant dense<0.000000e+00> : vector<16x16xf32>
    %143 = tpu.matmul %138, %140, %cst_43 {dimension_numbers = #tpu.dot_dimension_numbers<[1], [1], [0], [0], [0, 0, 1, 0], [], []>} : vector<16x32xbf16>, vector<16x32xbf16>, vector<16x16xf32> -> vector<16x16xf32>
    %cst_44 = arith.constant 0.176776692 : f32
    %144 = vector.broadcast %cst_44 : f32 to vector<16x16xf32>
    %145 = arith.mulf %143, %144 : vector<16x16xf32>
    %cst_45 = arith.constant dense<0xFF800000> : vector<16xf32>
    %146 = vector.multi_reduction <maximumf>, %145, %cst_45 [1] : vector<16x16xf32> to vector<16xf32>
    %147 = vector.shape_cast %146 : vector<16xf32> to vector<16x1xf32>
    %148 = vector.broadcast %147 : vector<16x1xf32> to vector<16x16xf32>
    %149 = arith.subf %145, %148 : vector<16x16xf32>
    %150 = math.exp %149 : vector<16x16xf32>
    %cst_46 = arith.constant dense<0.000000e+00> : vector<16xf32>
    %151 = vector.multi_reduction <add>, %150, %cst_46 [1] : vector<16x16xf32> to vector<16xf32>
    %152 = vector.shape_cast %151 : vector<16xf32> to vector<16x1xf32>
    %153 = tpu.reciprocal %152 {approx = true} : vector<16x1xf32> -> vector<16x1xf32>
    %154 = vector.broadcast %153 : vector<16x1xf32> to vector<16x16xf32>
    %155 = arith.mulf %150, %154 : vector<16x16xf32>
    %156 = arith.truncf %155 : vector<16x16xf32> to vector<16x16xbf16>
    %cst_47 = arith.constant dense<0.000000e+00> : vector<16x32xf32>
    %157 = tpu.matmul %156, %142, %cst_47 {dimension_numbers = #tpu.dot_dimension_numbers<[1], [0], [0], [1], [0, 0, 1, 1], [], []>} : vector<16x16xbf16>, vector<16x32xbf16>, vector<16x32xf32> -> vector<16x32xf32>
    %158 = arith.truncf %157 : vector<16x32xf32> to vector<16x32xbf16>
    %c160 = arith.constant 160 : index
    %c0_48 = arith.constant 0 : index
    %159 = vector.load %arg4[%c160, %c0_48] : memref<256x256xbf16, #tpu.memory_space<vmem>>, vector<32x256xbf16>
    %cst_49 = arith.constant dense<0.000000e+00> : vector<16x256xf32>
    %160 = tpu.matmul %158, %159, %cst_49 {dimension_numbers = #tpu.dot_dimension_numbers<[1], [0], [0], [1], [0, 0, 1, 1], [], []>} : vector<16x32xbf16>, vector<32x256xbf16>, vector<16x256xf32> -> vector<16x256xf32>
    %161 = arith.addf %136, %160 : vector<16x256xf32>
    %162 = vector.extract_strided_slice %8 {offsets = [0, 192], sizes = [16, 32], strides = [1, 1]} : vector<16x256xf32> to vector<16x32xf32>
    %163 = arith.truncf %162 : vector<16x32xf32> to vector<16x32xbf16>
    %164 = vector.extract_strided_slice %9 {offsets = [0, 192], sizes = [16, 32], strides = [1, 1]} : vector<16x256xf32> to vector<16x32xf32>
    %165 = arith.truncf %164 : vector<16x32xf32> to vector<16x32xbf16>
    %166 = vector.extract_strided_slice %10 {offsets = [0, 192], sizes = [16, 32], strides = [1, 1]} : vector<16x256xf32> to vector<16x32xf32>
    %167 = arith.truncf %166 : vector<16x32xf32> to vector<16x32xbf16>
    %cst_50 = arith.constant dense<0.000000e+00> : vector<16x16xf32>
    %168 = tpu.matmul %163, %165, %cst_50 {dimension_numbers = #tpu.dot_dimension_numbers<[1], [1], [0], [0], [0, 0, 1, 0], [], []>} : vector<16x32xbf16>, vector<16x32xbf16>, vector<16x16xf32> -> vector<16x16xf32>
    %cst_51 = arith.constant 0.176776692 : f32
    %169 = vector.broadcast %cst_51 : f32 to vector<16x16xf32>
    %170 = arith.mulf %168, %169 : vector<16x16xf32>
    %cst_52 = arith.constant dense<0xFF800000> : vector<16xf32>
    %171 = vector.multi_reduction <maximumf>, %170, %cst_52 [1] : vector<16x16xf32> to vector<16xf32>
    %172 = vector.shape_cast %171 : vector<16xf32> to vector<16x1xf32>
    %173 = vector.broadcast %172 : vector<16x1xf32> to vector<16x16xf32>
    %174 = arith.subf %170, %173 : vector<16x16xf32>
    %175 = math.exp %174 : vector<16x16xf32>
    %cst_53 = arith.constant dense<0.000000e+00> : vector<16xf32>
    %176 = vector.multi_reduction <add>, %175, %cst_53 [1] : vector<16x16xf32> to vector<16xf32>
    %177 = vector.shape_cast %176 : vector<16xf32> to vector<16x1xf32>
    %178 = tpu.reciprocal %177 {approx = true} : vector<16x1xf32> -> vector<16x1xf32>
    %179 = vector.broadcast %178 : vector<16x1xf32> to vector<16x16xf32>
    %180 = arith.mulf %175, %179 : vector<16x16xf32>
    %181 = arith.truncf %180 : vector<16x16xf32> to vector<16x16xbf16>
    %cst_54 = arith.constant dense<0.000000e+00> : vector<16x32xf32>
    %182 = tpu.matmul %181, %167, %cst_54 {dimension_numbers = #tpu.dot_dimension_numbers<[1], [0], [0], [1], [0, 0, 1, 1], [], []>} : vector<16x16xbf16>, vector<16x32xbf16>, vector<16x32xf32> -> vector<16x32xf32>
    %183 = arith.truncf %182 : vector<16x32xf32> to vector<16x32xbf16>
    %c192 = arith.constant 192 : index
    %c0_55 = arith.constant 0 : index
    %184 = vector.load %arg4[%c192, %c0_55] : memref<256x256xbf16, #tpu.memory_space<vmem>>, vector<32x256xbf16>
    %cst_56 = arith.constant dense<0.000000e+00> : vector<16x256xf32>
    %185 = tpu.matmul %183, %184, %cst_56 {dimension_numbers = #tpu.dot_dimension_numbers<[1], [0], [0], [1], [0, 0, 1, 1], [], []>} : vector<16x32xbf16>, vector<32x256xbf16>, vector<16x256xf32> -> vector<16x256xf32>
    %186 = arith.addf %161, %185 : vector<16x256xf32>
    %187 = vector.extract_strided_slice %8 {offsets = [0, 224], sizes = [16, 32], strides = [1, 1]} : vector<16x256xf32> to vector<16x32xf32>
    %188 = arith.truncf %187 : vector<16x32xf32> to vector<16x32xbf16>
    %189 = vector.extract_strided_slice %9 {offsets = [0, 224], sizes = [16, 32], strides = [1, 1]} : vector<16x256xf32> to vector<16x32xf32>
    %190 = arith.truncf %189 : vector<16x32xf32> to vector<16x32xbf16>
    %191 = vector.extract_strided_slice %10 {offsets = [0, 224], sizes = [16, 32], strides = [1, 1]} : vector<16x256xf32> to vector<16x32xf32>
    %192 = arith.truncf %191 : vector<16x32xf32> to vector<16x32xbf16>
    %cst_57 = arith.constant dense<0.000000e+00> : vector<16x16xf32>
    %193 = tpu.matmul %188, %190, %cst_57 {dimension_numbers = #tpu.dot_dimension_numbers<[1], [1], [0], [0], [0, 0, 1, 0], [], []>} : vector<16x32xbf16>, vector<16x32xbf16>, vector<16x16xf32> -> vector<16x16xf32>
    %cst_58 = arith.constant 0.176776692 : f32
    %194 = vector.broadcast %cst_58 : f32 to vector<16x16xf32>
    %195 = arith.mulf %193, %194 : vector<16x16xf32>
    %cst_59 = arith.constant dense<0xFF800000> : vector<16xf32>
    %196 = vector.multi_reduction <maximumf>, %195, %cst_59 [1] : vector<16x16xf32> to vector<16xf32>
    %197 = vector.shape_cast %196 : vector<16xf32> to vector<16x1xf32>
    %198 = vector.broadcast %197 : vector<16x1xf32> to vector<16x16xf32>
    %199 = arith.subf %195, %198 : vector<16x16xf32>
    %200 = math.exp %199 : vector<16x16xf32>
    %cst_60 = arith.constant dense<0.000000e+00> : vector<16xf32>
    %201 = vector.multi_reduction <add>, %200, %cst_60 [1] : vector<16x16xf32> to vector<16xf32>
    %202 = vector.shape_cast %201 : vector<16xf32> to vector<16x1xf32>
    %203 = tpu.reciprocal %202 {approx = true} : vector<16x1xf32> -> vector<16x1xf32>
    %204 = vector.broadcast %203 : vector<16x1xf32> to vector<16x16xf32>
    %205 = arith.mulf %200, %204 : vector<16x16xf32>
    %206 = arith.truncf %205 : vector<16x16xf32> to vector<16x16xbf16>
    %cst_61 = arith.constant dense<0.000000e+00> : vector<16x32xf32>
    %207 = tpu.matmul %206, %192, %cst_61 {dimension_numbers = #tpu.dot_dimension_numbers<[1], [0], [0], [1], [0, 0, 1, 1], [], []>} : vector<16x16xbf16>, vector<16x32xbf16>, vector<16x32xf32> -> vector<16x32xf32>
    %208 = arith.truncf %207 : vector<16x32xf32> to vector<16x32xbf16>
    %c224 = arith.constant 224 : index
    %c0_62 = arith.constant 0 : index
    %209 = vector.load %arg4[%c224, %c0_62] : memref<256x256xbf16, #tpu.memory_space<vmem>>, vector<32x256xbf16>
    %cst_63 = arith.constant dense<0.000000e+00> : vector<16x256xf32>
    %210 = tpu.matmul %208, %209, %cst_63 {dimension_numbers = #tpu.dot_dimension_numbers<[1], [0], [0], [1], [0, 0, 1, 1], [], []>} : vector<16x32xbf16>, vector<32x256xbf16>, vector<16x256xf32> -> vector<16x256xf32>
    %211 = arith.addf %186, %210 : vector<16x256xf32>
    %c0_64 = arith.constant 0 : index
    %c0_65 = arith.constant 0 : index
    %212 = vector.load %arg5[%c0_64, %c0_65] : memref<1x256xf32, #tpu.memory_space<vmem>>, vector<1x256xf32>
    %213 = vector.broadcast %212 : vector<1x256xf32> to vector<16x256xf32>
    %214 = arith.addf %211, %213 : vector<16x256xf32>
    %215 = arith.addf %1, %214 : vector<16x256xf32>
    %c0_66 = arith.constant 0 : index
    %c0_67 = arith.constant 0 : index
    %216 = vector.load %arg6[%c0_66, %c0_67] : memref<1x256xf32, #tpu.memory_space<vmem>>, vector<1x256xf32>
    %c0_68 = arith.constant 0 : index
    %c0_69 = arith.constant 0 : index
    %217 = vector.load %arg7[%c0_68, %c0_69] : memref<1x256xf32, #tpu.memory_space<vmem>>, vector<1x256xf32>
    %cst_70 = arith.constant dense<0.000000e+00> : vector<16xf32>
    %218 = vector.multi_reduction <add>, %215, %cst_70 [1] : vector<16x256xf32> to vector<16xf32>
    %219 = vector.shape_cast %218 : vector<16xf32> to vector<16x1xf32>
    %cst_71 = arith.constant 2.560000e+02 : f32
    %220 = vector.broadcast %cst_71 : f32 to vector<16x1xf32>
    %221 = arith.divf %219, %220 : vector<16x1xf32>
    %222 = vector.broadcast %221 : vector<16x1xf32> to vector<16x256xf32>
    %223 = arith.subf %215, %222 : vector<16x256xf32>
    %224 = arith.mulf %223, %223 : vector<16x256xf32>
    %cst_72 = arith.constant dense<0.000000e+00> : vector<16xf32>
    %225 = vector.multi_reduction <add>, %224, %cst_72 [1] : vector<16x256xf32> to vector<16xf32>
    %226 = vector.shape_cast %225 : vector<16xf32> to vector<16x1xf32>
    %cst_73 = arith.constant 2.560000e+02 : f32
    %227 = vector.broadcast %cst_73 : f32 to vector<16x1xf32>
    %228 = arith.divf %226, %227 : vector<16x1xf32>
    %229 = vector.broadcast %221 : vector<16x1xf32> to vector<16x256xf32>
    %230 = arith.subf %215, %229 : vector<16x256xf32>
    %cst_74 = arith.constant 9.99999974E-6 : f32
    %231 = vector.broadcast %cst_74 : f32 to vector<16x1xf32>
    %232 = arith.addf %228, %231 : vector<16x1xf32>
    %233 = math.rsqrt %232 : vector<16x1xf32>
    %234 = vector.broadcast %233 : vector<16x1xf32> to vector<16x256xf32>
    %235 = arith.mulf %230, %234 : vector<16x256xf32>
    %236 = vector.broadcast %216 : vector<1x256xf32> to vector<16x256xf32>
    %237 = arith.mulf %235, %236 : vector<16x256xf32>
    %238 = vector.broadcast %217 : vector<1x256xf32> to vector<16x256xf32>
    %239 = arith.addf %237, %238 : vector<16x256xf32>
    %240 = arith.truncf %239 : vector<16x256xf32> to vector<16x256xbf16>
    %c0_75 = arith.constant 0 : index
    %c0_76 = arith.constant 0 : index
    %241 = vector.load %arg8[%c0_75, %c0_76] : memref<256x512xbf16, #tpu.memory_space<vmem>>, vector<256x512xbf16>
    %cst_77 = arith.constant dense<0.000000e+00> : vector<16x512xf32>
    %242 = tpu.matmul %240, %241, %cst_77 {dimension_numbers = #tpu.dot_dimension_numbers<[1], [0], [0], [1], [0, 0, 1, 1], [], []>} : vector<16x256xbf16>, vector<256x512xbf16>, vector<16x512xf32> -> vector<16x512xf32>
    %c0_78 = arith.constant 0 : index
    %c0_79 = arith.constant 0 : index
    %243 = vector.load %arg9[%c0_78, %c0_79] : memref<1x512xf32, #tpu.memory_space<vmem>>, vector<1x512xf32>
    %244 = vector.broadcast %243 : vector<1x512xf32> to vector<16x512xf32>
    %245 = arith.addf %242, %244 : vector<16x512xf32>
    %cst_80 = arith.constant 0.000000e+00 : f32
    %246 = vector.broadcast %cst_80 : f32 to vector<16x512xf32>
    %247 = arith.maximumf %245, %246 : vector<16x512xf32>
    %248 = arith.truncf %247 : vector<16x512xf32> to vector<16x512xbf16>
    %c0_81 = arith.constant 0 : index
    %c0_82 = arith.constant 0 : index
    %249 = vector.load %arg10[%c0_81, %c0_82] : memref<512x256xbf16, #tpu.memory_space<vmem>>, vector<512x256xbf16>
    %cst_83 = arith.constant dense<0.000000e+00> : vector<16x256xf32>
    %250 = tpu.matmul %248, %249, %cst_83 {dimension_numbers = #tpu.dot_dimension_numbers<[1], [0], [0], [1], [0, 0, 1, 1], [], []>} : vector<16x512xbf16>, vector<512x256xbf16>, vector<16x256xf32> -> vector<16x256xf32>
    %c0_84 = arith.constant 0 : index
    %c0_85 = arith.constant 0 : index
    %251 = vector.load %arg11[%c0_84, %c0_85] : memref<1x256xf32, #tpu.memory_space<vmem>>, vector<1x256xf32>
    %252 = vector.broadcast %251 : vector<1x256xf32> to vector<16x256xf32>
    %253 = arith.addf %250, %252 : vector<16x256xf32>
    %254 = arith.addf %239, %253 : vector<16x256xf32>
    %c0_86 = arith.constant 0 : index
    %c0_87 = arith.constant 0 : index
    %255 = vector.load %arg12[%c0_86, %c0_87] : memref<1x256xf32, #tpu.memory_space<vmem>>, vector<1x256xf32>
    %c0_88 = arith.constant 0 : index
    %c0_89 = arith.constant 0 : index
    %256 = vector.load %arg13[%c0_88, %c0_89] : memref<1x256xf32, #tpu.memory_space<vmem>>, vector<1x256xf32>
    %cst_90 = arith.constant dense<0.000000e+00> : vector<16xf32>
    %257 = vector.multi_reduction <add>, %254, %cst_90 [1] : vector<16x256xf32> to vector<16xf32>
    %258 = vector.shape_cast %257 : vector<16xf32> to vector<16x1xf32>
    %cst_91 = arith.constant 2.560000e+02 : f32
    %259 = vector.broadcast %cst_91 : f32 to vector<16x1xf32>
    %260 = arith.divf %258, %259 : vector<16x1xf32>
    %261 = vector.broadcast %260 : vector<16x1xf32> to vector<16x256xf32>
    %262 = arith.subf %254, %261 : vector<16x256xf32>
    %263 = arith.mulf %262, %262 : vector<16x256xf32>
    %cst_92 = arith.constant dense<0.000000e+00> : vector<16xf32>
    %264 = vector.multi_reduction <add>, %263, %cst_92 [1] : vector<16x256xf32> to vector<16xf32>
    %265 = vector.shape_cast %264 : vector<16xf32> to vector<16x1xf32>
    %cst_93 = arith.constant 2.560000e+02 : f32
    %266 = vector.broadcast %cst_93 : f32 to vector<16x1xf32>
    %267 = arith.divf %265, %266 : vector<16x1xf32>
    %268 = vector.broadcast %260 : vector<16x1xf32> to vector<16x256xf32>
    %269 = arith.subf %254, %268 : vector<16x256xf32>
    %cst_94 = arith.constant 9.99999974E-6 : f32
    %270 = vector.broadcast %cst_94 : f32 to vector<16x1xf32>
    %271 = arith.addf %267, %270 : vector<16x1xf32>
    %272 = math.rsqrt %271 : vector<16x1xf32>
    %273 = vector.broadcast %272 : vector<16x1xf32> to vector<16x256xf32>
    %274 = arith.mulf %269, %273 : vector<16x256xf32>
    %275 = vector.broadcast %255 : vector<1x256xf32> to vector<16x256xf32>
    %276 = arith.mulf %274, %275 : vector<16x256xf32>
    %277 = vector.broadcast %256 : vector<1x256xf32> to vector<16x256xf32>
    %278 = arith.addf %276, %277 : vector<16x256xf32>
    %c0_95 = arith.constant 0 : index
    %c0_96 = arith.constant 0 : index
    %c0_97 = arith.constant 0 : index
    %279 = vector.load %arg14[%c0_95, %c0_96, %c0_97] : memref<1x16x256xf32, #tpu.memory_space<vmem>>, vector<1x16x256xf32>
    %280 = vector.shape_cast %279 : vector<1x16x256xf32> to vector<16x256xf32>
    %281 = vector.shape_cast %278 : vector<16x256xf32> to vector<1x16x256xf32>
    tpu.vector_store %arg14[%c0_95, %c0_96, %c0_97], %281 {strides = array<i32>} : memref<1x16x256xf32, #tpu.memory_space<vmem>>, vector<1x16x256xf32>,
    return
  }
  func.func @transform_0(%arg0: i32) -> (i32, i32, i32) {
    %c0_i32 = arith.constant 0 : i32
    %c0_i32_0 = arith.constant 0 : i32
    %c0_i32_1 = arith.constant 0 : i32
    return %arg0, %c0_i32, %c0_i32_0 : i32, i32, i32
  }
  func.func @transform_1(%arg0: i32) -> (i32, i32) {
    %c0_i32 = arith.constant 0 : i32
    %c0_i32_0 = arith.constant 0 : i32
    %c0_i32_1 = arith.constant 0 : i32
    return %c0_i32, %c0_i32_0 : i32, i32
  }
  func.func @transform_2(%arg0: i32) -> (i32, i32) {
    %c0_i32 = arith.constant 0 : i32
    %c0_i32_0 = arith.constant 0 : i32
    %c0_i32_1 = arith.constant 0 : i32
    return %c0_i32, %c0_i32_0 : i32, i32
  }
  func.func @transform_3(%arg0: i32) -> (i32, i32) {
    %c0_i32 = arith.constant 0 : i32
    %c0_i32_0 = arith.constant 0 : i32
    %c0_i32_1 = arith.constant 0 : i32
    return %c0_i32, %c0_i32_0 : i32, i32
  }
  func.func @transform_4(%arg0: i32) -> (i32, i32) {
    %c0_i32 = arith.constant 0 : i32
    %c0_i32_0 = arith.constant 0 : i32
    %c0_i32_1 = arith.constant 0 : i32
    return %c0_i32, %c0_i32_0 : i32, i32
  }
  func.func @transform_5(%arg0: i32) -> (i32, i32) {
    %c0_i32 = arith.constant 0 : i32
    %c0_i32_0 = arith.constant 0 : i32
    %c0_i32_1 = arith.constant 0 : i32
    return %c0_i32, %c0_i32_0 : i32, i32
  }
  func.func @transform_6(%arg0: i32) -> (i32, i32) {
    %c0_i32 = arith.constant 0 : i32
    %c0_i32_0 = arith.constant 0 : i32
    %c0_i32_1 = arith.constant 0 : i32
    return %c0_i32, %c0_i32_0 : i32, i32
  }
  func.func @transform_7(%arg0: i32) -> (i32, i32) {
    %c0_i32 = arith.constant 0 : i32
    %c0_i32_0 = arith.constant 0 : i32
    %c0_i32_1 = arith.constant 0 : i32
    return %c0_i32, %c0_i32_0 : i32, i32
  }
  func.func @transform_8(%arg0: i32) -> (i32, i32) {
    %c0_i32 = arith.constant 0 : i32
    %c0_i32_0 = arith.constant 0 : i32
    %c0_i32_1 = arith.constant 0 : i32
    return %c0_i32, %c0_i32_0 : i32, i32
  }
  func.func @transform_9(%arg0: i32) -> (i32, i32) {
    %c0_i32 = arith.constant 0 : i32
    %c0_i32_0 = arith.constant 0 : i32
    %c0_i32_1 = arith.constant 0 : i32
    return %c0_i32, %c0_i32_0 : i32, i32
  }
  func.func @transform_10(%arg0: i32) -> (i32, i32) {
    %c0_i32 = arith.constant 0 : i32
    %c0_i32_0 = arith.constant 0 : i32
    %c0_i32_1 = arith.constant 0 : i32
    return %c0_i32, %c0_i32_0 : i32, i32
  }
  func.func @transform_11(%arg0: i32) -> (i32, i32) {
    %c0_i32 = arith.constant 0 : i32
    %c0_i32_0 = arith.constant 0 : i32
    %c0_i32_1 = arith.constant 0 : i32
    return %c0_i32, %c0_i32_0 : i32, i32
  }
  func.func @transform_12(%arg0: i32) -> (i32, i32) {
    %c0_i32 = arith.constant 0 : i32
    %c0_i32_0 = arith.constant 0 : i32
    %c0_i32_1 = arith.constant 0 : i32
    return %c0_i32, %c0_i32_0 : i32, i32
  }
  func.func @transform_13(%arg0: i32) -> (i32, i32, i32) {
    %c0_i32 = arith.constant 0 : i32
    %c0_i32_0 = arith.constant 0 : i32
    %c0_i32_1 = arith.constant 0 : i32
    return %arg0, %c0_i32, %c0_i32_0 : i32, i32, i32
  }
}

module attributes {stable_mosaic.version = 11 : i64} {
  func.func @_encoder_layer_kernel(%arg0: i32, %arg1: memref<1x16x256xf32, #tpu.memory_space<vmem>>, %arg2: memref<256x768xbf16, #tpu.memory_space<vmem>>, %arg3: memref<1x768xf32, #tpu.memory_space<vmem>>, %arg4: memref<256x256xbf16, #tpu.memory_space<vmem>>, %arg5: memref<1x256xf32, #tpu.memory_space<vmem>>, %arg6: memref<1x256xf32, #tpu.memory_space<vmem>>, %arg7: memref<1x256xf32, #tpu.memory_space<vmem>>, %arg8: memref<256x512xbf16, #tpu.memory_space<vmem>>, %arg9: memref<1x512xf32, #tpu.memory_space<vmem>>, %arg10: memref<512x256xbf16, #tpu.memory_space<vmem>>, %arg11: memref<1x256xf32, #tpu.memory_space<vmem>>, %arg12: memref<1x256xf32, #tpu.memory_space<vmem>>, %arg13: memref<1x256xf32, #tpu.memory_space<vmem>>, %arg14: memref<1x16x256xf32, #tpu.memory_space<vmem>>) attributes {dimension_semantics = [#tpu.dimension_semantics<parallel>], iteration_bounds = array<i64: 2>, scalar_prefetch = 0 : i64, scratch_operands = 0 : i64, tpu.core_type = #tpu.core_type<tc>, window_params = [{transform_indices = @transform_0, window_bounds = array<i64: 1, 16, 256>}, {pipeline_mode = #tpu.pipeline_mode<synchronous>, transform_indices = @transform_1, window_bounds = array<i64: 256, 768>}, {pipeline_mode = #tpu.pipeline_mode<synchronous>, transform_indices = @transform_2, window_bounds = array<i64: 1, 768>}, {pipeline_mode = #tpu.pipeline_mode<synchronous>, transform_indices = @transform_3, window_bounds = array<i64: 256, 256>}, {pipeline_mode = #tpu.pipeline_mode<synchronous>, transform_indices = @transform_4, window_bounds = array<i64: 1, 256>}, {pipeline_mode = #tpu.pipeline_mode<synchronous>, transform_indices = @transform_5, window_bounds = array<i64: 1, 256>}, {pipeline_mode = #tpu.pipeline_mode<synchronous>, transform_indices = @transform_6, window_bounds = array<i64: 1, 256>}, {pipeline_mode = #tpu.pipeline_mode<synchronous>, transform_indices = @transform_7, window_bounds = array<i64: 256, 512>}, {pipeline_mode = #tpu.pipeline_mode<synchronous>, transform_indices = @transform_8, window_bounds = array<i64: 1, 512>}, {pipeline_mode = #tpu.pipeline_mode<synchronous>, transform_indices = @transform_9, window_bounds = array<i64: 512, 256>}, {pipeline_mode = #tpu.pipeline_mode<synchronous>, transform_indices = @transform_10, window_bounds = array<i64: 1, 256>}, {pipeline_mode = #tpu.pipeline_mode<synchronous>, transform_indices = @transform_11, window_bounds = array<i64: 1, 256>}, {pipeline_mode = #tpu.pipeline_mode<synchronous>, transform_indices = @transform_12, window_bounds = array<i64: 1, 256>}, {transform_indices = @transform_13, window_bounds = array<i64: 1, 16, 256>}]} {
    %c0 = arith.constant 0 : index
    %c0_0 = arith.constant 0 : index
    %c0_1 = arith.constant 0 : index
    %0 = vector.load %arg1[%c0, %c0_0, %c0_1] : memref<1x16x256xf32, #tpu.memory_space<vmem>>, vector<1x16x256xf32>
    %1 = vector.shape_cast %0 : vector<1x16x256xf32> to vector<16x256xf32>
    %2 = arith.truncf %1 : vector<16x256xf32> to vector<16x256xbf16>
    %c0_2 = arith.constant 0 : index
    %c0_3 = arith.constant 0 : index
    %3 = vector.load %arg2[%c0_2, %c0_3] : memref<256x768xbf16, #tpu.memory_space<vmem>>, vector<256x768xbf16>
    %cst = arith.constant dense<0.000000e+00> : vector<16x768xf32>
    %4 = tpu.matmul %2, %3, %cst {dimension_numbers = #tpu.dot_dimension_numbers<[1], [0], [0], [1], [0, 0, 1, 1], [], []>} : vector<16x256xbf16>, vector<256x768xbf16>, vector<16x768xf32> -> vector<16x768xf32>
    %c0_4 = arith.constant 0 : index
    %c0_5 = arith.constant 0 : index
    %5 = vector.load %arg3[%c0_4, %c0_5] : memref<1x768xf32, #tpu.memory_space<vmem>>, vector<1x768xf32>
    %6 = vector.broadcast %5 : vector<1x768xf32> to vector<16x768xf32>
    %7 = arith.addf %4, %6 : vector<16x768xf32>
    %8 = vector.extract_strided_slice %7 {offsets = [0, 0], sizes = [16, 256], strides = [1, 1]} : vector<16x768xf32> to vector<16x256xf32>
    %9 = vector.extract_strided_slice %7 {offsets = [0, 256], sizes = [16, 256], strides = [1, 1]} : vector<16x768xf32> to vector<16x256xf32>
    %10 = vector.extract_strided_slice %7 {offsets = [0, 512], sizes = [16, 256], strides = [1, 1]} : vector<16x768xf32> to vector<16x256xf32>
    %cst_6 = arith.constant 0.000000e+00 : f32
    %11 = vector.broadcast %cst_6 : f32 to vector<16x256xf32>
    %12 = vector.extract_strided_slice %8 {offsets = [0, 0], sizes = [16, 32], strides = [1, 1]} : vector<16x256xf32> to vector<16x32xf32>
    %13 = arith.truncf %12 : vector<16x32xf32> to vector<16x32xbf16>
    %14 = vector.extract_strided_slice %9 {offsets = [0, 0], sizes = [16, 32], strides = [1, 1]} : vector<16x256xf32> to vector<16x32xf32>
    %15 = arith.truncf %14 : vector<16x32xf32> to vector<16x32xbf16>
    %16 = vector.extract_strided_slice %10 {offsets = [0, 0], sizes = [16, 32], strides = [1, 1]} : vector<16x256xf32> to vector<16x32xf32>
    %17 = arith.truncf %16 : vector<16x32xf32> to vector<16x32xbf16>
    %cst_7 = arith.constant dense<0.000000e+00> : vector<16x16xf32>
    %18 = tpu.matmul %13, %15, %cst_7 {dimension_numbers = #tpu.dot_dimension_numbers<[1], [1], [0], [0], [0, 0, 1, 0], [], []>} : vector<16x32xbf16>, vector<16x32xbf16>, vector<16x16xf32> -> vector<16x16xf32>
    %cst_8 = arith.constant 0.176776692 : f32
    %19 = vector.broadcast %cst_8 : f32 to vector<16x16xf32>
    %20 = arith.mulf %18, %19 : vector<16x16xf32>
    %cst_9 = arith.constant dense<0xFF800000> : vector<16xf32>
    %21 = vector.multi_reduction <maximumf>, %20, %cst_9 [1] : vector<16x16xf32> to vector<16xf32>
    %22 = vector.shape_cast %21 : vector<16xf32> to vector<16x1xf32>
    %23 = vector.broadcast %22 : vector<16x1xf32> to vector<16x16xf32>
    %24 = arith.subf %20, %23 : vector<16x16xf32>
    %25 = math.exp %24 : vector<16x16xf32>
    %cst_10 = arith.constant dense<0.000000e+00> : vector<16xf32>
    %26 = vector.multi_reduction <add>, %25, %cst_10 [1] : vector<16x16xf32> to vector<16xf32>
    %27 = vector.shape_cast %26 : vector<16xf32> to vector<16x1xf32>
    %28 = tpu.reciprocal %27 {approx = true} : vector<16x1xf32> -> vector<16x1xf32>
    %29 = vector.broadcast %28 : vector<16x1xf32> to vector<16x16xf32>
    %30 = arith.mulf %25, %29 : vector<16x16xf32>
    %31 = arith.truncf %30 : vector<16x16xf32> to vector<16x16xbf16>
    %cst_11 = arith.constant dense<0.000000e+00> : vector<16x32xf32>
    %32 = tpu.matmul %31, %17, %cst_11 {dimension_numbers = #tpu.dot_dimension_numbers<[1], [0], [0], [1], [0, 0, 1, 1], [], []>} : vector<16x16xbf16>, vector<16x32xbf16>, vector<16x32xf32> -> vector<16x32xf32>
    %33 = arith.truncf %32 : vector<16x32xf32> to vector<16x32xbf16>
    %c0_12 = arith.constant 0 : index
    %c0_13 = arith.constant 0 : index
    %34 = vector.load %arg4[%c0_12, %c0_13] : memref<256x256xbf16, #tpu.memory_space<vmem>>, vector<32x256xbf16>
    %cst_14 = arith.constant dense<0.000000e+00> : vector<16x256xf32>
    %35 = tpu.matmul %33, %34, %cst_14 {dimension_numbers = #tpu.dot_dimension_numbers<[1], [0], [0], [1], [0, 0, 1, 1], [], []>} : vector<16x32xbf16>, vector<32x256xbf16>, vector<16x256xf32> -> vector<16x256xf32>
    %36 = arith.addf %11, %35 : vector<16x256xf32>
    %37 = vector.extract_strided_slice %8 {offsets = [0, 32], sizes = [16, 32], strides = [1, 1]} : vector<16x256xf32> to vector<16x32xf32>
    %38 = arith.truncf %37 : vector<16x32xf32> to vector<16x32xbf16>
    %39 = vector.extract_strided_slice %9 {offsets = [0, 32], sizes = [16, 32], strides = [1, 1]} : vector<16x256xf32> to vector<16x32xf32>
    %40 = arith.truncf %39 : vector<16x32xf32> to vector<16x32xbf16>
    %41 = vector.extract_strided_slice %10 {offsets = [0, 32], sizes = [16, 32], strides = [1, 1]} : vector<16x256xf32> to vector<16x32xf32>
    %42 = arith.truncf %41 : vector<16x32xf32> to vector<16x32xbf16>
    %cst_15 = arith.constant dense<0.000000e+00> : vector<16x16xf32>
    %43 = tpu.matmul %38, %40, %cst_15 {dimension_numbers = #tpu.dot_dimension_numbers<[1], [1], [0], [0], [0, 0, 1, 0], [], []>} : vector<16x32xbf16>, vector<16x32xbf16>, vector<16x16xf32> -> vector<16x16xf32>
    %cst_16 = arith.constant 0.176776692 : f32
    %44 = vector.broadcast %cst_16 : f32 to vector<16x16xf32>
    %45 = arith.mulf %43, %44 : vector<16x16xf32>
    %cst_17 = arith.constant dense<0xFF800000> : vector<16xf32>
    %46 = vector.multi_reduction <maximumf>, %45, %cst_17 [1] : vector<16x16xf32> to vector<16xf32>
    %47 = vector.shape_cast %46 : vector<16xf32> to vector<16x1xf32>
    %48 = vector.broadcast %47 : vector<16x1xf32> to vector<16x16xf32>
    %49 = arith.subf %45, %48 : vector<16x16xf32>
    %50 = math.exp %49 : vector<16x16xf32>
    %cst_18 = arith.constant dense<0.000000e+00> : vector<16xf32>
    %51 = vector.multi_reduction <add>, %50, %cst_18 [1] : vector<16x16xf32> to vector<16xf32>
    %52 = vector.shape_cast %51 : vector<16xf32> to vector<16x1xf32>
    %53 = tpu.reciprocal %52 {approx = true} : vector<16x1xf32> -> vector<16x1xf32>
    %54 = vector.broadcast %53 : vector<16x1xf32> to vector<16x16xf32>
    %55 = arith.mulf %50, %54 : vector<16x16xf32>
    %56 = arith.truncf %55 : vector<16x16xf32> to vector<16x16xbf16>
    %cst_19 = arith.constant dense<0.000000e+00> : vector<16x32xf32>
    %57 = tpu.matmul %56, %42, %cst_19 {dimension_numbers = #tpu.dot_dimension_numbers<[1], [0], [0], [1], [0, 0, 1, 1], [], []>} : vector<16x16xbf16>, vector<16x32xbf16>, vector<16x32xf32> -> vector<16x32xf32>
    %58 = arith.truncf %57 : vector<16x32xf32> to vector<16x32xbf16>
    %c32 = arith.constant 32 : index
    %c0_20 = arith.constant 0 : index
    %59 = vector.load %arg4[%c32, %c0_20] : memref<256x256xbf16, #tpu.memory_space<vmem>>, vector<32x256xbf16>
    %cst_21 = arith.constant dense<0.000000e+00> : vector<16x256xf32>
    %60 = tpu.matmul %58, %59, %cst_21 {dimension_numbers = #tpu.dot_dimension_numbers<[1], [0], [0], [1], [0, 0, 1, 1], [], []>} : vector<16x32xbf16>, vector<32x256xbf16>, vector<16x256xf32> -> vector<16x256xf32>
    %61 = arith.addf %36, %60 : vector<16x256xf32>
    %62 = vector.extract_strided_slice %8 {offsets = [0, 64], sizes = [16, 32], strides = [1, 1]} : vector<16x256xf32> to vector<16x32xf32>
    %63 = arith.truncf %62 : vector<16x32xf32> to vector<16x32xbf16>
    %64 = vector.extract_strided_slice %9 {offsets = [0, 64], sizes = [16, 32], strides = [1, 1]} : vector<16x256xf32> to vector<16x32xf32>
    %65 = arith.truncf %64 : vector<16x32xf32> to vector<16x32xbf16>
    %66 = vector.extract_strided_slice %10 {offsets = [0, 64], sizes = [16, 32], strides = [1, 1]} : vector<16x256xf32> to vector<16x32xf32>
    %67 = arith.truncf %66 : vector<16x32xf32> to vector<16x32xbf16>
    %cst_22 = arith.constant dense<0.000000e+00> : vector<16x16xf32>
    %68 = tpu.matmul %63, %65, %cst_22 {dimension_numbers = #tpu.dot_dimension_numbers<[1], [1], [0], [0], [0, 0, 1, 0], [], []>} : vector<16x32xbf16>, vector<16x32xbf16>, vector<16x16xf32> -> vector<16x16xf32>
    %cst_23 = arith.constant 0.176776692 : f32
    %69 = vector.broadcast %cst_23 : f32 to vector<16x16xf32>
    %70 = arith.mulf %68, %69 : vector<16x16xf32>
    %cst_24 = arith.constant dense<0xFF800000> : vector<16xf32>
    %71 = vector.multi_reduction <maximumf>, %70, %cst_24 [1] : vector<16x16xf32> to vector<16xf32>
    %72 = vector.shape_cast %71 : vector<16xf32> to vector<16x1xf32>
    %73 = vector.broadcast %72 : vector<16x1xf32> to vector<16x16xf32>
    %74 = arith.subf %70, %73 : vector<16x16xf32>
    %75 = math.exp %74 : vector<16x16xf32>
    %cst_25 = arith.constant dense<0.000000e+00> : vector<16xf32>
    %76 = vector.multi_reduction <add>, %75, %cst_25 [1] : vector<16x16xf32> to vector<16xf32>
    %77 = vector.shape_cast %76 : vector<16xf32> to vector<16x1xf32>
    %78 = tpu.reciprocal %77 {approx = true} : vector<16x1xf32> -> vector<16x1xf32>
    %79 = vector.broadcast %78 : vector<16x1xf32> to vector<16x16xf32>
    %80 = arith.mulf %75, %79 : vector<16x16xf32>
    %81 = arith.truncf %80 : vector<16x16xf32> to vector<16x16xbf16>
    %cst_26 = arith.constant dense<0.000000e+00> : vector<16x32xf32>
    %82 = tpu.matmul %81, %67, %cst_26 {dimension_numbers = #tpu.dot_dimension_numbers<[1], [0], [0], [1], [0, 0, 1, 1], [], []>} : vector<16x16xbf16>, vector<16x32xbf16>, vector<16x32xf32> -> vector<16x32xf32>
    %83 = arith.truncf %82 : vector<16x32xf32> to vector<16x32xbf16>
    %c64 = arith.constant 64 : index
    %c0_27 = arith.constant 0 : index
    %84 = vector.load %arg4[%c64, %c0_27] : memref<256x256xbf16, #tpu.memory_space<vmem>>, vector<32x256xbf16>
    %cst_28 = arith.constant dense<0.000000e+00> : vector<16x256xf32>
    %85 = tpu.matmul %83, %84, %cst_28 {dimension_numbers = #tpu.dot_dimension_numbers<[1], [0], [0], [1], [0, 0, 1, 1], [], []>} : vector<16x32xbf16>, vector<32x256xbf16>, vector<16x256xf32> -> vector<16x256xf32>
    %86 = arith.addf %61, %85 : vector<16x256xf32>
    %87 = vector.extract_strided_slice %8 {offsets = [0, 96], sizes = [16, 32], strides = [1, 1]} : vector<16x256xf32> to vector<16x32xf32>
    %88 = arith.truncf %87 : vector<16x32xf32> to vector<16x32xbf16>
    %89 = vector.extract_strided_slice %9 {offsets = [0, 96], sizes = [16, 32], strides = [1, 1]} : vector<16x256xf32> to vector<16x32xf32>
    %90 = arith.truncf %89 : vector<16x32xf32> to vector<16x32xbf16>
    %91 = vector.extract_strided_slice %10 {offsets = [0, 96], sizes = [16, 32], strides = [1, 1]} : vector<16x256xf32> to vector<16x32xf32>
    %92 = arith.truncf %91 : vector<16x32xf32> to vector<16x32xbf16>
    %cst_29 = arith.constant dense<0.000000e+00> : vector<16x16xf32>
    %93 = tpu.matmul %88, %90, %cst_29 {dimension_numbers = #tpu.dot_dimension_numbers<[1], [1], [0], [0], [0, 0, 1, 0], [], []>} : vector<16x32xbf16>, vector<16x32xbf16>, vector<16x16xf32> -> vector<16x16xf32>
    %cst_30 = arith.constant 0.176776692 : f32
    %94 = vector.broadcast %cst_30 : f32 to vector<16x16xf32>
    %95 = arith.mulf %93, %94 : vector<16x16xf32>
    %cst_31 = arith.constant dense<0xFF800000> : vector<16xf32>
    %96 = vector.multi_reduction <maximumf>, %95, %cst_31 [1] : vector<16x16xf32> to vector<16xf32>
    %97 = vector.shape_cast %96 : vector<16xf32> to vector<16x1xf32>
    %98 = vector.broadcast %97 : vector<16x1xf32> to vector<16x16xf32>
    %99 = arith.subf %95, %98 : vector<16x16xf32>
    %100 = math.exp %99 : vector<16x16xf32>
    %cst_32 = arith.constant dense<0.000000e+00> : vector<16xf32>
    %101 = vector.multi_reduction <add>, %100, %cst_32 [1] : vector<16x16xf32> to vector<16xf32>
    %102 = vector.shape_cast %101 : vector<16xf32> to vector<16x1xf32>
    %103 = tpu.reciprocal %102 {approx = true} : vector<16x1xf32> -> vector<16x1xf32>
    %104 = vector.broadcast %103 : vector<16x1xf32> to vector<16x16xf32>
    %105 = arith.mulf %100, %104 : vector<16x16xf32>
    %106 = arith.truncf %105 : vector<16x16xf32> to vector<16x16xbf16>
    %cst_33 = arith.constant dense<0.000000e+00> : vector<16x32xf32>
    %107 = tpu.matmul %106, %92, %cst_33 {dimension_numbers = #tpu.dot_dimension_numbers<[1], [0], [0], [1], [0, 0, 1, 1], [], []>} : vector<16x16xbf16>, vector<16x32xbf16>, vector<16x32xf32> -> vector<16x32xf32>
    %108 = arith.truncf %107 : vector<16x32xf32> to vector<16x32xbf16>
    %c96 = arith.constant 96 : index
    %c0_34 = arith.constant 0 : index
    %109 = vector.load %arg4[%c96, %c0_34] : memref<256x256xbf16, #tpu.memory_space<vmem>>, vector<32x256xbf16>
    %cst_35 = arith.constant dense<0.000000e+00> : vector<16x256xf32>
    %110 = tpu.matmul %108, %109, %cst_35 {dimension_numbers = #tpu.dot_dimension_numbers<[1], [0], [0], [1], [0, 0, 1, 1], [], []>} : vector<16x32xbf16>, vector<32x256xbf16>, vector<16x256xf32> -> vector<16x256xf32>
    %111 = arith.addf %86, %110 : vector<16x256xf32>
    %112 = vector.extract_strided_slice %8 {offsets = [0, 128], sizes = [16, 32], strides = [1, 1]} : vector<16x256xf32> to vector<16x32xf32>
    %113 = arith.truncf %112 : vector<16x32xf32> to vector<16x32xbf16>
    %114 = vector.extract_strided_slice %9 {offsets = [0, 128], sizes = [16, 32], strides = [1, 1]} : vector<16x256xf32> to vector<16x32xf32>
    %115 = arith.truncf %114 : vector<16x32xf32> to vector<16x32xbf16>
    %116 = vector.extract_strided_slice %10 {offsets = [0, 128], sizes = [16, 32], strides = [1, 1]} : vector<16x256xf32> to vector<16x32xf32>
    %117 = arith.truncf %116 : vector<16x32xf32> to vector<16x32xbf16>
    %cst_36 = arith.constant dense<0.000000e+00> : vector<16x16xf32>
    %118 = tpu.matmul %113, %115, %cst_36 {dimension_numbers = #tpu.dot_dimension_numbers<[1], [1], [0], [0], [0, 0, 1, 0], [], []>} : vector<16x32xbf16>, vector<16x32xbf16>, vector<16x16xf32> -> vector<16x16xf32>
    %cst_37 = arith.constant 0.176776692 : f32
    %119 = vector.broadcast %cst_37 : f32 to vector<16x16xf32>
    %120 = arith.mulf %118, %119 : vector<16x16xf32>
    %cst_38 = arith.constant dense<0xFF800000> : vector<16xf32>
    %121 = vector.multi_reduction <maximumf>, %120, %cst_38 [1] : vector<16x16xf32> to vector<16xf32>
    %122 = vector.shape_cast %121 : vector<16xf32> to vector<16x1xf32>
    %123 = vector.broadcast %122 : vector<16x1xf32> to vector<16x16xf32>
    %124 = arith.subf %120, %123 : vector<16x16xf32>
    %125 = math.exp %124 : vector<16x16xf32>
    %cst_39 = arith.constant dense<0.000000e+00> : vector<16xf32>
    %126 = vector.multi_reduction <add>, %125, %cst_39 [1] : vector<16x16xf32> to vector<16xf32>
    %127 = vector.shape_cast %126 : vector<16xf32> to vector<16x1xf32>
    %128 = tpu.reciprocal %127 {approx = true} : vector<16x1xf32> -> vector<16x1xf32>
    %129 = vector.broadcast %128 : vector<16x1xf32> to vector<16x16xf32>
    %130 = arith.mulf %125, %129 : vector<16x16xf32>
    %131 = arith.truncf %130 : vector<16x16xf32> to vector<16x16xbf16>
    %cst_40 = arith.constant dense<0.000000e+00> : vector<16x32xf32>
    %132 = tpu.matmul %131, %117, %cst_40 {dimension_numbers = #tpu.dot_dimension_numbers<[1], [0], [0], [1], [0, 0, 1, 1], [], []>} : vector<16x16xbf16>, vector<16x32xbf16>, vector<16x32xf32> -> vector<16x32xf32>
    %133 = arith.truncf %132 : vector<16x32xf32> to vector<16x32xbf16>
    %c128 = arith.constant 128 : index
    %c0_41 = arith.constant 0 : index
    %134 = vector.load %arg4[%c128, %c0_41] : memref<256x256xbf16, #tpu.memory_space<vmem>>, vector<32x256xbf16>
    %cst_42 = arith.constant dense<0.000000e+00> : vector<16x256xf32>
    %135 = tpu.matmul %133, %134, %cst_42 {dimension_numbers = #tpu.dot_dimension_numbers<[1], [0], [0], [1], [0, 0, 1, 1], [], []>} : vector<16x32xbf16>, vector<32x256xbf16>, vector<16x256xf32> -> vector<16x256xf32>
    %136 = arith.addf %111, %135 : vector<16x256xf32>
    %137 = vector.extract_strided_slice %8 {offsets = [0, 160], sizes = [16, 32], strides = [1, 1]} : vector<16x256xf32> to vector<16x32xf32>
    %138 = arith.truncf %137 : vector<16x32xf32> to vector<16x32xbf16>
    %139 = vector.extract_strided_slice %9 {offsets = [0, 160], sizes = [16, 32], strides = [1, 1]} : vector<16x256xf32> to vector<16x32xf32>
    %140 = arith.truncf %139 : vector<16x32xf32> to vector<16x32xbf16>
    %141 = vector.extract_strided_slice %10 {offsets = [0, 160], sizes = [16, 32], strides = [1, 1]} : vector<16x256xf32> to vector<16x32xf32>
    %142 = arith.truncf %141 : vector<16x32xf32> to vector<16x32xbf16>
    %cst_43 = arith.constant dense<0.000000e+00> : vector<16x16xf32>
    %143 = tpu.matmul %138, %140, %cst_43 {dimension_numbers = #tpu.dot_dimension_numbers<[1], [1], [0], [0], [0, 0, 1, 0], [], []>} : vector<16x32xbf16>, vector<16x32xbf16>, vector<16x16xf32> -> vector<16x16xf32>
    %cst_44 = arith.constant 0.176776692 : f32
    %144 = vector.broadcast %cst_44 : f32 to vector<16x16xf32>
    %145 = arith.mulf %143, %144 : vector<16x16xf32>
    %cst_45 = arith.constant dense<0xFF800000> : vector<16xf32>
    %146 = vector.multi_reduction <maximumf>, %145, %cst_45 [1] : vector<16x16xf32> to vector<16xf32>
    %147 = vector.shape_cast %146 : vector<16xf32> to vector<16x1xf32>
    %148 = vector.broadcast %147 : vector<16x1xf32> to vector<16x16xf32>
    %149 = arith.subf %145, %148 : vector<16x16xf32>
    %150 = math.exp %149 : vector<16x16xf32>
    %cst_46 = arith.constant dense<0.000000e+00> : vector<16xf32>
    %151 = vector.multi_reduction <add>, %150, %cst_46 [1] : vector<16x16xf32> to vector<16xf32>
    %152 = vector.shape_cast %151 : vector<16xf32> to vector<16x1xf32>
    %153 = tpu.reciprocal %152 {approx = true} : vector<16x1xf32> -> vector<16x1xf32>
    %154 = vector.broadcast %153 : vector<16x1xf32> to vector<16x16xf32>
    %155 = arith.mulf %150, %154 : vector<16x16xf32>
    %156 = arith.truncf %155 : vector<16x16xf32> to vector<16x16xbf16>
    %cst_47 = arith.constant dense<0.000000e+00> : vector<16x32xf32>
    %157 = tpu.matmul %156, %142, %cst_47 {dimension_numbers = #tpu.dot_dimension_numbers<[1], [0], [0], [1], [0, 0, 1, 1], [], []>} : vector<16x16xbf16>, vector<16x32xbf16>, vector<16x32xf32> -> vector<16x32xf32>
    %158 = arith.truncf %157 : vector<16x32xf32> to vector<16x32xbf16>
    %c160 = arith.constant 160 : index
    %c0_48 = arith.constant 0 : index
    %159 = vector.load %arg4[%c160, %c0_48] : memref<256x256xbf16, #tpu.memory_space<vmem>>, vector<32x256xbf16>
    %cst_49 = arith.constant dense<0.000000e+00> : vector<16x256xf32>
    %160 = tpu.matmul %158, %159, %cst_49 {dimension_numbers = #tpu.dot_dimension_numbers<[1], [0], [0], [1], [0, 0, 1, 1], [], []>} : vector<16x32xbf16>, vector<32x256xbf16>, vector<16x256xf32> -> vector<16x256xf32>
    %161 = arith.addf %136, %160 : vector<16x256xf32>
    %162 = vector.extract_strided_slice %8 {offsets = [0, 192], sizes = [16, 32], strides = [1, 1]} : vector<16x256xf32> to vector<16x32xf32>
    %163 = arith.truncf %162 : vector<16x32xf32> to vector<16x32xbf16>
    %164 = vector.extract_strided_slice %9 {offsets = [0, 192], sizes = [16, 32], strides = [1, 1]} : vector<16x256xf32> to vector<16x32xf32>
    %165 = arith.truncf %164 : vector<16x32xf32> to vector<16x32xbf16>
    %166 = vector.extract_strided_slice %10 {offsets = [0, 192], sizes = [16, 32], strides = [1, 1]} : vector<16x256xf32> to vector<16x32xf32>
    %167 = arith.truncf %166 : vector<16x32xf32> to vector<16x32xbf16>
    %cst_50 = arith.constant dense<0.000000e+00> : vector<16x16xf32>
    %168 = tpu.matmul %163, %165, %cst_50 {dimension_numbers = #tpu.dot_dimension_numbers<[1], [1], [0], [0], [0, 0, 1, 0], [], []>} : vector<16x32xbf16>, vector<16x32xbf16>, vector<16x16xf32> -> vector<16x16xf32>
    %cst_51 = arith.constant 0.176776692 : f32
    %169 = vector.broadcast %cst_51 : f32 to vector<16x16xf32>
    %170 = arith.mulf %168, %169 : vector<16x16xf32>
    %cst_52 = arith.constant dense<0xFF800000> : vector<16xf32>
    %171 = vector.multi_reduction <maximumf>, %170, %cst_52 [1] : vector<16x16xf32> to vector<16xf32>
    %172 = vector.shape_cast %171 : vector<16xf32> to vector<16x1xf32>
    %173 = vector.broadcast %172 : vector<16x1xf32> to vector<16x16xf32>
    %174 = arith.subf %170, %173 : vector<16x16xf32>
    %175 = math.exp %174 : vector<16x16xf32>
    %cst_53 = arith.constant dense<0.000000e+00> : vector<16xf32>
    %176 = vector.multi_reduction <add>, %175, %cst_53 [1] : vector<16x16xf32> to vector<16xf32>
    %177 = vector.shape_cast %176 : vector<16xf32> to vector<16x1xf32>
    %178 = tpu.reciprocal %177 {approx = true} : vector<16x1xf32> -> vector<16x1xf32>
    %179 = vector.broadcast %178 : vector<16x1xf32> to vector<16x16xf32>
    %180 = arith.mulf %175, %179 : vector<16x16xf32>
    %181 = arith.truncf %180 : vector<16x16xf32> to vector<16x16xbf16>
    %cst_54 = arith.constant dense<0.000000e+00> : vector<16x32xf32>
    %182 = tpu.matmul %181, %167, %cst_54 {dimension_numbers = #tpu.dot_dimension_numbers<[1], [0], [0], [1], [0, 0, 1, 1], [], []>} : vector<16x16xbf16>, vector<16x32xbf16>, vector<16x32xf32> -> vector<16x32xf32>
    %183 = arith.truncf %182 : vector<16x32xf32> to vector<16x32xbf16>
    %c192 = arith.constant 192 : index
    %c0_55 = arith.constant 0 : index
    %184 = vector.load %arg4[%c192, %c0_55] : memref<256x256xbf16, #tpu.memory_space<vmem>>, vector<32x256xbf16>
    %cst_56 = arith.constant dense<0.000000e+00> : vector<16x256xf32>
    %185 = tpu.matmul %183, %184, %cst_56 {dimension_numbers = #tpu.dot_dimension_numbers<[1], [0], [0], [1], [0, 0, 1, 1], [], []>} : vector<16x32xbf16>, vector<32x256xbf16>, vector<16x256xf32> -> vector<16x256xf32>
    %186 = arith.addf %161, %185 : vector<16x256xf32>
    %187 = vector.extract_strided_slice %8 {offsets = [0, 224], sizes = [16, 32], strides = [1, 1]} : vector<16x256xf32> to vector<16x32xf32>
    %188 = arith.truncf %187 : vector<16x32xf32> to vector<16x32xbf16>
    %189 = vector.extract_strided_slice %9 {offsets = [0, 224], sizes = [16, 32], strides = [1, 1]} : vector<16x256xf32> to vector<16x32xf32>
    %190 = arith.truncf %189 : vector<16x32xf32> to vector<16x32xbf16>
    %191 = vector.extract_strided_slice %10 {offsets = [0, 224], sizes = [16, 32], strides = [1, 1]} : vector<16x256xf32> to vector<16x32xf32>
    %192 = arith.truncf %191 : vector<16x32xf32> to vector<16x32xbf16>
    %cst_57 = arith.constant dense<0.000000e+00> : vector<16x16xf32>
    %193 = tpu.matmul %188, %190, %cst_57 {dimension_numbers = #tpu.dot_dimension_numbers<[1], [1], [0], [0], [0, 0, 1, 0], [], []>} : vector<16x32xbf16>, vector<16x32xbf16>, vector<16x16xf32> -> vector<16x16xf32>
    %cst_58 = arith.constant 0.176776692 : f32
    %194 = vector.broadcast %cst_58 : f32 to vector<16x16xf32>
    %195 = arith.mulf %193, %194 : vector<16x16xf32>
    %cst_59 = arith.constant dense<0xFF800000> : vector<16xf32>
    %196 = vector.multi_reduction <maximumf>, %195, %cst_59 [1] : vector<16x16xf32> to vector<16xf32>
    %197 = vector.shape_cast %196 : vector<16xf32> to vector<16x1xf32>
    %198 = vector.broadcast %197 : vector<16x1xf32> to vector<16x16xf32>
    %199 = arith.subf %195, %198 : vector<16x16xf32>
    %200 = math.exp %199 : vector<16x16xf32>
    %cst_60 = arith.constant dense<0.000000e+00> : vector<16xf32>
    %201 = vector.multi_reduction <add>, %200, %cst_60 [1] : vector<16x16xf32> to vector<16xf32>
    %202 = vector.shape_cast %201 : vector<16xf32> to vector<16x1xf32>
    %203 = tpu.reciprocal %202 {approx = true} : vector<16x1xf32> -> vector<16x1xf32>
    %204 = vector.broadcast %203 : vector<16x1xf32> to vector<16x16xf32>
    %205 = arith.mulf %200, %204 : vector<16x16xf32>
    %206 = arith.truncf %205 : vector<16x16xf32> to vector<16x16xbf16>
    %cst_61 = arith.constant dense<0.000000e+00> : vector<16x32xf32>
    %207 = tpu.matmul %206, %192, %cst_61 {dimension_numbers = #tpu.dot_dimension_numbers<[1], [0], [0], [1], [0, 0, 1, 1], [], []>} : vector<16x16xbf16>, vector<16x32xbf16>, vector<16x32xf32> -> vector<16x32xf32>
    %208 = arith.truncf %207 : vector<16x32xf32> to vector<16x32xbf16>
    %c224 = arith.constant 224 : index
    %c0_62 = arith.constant 0 : index
    %209 = vector.load %arg4[%c224, %c0_62] : memref<256x256xbf16, #tpu.memory_space<vmem>>, vector<32x256xbf16>
    %cst_63 = arith.constant dense<0.000000e+00> : vector<16x256xf32>
    %210 = tpu.matmul %208, %209, %cst_63 {dimension_numbers = #tpu.dot_dimension_numbers<[1], [0], [0], [1], [0, 0, 1, 1], [], []>} : vector<16x32xbf16>, vector<32x256xbf16>, vector<16x256xf32> -> vector<16x256xf32>
    %211 = arith.addf %186, %210 : vector<16x256xf32>
    %c0_64 = arith.constant 0 : index
    %c0_65 = arith.constant 0 : index
    %212 = vector.load %arg5[%c0_64, %c0_65] : memref<1x256xf32, #tpu.memory_space<vmem>>, vector<1x256xf32>
    %213 = vector.broadcast %212 : vector<1x256xf32> to vector<16x256xf32>
    %214 = arith.addf %211, %213 : vector<16x256xf32>
    %215 = arith.addf %1, %214 : vector<16x256xf32>
    %c0_66 = arith.constant 0 : index
    %c0_67 = arith.constant 0 : index
    %216 = vector.load %arg6[%c0_66, %c0_67] : memref<1x256xf32, #tpu.memory_space<vmem>>, vector<1x256xf32>
    %c0_68 = arith.constant 0 : index
    %c0_69 = arith.constant 0 : index
    %217 = vector.load %arg7[%c0_68, %c0_69] : memref<1x256xf32, #tpu.memory_space<vmem>>, vector<1x256xf32>
    %cst_70 = arith.constant dense<0.000000e+00> : vector<16xf32>
    %218 = vector.multi_reduction <add>, %215, %cst_70 [1] : vector<16x256xf32> to vector<16xf32>
    %219 = vector.shape_cast %218 : vector<16xf32> to vector<16x1xf32>
    %cst_71 = arith.constant 2.560000e+02 : f32
    %220 = vector.broadcast %cst_71 : f32 to vector<16x1xf32>
    %221 = arith.divf %219, %220 : vector<16x1xf32>
    %222 = vector.broadcast %221 : vector<16x1xf32> to vector<16x256xf32>
    %223 = arith.subf %215, %222 : vector<16x256xf32>
    %224 = arith.mulf %223, %223 : vector<16x256xf32>
    %cst_72 = arith.constant dense<0.000000e+00> : vector<16xf32>
    %225 = vector.multi_reduction <add>, %224, %cst_72 [1] : vector<16x256xf32> to vector<16xf32>
    %226 = vector.shape_cast %225 : vector<16xf32> to vector<16x1xf32>
    %cst_73 = arith.constant 2.560000e+02 : f32
    %227 = vector.broadcast %cst_73 : f32 to vector<16x1xf32>
    %228 = arith.divf %226, %227 : vector<16x1xf32>
    %229 = vector.broadcast %221 : vector<16x1xf32> to vector<16x256xf32>
    %230 = arith.subf %215, %229 : vector<16x256xf32>
    %cst_74 = arith.constant 9.99999974E-6 : f32
    %231 = vector.broadcast %cst_74 : f32 to vector<16x1xf32>
    %232 = arith.addf %228, %231 : vector<16x1xf32>
    %233 = math.rsqrt %232 : vector<16x1xf32>
    %234 = vector.broadcast %233 : vector<16x1xf32> to vector<16x256xf32>
    %235 = arith.mulf %230, %234 : vector<16x256xf32>
    %236 = vector.broadcast %216 : vector<1x256xf32> to vector<16x256xf32>
    %237 = arith.mulf %235, %236 : vector<16x256xf32>
    %238 = vector.broadcast %217 : vector<1x256xf32> to vector<16x256xf32>
    %239 = arith.addf %237, %238 : vector<16x256xf32>
    %240 = arith.truncf %239 : vector<16x256xf32> to vector<16x256xbf16>
    %c0_75 = arith.constant 0 : index
    %c0_76 = arith.constant 0 : index
    %241 = vector.load %arg8[%c0_75, %c0_76] : memref<256x512xbf16, #tpu.memory_space<vmem>>, vector<256x512xbf16>
    %cst_77 = arith.constant dense<0.000000e+00> : vector<16x512xf32>
    %242 = tpu.matmul %240, %241, %cst_77 {dimension_numbers = #tpu.dot_dimension_numbers<[1], [0], [0], [1], [0, 0, 1, 1], [], []>} : vector<16x256xbf16>, vector<256x512xbf16>, vector<16x512xf32> -> vector<16x512xf32>
    %c0_78 = arith.constant 0 : index
    %c0_79 = arith.constant 0 : index
    %243 = vector.load %arg9[%c0_78, %c0_79] : memref<1x512xf32, #tpu.memory_space<vmem>>, vector<1x512xf32>
    %244 = vector.broadcast %243 : vector<1x512xf32> to vector<16x512xf32>
    %245 = arith.addf %242, %244 : vector<16x512xf32>
    %cst_80 = arith.constant 0.000000e+00 : f32
    %246 = vector.broadcast %cst_80 : f32 to vector<16x512xf32>
    %247 = arith.maximumf %245, %246 : vector<16x512xf32>
    %248 = arith.truncf %247 : vector<16x512xf32> to vector<16x512xbf16>
    %c0_81 = arith.constant 0 : index
    %c0_82 = arith.constant 0 : index
    %249 = vector.load %arg10[%c0_81, %c0_82] : memref<512x256xbf16, #tpu.memory_space<vmem>>, vector<512x256xbf16>
    %cst_83 = arith.constant dense<0.000000e+00> : vector<16x256xf32>
    %250 = tpu.matmul %248, %249, %cst_83 {dimension_numbers = #tpu.dot_dimension_numbers<[1], [0], [0], [1], [0, 0, 1, 1], [], []>} : vector<16x512xbf16>, vector<512x256xbf16>, vector<16x256xf32> -> vector<16x256xf32>
    %c0_84 = arith.constant 0 : index
    %c0_85 = arith.constant 0 : index
    %251 = vector.load %arg11[%c0_84, %c0_85] : memref<1x256xf32, #tpu.memory_space<vmem>>, vector<1x256xf32>
    %252 = vector.broadcast %251 : vector<1x256xf32> to vector<16x256xf32>
    %253 = arith.addf %250, %252 : vector<16x256xf32>
    %254 = arith.addf %239, %253 : vector<16x256xf32>
    %c0_86 = arith.constant 0 : index
    %c0_87 = arith.constant 0 : index
    %255 = vector.load %arg12[%c0_86, %c0_87] : memref<1x256xf32, #tpu.memory_space<vmem>>, vector<1x256xf32>
    %c0_88 = arith.constant 0 : index
    %c0_89 = arith.constant 0 : index
    %256 = vector.load %arg13[%c0_88, %c0_89] : memref<1x256xf32, #tpu.memory_space<vmem>>, vector<1x256xf32>
    %cst_90 = arith.constant dense<0.000000e+00> : vector<16xf32>
    %257 = vector.multi_reduction <add>, %254, %cst_90 [1] : vector<16x256xf32> to vector<16xf32>
    %258 = vector.shape_cast %257 : vector<16xf32> to vector<16x1xf32>
    %cst_91 = arith.constant 2.560000e+02 : f32
    %259 = vector.broadcast %cst_91 : f32 to vector<16x1xf32>
    %260 = arith.divf %258, %259 : vector<16x1xf32>
    %261 = vector.broadcast %260 : vector<16x1xf32> to vector<16x256xf32>
    %262 = arith.subf %254, %261 : vector<16x256xf32>
    %263 = arith.mulf %262, %262 : vector<16x256xf32>
    %cst_92 = arith.constant dense<0.000000e+00> : vector<16xf32>
    %264 = vector.multi_reduction <add>, %263, %cst_92 [1] : vector<16x256xf32> to vector<16xf32>
    %265 = vector.shape_cast %264 : vector<16xf32> to vector<16x1xf32>
    %cst_93 = arith.constant 2.560000e+02 : f32
    %266 = vector.broadcast %cst_93 : f32 to vector<16x1xf32>
    %267 = arith.divf %265, %266 : vector<16x1xf32>
    %268 = vector.broadcast %260 : vector<16x1xf32> to vector<16x256xf32>
    %269 = arith.subf %254, %268 : vector<16x256xf32>
    %cst_94 = arith.constant 9.99999974E-6 : f32
    %270 = vector.broadcast %cst_94 : f32 to vector<16x1xf32>
    %271 = arith.addf %267, %270 : vector<16x1xf32>
    %272 = math.rsqrt %271 : vector<16x1xf32>
    %273 = vector.broadcast %272 : vector<16x1xf32> to vector<16x256xf32>
    %274 = arith.mulf %269, %273 : vector<16x256xf32>
    %275 = vector.broadcast %255 : vector<1x256xf32> to vector<16x256xf32>
    %276 = arith.mulf %274, %275 : vector<16x256xf32>
    %277 = vector.broadcast %256 : vector<1x256xf32> to vector<16x256xf32>
    %278 = arith.addf %276, %277 : vector<16x256xf32>
    %c0_95 = arith.constant 0 : index
    %c0_96 = arith.constant 0 : index
    %c0_97 = arith.constant 0 : index
    %279 = vector.load %arg14[%c0_95, %c0_96, %c0_97] : memref<1x16x256xf32, #tpu.memory_space<vmem>>, vector<1x16x256xf32>
    %280 = vector.shape_cast %279 : vector<1x16x256xf32> to vector<16x256xf32>
    %281 = vector.shape_cast %278 : vector<16x256xf32> to vector<1x16x256xf32>
    tpu.vector_store %arg14[%c0_95, %c0_96, %c0_97], %281 {strides = array<i32>} : memref<1x16x256xf32, #tpu.memory_space<vmem>>, vector<1x16x256xf32>,
    return
  }
  func.func @transform_0(%arg0: i32) -> (i32, i32, i32) {
    %c0_i32 = arith.constant 0 : i32
    %c0_i32_0 = arith.constant 0 : i32
    %c0_i32_1 = arith.constant 0 : i32
    return %arg0, %c0_i32, %c0_i32_0 : i32, i32, i32
  }
  func.func @transform_1(%arg0: i32) -> (i32, i32) {
    %c0_i32 = arith.constant 0 : i32
    %c0_i32_0 = arith.constant 0 : i32
    %c0_i32_1 = arith.constant 0 : i32
    return %c0_i32, %c0_i32_0 : i32, i32
  }
  func.func @transform_2(%arg0: i32) -> (i32, i32) {
    %c0_i32 = arith.constant 0 : i32
    %c0_i32_0 = arith.constant 0 : i32
    %c0_i32_1 = arith.constant 0 : i32
    return %c0_i32, %c0_i32_0 : i32, i32
  }
  func.func @transform_3(%arg0: i32) -> (i32, i32) {
    %c0_i32 = arith.constant 0 : i32
    %c0_i32_0 = arith.constant 0 : i32
    %c0_i32_1 = arith.constant 0 : i32
    return %c0_i32, %c0_i32_0 : i32, i32
  }
  func.func @transform_4(%arg0: i32) -> (i32, i32) {
    %c0_i32 = arith.constant 0 : i32
    %c0_i32_0 = arith.constant 0 : i32
    %c0_i32_1 = arith.constant 0 : i32
    return %c0_i32, %c0_i32_0 : i32, i32
  }
  func.func @transform_5(%arg0: i32) -> (i32, i32) {
    %c0_i32 = arith.constant 0 : i32
    %c0_i32_0 = arith.constant 0 : i32
    %c0_i32_1 = arith.constant 0 : i32
    return %c0_i32, %c0_i32_0 : i32, i32
  }
  func.func @transform_6(%arg0: i32) -> (i32, i32) {
    %c0_i32 = arith.constant 0 : i32
    %c0_i32_0 = arith.constant 0 : i32
    %c0_i32_1 = arith.constant 0 : i32
    return %c0_i32, %c0_i32_0 : i32, i32
  }
  func.func @transform_7(%arg0: i32) -> (i32, i32) {
    %c0_i32 = arith.constant 0 : i32
    %c0_i32_0 = arith.constant 0 : i32
    %c0_i32_1 = arith.constant 0 : i32
    return %c0_i32, %c0_i32_0 : i32, i32
  }
  func.func @transform_8(%arg0: i32) -> (i32, i32) {
    %c0_i32 = arith.constant 0 : i32
    %c0_i32_0 = arith.constant 0 : i32
    %c0_i32_1 = arith.constant 0 : i32
    return %c0_i32, %c0_i32_0 : i32, i32
  }
  func.func @transform_9(%arg0: i32) -> (i32, i32) {
    %c0_i32 = arith.constant 0 : i32
    %c0_i32_0 = arith.constant 0 : i32
    %c0_i32_1 = arith.constant 0 : i32
    return %c0_i32, %c0_i32_0 : i32, i32
  }
  func.func @transform_10(%arg0: i32) -> (i32, i32) {
    %c0_i32 = arith.constant 0 : i32
    %c0_i32_0 = arith.constant 0 : i32
    %c0_i32_1 = arith.constant 0 : i32
    return %c0_i32, %c0_i32_0 : i32, i32
  }
  func.func @transform_11(%arg0: i32) -> (i32, i32) {
    %c0_i32 = arith.constant 0 : i32
    %c0_i32_0 = arith.constant 0 : i32
    %c0_i32_1 = arith.constant 0 : i32
    return %c0_i32, %c0_i32_0 : i32, i32
  }
  func.func @transform_12(%arg0: i32) -> (i32, i32) {
    %c0_i32 = arith.constant 0 : i32
    %c0_i32_0 = arith.constant 0 : i32
    %c0_i32_1 = arith.constant 0 : i32
    return %c0_i32, %c0_i32_0 : i32, i32
  }
  func.func @transform_13(%arg0: i32) -> (i32, i32, i32) {
    %c0_i32 = arith.constant 0 : i32
    %c0_i32_0 = arith.constant 0 : i32
    %c0_i32_1 = arith.constant 0 : i32
    return %arg0, %c0_i32, %c0_i32_0 : i32, i32, i32
  }
}

module attributes {stable_mosaic.version = 11 : i64} {
  func.func @_upconv_kernel(%arg0: i32, %arg1: memref<1x16x256xf32, #tpu.memory_space<vmem>>, %arg2: memref<256x512xbf16, #tpu.memory_space<vmem>>, %arg3: memref<1x512xf32, #tpu.memory_space<vmem>>, %arg4: memref<1x4x2x4x256xf32, #tpu.memory_space<vmem>>) attributes {dimension_semantics = [#tpu.dimension_semantics<parallel>], iteration_bounds = array<i64: 2>, scalar_prefetch = 0 : i64, scratch_operands = 0 : i64, tpu.core_type = #tpu.core_type<tc>, window_params = [{transform_indices = @transform_0, window_bounds = array<i64: 1, 16, 256>}, {pipeline_mode = #tpu.pipeline_mode<synchronous>, transform_indices = @transform_1, window_bounds = array<i64: 256, 512>}, {pipeline_mode = #tpu.pipeline_mode<synchronous>, transform_indices = @transform_2, window_bounds = array<i64: 1, 512>}, {transform_indices = @transform_3, window_bounds = array<i64: 1, 4, 2, 4, 256>}]} {
    %c0 = arith.constant 0 : index
    %c0_0 = arith.constant 0 : index
    %c0_1 = arith.constant 0 : index
    %0 = vector.load %arg1[%c0, %c0_0, %c0_1] : memref<1x16x256xf32, #tpu.memory_space<vmem>>, vector<1x16x256xf32>
    %1 = vector.shape_cast %0 : vector<1x16x256xf32> to vector<16x256xf32>
    %2 = arith.truncf %1 : vector<16x256xf32> to vector<16x256xbf16>
    %c0_2 = arith.constant 0 : index
    %c0_3 = arith.constant 0 : index
    %3 = vector.load %arg2[%c0_2, %c0_3] : memref<256x512xbf16, #tpu.memory_space<vmem>>, vector<256x512xbf16>
    %cst = arith.constant dense<0.000000e+00> : vector<16x512xf32>
    %4 = tpu.matmul %2, %3, %cst {dimension_numbers = #tpu.dot_dimension_numbers<[1], [0], [0], [1], [0, 0, 1, 1], [], []>} : vector<16x256xbf16>, vector<256x512xbf16>, vector<16x512xf32> -> vector<16x512xf32>
    %c0_4 = arith.constant 0 : index
    %c0_5 = arith.constant 0 : index
    %5 = vector.load %arg3[%c0_4, %c0_5] : memref<1x512xf32, #tpu.memory_space<vmem>>, vector<1x512xf32>
    %6 = vector.broadcast %5 : vector<1x512xf32> to vector<16x512xf32>
    %7 = arith.addf %4, %6 : vector<16x512xf32>
    %cst_6 = arith.constant 0.000000e+00 : f32
    %8 = vector.broadcast %cst_6 : f32 to vector<16x512xf32>
    %9 = arith.maximumf %7, %8 : vector<16x512xf32>
    %10 = vector.extract_strided_slice %9 {offsets = [0, 0], sizes = [4, 512], strides = [1, 1]} : vector<16x512xf32> to vector<4x512xf32>
    %11 = vector.extract_strided_slice %10 {offsets = [0, 0], sizes = [4, 256], strides = [1, 1]} : vector<4x512xf32> to vector<4x256xf32>
    %c0_7 = arith.constant 0 : index
    %c0_8 = arith.constant 0 : index
    %c0_9 = arith.constant 0 : index
    %c0_10 = arith.constant 0 : index
    %c0_11 = arith.constant 0 : index
    %12 = vector.load %arg4[%c0_7, %c0_8, %c0_9, %c0_10, %c0_11] : memref<1x4x2x4x256xf32, #tpu.memory_space<vmem>>, vector<1x1x1x4x256xf32>
    %13 = vector.shape_cast %12 : vector<1x1x1x4x256xf32> to vector<4x256xf32>
    %14 = vector.shape_cast %11 : vector<4x256xf32> to vector<1x1x1x4x256xf32>
    tpu.vector_store %arg4[%c0_7, %c0_8, %c0_9, %c0_10, %c0_11], %14 {strides = array<i32>} : memref<1x4x2x4x256xf32, #tpu.memory_space<vmem>>, vector<1x1x1x4x256xf32>,
    %15 = vector.extract_strided_slice %10 {offsets = [0, 256], sizes = [4, 256], strides = [1, 1]} : vector<4x512xf32> to vector<4x256xf32>
    %c0_12 = arith.constant 0 : index
    %c0_13 = arith.constant 0 : index
    %c1 = arith.constant 1 : index
    %c0_14 = arith.constant 0 : index
    %c0_15 = arith.constant 0 : index
    %16 = vector.load %arg4[%c0_12, %c0_13, %c1, %c0_14, %c0_15] : memref<1x4x2x4x256xf32, #tpu.memory_space<vmem>>, vector<1x1x1x4x256xf32>
    %17 = vector.shape_cast %16 : vector<1x1x1x4x256xf32> to vector<4x256xf32>
    %18 = vector.shape_cast %15 : vector<4x256xf32> to vector<1x1x1x4x256xf32>
    tpu.vector_store %arg4[%c0_12, %c0_13, %c1, %c0_14, %c0_15], %18 {strides = array<i32>} : memref<1x4x2x4x256xf32, #tpu.memory_space<vmem>>, vector<1x1x1x4x256xf32>,
    %19 = vector.extract_strided_slice %9 {offsets = [4, 0], sizes = [4, 512], strides = [1, 1]} : vector<16x512xf32> to vector<4x512xf32>
    %20 = vector.extract_strided_slice %19 {offsets = [0, 0], sizes = [4, 256], strides = [1, 1]} : vector<4x512xf32> to vector<4x256xf32>
    %c0_16 = arith.constant 0 : index
    %c1_17 = arith.constant 1 : index
    %c0_18 = arith.constant 0 : index
    %c0_19 = arith.constant 0 : index
    %c0_20 = arith.constant 0 : index
    %21 = vector.load %arg4[%c0_16, %c1_17, %c0_18, %c0_19, %c0_20] : memref<1x4x2x4x256xf32, #tpu.memory_space<vmem>>, vector<1x1x1x4x256xf32>
    %22 = vector.shape_cast %21 : vector<1x1x1x4x256xf32> to vector<4x256xf32>
    %23 = vector.shape_cast %20 : vector<4x256xf32> to vector<1x1x1x4x256xf32>
    tpu.vector_store %arg4[%c0_16, %c1_17, %c0_18, %c0_19, %c0_20], %23 {strides = array<i32>} : memref<1x4x2x4x256xf32, #tpu.memory_space<vmem>>, vector<1x1x1x4x256xf32>,
    %24 = vector.extract_strided_slice %19 {offsets = [0, 256], sizes = [4, 256], strides = [1, 1]} : vector<4x512xf32> to vector<4x256xf32>
    %c0_21 = arith.constant 0 : index
    %c1_22 = arith.constant 1 : index
    %c1_23 = arith.constant 1 : index
    %c0_24 = arith.constant 0 : index
    %c0_25 = arith.constant 0 : index
    %25 = vector.load %arg4[%c0_21, %c1_22, %c1_23, %c0_24, %c0_25] : memref<1x4x2x4x256xf32, #tpu.memory_space<vmem>>, vector<1x1x1x4x256xf32>
    %26 = vector.shape_cast %25 : vector<1x1x1x4x256xf32> to vector<4x256xf32>
    %27 = vector.shape_cast %24 : vector<4x256xf32> to vector<1x1x1x4x256xf32>
    tpu.vector_store %arg4[%c0_21, %c1_22, %c1_23, %c0_24, %c0_25], %27 {strides = array<i32>} : memref<1x4x2x4x256xf32, #tpu.memory_space<vmem>>, vector<1x1x1x4x256xf32>,
    %28 = vector.extract_strided_slice %9 {offsets = [8, 0], sizes = [4, 512], strides = [1, 1]} : vector<16x512xf32> to vector<4x512xf32>
    %29 = vector.extract_strided_slice %28 {offsets = [0, 0], sizes = [4, 256], strides = [1, 1]} : vector<4x512xf32> to vector<4x256xf32>
    %c0_26 = arith.constant 0 : index
    %c2 = arith.constant 2 : index
    %c0_27 = arith.constant 0 : index
    %c0_28 = arith.constant 0 : index
    %c0_29 = arith.constant 0 : index
    %30 = vector.load %arg4[%c0_26, %c2, %c0_27, %c0_28, %c0_29] : memref<1x4x2x4x256xf32, #tpu.memory_space<vmem>>, vector<1x1x1x4x256xf32>
    %31 = vector.shape_cast %30 : vector<1x1x1x4x256xf32> to vector<4x256xf32>
    %32 = vector.shape_cast %29 : vector<4x256xf32> to vector<1x1x1x4x256xf32>
    tpu.vector_store %arg4[%c0_26, %c2, %c0_27, %c0_28, %c0_29], %32 {strides = array<i32>} : memref<1x4x2x4x256xf32, #tpu.memory_space<vmem>>, vector<1x1x1x4x256xf32>,
    %33 = vector.extract_strided_slice %28 {offsets = [0, 256], sizes = [4, 256], strides = [1, 1]} : vector<4x512xf32> to vector<4x256xf32>
    %c0_30 = arith.constant 0 : index
    %c2_31 = arith.constant 2 : index
    %c1_32 = arith.constant 1 : index
    %c0_33 = arith.constant 0 : index
    %c0_34 = arith.constant 0 : index
    %34 = vector.load %arg4[%c0_30, %c2_31, %c1_32, %c0_33, %c0_34] : memref<1x4x2x4x256xf32, #tpu.memory_space<vmem>>, vector<1x1x1x4x256xf32>
    %35 = vector.shape_cast %34 : vector<1x1x1x4x256xf32> to vector<4x256xf32>
    %36 = vector.shape_cast %33 : vector<4x256xf32> to vector<1x1x1x4x256xf32>
    tpu.vector_store %arg4[%c0_30, %c2_31, %c1_32, %c0_33, %c0_34], %36 {strides = array<i32>} : memref<1x4x2x4x256xf32, #tpu.memory_space<vmem>>, vector<1x1x1x4x256xf32>,
    %37 = vector.extract_strided_slice %9 {offsets = [12, 0], sizes = [4, 512], strides = [1, 1]} : vector<16x512xf32> to vector<4x512xf32>
    %38 = vector.extract_strided_slice %37 {offsets = [0, 0], sizes = [4, 256], strides = [1, 1]} : vector<4x512xf32> to vector<4x256xf32>
    %c0_35 = arith.constant 0 : index
    %c3 = arith.constant 3 : index
    %c0_36 = arith.constant 0 : index
    %c0_37 = arith.constant 0 : index
    %c0_38 = arith.constant 0 : index
    %39 = vector.load %arg4[%c0_35, %c3, %c0_36, %c0_37, %c0_38] : memref<1x4x2x4x256xf32, #tpu.memory_space<vmem>>, vector<1x1x1x4x256xf32>
    %40 = vector.shape_cast %39 : vector<1x1x1x4x256xf32> to vector<4x256xf32>
    %41 = vector.shape_cast %38 : vector<4x256xf32> to vector<1x1x1x4x256xf32>
    tpu.vector_store %arg4[%c0_35, %c3, %c0_36, %c0_37, %c0_38], %41 {strides = array<i32>} : memref<1x4x2x4x256xf32, #tpu.memory_space<vmem>>, vector<1x1x1x4x256xf32>,
    %42 = vector.extract_strided_slice %37 {offsets = [0, 256], sizes = [4, 256], strides = [1, 1]} : vector<4x512xf32> to vector<4x256xf32>
    %c0_39 = arith.constant 0 : index
    %c3_40 = arith.constant 3 : index
    %c1_41 = arith.constant 1 : index
    %c0_42 = arith.constant 0 : index
    %c0_43 = arith.constant 0 : index
    %43 = vector.load %arg4[%c0_39, %c3_40, %c1_41, %c0_42, %c0_43] : memref<1x4x2x4x256xf32, #tpu.memory_space<vmem>>, vector<1x1x1x4x256xf32>
    %44 = vector.shape_cast %43 : vector<1x1x1x4x256xf32> to vector<4x256xf32>
    %45 = vector.shape_cast %42 : vector<4x256xf32> to vector<1x1x1x4x256xf32>
    tpu.vector_store %arg4[%c0_39, %c3_40, %c1_41, %c0_42, %c0_43], %45 {strides = array<i32>} : memref<1x4x2x4x256xf32, #tpu.memory_space<vmem>>, vector<1x1x1x4x256xf32>,
    return
  }
  func.func @transform_0(%arg0: i32) -> (i32, i32, i32) {
    %c0_i32 = arith.constant 0 : i32
    %c0_i32_0 = arith.constant 0 : i32
    %c0_i32_1 = arith.constant 0 : i32
    return %arg0, %c0_i32, %c0_i32_0 : i32, i32, i32
  }
  func.func @transform_1(%arg0: i32) -> (i32, i32) {
    %c0_i32 = arith.constant 0 : i32
    %c0_i32_0 = arith.constant 0 : i32
    %c0_i32_1 = arith.constant 0 : i32
    return %c0_i32, %c0_i32_0 : i32, i32
  }
  func.func @transform_2(%arg0: i32) -> (i32, i32) {
    %c0_i32 = arith.constant 0 : i32
    %c0_i32_0 = arith.constant 0 : i32
    %c0_i32_1 = arith.constant 0 : i32
    return %c0_i32, %c0_i32_0 : i32, i32
  }
  func.func @transform_3(%arg0: i32) -> (i32, i32, i32, i32, i32) {
    %c0_i32 = arith.constant 0 : i32
    %c0_i32_0 = arith.constant 0 : i32
    %c0_i32_1 = arith.constant 0 : i32
    %c0_i32_2 = arith.constant 0 : i32
    %c0_i32_3 = arith.constant 0 : i32
    return %arg0, %c0_i32, %c0_i32_0, %c0_i32_1, %c0_i32_2 : i32, i32, i32, i32, i32
  }
}

module attributes {stable_mosaic.version = 11 : i64} {
  func.func @_upconv_kernel(%arg0: i32, %arg1: memref<1x64x128xf32, #tpu.memory_space<vmem>>, %arg2: memref<128x256xbf16, #tpu.memory_space<vmem>>, %arg3: memref<1x256xf32, #tpu.memory_space<vmem>>, %arg4: memref<1x8x2x8x128xf32, #tpu.memory_space<vmem>>) attributes {dimension_semantics = [#tpu.dimension_semantics<parallel>], iteration_bounds = array<i64: 2>, scalar_prefetch = 0 : i64, scratch_operands = 0 : i64, tpu.core_type = #tpu.core_type<tc>, window_params = [{transform_indices = @transform_0, window_bounds = array<i64: 1, 64, 128>}, {pipeline_mode = #tpu.pipeline_mode<synchronous>, transform_indices = @transform_1, window_bounds = array<i64: 128, 256>}, {pipeline_mode = #tpu.pipeline_mode<synchronous>, transform_indices = @transform_2, window_bounds = array<i64: 1, 256>}, {transform_indices = @transform_3, window_bounds = array<i64: 1, 8, 2, 8, 128>}]} {
    %c0 = arith.constant 0 : index
    %c0_0 = arith.constant 0 : index
    %c0_1 = arith.constant 0 : index
    %0 = vector.load %arg1[%c0, %c0_0, %c0_1] : memref<1x64x128xf32, #tpu.memory_space<vmem>>, vector<1x64x128xf32>
    %1 = vector.shape_cast %0 : vector<1x64x128xf32> to vector<64x128xf32>
    %2 = arith.truncf %1 : vector<64x128xf32> to vector<64x128xbf16>
    %c0_2 = arith.constant 0 : index
    %c0_3 = arith.constant 0 : index
    %3 = vector.load %arg2[%c0_2, %c0_3] : memref<128x256xbf16, #tpu.memory_space<vmem>>, vector<128x256xbf16>
    %cst = arith.constant dense<0.000000e+00> : vector<64x256xf32>
    %4 = tpu.matmul %2, %3, %cst {dimension_numbers = #tpu.dot_dimension_numbers<[1], [0], [0], [1], [0, 0, 1, 1], [], []>} : vector<64x128xbf16>, vector<128x256xbf16>, vector<64x256xf32> -> vector<64x256xf32>
    %c0_4 = arith.constant 0 : index
    %c0_5 = arith.constant 0 : index
    %5 = vector.load %arg3[%c0_4, %c0_5] : memref<1x256xf32, #tpu.memory_space<vmem>>, vector<1x256xf32>
    %6 = vector.broadcast %5 : vector<1x256xf32> to vector<64x256xf32>
    %7 = arith.addf %4, %6 : vector<64x256xf32>
    %cst_6 = arith.constant 0.000000e+00 : f32
    %8 = vector.broadcast %cst_6 : f32 to vector<64x256xf32>
    %9 = arith.maximumf %7, %8 : vector<64x256xf32>
    %10 = vector.extract_strided_slice %9 {offsets = [0, 0], sizes = [8, 256], strides = [1, 1]} : vector<64x256xf32> to vector<8x256xf32>
    %11 = vector.extract_strided_slice %10 {offsets = [0, 0], sizes = [8, 128], strides = [1, 1]} : vector<8x256xf32> to vector<8x128xf32>
    %c0_7 = arith.constant 0 : index
    %c0_8 = arith.constant 0 : index
    %c0_9 = arith.constant 0 : index
    %c0_10 = arith.constant 0 : index
    %c0_11 = arith.constant 0 : index
    %12 = vector.load %arg4[%c0_7, %c0_8, %c0_9, %c0_10, %c0_11] : memref<1x8x2x8x128xf32, #tpu.memory_space<vmem>>, vector<1x1x1x8x128xf32>
    %13 = vector.shape_cast %12 : vector<1x1x1x8x128xf32> to vector<8x128xf32>
    %14 = vector.shape_cast %11 : vector<8x128xf32> to vector<1x1x1x8x128xf32>
    tpu.vector_store %arg4[%c0_7, %c0_8, %c0_9, %c0_10, %c0_11], %14 {strides = array<i32>} : memref<1x8x2x8x128xf32, #tpu.memory_space<vmem>>, vector<1x1x1x8x128xf32>,
    %15 = vector.extract_strided_slice %10 {offsets = [0, 128], sizes = [8, 128], strides = [1, 1]} : vector<8x256xf32> to vector<8x128xf32>
    %c0_12 = arith.constant 0 : index
    %c0_13 = arith.constant 0 : index
    %c1 = arith.constant 1 : index
    %c0_14 = arith.constant 0 : index
    %c0_15 = arith.constant 0 : index
    %16 = vector.load %arg4[%c0_12, %c0_13, %c1, %c0_14, %c0_15] : memref<1x8x2x8x128xf32, #tpu.memory_space<vmem>>, vector<1x1x1x8x128xf32>
    %17 = vector.shape_cast %16 : vector<1x1x1x8x128xf32> to vector<8x128xf32>
    %18 = vector.shape_cast %15 : vector<8x128xf32> to vector<1x1x1x8x128xf32>
    tpu.vector_store %arg4[%c0_12, %c0_13, %c1, %c0_14, %c0_15], %18 {strides = array<i32>} : memref<1x8x2x8x128xf32, #tpu.memory_space<vmem>>, vector<1x1x1x8x128xf32>,
    %19 = vector.extract_strided_slice %9 {offsets = [8, 0], sizes = [8, 256], strides = [1, 1]} : vector<64x256xf32> to vector<8x256xf32>
    %20 = vector.extract_strided_slice %19 {offsets = [0, 0], sizes = [8, 128], strides = [1, 1]} : vector<8x256xf32> to vector<8x128xf32>
    %c0_16 = arith.constant 0 : index
    %c1_17 = arith.constant 1 : index
    %c0_18 = arith.constant 0 : index
    %c0_19 = arith.constant 0 : index
    %c0_20 = arith.constant 0 : index
    %21 = vector.load %arg4[%c0_16, %c1_17, %c0_18, %c0_19, %c0_20] : memref<1x8x2x8x128xf32, #tpu.memory_space<vmem>>, vector<1x1x1x8x128xf32>
    %22 = vector.shape_cast %21 : vector<1x1x1x8x128xf32> to vector<8x128xf32>
    %23 = vector.shape_cast %20 : vector<8x128xf32> to vector<1x1x1x8x128xf32>
    tpu.vector_store %arg4[%c0_16, %c1_17, %c0_18, %c0_19, %c0_20], %23 {strides = array<i32>} : memref<1x8x2x8x128xf32, #tpu.memory_space<vmem>>, vector<1x1x1x8x128xf32>,
    %24 = vector.extract_strided_slice %19 {offsets = [0, 128], sizes = [8, 128], strides = [1, 1]} : vector<8x256xf32> to vector<8x128xf32>
    %c0_21 = arith.constant 0 : index
    %c1_22 = arith.constant 1 : index
    %c1_23 = arith.constant 1 : index
    %c0_24 = arith.constant 0 : index
    %c0_25 = arith.constant 0 : index
    %25 = vector.load %arg4[%c0_21, %c1_22, %c1_23, %c0_24, %c0_25] : memref<1x8x2x8x128xf32, #tpu.memory_space<vmem>>, vector<1x1x1x8x128xf32>
    %26 = vector.shape_cast %25 : vector<1x1x1x8x128xf32> to vector<8x128xf32>
    %27 = vector.shape_cast %24 : vector<8x128xf32> to vector<1x1x1x8x128xf32>
    tpu.vector_store %arg4[%c0_21, %c1_22, %c1_23, %c0_24, %c0_25], %27 {strides = array<i32>} : memref<1x8x2x8x128xf32, #tpu.memory_space<vmem>>, vector<1x1x1x8x128xf32>,
    %28 = vector.extract_strided_slice %9 {offsets = [16, 0], sizes = [8, 256], strides = [1, 1]} : vector<64x256xf32> to vector<8x256xf32>
    %29 = vector.extract_strided_slice %28 {offsets = [0, 0], sizes = [8, 128], strides = [1, 1]} : vector<8x256xf32> to vector<8x128xf32>
    %c0_26 = arith.constant 0 : index
    %c2 = arith.constant 2 : index
    %c0_27 = arith.constant 0 : index
    %c0_28 = arith.constant 0 : index
    %c0_29 = arith.constant 0 : index
    %30 = vector.load %arg4[%c0_26, %c2, %c0_27, %c0_28, %c0_29] : memref<1x8x2x8x128xf32, #tpu.memory_space<vmem>>, vector<1x1x1x8x128xf32>
    %31 = vector.shape_cast %30 : vector<1x1x1x8x128xf32> to vector<8x128xf32>
    %32 = vector.shape_cast %29 : vector<8x128xf32> to vector<1x1x1x8x128xf32>
    tpu.vector_store %arg4[%c0_26, %c2, %c0_27, %c0_28, %c0_29], %32 {strides = array<i32>} : memref<1x8x2x8x128xf32, #tpu.memory_space<vmem>>, vector<1x1x1x8x128xf32>,
    %33 = vector.extract_strided_slice %28 {offsets = [0, 128], sizes = [8, 128], strides = [1, 1]} : vector<8x256xf32> to vector<8x128xf32>
    %c0_30 = arith.constant 0 : index
    %c2_31 = arith.constant 2 : index
    %c1_32 = arith.constant 1 : index
    %c0_33 = arith.constant 0 : index
    %c0_34 = arith.constant 0 : index
    %34 = vector.load %arg4[%c0_30, %c2_31, %c1_32, %c0_33, %c0_34] : memref<1x8x2x8x128xf32, #tpu.memory_space<vmem>>, vector<1x1x1x8x128xf32>
    %35 = vector.shape_cast %34 : vector<1x1x1x8x128xf32> to vector<8x128xf32>
    %36 = vector.shape_cast %33 : vector<8x128xf32> to vector<1x1x1x8x128xf32>
    tpu.vector_store %arg4[%c0_30, %c2_31, %c1_32, %c0_33, %c0_34], %36 {strides = array<i32>} : memref<1x8x2x8x128xf32, #tpu.memory_space<vmem>>, vector<1x1x1x8x128xf32>,
    %37 = vector.extract_strided_slice %9 {offsets = [24, 0], sizes = [8, 256], strides = [1, 1]} : vector<64x256xf32> to vector<8x256xf32>
    %38 = vector.extract_strided_slice %37 {offsets = [0, 0], sizes = [8, 128], strides = [1, 1]} : vector<8x256xf32> to vector<8x128xf32>
    %c0_35 = arith.constant 0 : index
    %c3 = arith.constant 3 : index
    %c0_36 = arith.constant 0 : index
    %c0_37 = arith.constant 0 : index
    %c0_38 = arith.constant 0 : index
    %39 = vector.load %arg4[%c0_35, %c3, %c0_36, %c0_37, %c0_38] : memref<1x8x2x8x128xf32, #tpu.memory_space<vmem>>, vector<1x1x1x8x128xf32>
    %40 = vector.shape_cast %39 : vector<1x1x1x8x128xf32> to vector<8x128xf32>
    %41 = vector.shape_cast %38 : vector<8x128xf32> to vector<1x1x1x8x128xf32>
    tpu.vector_store %arg4[%c0_35, %c3, %c0_36, %c0_37, %c0_38], %41 {strides = array<i32>} : memref<1x8x2x8x128xf32, #tpu.memory_space<vmem>>, vector<1x1x1x8x128xf32>,
    %42 = vector.extract_strided_slice %37 {offsets = [0, 128], sizes = [8, 128], strides = [1, 1]} : vector<8x256xf32> to vector<8x128xf32>
    %c0_39 = arith.constant 0 : index
    %c3_40 = arith.constant 3 : index
    %c1_41 = arith.constant 1 : index
    %c0_42 = arith.constant 0 : index
    %c0_43 = arith.constant 0 : index
    %43 = vector.load %arg4[%c0_39, %c3_40, %c1_41, %c0_42, %c0_43] : memref<1x8x2x8x128xf32, #tpu.memory_space<vmem>>, vector<1x1x1x8x128xf32>
    %44 = vector.shape_cast %43 : vector<1x1x1x8x128xf32> to vector<8x128xf32>
    %45 = vector.shape_cast %42 : vector<8x128xf32> to vector<1x1x1x8x128xf32>
    tpu.vector_store %arg4[%c0_39, %c3_40, %c1_41, %c0_42, %c0_43], %45 {strides = array<i32>} : memref<1x8x2x8x128xf32, #tpu.memory_space<vmem>>, vector<1x1x1x8x128xf32>,
    %46 = vector.extract_strided_slice %9 {offsets = [32, 0], sizes = [8, 256], strides = [1, 1]} : vector<64x256xf32> to vector<8x256xf32>
    %47 = vector.extract_strided_slice %46 {offsets = [0, 0], sizes = [8, 128], strides = [1, 1]} : vector<8x256xf32> to vector<8x128xf32>
    %c0_44 = arith.constant 0 : index
    %c4 = arith.constant 4 : index
    %c0_45 = arith.constant 0 : index
    %c0_46 = arith.constant 0 : index
    %c0_47 = arith.constant 0 : index
    %48 = vector.load %arg4[%c0_44, %c4, %c0_45, %c0_46, %c0_47] : memref<1x8x2x8x128xf32, #tpu.memory_space<vmem>>, vector<1x1x1x8x128xf32>
    %49 = vector.shape_cast %48 : vector<1x1x1x8x128xf32> to vector<8x128xf32>
    %50 = vector.shape_cast %47 : vector<8x128xf32> to vector<1x1x1x8x128xf32>
    tpu.vector_store %arg4[%c0_44, %c4, %c0_45, %c0_46, %c0_47], %50 {strides = array<i32>} : memref<1x8x2x8x128xf32, #tpu.memory_space<vmem>>, vector<1x1x1x8x128xf32>,
    %51 = vector.extract_strided_slice %46 {offsets = [0, 128], sizes = [8, 128], strides = [1, 1]} : vector<8x256xf32> to vector<8x128xf32>
    %c0_48 = arith.constant 0 : index
    %c4_49 = arith.constant 4 : index
    %c1_50 = arith.constant 1 : index
    %c0_51 = arith.constant 0 : index
    %c0_52 = arith.constant 0 : index
    %52 = vector.load %arg4[%c0_48, %c4_49, %c1_50, %c0_51, %c0_52] : memref<1x8x2x8x128xf32, #tpu.memory_space<vmem>>, vector<1x1x1x8x128xf32>
    %53 = vector.shape_cast %52 : vector<1x1x1x8x128xf32> to vector<8x128xf32>
    %54 = vector.shape_cast %51 : vector<8x128xf32> to vector<1x1x1x8x128xf32>
    tpu.vector_store %arg4[%c0_48, %c4_49, %c1_50, %c0_51, %c0_52], %54 {strides = array<i32>} : memref<1x8x2x8x128xf32, #tpu.memory_space<vmem>>, vector<1x1x1x8x128xf32>,
    %55 = vector.extract_strided_slice %9 {offsets = [40, 0], sizes = [8, 256], strides = [1, 1]} : vector<64x256xf32> to vector<8x256xf32>
    %56 = vector.extract_strided_slice %55 {offsets = [0, 0], sizes = [8, 128], strides = [1, 1]} : vector<8x256xf32> to vector<8x128xf32>
    %c0_53 = arith.constant 0 : index
    %c5 = arith.constant 5 : index
    %c0_54 = arith.constant 0 : index
    %c0_55 = arith.constant 0 : index
    %c0_56 = arith.constant 0 : index
    %57 = vector.load %arg4[%c0_53, %c5, %c0_54, %c0_55, %c0_56] : memref<1x8x2x8x128xf32, #tpu.memory_space<vmem>>, vector<1x1x1x8x128xf32>
    %58 = vector.shape_cast %57 : vector<1x1x1x8x128xf32> to vector<8x128xf32>
    %59 = vector.shape_cast %56 : vector<8x128xf32> to vector<1x1x1x8x128xf32>
    tpu.vector_store %arg4[%c0_53, %c5, %c0_54, %c0_55, %c0_56], %59 {strides = array<i32>} : memref<1x8x2x8x128xf32, #tpu.memory_space<vmem>>, vector<1x1x1x8x128xf32>,
    %60 = vector.extract_strided_slice %55 {offsets = [0, 128], sizes = [8, 128], strides = [1, 1]} : vector<8x256xf32> to vector<8x128xf32>
    %c0_57 = arith.constant 0 : index
    %c5_58 = arith.constant 5 : index
    %c1_59 = arith.constant 1 : index
    %c0_60 = arith.constant 0 : index
    %c0_61 = arith.constant 0 : index
    %61 = vector.load %arg4[%c0_57, %c5_58, %c1_59, %c0_60, %c0_61] : memref<1x8x2x8x128xf32, #tpu.memory_space<vmem>>, vector<1x1x1x8x128xf32>
    %62 = vector.shape_cast %61 : vector<1x1x1x8x128xf32> to vector<8x128xf32>
    %63 = vector.shape_cast %60 : vector<8x128xf32> to vector<1x1x1x8x128xf32>
    tpu.vector_store %arg4[%c0_57, %c5_58, %c1_59, %c0_60, %c0_61], %63 {strides = array<i32>} : memref<1x8x2x8x128xf32, #tpu.memory_space<vmem>>, vector<1x1x1x8x128xf32>,
    %64 = vector.extract_strided_slice %9 {offsets = [48, 0], sizes = [8, 256], strides = [1, 1]} : vector<64x256xf32> to vector<8x256xf32>
    %65 = vector.extract_strided_slice %64 {offsets = [0, 0], sizes = [8, 128], strides = [1, 1]} : vector<8x256xf32> to vector<8x128xf32>
    %c0_62 = arith.constant 0 : index
    %c6 = arith.constant 6 : index
    %c0_63 = arith.constant 0 : index
    %c0_64 = arith.constant 0 : index
    %c0_65 = arith.constant 0 : index
    %66 = vector.load %arg4[%c0_62, %c6, %c0_63, %c0_64, %c0_65] : memref<1x8x2x8x128xf32, #tpu.memory_space<vmem>>, vector<1x1x1x8x128xf32>
    %67 = vector.shape_cast %66 : vector<1x1x1x8x128xf32> to vector<8x128xf32>
    %68 = vector.shape_cast %65 : vector<8x128xf32> to vector<1x1x1x8x128xf32>
    tpu.vector_store %arg4[%c0_62, %c6, %c0_63, %c0_64, %c0_65], %68 {strides = array<i32>} : memref<1x8x2x8x128xf32, #tpu.memory_space<vmem>>, vector<1x1x1x8x128xf32>,
    %69 = vector.extract_strided_slice %64 {offsets = [0, 128], sizes = [8, 128], strides = [1, 1]} : vector<8x256xf32> to vector<8x128xf32>
    %c0_66 = arith.constant 0 : index
    %c6_67 = arith.constant 6 : index
    %c1_68 = arith.constant 1 : index
    %c0_69 = arith.constant 0 : index
    %c0_70 = arith.constant 0 : index
    %70 = vector.load %arg4[%c0_66, %c6_67, %c1_68, %c0_69, %c0_70] : memref<1x8x2x8x128xf32, #tpu.memory_space<vmem>>, vector<1x1x1x8x128xf32>
    %71 = vector.shape_cast %70 : vector<1x1x1x8x128xf32> to vector<8x128xf32>
    %72 = vector.shape_cast %69 : vector<8x128xf32> to vector<1x1x1x8x128xf32>
    tpu.vector_store %arg4[%c0_66, %c6_67, %c1_68, %c0_69, %c0_70], %72 {strides = array<i32>} : memref<1x8x2x8x128xf32, #tpu.memory_space<vmem>>, vector<1x1x1x8x128xf32>,
    %73 = vector.extract_strided_slice %9 {offsets = [56, 0], sizes = [8, 256], strides = [1, 1]} : vector<64x256xf32> to vector<8x256xf32>
    %74 = vector.extract_strided_slice %73 {offsets = [0, 0], sizes = [8, 128], strides = [1, 1]} : vector<8x256xf32> to vector<8x128xf32>
    %c0_71 = arith.constant 0 : index
    %c7 = arith.constant 7 : index
    %c0_72 = arith.constant 0 : index
    %c0_73 = arith.constant 0 : index
    %c0_74 = arith.constant 0 : index
    %75 = vector.load %arg4[%c0_71, %c7, %c0_72, %c0_73, %c0_74] : memref<1x8x2x8x128xf32, #tpu.memory_space<vmem>>, vector<1x1x1x8x128xf32>
    %76 = vector.shape_cast %75 : vector<1x1x1x8x128xf32> to vector<8x128xf32>
    %77 = vector.shape_cast %74 : vector<8x128xf32> to vector<1x1x1x8x128xf32>
    tpu.vector_store %arg4[%c0_71, %c7, %c0_72, %c0_73, %c0_74], %77 {strides = array<i32>} : memref<1x8x2x8x128xf32, #tpu.memory_space<vmem>>, vector<1x1x1x8x128xf32>,
    %78 = vector.extract_strided_slice %73 {offsets = [0, 128], sizes = [8, 128], strides = [1, 1]} : vector<8x256xf32> to vector<8x128xf32>
    %c0_75 = arith.constant 0 : index
    %c7_76 = arith.constant 7 : index
    %c1_77 = arith.constant 1 : index
    %c0_78 = arith.constant 0 : index
    %c0_79 = arith.constant 0 : index
    %79 = vector.load %arg4[%c0_75, %c7_76, %c1_77, %c0_78, %c0_79] : memref<1x8x2x8x128xf32, #tpu.memory_space<vmem>>, vector<1x1x1x8x128xf32>
    %80 = vector.shape_cast %79 : vector<1x1x1x8x128xf32> to vector<8x128xf32>
    %81 = vector.shape_cast %78 : vector<8x128xf32> to vector<1x1x1x8x128xf32>
    tpu.vector_store %arg4[%c0_75, %c7_76, %c1_77, %c0_78, %c0_79], %81 {strides = array<i32>} : memref<1x8x2x8x128xf32, #tpu.memory_space<vmem>>, vector<1x1x1x8x128xf32>,
    return
  }
  func.func @transform_0(%arg0: i32) -> (i32, i32, i32) {
    %c0_i32 = arith.constant 0 : i32
    %c0_i32_0 = arith.constant 0 : i32
    %c0_i32_1 = arith.constant 0 : i32
    return %arg0, %c0_i32, %c0_i32_0 : i32, i32, i32
  }
  func.func @transform_1(%arg0: i32) -> (i32, i32) {
    %c0_i32 = arith.constant 0 : i32
    %c0_i32_0 = arith.constant 0 : i32
    %c0_i32_1 = arith.constant 0 : i32
    return %c0_i32, %c0_i32_0 : i32, i32
  }
  func.func @transform_2(%arg0: i32) -> (i32, i32) {
    %c0_i32 = arith.constant 0 : i32
    %c0_i32_0 = arith.constant 0 : i32
    %c0_i32_1 = arith.constant 0 : i32
    return %c0_i32, %c0_i32_0 : i32, i32
  }
  func.func @transform_3(%arg0: i32) -> (i32, i32, i32, i32, i32) {
    %c0_i32 = arith.constant 0 : i32
    %c0_i32_0 = arith.constant 0 : i32
    %c0_i32_1 = arith.constant 0 : i32
    %c0_i32_2 = arith.constant 0 : i32
    %c0_i32_3 = arith.constant 0 : i32
    return %arg0, %c0_i32, %c0_i32_0, %c0_i32_1, %c0_i32_2 : i32, i32, i32, i32, i32
  }
}

module attributes {stable_mosaic.version = 11 : i64} {
  func.func @_matmul_kernel(%arg0: i32, %arg1: i32, %arg2: i32, %arg3: memref<256x128xbf16, #tpu.memory_space<vmem>>, %arg4: memref<128x256xbf16, #tpu.memory_space<vmem>>, %arg5: memref<1x256xf32, #tpu.memory_space<vmem>>, %arg6: memref<256x256xf32, #tpu.memory_space<vmem>>, %arg7: memref<256x256xf32, #tpu.memory_space<vmem>>) attributes {dimension_semantics = [#tpu.dimension_semantics<parallel>, #tpu.dimension_semantics<parallel>, #tpu.dimension_semantics<arbitrary>], iteration_bounds = array<i64: 2, 1, 1>, scalar_prefetch = 0 : i64, scratch_operands = 1 : i64, tpu.core_type = #tpu.core_type<tc>, window_params = [{transform_indices = @transform_0, window_bounds = array<i64: 256, 128>}, {transform_indices = @transform_1, window_bounds = array<i64: 128, 256>}, {transform_indices = @transform_2, window_bounds = array<i64: 1, 256>}, {transform_indices = @transform_3, window_bounds = array<i64: 256, 256>}]} {
    %c0_i32 = arith.constant 0 : i32
    %0 = arith.cmpi eq, %arg2, %c0_i32 : i32
    %1 = arith.extui %0 : i1 to i32
    %c0_i32_0 = arith.constant 0 : i32
    %2 = arith.cmpi ne, %1, %c0_i32_0 : i32
    scf.if %2 {
      %cst_10 = arith.constant 0.000000e+00 : f32
      %12 = vector.broadcast %cst_10 : f32 to vector<256x256xf32>
      %c0_11 = arith.constant 0 : index
      %c0_12 = arith.constant 0 : index
      %13 = vector.load %arg7[%c0_11, %c0_12] : memref<256x256xf32, #tpu.memory_space<vmem>>, vector<256x256xf32>
      tpu.vector_store %arg7[%c0_11, %c0_12], %12 {strides = array<i32>} : memref<256x256xf32, #tpu.memory_space<vmem>>, vector<256x256xf32>,
    } else {
    }
    %c0 = arith.constant 0 : index
    %c0_1 = arith.constant 0 : index
    %3 = vector.load %arg7[%c0, %c0_1] : memref<256x256xf32, #tpu.memory_space<vmem>>, vector<256x256xf32>
    %c0_2 = arith.constant 0 : index
    %c0_3 = arith.constant 0 : index
    %4 = vector.load %arg3[%c0_2, %c0_3] : memref<256x128xbf16, #tpu.memory_space<vmem>>, vector<256x128xbf16>
    %c0_4 = arith.constant 0 : index
    %c0_5 = arith.constant 0 : index
    %5 = vector.load %arg4[%c0_4, %c0_5] : memref<128x256xbf16, #tpu.memory_space<vmem>>, vector<128x256xbf16>
    %cst = arith.constant dense<0.000000e+00> : vector<256x256xf32>
    %6 = tpu.matmul %4, %5, %cst {dimension_numbers = #tpu.dot_dimension_numbers<[1], [0], [0], [1], [0, 0, 1, 1], [], []>} : vector<256x128xbf16>, vector<128x256xbf16>, vector<256x256xf32> -> vector<256x256xf32>
    %7 = arith.addf %3, %6 : vector<256x256xf32>
    %c0_6 = arith.constant 0 : index
    %c0_7 = arith.constant 0 : index
    %8 = vector.load %arg7[%c0_6, %c0_7] : memref<256x256xf32, #tpu.memory_space<vmem>>, vector<256x256xf32>
    tpu.vector_store %arg7[%c0_6, %c0_7], %7 {strides = array<i32>} : memref<256x256xf32, #tpu.memory_space<vmem>>, vector<256x256xf32>,
    %c0_i32_8 = arith.constant 0 : i32
    %9 = arith.cmpi eq, %arg2, %c0_i32_8 : i32
    %10 = arith.extui %9 : i1 to i32
    %c0_i32_9 = arith.constant 0 : i32
    %11 = arith.cmpi ne, %10, %c0_i32_9 : i32
    scf.if %11 {
      %c0_10 = arith.constant 0 : index
      %c0_11 = arith.constant 0 : index
      %12 = vector.load %arg7[%c0_10, %c0_11] : memref<256x256xf32, #tpu.memory_space<vmem>>, vector<256x256xf32>
      %c0_12 = arith.constant 0 : index
      %c0_13 = arith.constant 0 : index
      %13 = vector.load %arg5[%c0_12, %c0_13] : memref<1x256xf32, #tpu.memory_space<vmem>>, vector<1x256xf32>
      %14 = vector.broadcast %13 : vector<1x256xf32> to vector<256x256xf32>
      %15 = arith.addf %12, %14 : vector<256x256xf32>
      %c0_14 = arith.constant 0 : index
      %c0_15 = arith.constant 0 : index
      %16 = vector.load %arg6[%c0_14, %c0_15] : memref<256x256xf32, #tpu.memory_space<vmem>>, vector<256x256xf32>
      tpu.vector_store %arg6[%c0_14, %c0_15], %15 {strides = array<i32>} : memref<256x256xf32, #tpu.memory_space<vmem>>, vector<256x256xf32>,
    } else {
    }
    return
  }
  func.func @transform_0(%arg0: i32, %arg1: i32, %arg2: i32) -> (i32, i32) {
    %c0_i32 = arith.constant 0 : i32
    return %arg0, %arg2 : i32, i32
  }
  func.func @transform_1(%arg0: i32, %arg1: i32, %arg2: i32) -> (i32, i32) {
    %c0_i32 = arith.constant 0 : i32
    return %arg2, %arg1 : i32, i32
  }
  func.func @transform_2(%arg0: i32, %arg1: i32, %arg2: i32) -> (i32, i32) {
    %c0_i32 = arith.constant 0 : i32
    %c0_i32_0 = arith.constant 0 : i32
    return %c0_i32, %arg1 : i32, i32
  }
  func.func @transform_3(%arg0: i32, %arg1: i32, %arg2: i32) -> (i32, i32) {
    %c0_i32 = arith.constant 0 : i32
    return %arg0, %arg1 : i32, i32
  }
}

</mosaic_0001>

<bundles_post_ra>
// kernel: unter_forward.13
= control target key start
LH: loop header
LB: loop body
LE: loop exit
PB: predicated region body
PF: predicated region fallthrough
CT: control target
= control target key end

     0   :  { %s158_s22 = smov 64   ;;  %vm136_vm0 = vcmask 523264   ;;  %s369_s0 = inlined_call_operand.vmem [shape: f32[2,8,2,8,128], index: 0, kind: input, shape index: {}]   ;;  %s370_s1 = inlined_call_operand.vmem [shape: f32[2,8,8,64], index: 1, kind: output, shape index: {}]  }
   0x1   :  { %v12_v0 = vld [vmem:[%s369_s0 + $0x20] sm:$0xff]  ;;  %v13_v1 = vld [vmem:[%s369_s0 + $0x28] sm:$0xff]  ;;  %v14_v5 = vld [vmem:[%s369_s0 + $0x30] sm:$0xff] }
   0x2   :  { %v8_v2 = vld [vmem:[%s369_s0] sm:$0xff]  ;;  %v178_v3 = vmax.f32 %v12_v0, %v13_v1  ;;  %v9_v4 = vld [vmem:[%s369_s0 + $0x8] sm:$0xff]  ;;  %v15_v6 = vld [vmem:[%s369_s0 + $0x38] sm:$0xff] }
   0x3   :  { %v189_v7 = vmax.f32 %v8_v2, %v9_v4  ;;  %v10_v8 = vld [vmem:[%s369_s0 + $0x10] sm:$0xff]  ;;  %v11_v9 = vld [vmem:[%s369_s0 + $0x18] sm:$0xff]  ;;  %v199_v10 = vmax.f32 %v14_v5, %v15_v6  ;;  %v16_v14 = vld [vmem:[%s369_s0 + $0x40] sm:$0xff] }
   0x4   :  { %76 = vrot.lane.b32.xlu1 %v178_v3, %s158_s22  ;;  %v203_v11 = vmax.f32 %v10_v8, %v11_v9  ;;  %v18_v12 = vld [vmem:[%s369_s0 + $0x50] sm:$0xff]  ;;  %v19_v13 = vld [vmem:[%s369_s0 + $0x58] sm:$0xff]  ;;  %v17_v15 = vld [vmem:[%s369_s0 + $0x48] sm:$0xff] }
   0x5   :  { %72 = vrot.lane.b32.xlu0 %v189_v7, %s158_s22  ;;  %v219_v16 = vmax.f32 %v18_v12, %v19_v13  ;;  %v223_v17 = vmax.f32 %v16_v14, %v17_v15  ;;  %v22_v18 = vld [vmem:[%s369_s0 + $0x70] sm:$0xff]  ;;  %v23_v19 = vld [vmem:[%s369_s0 + $0x78] sm:$0xff]  ;;  %v20_v20 = vld [vmem:[%s369_s0 + $0x60] sm:$0xff] }
   0x6   :  { %v21_v21 = vld [vmem:[%s369_s0 + $0x68] sm:$0xff]  ;;  %v47_v22 = vmax.f32 %v22_v18, %v23_v19  ;;  %v26_v24 = vld [vmem:[%s369_s0 + $0x90] sm:$0xff]  ;;  %v27_v25 = vld [vmem:[%s369_s0 + $0x98] sm:$0xff] }
   0x7   :  { %v46_v23 = vmax.f32 %v20_v20, %v21_v21  ;;  %v24_v26 = vld [vmem:[%s369_s0 + $0x80] sm:$0xff]  ;;  %v25_v27 = vld [vmem:[%s369_s0 + $0x88] sm:$0xff]  ;;  %v49_v28 = vmax.f32 %v26_v24, %v27_v25  ;;  %v30_v30 = vld [vmem:[%s369_s0 + $0xb0] sm:$0xff] }
   0x8   :  { %78 = vrot.lane.b32.xlu1 %v199_v10, %s158_s22  ;;  %v48_v29 = vmax.f32 %v24_v26, %v25_v27  ;;  %v31_v31 = vld [vmem:[%s369_s0 + $0xb8] sm:$0xff]  ;;  %v28_v32 = vld [vmem:[%s369_s0 + $0xa0] sm:$0xff]  ;;  %v29_v33 = vld [vmem:[%s369_s0 + $0xa8] sm:$0xff] }
   0x9   :  { %74 = vrot.lane.b32.xlu0 %v203_v11, %s158_s22  ;;  %v51_v34 = vmax.f32 %v30_v30, %v31_v31  ;;  %v50_v35 = vmax.f32 %v28_v32, %v29_v33  ;;  %v34_v36 = vld [vmem:[%s369_s0 + $0xd0] sm:$0xff]  ;;  %v35_v37 = vld [vmem:[%s369_s0 + $0xd8] sm:$0xff]  ;;  %v32_v38 = vld [vmem:[%s369_s0 + $0xc0] sm:$0xff] }
   0xa   :  { %v33_v39 = vld [vmem:[%s369_s0 + $0xc8] sm:$0xff]  ;;  %v53_v40 = vmax.f32 %v34_v36, %v35_v37  ;;  %v38_v42 = vld [vmem:[%s369_s0 + $0xf0] sm:$0xff]  ;;  %v39_v43 = vld [vmem:[%s369_s0 + $0xf8] sm:$0xff] }
   0xb   :  { %v52_v41 = vmax.f32 %v32_v38, %v33_v39  ;;  %v36_v44 = vld [vmem:[%s369_s0 + $0xe0] sm:$0xff]  ;;  %v37_v45 = vld [vmem:[%s369_s0 + $0xe8] sm:$0xff]  ;;  %v55_v46 = vmax.f32 %v38_v42, %v39_v43 }
   0xc   :  { %82 = vrot.lane.b32.xlu1 %v219_v16, %s158_s22  ;;  %v54_v47 = vmax.f32 %v36_v44, %v37_v45 }
   0xd   :  { %80 = vrot.lane.b32.xlu0 %v223_v17, %s158_s22 }
  0x10   :  { %86 = vrot.lane.b32.xlu1 %v47_v22, %s158_s22 }
  0x11   :  { %84 = vrot.lane.b32.xlu0 %v46_v23, %s158_s22 }
  0x14   :  { %90 = vrot.lane.b32.xlu1 %v49_v28, %s158_s22 }
  0x15   :  { %88 = vrot.lane.b32.xlu0 %v48_v29, %s158_s22 }
  0x18   :  { %94 = vrot.lane.b32.xlu1 %v51_v34, %s158_s22 }
  0x19   :  { %92 = vrot.lane.b32.xlu0 %v50_v35, %s158_s22 }
  0x1c   :  { %98 = vrot.lane.b32.xlu1 %v53_v40, %s158_s22 }
  0x1d   :  { %96 = vrot.lane.b32.xlu0 %v52_v41, %s158_s22 }
  0x20   :  { %102 = vrot.lane.b32.xlu1 %v55_v46, %s158_s22 }
  0x21   :  { %100 = vrot.lane.b32.xlu0 %v54_v47, %s158_s22 }
  0x76   :  { %v77_v48 = vpop.permute.xlu1 %76 }
  0x77   :  { %v122_v49 = vmax.f32 %v178_v3, %v77_v48  ;;  %v73_v50 = vpop.permute.xlu0 %72 }
  0x78   :  { %v120_v51 = vmax.f32 %v189_v7, %v73_v50 }
  0x79   :  { %139 = vst.msk [vmem:[%s370_s1 + $0x10] sm:$0xff] %vm136_vm0, %v122_v49 }
  0x7a   :  { %137 = vst.msk [vmem:[%s370_s1] sm:$0xff] %vm136_vm0, %v120_v51  ;;  %v79_v52 = vpop.permute.xlu1 %78 }
  0x7b   :  { %v123_v53 = vmax.f32 %v199_v10, %v79_v52  ;;  %v75_v54 = vpop.permute.xlu0 %74 }
  0x7c   :  { %v121_v55 = vmax.f32 %v203_v11, %v75_v54 }
  0x7d   :  { %140 = vst.msk [vmem:[%s370_s1 + $0x18] sm:$0xff] %vm136_vm0, %v123_v53 }
  0x7e   :  { %138 = vst.msk [vmem:[%s370_s1 + $0x8] sm:$0xff] %vm136_vm0, %v121_v55  ;;  %v83_v56 = vpop.permute.xlu1 %82 }
  0x7f   :  { %v125_v57 = vmax.f32 %v219_v16, %v83_v56  ;;  %v81_v58 = vpop.permute.xlu0 %80 }
  0x80   :  { %v124_v59 = vmax.f32 %v223_v17, %v81_v58 }
  0x81   :  { %142 = vst.msk [vmem:[%s370_s1 + $0x28] sm:$0xff] %vm136_vm0, %v125_v57 }
  0x82   :  { %141 = vst.msk [vmem:[%s370_s1 + $0x20] sm:$0xff] %vm136_vm0, %v124_v59  ;;  %v87_v60 = vpop.permute.xlu1 %86 }
  0x83   :  { %v127_v61 = vmax.f32 %v47_v22, %v87_v60  ;;  %v85_v62 = vpop.permute.xlu0 %84 }
  0x84   :  { %v126_v63 = vmax.f32 %v46_v23, %v85_v62 }
  0x85   :  { %144 = vst.msk [vmem:[%s370_s1 + $0x38] sm:$0xff] %vm136_vm0, %v127_v61 }
  0x86   :  { %143 = vst.msk [vmem:[%s370_s1 + $0x30] sm:$0xff] %vm136_vm0, %v126_v63  ;;  %v91_v0 = vpop.permute.xlu1 %90 }
  0x87   :  { %v129_v1 = vmax.f32 %v49_v28, %v91_v0  ;;  %v89_v2 = vpop.permute.xlu0 %88 }
  0x88   :  { %v128_v3 = vmax.f32 %v48_v29, %v89_v2 }
  0x89   :  { %146 = vst.msk [vmem:[%s370_s1 + $0x48] sm:$0xff] %vm136_vm0, %v129_v1 }
  0x8a   :  { %145 = vst.msk [vmem:[%s370_s1 + $0x40] sm:$0xff] %vm136_vm0, %v128_v3  ;;  %v95_v4 = vpop.permute.xlu1 %94 }
  0x8b   :  { %v131_v5 = vmax.f32 %v51_v34, %v95_v4  ;;  %v93_v6 = vpop.permute.xlu0 %92 }
  0x8c   :  { %v130_v7 = vmax.f32 %v50_v35, %v93_v6 }
  0x8d   :  { %148 = vst.msk [vmem:[%s370_s1 + $0x58] sm:$0xff] %vm136_vm0, %v131_v5 }
  0x8e   :  { %147 = vst.msk [vmem:[%s370_s1 + $0x50] sm:$0xff] %vm136_vm0, %v130_v7  ;;  %v99_v8 = vpop.permute.xlu1 %98 }
  0x8f   :  { %v133_v9 = vmax.f32 %v53_v40, %v99_v8  ;;  %v97_v10 = vpop.permute.xlu0 %96 }
  0x90   :  { %v132_v11 = vmax.f32 %v52_v41, %v97_v10 }
  0x91   :  { %150 = vst.msk [vmem:[%s370_s1 + $0x68] sm:$0xff] %vm136_vm0, %v133_v9 }
  0x92   :  { %149 = vst.msk [vmem:[%s370_s1 + $0x60] sm:$0xff] %vm136_vm0, %v132_v11  ;;  %v103_v12 = vpop.permute.xlu1 %102 }
  0x93   :  { %v135_v13 = vmax.f32 %v55_v46, %v103_v12  ;;  %v101_v14 = vpop.permute.xlu0 %100 }
  0x94   :  { %v134_v15 = vmax.f32 %v54_v47, %v101_v14 }
  0x95   :  { %152 = vst.msk [vmem:[%s370_s1 + $0x78] sm:$0xff] %vm136_vm0, %v135_v13 }
  0x96   :  { %151 = vst.msk [vmem:[%s370_s1 + $0x70] sm:$0xff] %vm136_vm0, %v134_v15 }

// kernel: unter_forward.12
= control target key start
LH: loop header
LB: loop body
LE: loop exit
PB: predicated region body
PF: predicated region fallthrough
CT: control target
= control target key end

     0   :  { %s1212_s12 = smov 0   ;;  %s1214_s13 = smov 0   ;;  %s1362_s0 = inlined_call_operand.vmem [shape: bf16[512,128], index: 0, kind: input, shape index: {}]   ;;  %s1363_s1 = inlined_call_operand.vmem [shape: bf16[128,128], index: 1, kind: input, shape index: {}]   ;;  %s1364_s2 = inlined_call_operand.vmem [shape: f32[1,128], index: 2, kind: input, shape index: {}]   ;;  %s1365_s3 = inlined_call_operand.vmem [shape: f32[512,128], index: 3, kind: output, shape index: {}]  }
   0x1   :  { %s1216_s14 = smov 0  }
   0x2 LB: > { %s32_s15 = sadd.s32 1, %s1186_s13  ;;  %p1000_p0 = scmp.ge.s32.totalorder %s1190_s14, 1  ;;  %s1190_s14 = sphi %s1216_s14, %s13_s14   ;;  %s1186_s13 = sphi %s1214_s13, %s1367_s13   ;;  %s1182_s12 = sphi %s1212_s12, %s1366_s12  }
   0x3   : > { %p34_p1 = scmp.ge.s32.totalorder %s32_s15, 2  ;;  %p188_p2 = scmp.lt.s32.totalorder %s1190_s14, 3 }
   0x5   : > { %s1369_s15 = smov (%p34_p1, %s32_s15), 0  ;;  %p189_p3 = pnand %p1000_p0, %p188_p2 }
   0x6   : > { %s1001_s18 = sshll.u32 (!%p189_p3), %s1182_s12, 5 }
   0x7   : > { %192 = sbr.rel (%p189_p3) target bundleno = 273 (0x111), region = 32  ;;  %p230_p4 = scmp.lt.s32.totalorder (!%p189_p3), %s1001_s18, 63 }
   0xc   : > { %v1144_v0 = vld [vmem:[%s1363_s1 + $0x38] sm:$0xff]   ;;  %v1145_v1 = vld [vmem:[%s1363_s1 + $0x30] sm:$0xff]   ;;  %s1371_s18 = smov (!%p230_p4, %s1001_s18), 63  ;;  %v1146_v2 = vld [vmem:[%s1363_s1 + $0x28] sm:$0xff]  }
   0xd   : > { %1056 = vmatprep.subr.bf16.mxu0 %v1144_v0  ;;  %1104 = vmatprep.subr.bf16.mxu1 %v1144_v0  ;;  %s1002_s23 = sshll.u32 %s1371_s18, 2  ;;  %v1147_v3 = vld [vmem:[%s1363_s1 + $0x20] sm:$0xff]   ;;  %v1148_v6 = vld [vmem:[%s1363_s1 + $0x18] sm:$0xff]   ;;  %v1149_v7 = vld [vmem:[%s1363_s1 + $0x10] sm:$0xff]   ;;  %s1004_s12 = sshll.u32 %s1371_s18, 3 }
   0xe   : > { %1057 = vmatpush3.bf16.msra.mxu0 %v1144_v0  ;;  %1112 = vmatpush3.bf16.msra.mxu1 %v1144_v0  ;;  %s1245_s26 = scalar_lea.vmem %s1362_s0, %s1002_s23  ;;  %v1150_v8 = vld [vmem:[%s1363_s1 + $0x8] sm:$0xff]   ;;  %v1151_v9 = vld [vmem:[%s1363_s1] sm:$0xff]   ;;  %s1289_s19 = scalar_lea.vmem %s1365_s3, %s1004_s12 }
   0xf   : > { %1058 = vmatprep.subr.bf16.mxu0 %v1145_v1  ;;  %1105 = vmatprep.subr.bf16.mxu1 %v1145_v1  ;;  %v1152_v4 = vld [vmem:[%s1245_s26] sm:$0xff]   ;;  %v1154_v10 = vld [vmem:[%s1245_s26 + $0x8] sm:$0xff]   ;;  %v1156_v12 = vld [vmem:[%s1245_s26 + $0x10] sm:$0xff]  }
  0x10   : > { %v1153_v5 = vld [vmem:[%s1245_s26 + $0x40] sm:$0xff]   ;;  %1072 = vmatprep.mubr.bf16.mxu0 %v1152_v4  ;;  %v1155_v11 = vld [vmem:[%s1245_s26 + $0x48] sm:$0xff]   ;;  %v1157_v13 = vld [vmem:[%s1245_s26 + $0x50] sm:$0xff]  }
  0x11   : > { %1088 = vmatprep.mubr.bf16.mxu1 %v1153_v5  ;;  %v1158_v14 = vld [vmem:[%s1245_s26 + $0x18] sm:$0xff]   ;;  %v1160_v16 = vld [vmem:[%s1245_s26 + $0x20] sm:$0xff]   ;;  %v1162_v18 = vld [vmem:[%s1245_s26 + $0x28] sm:$0xff]  }
  0x12   : > { %1059 = vmatpush3.bf16.msra.mxu0 %v1145_v1  ;;  %1113 = vmatpush3.bf16.msra.mxu1 %v1145_v1  ;;  %v1159_v15 = vld [vmem:[%s1245_s26 + $0x58] sm:$0xff]   ;;  %v1161_v17 = vld [vmem:[%s1245_s26 + $0x60] sm:$0xff]   ;;  %v1163_v19 = vld [vmem:[%s1245_s26 + $0x68] sm:$0xff]  }
  0x13   : > { %1060 = vmatprep.subr.bf16.mxu0 %v1146_v2  ;;  %1106 = vmatprep.subr.bf16.mxu1 %v1146_v2  ;;  %v1164_v20 = vld [vmem:[%s1245_s26 + $0x30] sm:$0xff]   ;;  %v1166_v22 = vld [vmem:[%s1245_s26 + $0x38] sm:$0xff]   ;;  %v1281_v24 = vld [vmem:[%s1364_s2] ss:$0 sm:$0xff] }
  0x14   : > { %v1165_v21 = vld [vmem:[%s1245_s26 + $0x70] sm:$0xff]   ;;  %v1167_v23 = vld [vmem:[%s1245_s26 + $0x78] sm:$0xff]  }
  0x16   : > { %1061 = vmatpush3.bf16.msra.mxu0 %v1146_v2  ;;  %1114 = vmatpush3.bf16.msra.mxu1 %v1146_v2 }
  0x17   : > { %1062 = vmatprep.subr.bf16.mxu0 %v1147_v3  ;;  %1107 = vmatprep.subr.bf16.mxu1 %v1147_v3 }
  0x1a   : > { %1063 = vmatpush3.bf16.msra.mxu0 %v1147_v3  ;;  %1115 = vmatpush3.bf16.msra.mxu1 %v1147_v3 }
  0x1b   : > { %1064 = vmatprep.subr.bf16.mxu0 %v1148_v6  ;;  %1108 = vmatprep.subr.bf16.mxu1 %v1148_v6 }
  0x1e   : > { %1065 = vmatpush3.bf16.msra.mxu0 %v1148_v6  ;;  %1116 = vmatpush3.bf16.msra.mxu1 %v1148_v6 }
  0x1f   : > { %1066 = vmatprep.subr.bf16.mxu0 %v1149_v7  ;;  %1109 = vmatprep.subr.bf16.mxu1 %v1149_v7 }
  0x22   : > { %1067 = vmatpush3.bf16.msra.mxu0 %v1149_v7  ;;  %1117 = vmatpush3.bf16.msra.mxu1 %v1149_v7 }
  0x23   : > { %1068 = vmatprep.subr.bf16.mxu0 %v1150_v8  ;;  %1110 = vmatprep.subr.bf16.mxu1 %v1150_v8 }
  0x26   : > { %1069 = vmatpush3.bf16.msra.mxu0 %v1150_v8  ;;  %1118 = vmatpush3.bf16.msra.mxu1 %v1150_v8 }
  0x27   : > { %1070 = vmatprep.subr.bf16.mxu0 %v1151_v9  ;;  %1111 = vmatprep.subr.bf16.mxu1 %v1151_v9 }
  0x2a   : > { %1071 = vmatpush3.bf16.msra.mxu0 %v1151_v9  ;;  %1119 = vmatpush3.bf16.msra.mxu1 %v1151_v9 }
  0x2d   : > { %1073 = vmatmul.mubr.bf16.vlgmr.msra.gmra.mxu0 %v1154_v10  ;;  %1089 = vmatmul.mubr.bf16.vlgmr.msra.gmra.mxu1 %v1155_v11 }
  0x2e   : > { %1076 = vmatprep.mubr.bf16.mxu0 %v1156_v12  ;;  %1092 = vmatprep.mubr.bf16.mxu1 %v1157_v13 }
  0x35   : > { %1077 = vmatmul.mubr.bf16.gmra.mxu0 %v1158_v14  ;;  %1093 = vmatmul.mubr.bf16.gmra.mxu1 %v1159_v15 }
  0x36   : > { %1080 = vmatprep.mubr.bf16.mxu0 %v1160_v16  ;;  %1096 = vmatprep.mubr.bf16.mxu1 %v1161_v17 }
  0x3d   : > { %1081 = vmatmul.mubr.bf16.gmra.mxu0 %v1162_v18  ;;  %1097 = vmatmul.mubr.bf16.gmra.mxu1 %v1163_v19 }
  0x3e   : > { %1084 = vmatprep.mubr.bf16.mxu0 %v1164_v20  ;;  %1100 = vmatprep.mubr.bf16.mxu1 %v1165_v21 }
  0x45   : > { %1085 = vmatmul.mubr.bf16.gmra.mxu0 %v1166_v22  ;;  %1101 = vmatmul.mubr.bf16.gmra.mxu1 %v1167_v23 }
  0xed   : > { %v1074_v25 = vpop.f32.mrf.mxu0  ;;  %v1090_v26 = vpop.f32.mrf.mxu1 }
  0xee   : > { %v789_v27 = vadd.f32 %v1074_v25, %v1281_v24  ;;  %v805_v28 = vadd.f32 %v1090_v26, %v1281_v24 }
  0xef   : > { %v554_v29 = vpop.f32.mrf.mxu0  ;;  %v618_v30 = vpop.f32.mrf.mxu1 }
  0xf0   : > { %v821_v31 = vmax.f32 %v789_v27, 0.0  ;;  %v837_v32 = vmax.f32 %v805_v28, 0.0  ;;  %v787_v33 = vadd.f32 %v1281_v24, %v554_v29  ;;  %v803_v34 = vadd.f32 %v1281_v24, %v618_v30 }
  0xf1   : > { %v1075_v35 = vpop.f32.mrf.mxu0  ;;  %v1091_v36 = vpop.f32.mrf.mxu1 }
  0xf2   : > { %853 = vst [vmem:[%s1289_s19 + $0x10] sm:$0xff] %v821_v31  ;;  %869 = vst [vmem:[%s1289_s19 + $0x90] sm:$0xff] %v837_v32  ;;  %v819_v37 = vmax.f32 %v787_v33, 0.0  ;;  %v835_v38 = vmax.f32 %v803_v34, 0.0  ;;  %v790_v39 = vadd.f32 %v1075_v35, %v1281_v24  ;;  %v806_v40 = vadd.f32 %v1091_v36, %v1281_v24 }
  0xf3   : > { %v557_v41 = vpop.f32.mrf.mxu0  ;;  %v621_v42 = vpop.f32.mrf.mxu1 }
  0xf4   : > { %851 = vst [vmem:[%s1289_s19] sm:$0xff] %v819_v37  ;;  %867 = vst [vmem:[%s1289_s19 + $0x80] sm:$0xff] %v835_v38  ;;  %v822_v43 = vmax.f32 %v790_v39, 0.0  ;;  %v838_v44 = vmax.f32 %v806_v40, 0.0  ;;  %v788_v45 = vadd.f32 %v1281_v24, %v557_v41  ;;  %v804_v46 = vadd.f32 %v1281_v24, %v621_v42 }
  0xf5   : > { %v1078_v47 = vpop.f32.mrf.mxu0  ;;  %v1094_v48 = vpop.f32.mrf.mxu1 }
  0xf6   : > { %854 = vst [vmem:[%s1289_s19 + $0x18] sm:$0xff] %v822_v43  ;;  %870 = vst [vmem:[%s1289_s19 + $0x98] sm:$0xff] %v838_v44  ;;  %v820_v49 = vmax.f32 %v788_v45, 0.0  ;;  %v836_v50 = vmax.f32 %v804_v46, 0.0  ;;  %v793_v51 = vadd.f32 %v1078_v47, %v1281_v24  ;;  %v809_v52 = vadd.f32 %v1094_v48, %v1281_v24 }
  0xf7   : > { %v570_v53 = vpop.f32.mrf.mxu0  ;;  %v634_v54 = vpop.f32.mrf.mxu1 }
  0xf8   : > { %852 = vst [vmem:[%s1289_s19 + $0x8] sm:$0xff] %v820_v49  ;;  %868 = vst [vmem:[%s1289_s19 + $0x88] sm:$0xff] %v836_v50  ;;  %v825_v55 = vmax.f32 %v793_v51, 0.0  ;;  %v841_v56 = vmax.f32 %v809_v52, 0.0  ;;  %v791_v57 = vadd.f32 %v1281_v24, %v570_v53  ;;  %v807_v58 = vadd.f32 %v1281_v24, %v634_v54 }
  0xf9   : > { %v1079_v59 = vpop.f32.mrf.mxu0  ;;  %v1095_v60 = vpop.f32.mrf.mxu1 }
  0xfa   : > { %857 = vst [vmem:[%s1289_s19 + $0x30] sm:$0xff] %v825_v55  ;;  %873 = vst [vmem:[%s1289_s19 + $0xb0] sm:$0xff] %v841_v56  ;;  %v823_v61 = vmax.f32 %v791_v57, 0.0  ;;  %v839_v62 = vmax.f32 %v807_v58, 0.0  ;;  %v794_v63 = vadd.f32 %v1079_v59, %v1281_v24  ;;  %v810_v0 = vadd.f32 %v1095_v60, %v1281_v24 }
  0xfb   : > { %v573_v1 = vpop.f32.mrf.mxu0  ;;  %v637_v2 = vpop.f32.mrf.mxu1 }
  0xfc   : > { %855 = vst [vmem:[%s1289_s19 + $0x20] sm:$0xff] %v823_v61  ;;  %871 = vst [vmem:[%s1289_s19 + $0xa0] sm:$0xff] %v839_v62  ;;  %v826_v3 = vmax.f32 %v794_v63, 0.0  ;;  %v842_v4 = vmax.f32 %v810_v0, 0.0  ;;  %v792_v5 = vadd.f32 %v1281_v24, %v573_v1  ;;  %v808_v6 = vadd.f32 %v1281_v24, %v637_v2 }
  0xfd   : > { %v1082_v7 = vpop.f32.mrf.mxu0  ;;  %v1098_v8 = vpop.f32.mrf.mxu1 }
  0xfe   : > { %858 = vst [vmem:[%s1289_s19 + $0x38] sm:$0xff] %v826_v3  ;;  %874 = vst [vmem:[%s1289_s19 + $0xb8] sm:$0xff] %v842_v4  ;;  %v824_v9 = vmax.f32 %v792_v5, 0.0  ;;  %v840_v10 = vmax.f32 %v808_v6, 0.0  ;;  %v797_v11 = vadd.f32 %v1082_v7, %v1281_v24  ;;  %v813_v12 = vadd.f32 %v1098_v8, %v1281_v24 }
  0xff   : > { %v586_v13 = vpop.f32.mrf.mxu0  ;;  %v650_v14 = vpop.f32.mrf.mxu1 }
 0x100   : > { %856 = vst [vmem:[%s1289_s19 + $0x28] sm:$0xff] %v824_v9  ;;  %872 = vst [vmem:[%s1289_s19 + $0xa8] sm:$0xff] %v840_v10  ;;  %v829_v15 = vmax.f32 %v797_v11, 0.0  ;;  %v845_v16 = vmax.f32 %v813_v12, 0.0  ;;  %v795_v17 = vadd.f32 %v1281_v24, %v586_v13  ;;  %v811_v18 = vadd.f32 %v1281_v24, %v650_v14 }
 0x101   : > { %v1083_v19 = vpop.f32.mrf.mxu0  ;;  %v1099_v20 = vpop.f32.mrf.mxu1 }
 0x102   : > { %861 = vst [vmem:[%s1289_s19 + $0x50] sm:$0xff] %v829_v15  ;;  %877 = vst [vmem:[%s1289_s19 + $0xd0] sm:$0xff] %v845_v16  ;;  %v827_v21 = vmax.f32 %v795_v17, 0.0  ;;  %v843_v22 = vmax.f32 %v811_v18, 0.0  ;;  %v798_v23 = vadd.f32 %v1083_v19, %v1281_v24  ;;  %v814_v25 = vadd.f32 %v1099_v20, %v1281_v24 }
 0x103   : > { %v589_v26 = vpop.f32.mrf.mxu0  ;;  %v653_v27 = vpop.f32.mrf.mxu1 }
 0x104   : > { %859 = vst [vmem:[%s1289_s19 + $0x40] sm:$0xff] %v827_v21  ;;  %875 = vst [vmem:[%s1289_s19 + $0xc0] sm:$0xff] %v843_v22  ;;  %v830_v28 = vmax.f32 %v798_v23, 0.0  ;;  %v846_v29 = vmax.f32 %v814_v25, 0.0  ;;  %v796_v30 = vadd.f32 %v1281_v24, %v589_v26  ;;  %v812_v31 = vadd.f32 %v1281_v24, %v653_v27 }
 0x105   : > { %v1086_v32 = vpop.f32.mrf.mxu0  ;;  %v1102_v33 = vpop.f32.mrf.mxu1 }
 0x106   : > { %862 = vst [vmem:[%s1289_s19 + $0x58] sm:$0xff] %v830_v28  ;;  %878 = vst [vmem:[%s1289_s19 + $0xd8] sm:$0xff] %v846_v29  ;;  %v828_v34 = vmax.f32 %v796_v30, 0.0  ;;  %v844_v35 = vmax.f32 %v812_v31, 0.0  ;;  %v801_v36 = vadd.f32 %v1086_v32, %v1281_v24  ;;  %v817_v37 = vadd.f32 %v1102_v33, %v1281_v24 }
 0x107   : > { %v602_v38 = vpop.f32.mrf.mxu0  ;;  %v666_v39 = vpop.f32.mrf.mxu1 }
 0x108   : > { %860 = vst [vmem:[%s1289_s19 + $0x48] sm:$0xff] %v828_v34  ;;  %876 = vst [vmem:[%s1289_s19 + $0xc8] sm:$0xff] %v844_v35  ;;  %v833_v40 = vmax.f32 %v801_v36, 0.0  ;;  %v849_v41 = vmax.f32 %v817_v37, 0.0  ;;  %v799_v42 = vadd.f32 %v1281_v24, %v602_v38  ;;  %v815_v43 = vadd.f32 %v1281_v24, %v666_v39 }
 0x109   : > { %v1087_v44 = vpop.f32.mrf.mxu0  ;;  %v1103_v45 = vpop.f32.mrf.mxu1 }
 0x10a   : > { %865 = vst [vmem:[%s1289_s19 + $0x70] sm:$0xff] %v833_v40  ;;  %881 = vst [vmem:[%s1289_s19 + $0xf0] sm:$0xff] %v849_v41  ;;  %v831_v46 = vmax.f32 %v799_v42, 0.0  ;;  %v847_v47 = vmax.f32 %v815_v43, 0.0  ;;  %v802_v48 = vadd.f32 %v1087_v44, %v1281_v24  ;;  %v818_v49 = vadd.f32 %v1103_v45, %v1281_v24 }
 0x10b   : > { %v605_v50 = vpop.f32.mrf.mxu0  ;;  %v669_v51 = vpop.f32.mrf.mxu1 }
 0x10c   : > { %863 = vst [vmem:[%s1289_s19 + $0x60] sm:$0xff] %v831_v46  ;;  %879 = vst [vmem:[%s1289_s19 + $0xe0] sm:$0xff] %v847_v47  ;;  %v834_v52 = vmax.f32 %v802_v48, 0.0  ;;  %v850_v53 = vmax.f32 %v818_v49, 0.0  ;;  %v800_v54 = vadd.f32 %v1281_v24, %v605_v50  ;;  %v816_v55 = vadd.f32 %v1281_v24, %v669_v51 }
 0x10e   : > { %866 = vst [vmem:[%s1289_s19 + $0x78] sm:$0xff] %v834_v52  ;;  %882 = vst [vmem:[%s1289_s19 + $0xf8] sm:$0xff] %v850_v53  ;;  %v832_v56 = vmax.f32 %v800_v54, 0.0  ;;  %v848_v57 = vmax.f32 %v816_v55, 0.0 }
 0x110   : > { %864 = vst [vmem:[%s1289_s19 + $0x68] sm:$0xff] %v832_v56  ;;  %880 = vst [vmem:[%s1289_s19 + $0xe8] sm:$0xff] %v848_v57 }
 0x111 PF: > { %s13_s14 = sadd.s32 1, %s1190_s14   ;;  %s1366_s12 = smov %s1186_s13 }
 0x112   : > { %p10_p5 = scmp.ge.s32.totalorder %s13_s14, 4   ;;  %s1367_s13 = smov %s1369_s15 }
 0x114   :  { %12 = sbr.rel (!%p10_p5) target bundleno = 2 (0x2), region = 76 }

// kernel: unter_forward.15
= control target key start
LH: loop header
LB: loop body
LE: loop exit
PB: predicated region body
PF: predicated region fallthrough
CT: control target
= control target key end

     0   :  { %s158_s0 = inlined_call_operand.vmem [shape: f32[2,4,2,4,256], index: 0, kind: input, shape index: {}]   ;;  %s159_s1 = inlined_call_operand.vmem [shape: f32[2,4,4,128], index: 1, kind: output, shape index: {}]  }
   0x1   :  { %v8_v0 = vld [vmem:[%s158_s0] sm:$0xff]  ;;  %v9_v1 = vld [vmem:[%s158_s0 + $0x8] sm:$0xff]  ;;  %v10_v2 = vld [vmem:[%s158_s0 + $0x10] sm:$0xff] }
   0x2   :  { %v24_v3 = vmax.f32 %v8_v0, %v9_v1  ;;  %v11_v4 = vld [vmem:[%s158_s0 + $0x18] sm:$0xff]  ;;  %v12_v5 = vld [vmem:[%s158_s0 + $0x20] sm:$0xff]  ;;  %v13_v6 = vld [vmem:[%s158_s0 + $0x28] sm:$0xff] }
   0x3   :  { %v25_v7 = vmax.f32 %v10_v2, %v11_v4  ;;  %v26_v8 = vmax.f32 %v12_v5, %v13_v6  ;;  %v14_v9 = vld [vmem:[%s158_s0 + $0x30] sm:$0xff]  ;;  %v15_v10 = vld [vmem:[%s158_s0 + $0x38] sm:$0xff]  ;;  %v16_v11 = vld [vmem:[%s158_s0 + $0x40] sm:$0xff] }
   0x4   :  { %v40_v12 = vrot.slane %v24_v3, 4  ;;  %v27_v13 = vmax.f32 %v14_v9, %v15_v10  ;;  %v17_v14 = vld [vmem:[%s158_s0 + $0x48] sm:$0xff]  ;;  %v18_v15 = vld [vmem:[%s158_s0 + $0x50] sm:$0xff]  ;;  %v19_v16 = vld [vmem:[%s158_s0 + $0x58] sm:$0xff] }
   0x5   :  { %v41_v17 = vrot.slane %v25_v7, 4  ;;  %v42_v18 = vrot.slane %v26_v8, 4  ;;  %v28_v19 = vmax.f32 %v16_v11, %v17_v14  ;;  %v29_v20 = vmax.f32 %v18_v15, %v19_v16  ;;  %v20_v21 = vld [vmem:[%s158_s0 + $0x60] sm:$0xff]  ;;  %v21_v22 = vld [vmem:[%s158_s0 + $0x68] sm:$0xff]  ;;  %v22_v23 = vld [vmem:[%s158_s0 + $0x70] sm:$0xff] }
   0x6   :  { %v56_v24 = vmax.f32 %v24_v3, %v40_v12  ;;  %v43_v25 = vrot.slane %v27_v13, 4  ;;  %v30_v26 = vmax.f32 %v20_v21, %v21_v22  ;;  %v23_v27 = vld [vmem:[%s158_s0 + $0x78] sm:$0xff] }
   0x7   :  { %v57_v28 = vmax.f32 %v25_v7, %v41_v17  ;;  %v58_v29 = vmax.f32 %v26_v8, %v42_v18  ;;  %v44_v30 = vrot.slane %v28_v19, 4  ;;  %v45_v31 = vrot.slane %v29_v20, 4 }
   0x8   :  { %64 = vst [vmem:[%s159_s1] sm:$0xf] %v56_v24  ;;  %v59_v32 = vmax.f32 %v27_v13, %v43_v25  ;;  %v46_v33 = vrot.slane %v30_v26, 4  ;;  %v31_v34 = vmax.f32 %v22_v23, %v23_v27 }
   0x9   :  { %65 = vst [vmem:[%s159_s1 + $0x4] sm:$0xf] %v57_v28  ;;  %66 = vst [vmem:[%s159_s1 + $0x8] sm:$0xf] %v58_v29  ;;  %v60_v35 = vmax.f32 %v28_v19, %v44_v30  ;;  %v61_v36 = vmax.f32 %v29_v20, %v45_v31 }
   0xa   :  { %67 = vst [vmem:[%s159_s1 + $0xc] sm:$0xf] %v59_v32  ;;  %v62_v37 = vmax.f32 %v30_v26, %v46_v33  ;;  %v47_v38 = vrot.slane %v31_v34, 4 }
   0xb   :  { %68 = vst [vmem:[%s159_s1 + $0x10] sm:$0xf] %v60_v35  ;;  %69 = vst [vmem:[%s159_s1 + $0x14] sm:$0xf] %v61_v36 }
   0xc   :  { %70 = vst [vmem:[%s159_s1 + $0x18] sm:$0xf] %v62_v37  ;;  %v63_v39 = vmax.f32 %v31_v34, %v47_v38 }
   0xe   :  { %71 = vst [vmem:[%s159_s1 + $0x1c] sm:$0xf] %v63_v39 }

// kernel: unter_forward.14
= control target key start
LH: loop header
LB: loop body
LE: loop exit
PB: predicated region body
PF: predicated region fallthrough
CT: control target
= control target key end

     0   :  { %s1625_s12 = smov 0   ;;  %s1627_s13 = smov 0   ;;  %s1879_s0 = inlined_call_operand.vmem [shape: bf16[128,1024], index: 0, kind: input, shape index: {}]   ;;  %s1880_s1 = inlined_call_operand.vmem [shape: bf16[1024,128], index: 1, kind: input, shape index: {}]   ;;  %s1881_s2 = inlined_call_operand.vmem [shape: f32[1,128], index: 2, kind: input, shape index: {}]   ;;  %s1882_s3 = inlined_call_operand.vmem [shape: f32[128,128], index: 3, kind: output, shape index: {}]  }
   0x1   :  { %s1629_s14 = smov 0   ;;  %s1631_s15 = smov 0  }
   0x2   :  { %s1633_s16 = smov 0  }
   0x3 LB: > { %s25_s17 = sadd.s32 1, %s1598_s15  ;;  %p48_p1 = scmp.ne.s32.totalorder %s1590_s13, %s1586_s12  ;;  %s1602_s16 = sphi %s1633_s16, %s13_s16   ;;  %s1598_s15 = sphi %s1631_s15, %s1886_s15   ;;  %s1594_s14 = sphi %s1629_s14, %s1885_s14   ;;  %s1590_s13 = sphi %s1627_s13, %s1884_s13   ;;  %s1586_s12 = sphi %s1625_s12, %s1883_s12  }
   0x4   : > { %p26_p0 = scmp.ge.s32.totalorder %s25_s17, 2  ;;  %p49_p2 = scmp.eq.s32.totalorder %s1602_s16, 0 }
   0x5   : > { %s41_s19 = sadd.s32 1, %s1590_s13  ;;  %p1235_p5 = scmp.ge.s32.totalorder %s1602_s16, 2 }
   0x6   : > { %s1888_s17 = smov (%p26_p0, %s25_s17), 0  ;;  %p50_p3 = por %p49_p2, %p48_p1 }
   0x7   : > { %s37_s18 = ssub.s32 %s1598_s15, %s1888_s17  ;;  %162 = sbr.rel (%p1235_p5) target bundleno = 32 (0x20), region = 20 }
   0x8   : > { %p39_p4 = scmp.eq.s32.totalorder %s37_s18, 0 }
   0xa   : > { %s1660_s20 = scalar_select %p39_p4, %s1590_s13, %s41_s19  }
   0xc   : > { %165 = sbr.rel (!%p50_p3) target bundleno = 32 (0x20), region = 24  ;;  %s167_s21 = sand.u32 (%p50_p3), 1, %s1590_s13  }
   0xd   : > { %s1314_s22 = sshll.u32 (%p50_p3), %s1598_s15, 4  ;;  %s1236_s23 = sshll.u32 (%p50_p3), %s167_s21, 8 }
   0xe   : > { %s1668_s26 = scalar_lea.vmem (%p50_p3), %s1879_s0, %s1314_s22  ;;  %s1673_s27 = scalar_lea.vmem (%p50_p3), [#allocation3], %s1236_s23 }
   0xf   : > { %v188_v0 = vld [vmem:[%s1668_s26] sm:$0xff] (%p50_p3)  ;;  %v190_v1 = vld [vmem:[%s1668_s26 + $0x8] sm:$0xff] (%p50_p3) }
  0x10   : > { %v192_v2 = vld [vmem:[%s1668_s26 + $0x20] sm:$0xff] (%p50_p3)  ;;  %189 = vst [vmem:[%s1673_s27] sm:$0xff] (%p50_p3), %v188_v0  ;;  %191 = vst [vmem:[%s1673_s27 + $0x8] sm:$0xff] (%p50_p3), %v190_v1  ;;  %v194_v3 = vld [vmem:[%s1668_s26 + $0x28] sm:$0xff] (%p50_p3) }
  0x11   : > { %193 = vst [vmem:[%s1673_s27 + $0x10] sm:$0xff] %v192_v2  ;;  %v196_v4 = vld [vmem:[%s1668_s26 + $0x40] sm:$0xff]  ;;  %v198_v5 = vld [vmem:[%s1668_s26 + $0x48] sm:$0xff]  ;;  %195 = vst [vmem:[%s1673_s27 + $0x18] sm:$0xff] %v194_v3 }
  0x12   : > { %197 = vst [vmem:[%s1673_s27 + $0x20] sm:$0xff] %v196_v4  ;;  %199 = vst [vmem:[%s1673_s27 + $0x28] sm:$0xff] %v198_v5  ;;  %v200_v6 = vld [vmem:[%s1668_s26 + $0x60] sm:$0xff]  ;;  %v202_v7 = vld [vmem:[%s1668_s26 + $0x68] sm:$0xff] }
  0x13   : > { %v204_v8 = vld [vmem:[%s1668_s26 + $0x80] sm:$0xff]  ;;  %201 = vst [vmem:[%s1673_s27 + $0x30] sm:$0xff] %v200_v6  ;;  %203 = vst [vmem:[%s1673_s27 + $0x38] sm:$0xff] %v202_v7  ;;  %v206_v9 = vld [vmem:[%s1668_s26 + $0x88] sm:$0xff] }
  0x14   : > { %205 = vst [vmem:[%s1673_s27 + $0x40] sm:$0xff] %v204_v8  ;;  %v208_v10 = vld [vmem:[%s1668_s26 + $0xa0] sm:$0xff]  ;;  %v210_v11 = vld [vmem:[%s1668_s26 + $0xa8] sm:$0xff]  ;;  %207 = vst [vmem:[%s1673_s27 + $0x48] sm:$0xff] %v206_v9 }
  0x15   : > { %209 = vst [vmem:[%s1673_s27 + $0x50] sm:$0xff] %v208_v10  ;;  %211 = vst [vmem:[%s1673_s27 + $0x58] sm:$0xff] %v210_v11  ;;  %v212_v12 = vld [vmem:[%s1668_s26 + $0xc0] sm:$0xff]  ;;  %v214_v13 = vld [vmem:[%s1668_s26 + $0xc8] sm:$0xff] }
  0x16   : > { %v216_v14 = vld [vmem:[%s1668_s26 + $0xe0] sm:$0xff]  ;;  %213 = vst [vmem:[%s1673_s27 + $0x60] sm:$0xff] %v212_v12  ;;  %215 = vst [vmem:[%s1673_s27 + $0x68] sm:$0xff] %v214_v13  ;;  %v218_v15 = vld [vmem:[%s1668_s26 + $0xe8] sm:$0xff] }
  0x17   : > { %217 = vst [vmem:[%s1673_s27 + $0x70] sm:$0xff] %v216_v14  ;;  %v220_v16 = vld [vmem:[%s1668_s26 + $0x100] sm:$0xff]  ;;  %v222_v17 = vld [vmem:[%s1668_s26 + $0x108] sm:$0xff]  ;;  %219 = vst [vmem:[%s1673_s27 + $0x78] sm:$0xff] %v218_v15 }
  0x18   : > { %221 = vst [vmem:[%s1673_s27 + $0x80] sm:$0xff] %v220_v16  ;;  %223 = vst [vmem:[%s1673_s27 + $0x88] sm:$0xff] %v222_v17  ;;  %v224_v18 = vld [vmem:[%s1668_s26 + $0x120] sm:$0xff]  ;;  %v226_v19 = vld [vmem:[%s1668_s26 + $0x128] sm:$0xff] }
  0x19   : > { %v228_v20 = vld [vmem:[%s1668_s26 + $0x140] sm:$0xff]  ;;  %225 = vst [vmem:[%s1673_s27 + $0x90] sm:$0xff] %v224_v18  ;;  %227 = vst [vmem:[%s1673_s27 + $0x98] sm:$0xff] %v226_v19  ;;  %v230_v21 = vld [vmem:[%s1668_s26 + $0x148] sm:$0xff] }
  0x1a   : > { %229 = vst [vmem:[%s1673_s27 + $0xa0] sm:$0xff] %v228_v20  ;;  %v232_v22 = vld [vmem:[%s1668_s26 + $0x160] sm:$0xff]  ;;  %v234_v23 = vld [vmem:[%s1668_s26 + $0x168] sm:$0xff]  ;;  %231 = vst [vmem:[%s1673_s27 + $0xa8] sm:$0xff] %v230_v21 }
  0x1b   : > { %233 = vst [vmem:[%s1673_s27 + $0xb0] sm:$0xff] %v232_v22  ;;  %235 = vst [vmem:[%s1673_s27 + $0xb8] sm:$0xff] %v234_v23  ;;  %v236_v24 = vld [vmem:[%s1668_s26 + $0x180] sm:$0xff]  ;;  %v238_v25 = vld [vmem:[%s1668_s26 + $0x188] sm:$0xff] }
  0x1c   : > { %v240_v26 = vld [vmem:[%s1668_s26 + $0x1a0] sm:$0xff]  ;;  %237 = vst [vmem:[%s1673_s27 + $0xc0] sm:$0xff] %v236_v24  ;;  %239 = vst [vmem:[%s1673_s27 + $0xc8] sm:$0xff] %v238_v25  ;;  %v242_v27 = vld [vmem:[%s1668_s26 + $0x1a8] sm:$0xff] }
  0x1d   : > { %241 = vst [vmem:[%s1673_s27 + $0xd0] sm:$0xff] %v240_v26  ;;  %v244_v28 = vld [vmem:[%s1668_s26 + $0x1c0] sm:$0xff]  ;;  %v246_v29 = vld [vmem:[%s1668_s26 + $0x1c8] sm:$0xff]  ;;  %243 = vst [vmem:[%s1673_s27 + $0xd8] sm:$0xff] %v242_v27 }
  0x1e   : > { %245 = vst [vmem:[%s1673_s27 + $0xe0] sm:$0xff] %v244_v28  ;;  %247 = vst [vmem:[%s1673_s27 + $0xe8] sm:$0xff] %v246_v29  ;;  %v248_v30 = vld [vmem:[%s1668_s26 + $0x1e0] sm:$0xff]  ;;  %v250_v31 = vld [vmem:[%s1668_s26 + $0x1e8] sm:$0xff] }
  0x1f   : > { %249 = vst [vmem:[%s1673_s27 + $0xf0] sm:$0xff] %v248_v30  ;;  %251 = vst [vmem:[%s1673_s27 + $0xf8] sm:$0xff] %v250_v31 }
  0x20 PF: > { %p1239_p6 = scmp.ge.s32.totalorder %s1602_s16, 1  ;;  %p268_p7 = scmp.lt.s32.totalorder %s1602_s16, 3 }
  0x22   : > { %p269_p8 = pnand %p1239_p6, %p268_p7 }
  0x23   : > { %s275_s28 = sand.u32 (!%p269_p8), 1, %s1586_s12   ;;  %s1241_s29 = sshll.u32 (!%p269_p8), %s1594_s14, 6 }
  0x24   : > { %272 = sbr.rel (%p269_p8) target bundleno = 365 (0x16d), region = 51  ;;  %s1240_s30 = sshll.u32 (!%p269_p8), %s275_s28, 8 }
  0x25   : > { %p315_p9 = scmp.lt.s32.totalorder (!%p269_p8), %s1241_s29, 127  ;;  %s1745_s8 = scalar_lea.vmem (!%p269_p8), [#allocation3], %s1240_s30 }
  0x26   : > { %p1243_p10 = scmp.ne.s32.totalorder (!%p269_p8), %s1594_s14, 0 }
  0x29   : > { %s1890_s29 = smov (!%p315_p9, %s1241_s29), 127  ;;  %339 = sbr.rel (%p1243_p10) target bundleno = 55 (0x37), region = 59 }
  0x2a   : > { %s1242_s4 = sshll.u32 %s1890_s29, 2 }
  0x2b   : > { %s1743_s7 = scalar_lea.vmem %s1880_s1, %s1242_s4 }
  0x2e   : > { %v1604_v32 = vmov 0.0  }
  0x2f   : > { %340 = vst [vmem:[#allocation2 + $0x30] sm:$0xff] %v1604_v32  ;;  %341 = vst [vmem:[#allocation2] sm:$0xff] %v1604_v32 }
  0x30   : > { %342 = vst [vmem:[#allocation2 + $0x58] sm:$0xff] %v1604_v32  ;;  %343 = vst [vmem:[#allocation2 + $0x18] sm:$0xff] %v1604_v32 }
  0x31   : > { %344 = vst [vmem:[#allocation2 + $0x50] sm:$0xff] %v1604_v32  ;;  %345 = vst [vmem:[#allocation2 + $0x68] sm:$0xff] %v1604_v32 }
  0x32   : > { %346 = vst [vmem:[#allocation2 + $0x8] sm:$0xff] %v1604_v32  ;;  %347 = vst [vmem:[#allocation2 + $0x48] sm:$0xff] %v1604_v32 }
  0x33   : > { %348 = vst [vmem:[#allocation2 + $0x40] sm:$0xff] %v1604_v32  ;;  %349 = vst [vmem:[#allocation2 + $0x20] sm:$0xff] %v1604_v32 }
  0x34   : > { %350 = vst [vmem:[#allocation2 + $0x10] sm:$0xff] %v1604_v32  ;;  %351 = vst [vmem:[#allocation2 + $0x38] sm:$0xff] %v1604_v32 }
  0x35   : > { %352 = vst [vmem:[#allocation2 + $0x60] sm:$0xff] %v1604_v32  ;;  %353 = vst [vmem:[#allocation2 + $0x70] sm:$0xff] %v1604_v32 }
  0x36   : > { %354 = vst [vmem:[#allocation2 + $0x78] sm:$0xff] %v1604_v32  ;;  %355 = vst [vmem:[#allocation2 + $0x28] sm:$0xff] %v1604_v32 }
  0x37 PF: > { %v1484_v33 = vld [vmem:[%s1743_s7 + $0x78] sm:$0xff]   ;;  %v1488_v37 = vld [vmem:[%s1743_s7 + $0x70] sm:$0xff]   ;;  %v1492_v41 = vld [vmem:[%s1743_s7 + $0x68] sm:$0xff]   ;;  %p1308_p11 = scmp.ne.s32.totalorder %s1594_s14, 1 }
  0x38   : > { %v1485_v34 = vld [vmem:[%s1743_s7 + $0xf8] sm:$0xff]   ;;  %1315 = vmatprep.subr.bf16.mxu0 %v1484_v33  ;;  %v1489_v38 = vld [vmem:[%s1743_s7 + $0xf0] sm:$0xff]   ;;  %v1493_v42 = vld [vmem:[%s1743_s7 + $0xe8] sm:$0xff]  }
  0x39   : > { %v1486_v35 = vld [vmem:[%s1743_s7 + $0x38] sm:$0xff]   ;;  %1379 = vmatprep.subr.bf16.mxu1 %v1485_v34  ;;  %v1490_v39 = vld [vmem:[%s1743_s7 + $0x30] sm:$0xff]   ;;  %v1494_v43 = vld [vmem:[%s1743_s7 + $0x28] sm:$0xff]  }
  0x3a   : > { %v1487_v36 = vld [vmem:[%s1743_s7 + $0xb8] sm:$0xff]   ;;  %1316 = vmatpush3.bf16.msra.mxu0 %v1486_v35  ;;  %v1491_v40 = vld [vmem:[%s1743_s7 + $0xb0] sm:$0xff]   ;;  %v1495_v44 = vld [vmem:[%s1743_s7 + $0xa8] sm:$0xff]  }
  0x3b   : > { %1380 = vmatpush3.bf16.msra.mxu1 %v1487_v36  ;;  %1317 = vmatprep.subr.bf16.mxu0 %v1488_v37  ;;  %v1496_v45 = vld [vmem:[%s1743_s7 + $0x60] sm:$0xff]   ;;  %v1500_v49 = vld [vmem:[%s1743_s7 + $0x58] sm:$0xff]   ;;  %v1504_v53 = vld [vmem:[%s1743_s7 + $0x50] sm:$0xff]  }
  0x3c   : > { %1381 = vmatprep.subr.bf16.mxu1 %v1489_v38  ;;  %v1497_v46 = vld [vmem:[%s1743_s7 + $0xe0] sm:$0xff]   ;;  %v1501_v50 = vld [vmem:[%s1743_s7 + $0xd8] sm:$0xff]   ;;  %v1505_v54 = vld [vmem:[%s1743_s7 + $0xd0] sm:$0xff]  }
  0x3d   : > { %v1498_v47 = vld [vmem:[%s1743_s7 + $0x20] sm:$0xff]   ;;  %v1502_v51 = vld [vmem:[%s1743_s7 + $0x18] sm:$0xff]   ;;  %v1506_v55 = vld [vmem:[%s1743_s7 + $0x10] sm:$0xff]  }
  0x3e   : > { %1318 = vmatpush3.bf16.msra.mxu0 %v1490_v39  ;;  %v1499_v48 = vld [vmem:[%s1743_s7 + $0xa0] sm:$0xff]   ;;  %v1503_v52 = vld [vmem:[%s1743_s7 + $0x98] sm:$0xff]   ;;  %v1507_v56 = vld [vmem:[%s1743_s7 + $0x90] sm:$0xff]  }
  0x3f   : > { %1382 = vmatpush3.bf16.msra.mxu1 %v1491_v40  ;;  %1319 = vmatprep.subr.bf16.mxu0 %v1492_v41  ;;  %v1508_v57 = vld [vmem:[%s1743_s7 + $0x48] sm:$0xff]   ;;  %v1512_v61 = vld [vmem:[%s1743_s7 + $0x40] sm:$0xff]   ;;  %v356_v40 = vld [vmem:[#allocation2 + $0x30] sm:$0xff] }
  0x40   : > { %1383 = vmatprep.subr.bf16.mxu1 %v1493_v42  ;;  %v1509_v58 = vld [vmem:[%s1743_s7 + $0xc8] sm:$0xff]   ;;  %v1513_v62 = vld [vmem:[%s1743_s7 + $0xc0] sm:$0xff]  }
  0x41   : > { %v1510_v59 = vld [vmem:[%s1743_s7 + $0x8] sm:$0xff]   ;;  %v1514_v63 = vld [vmem:[%s1743_s7] sm:$0xff]  }
  0x42   : > { %1320 = vmatpush3.bf16.msra.mxu0 %v1494_v43  ;;  %v1511_v60 = vld [vmem:[%s1743_s7 + $0x88] sm:$0xff]   ;;  %v1515_v0 = vld [vmem:[%s1743_s7 + $0x80] sm:$0xff]  }
  0x43   : > { %1384 = vmatpush3.bf16.msra.mxu1 %v1495_v44  ;;  %1321 = vmatprep.subr.bf16.mxu0 %v1496_v45  ;;  %v1516_v1 = vld [vmem:[%s1745_s8] ss:$16 sps:$4 sm:$0xff]   ;;  %v1518_v2 = vld [vmem:[%s1745_s8 + $0x4] ss:$16 sps:$4 sm:$0xff]   ;;  %v1519_v3 = vld [vmem:[%s1745_s8 + $0x8] ss:$16 sps:$4 sm:$0xff]  }
  0x44   : > { %1385 = vmatprep.subr.bf16.mxu1 %v1497_v46  ;;  %v1521_v4 = vld [vmem:[%s1745_s8 + $0xc] ss:$16 sps:$4 sm:$0xff]   ;;  %852 = vmatprep.mubr.bf16.mxu0 %v1518_v2  ;;  %v1522_v5 = vld [vmem:[%s1745_s8 + $0x24] ss:$16 sps:$4 sm:$0xff]   ;;  %v1526_v7 = vld [vmem:[%s1745_s8 + $0x20] ss:$16 sps:$4 sm:$0xff]  }
  0x45   : > { %949 = vmatprep.mubr.bf16.mxu1 %v1521_v4  ;;  %v1524_v6 = vld [vmem:[%s1745_s8 + $0x2c] ss:$16 sps:$4 sm:$0xff]   ;;  %v1527_v8 = vld [vmem:[%s1745_s8 + $0x28] ss:$16 sps:$4 sm:$0xff]   ;;  %v1528_v9 = vld [vmem:[%s1745_s8 + $0x44] ss:$16 sps:$4 sm:$0xff]  }
  0x46   : > { %1322 = vmatpush3.bf16.msra.mxu0 %v1498_v47  ;;  %v1530_v10 = vld [vmem:[%s1745_s8 + $0x4c] ss:$16 sps:$4 sm:$0xff]   ;;  %v1532_v11 = vld [vmem:[%s1745_s8 + $0x40] ss:$16 sps:$4 sm:$0xff]   ;;  %v1533_v12 = vld [vmem:[%s1745_s8 + $0x48] ss:$16 sps:$4 sm:$0xff]  }
  0x47   : > { %1386 = vmatpush3.bf16.msra.mxu1 %v1499_v48  ;;  %1323 = vmatprep.subr.bf16.mxu0 %v1500_v49  ;;  %v1534_v13 = vld [vmem:[%s1745_s8 + $0x64] ss:$16 sps:$4 sm:$0xff]   ;;  %v1536_v14 = vld [vmem:[%s1745_s8 + $0x6c] ss:$16 sps:$4 sm:$0xff]   ;;  %v1538_v15 = vld [vmem:[%s1745_s8 + $0x60] ss:$16 sps:$4 sm:$0xff]  }
  0x48   : > { %1387 = vmatprep.subr.bf16.mxu1 %v1501_v50  ;;  %v1539_v16 = vld [vmem:[%s1745_s8 + $0x68] ss:$16 sps:$4 sm:$0xff]   ;;  %v1540_v17 = vld [vmem:[%s1745_s8 + $0x84] ss:$16 sps:$4 sm:$0xff]   ;;  %v1542_v18 = vld [vmem:[%s1745_s8 + $0x8c] ss:$16 sps:$4 sm:$0xff]  }
  0x49   : > { %v1544_v19 = vld [vmem:[%s1745_s8 + $0x80] ss:$16 sps:$4 sm:$0xff]   ;;  %v1545_v20 = vld [vmem:[%s1745_s8 + $0x88] ss:$16 sps:$4 sm:$0xff]   ;;  %v1546_v21 = vld [vmem:[%s1745_s8 + $0xa4] ss:$16 sps:$4 sm:$0xff]  }
  0x4a   : > { %1324 = vmatpush3.bf16.msra.mxu0 %v1502_v51  ;;  %v1548_v22 = vld [vmem:[%s1745_s8 + $0xac] ss:$16 sps:$4 sm:$0xff]   ;;  %v1550_v23 = vld [vmem:[%s1745_s8 + $0xa0] ss:$16 sps:$4 sm:$0xff]   ;;  %v1551_v24 = vld [vmem:[%s1745_s8 + $0xa8] ss:$16 sps:$4 sm:$0xff]  }
  0x4b   : > { %1388 = vmatpush3.bf16.msra.mxu1 %v1503_v52  ;;  %1325 = vmatprep.subr.bf16.mxu0 %v1504_v53  ;;  %v1552_v25 = vld [vmem:[%s1745_s8 + $0xc4] ss:$16 sps:$4 sm:$0xff]   ;;  %v1554_v26 = vld [vmem:[%s1745_s8 + $0xcc] ss:$16 sps:$4 sm:$0xff]   ;;  %v1556_v27 = vld [vmem:[%s1745_s8 + $0xc0] ss:$16 sps:$4 sm:$0xff]  }
  0x4c   : > { %1389 = vmatprep.subr.bf16.mxu1 %v1505_v54  ;;  %v1557_v28 = vld [vmem:[%s1745_s8 + $0xc8] ss:$16 sps:$4 sm:$0xff]   ;;  %v1558_v29 = vld [vmem:[%s1745_s8 + $0xe4] ss:$16 sps:$4 sm:$0xff]   ;;  %v1560_v30 = vld [vmem:[%s1745_s8 + $0xec] ss:$16 sps:$4 sm:$0xff]  }
  0x4d   : > { %v1562_v31 = vld [vmem:[%s1745_s8 + $0xe0] ss:$16 sps:$4 sm:$0xff]   ;;  %v1563_v32 = vld [vmem:[%s1745_s8 + $0xe8] ss:$16 sps:$4 sm:$0xff]  }
  0x4e   : > { %1326 = vmatpush3.bf16.msra.mxu0 %v1506_v55  ;;  %v357_v49 = vld [vmem:[#allocation2] sm:$0xff] }
  0x4f   : > { %1390 = vmatpush3.bf16.msra.mxu1 %v1507_v56  ;;  %1327 = vmatprep.subr.bf16.mxu0 %v1508_v57 }
  0x50   : > { %1391 = vmatprep.subr.bf16.mxu1 %v1509_v58  ;;  %v358_v58 = vld [vmem:[#allocation2 + $0x58] sm:$0xff] }
  0x52   : > { %1328 = vmatpush3.bf16.msra.mxu0 %v1510_v59 }
  0x53   : > { %1392 = vmatpush3.bf16.msra.mxu1 %v1511_v60  ;;  %1329 = vmatprep.subr.bf16.mxu0 %v1512_v61 }
  0x54   : > { %1393 = vmatprep.subr.bf16.mxu1 %v1513_v62 }
  0x56   : > { %1330 = vmatpush3.bf16.msra.mxu0 %v1514_v63 }
  0x57   : > { %1394 = vmatpush3.bf16.msra.mxu1 %v1515_v0 }
  0x59   : > { %853 = vmatmul.mubr.bf16.vlgmr.msra.gmra.mxu0 %v1516_v1 }
  0x5a   : > { %950 = vmatmul.mubr.bf16.vlgmr.msra.gmra.mxu1 %v1519_v3  ;;  %860 = vmatprep.mubr.bf16.mxu0 %v1522_v5  ;;  %v359_v3 = vld [vmem:[#allocation2 + $0x18] sm:$0xff] }
  0x5b   : > { %957 = vmatprep.mubr.bf16.mxu1 %v1524_v6 }
  0x61   : > { %861 = vmatmul.mubr.bf16.gmra.mxu0 %v1526_v7 }
  0x62   : > { %958 = vmatmul.mubr.bf16.gmra.mxu1 %v1527_v8  ;;  %868 = vmatprep.mubr.bf16.mxu0 %v1528_v9 }
  0x63   : > { %965 = vmatprep.mubr.bf16.mxu1 %v1530_v10 }
  0x69   : > { %869 = vmatmul.mubr.bf16.gmra.mxu0 %v1532_v11 }
  0x6a   : > { %966 = vmatmul.mubr.bf16.gmra.mxu1 %v1533_v12  ;;  %876 = vmatprep.mubr.bf16.mxu0 %v1534_v13  ;;  %v360_v12 = vld [vmem:[#allocation2 + $0x50] sm:$0xff] }
  0x6b   : > { %973 = vmatprep.mubr.bf16.mxu1 %v1536_v14 }
  0x71   : > { %877 = vmatmul.mubr.bf16.gmra.mxu0 %v1538_v15 }
  0x72   : > { %974 = vmatmul.mubr.bf16.gmra.mxu1 %v1539_v16  ;;  %884 = vmatprep.mubr.bf16.mxu0 %v1540_v17 }
  0x73   : > { %981 = vmatprep.mubr.bf16.mxu1 %v1542_v18 }
  0x79   : > { %885 = vmatmul.mubr.bf16.gmra.mxu0 %v1544_v19 }
  0x7a   : > { %982 = vmatmul.mubr.bf16.gmra.mxu1 %v1545_v20  ;;  %892 = vmatprep.mubr.bf16.mxu0 %v1546_v21  ;;  %v361_v21 = vld [vmem:[#allocation2 + $0x68] sm:$0xff] }
  0x7b   : > { %989 = vmatprep.mubr.bf16.mxu1 %v1548_v22 }
  0x81   : > { %893 = vmatmul.mubr.bf16.gmra.mxu0 %v1550_v23 }
  0x82   : > { %990 = vmatmul.mubr.bf16.gmra.mxu1 %v1551_v24  ;;  %900 = vmatprep.mubr.bf16.mxu0 %v1552_v25 }
  0x83   : > { %997 = vmatprep.mubr.bf16.mxu1 %v1554_v26 }
  0x89   : > { %901 = vmatmul.mubr.bf16.gmra.mxu0 %v1556_v27 }
  0x8a   : > { %998 = vmatmul.mubr.bf16.gmra.mxu1 %v1557_v28  ;;  %908 = vmatprep.mubr.bf16.mxu0 %v1558_v29 }
  0x8b   : > { %1005 = vmatprep.mubr.bf16.mxu1 %v1560_v30  ;;  %v362_v30 = vld [vmem:[#allocation2 + $0x8] sm:$0xff] }
  0x91   : > { %909 = vmatmul.mubr.bf16.gmra.mxu0 %v1562_v31 }
  0x92   : > { %1006 = vmatmul.mubr.bf16.gmra.mxu1 %v1563_v32 }
 0x119   : > { %v1331_v33 = vpop.f32.mrf.mxu0 }
 0x11a   : > { %v1395_v34 = vpop.f32.mrf.mxu1 }
 0x11b   : > { %v1332_v35 = vpop.f32.mrf.mxu0 }
 0x11c   : > { %v1333_v36 = vadd.f32 %v1332_v35, %v1331_v33  ;;  %v1396_v37 = vpop.f32.mrf.mxu1 }
 0x11d   : > { %v1397_v38 = vadd.f32 %v1396_v37, %v1395_v34  ;;  %v1334_v39 = vpop.f32.mrf.mxu0 }
 0x11e   : > { %v1398_v41 = vpop.f32.mrf.mxu1 }
 0x11f   : > { %v952_v42 = vadd.f32 %v1397_v38, %v1333_v36  ;;  %v1335_v43 = vpop.f32.mrf.mxu0 }
 0x120   : > { %v1336_v44 = vadd.f32 %v1335_v43, %v1334_v39  ;;  %v1399_v45 = vpop.f32.mrf.mxu1  ;;  %v363_v39 = vld [vmem:[#allocation2 + $0x48] sm:$0xff] }
 0x121   : > { %v1014_v46 = vadd.f32 %v952_v42, %v356_v40  ;;  %v1400_v47 = vadd.f32 %v1399_v45, %v1398_v41  ;;  %v1337_v48 = vpop.f32.mrf.mxu0 }
 0x122   : > { %v1401_v50 = vpop.f32.mrf.mxu1 }
 0x123   : > { %1030 = vst [vmem:[#allocation2 + $0x30] sm:$0xff] %v1014_v46  ;;  %v955_v51 = vadd.f32 %v1400_v47, %v1336_v44  ;;  %v1338_v52 = vpop.f32.mrf.mxu0 }
 0x124   : > { %v1339_v53 = vadd.f32 %v1338_v52, %v1337_v48  ;;  %v1402_v54 = vpop.f32.mrf.mxu1  ;;  %v364_v48 = vld [vmem:[#allocation2 + $0x40] sm:$0xff] }
 0x125   : > { %v1015_v55 = vadd.f32 %v955_v51, %v357_v49  ;;  %v1403_v56 = vadd.f32 %v1402_v54, %v1401_v50  ;;  %v1340_v57 = vpop.f32.mrf.mxu0 }
 0x126   : > { %v1404_v59 = vpop.f32.mrf.mxu1 }
 0x127   : > { %1031 = vst [vmem:[#allocation2] sm:$0xff] %v1015_v55  ;;  %v960_v60 = vadd.f32 %v1403_v56, %v1339_v53  ;;  %v1341_v61 = vpop.f32.mrf.mxu0 }
 0x128   : > { %v1342_v62 = vadd.f32 %v1341_v61, %v1340_v57  ;;  %v1405_v63 = vpop.f32.mrf.mxu1  ;;  %v365_v57 = vld [vmem:[#allocation2 + $0x20] sm:$0xff] }
 0x129   : > { %v1016_v0 = vadd.f32 %v960_v60, %v358_v58  ;;  %v1406_v1 = vadd.f32 %v1405_v63, %v1404_v59  ;;  %v1343_v2 = vpop.f32.mrf.mxu0 }
 0x12a   : > { %v1407_v4 = vpop.f32.mrf.mxu1 }
 0x12b   : > { %1032 = vst [vmem:[#allocation2 + $0x58] sm:$0xff] %v1016_v0  ;;  %v963_v5 = vadd.f32 %v1406_v1, %v1342_v62  ;;  %v1344_v6 = vpop.f32.mrf.mxu0 }
 0x12c   : > { %v1345_v7 = vadd.f32 %v1344_v6, %v1343_v2  ;;  %v1408_v8 = vpop.f32.mrf.mxu1  ;;  %v366_v2 = vld [vmem:[#allocation2 + $0x10] sm:$0xff] }
 0x12d   : > { %v1017_v9 = vadd.f32 %v963_v5, %v359_v3  ;;  %v1409_v10 = vadd.f32 %v1408_v8, %v1407_v4  ;;  %v1346_v11 = vpop.f32.mrf.mxu0 }
 0x12e   : > { %v1410_v13 = vpop.f32.mrf.mxu1 }
 0x12f   : > { %1033 = vst [vmem:[#allocation2 + $0x18] sm:$0xff] %v1017_v9  ;;  %v968_v14 = vadd.f32 %v1409_v10, %v1345_v7  ;;  %v1347_v15 = vpop.f32.mrf.mxu0 }
 0x130   : > { %v1348_v16 = vadd.f32 %v1347_v15, %v1346_v11  ;;  %v1411_v17 = vpop.f32.mrf.mxu1  ;;  %v367_v11 = vld [vmem:[#allocation2 + $0x38] sm:$0xff] }
 0x131   : > { %v1018_v18 = vadd.f32 %v968_v14, %v360_v12  ;;  %v1412_v19 = vadd.f32 %v1411_v17, %v1410_v13  ;;  %v1349_v20 = vpop.f32.mrf.mxu0 }
 0x132   : > { %v1413_v22 = vpop.f32.mrf.mxu1 }
 0x133   : > { %1034 = vst [vmem:[#allocation2 + $0x50] sm:$0xff] %v1018_v18  ;;  %v971_v23 = vadd.f32 %v1412_v19, %v1348_v16  ;;  %v1350_v24 = vpop.f32.mrf.mxu0 }
 0x134   : > { %v1351_v25 = vadd.f32 %v1350_v24, %v1349_v20  ;;  %v1414_v26 = vpop.f32.mrf.mxu1  ;;  %v368_v20 = vld [vmem:[#allocation2 + $0x60] sm:$0xff] }
 0x135   : > { %v1019_v27 = vadd.f32 %v971_v23, %v361_v21  ;;  %v1415_v28 = vadd.f32 %v1414_v26, %v1413_v22  ;;  %v1352_v29 = vpop.f32.mrf.mxu0 }
 0x136   : > { %v1416_v31 = vpop.f32.mrf.mxu1 }
 0x137   : > { %1035 = vst [vmem:[#allocation2 + $0x68] sm:$0xff] %v1019_v27  ;;  %v976_v32 = vadd.f32 %v1415_v28, %v1351_v25  ;;  %v1353_v33 = vpop.f32.mrf.mxu0 }
 0x138   : > { %v1354_v34 = vadd.f32 %v1353_v33, %v1352_v29  ;;  %v1417_v35 = vpop.f32.mrf.mxu1  ;;  %v369_v29 = vld [vmem:[#allocation2 + $0x70] sm:$0xff] }
 0x139   : > { %v1020_v36 = vadd.f32 %v976_v32, %v362_v30  ;;  %v1418_v37 = vadd.f32 %v1417_v35, %v1416_v31  ;;  %v1355_v38 = vpop.f32.mrf.mxu0 }
 0x13a   : > { %v1419_v40 = vpop.f32.mrf.mxu1 }
 0x13b   : > { %1036 = vst [vmem:[#allocation2 + $0x8] sm:$0xff] %v1020_v36  ;;  %v979_v41 = vadd.f32 %v1418_v37, %v1354_v34  ;;  %v1356_v42 = vpop.f32.mrf.mxu0 }
 0x13c   : > { %v1357_v43 = vadd.f32 %v1356_v42, %v1355_v38  ;;  %v1420_v44 = vpop.f32.mrf.mxu1  ;;  %v370_v38 = vld [vmem:[#allocation2 + $0x78] sm:$0xff] }
 0x13d   : > { %v1021_v45 = vadd.f32 %v979_v41, %v363_v39  ;;  %v1421_v46 = vadd.f32 %v1420_v44, %v1419_v40  ;;  %v1358_v47 = vpop.f32.mrf.mxu0 }
 0x13e   : > { %v1422_v49 = vpop.f32.mrf.mxu1 }
 0x13f   : > { %1037 = vst [vmem:[#allocation2 + $0x48] sm:$0xff] %v1021_v45  ;;  %v984_v50 = vadd.f32 %v1421_v46, %v1357_v43  ;;  %v1359_v51 = vpop.f32.mrf.mxu0  ;;  %v371_v46 = vld [vmem:[#allocation2 + $0x28] sm:$0xff] }
 0x140   : > { %v1360_v52 = vadd.f32 %v1359_v51, %v1358_v47  ;;  %v1423_v53 = vpop.f32.mrf.mxu1 }
 0x141   : > { %v1022_v54 = vadd.f32 %v984_v50, %v364_v48  ;;  %v1424_v55 = vadd.f32 %v1423_v53, %v1422_v49  ;;  %v1361_v56 = vpop.f32.mrf.mxu0 }
 0x142   : > { %v1425_v58 = vpop.f32.mrf.mxu1 }
 0x143   : > { %1038 = vst [vmem:[#allocation2 + $0x40] sm:$0xff] %v1022_v54  ;;  %v987_v59 = vadd.f32 %v1424_v55, %v1360_v52  ;;  %v1362_v60 = vpop.f32.mrf.mxu0 }
 0x144   : > { %v1363_v61 = vadd.f32 %v1362_v60, %v1361_v56  ;;  %v1426_v62 = vpop.f32.mrf.mxu1 }
 0x145   : > { %v1023_v63 = vadd.f32 %v987_v59, %v365_v57  ;;  %v1427_v0 = vadd.f32 %v1426_v62, %v1425_v58  ;;  %v1364_v1 = vpop.f32.mrf.mxu0 }
 0x146   : > { %v1428_v3 = vpop.f32.mrf.mxu1 }
 0x147   : > { %1039 = vst [vmem:[#allocation2 + $0x20] sm:$0xff] %v1023_v63  ;;  %v992_v4 = vadd.f32 %v1427_v0, %v1363_v61  ;;  %v1365_v5 = vpop.f32.mrf.mxu0 }
 0x148   : > { %v1366_v6 = vadd.f32 %v1365_v5, %v1364_v1  ;;  %v1429_v7 = vpop.f32.mrf.mxu1 }
 0x149   : > { %v1024_v8 = vadd.f32 %v992_v4, %v366_v2  ;;  %v1430_v9 = vadd.f32 %v1429_v7, %v1428_v3  ;;  %v1367_v10 = vpop.f32.mrf.mxu0 }
 0x14a   : > { %v1431_v12 = vpop.f32.mrf.mxu1 }
 0x14b   : > { %1040 = vst [vmem:[#allocation2 + $0x10] sm:$0xff] %v1024_v8  ;;  %v995_v13 = vadd.f32 %v1430_v9, %v1366_v6  ;;  %v1368_v14 = vpop.f32.mrf.mxu0 }
 0x14c   : > { %v1369_v15 = vadd.f32 %v1368_v14, %v1367_v10  ;;  %v1432_v16 = vpop.f32.mrf.mxu1 }
 0x14d   : > { %v1025_v17 = vadd.f32 %v995_v13, %v367_v11  ;;  %v1433_v18 = vadd.f32 %v1432_v16, %v1431_v12  ;;  %v1370_v19 = vpop.f32.mrf.mxu0 }
 0x14e   : > { %v1434_v21 = vpop.f32.mrf.mxu1 }
 0x14f   : > { %1041 = vst [vmem:[#allocation2 + $0x38] sm:$0xff] %v1025_v17  ;;  %v1000_v22 = vadd.f32 %v1433_v18, %v1369_v15  ;;  %v1371_v23 = vpop.f32.mrf.mxu0 }
 0x150   : > { %v1372_v24 = vadd.f32 %v1371_v23, %v1370_v19  ;;  %v1435_v25 = vpop.f32.mrf.mxu1 }
 0x151   : > { %v1026_v26 = vadd.f32 %v1000_v22, %v368_v20  ;;  %v1436_v27 = vadd.f32 %v1435_v25, %v1434_v21  ;;  %v1373_v28 = vpop.f32.mrf.mxu0 }
 0x152   : > { %v1437_v30 = vpop.f32.mrf.mxu1 }
 0x153   : > { %1042 = vst [vmem:[#allocation2 + $0x60] sm:$0xff] %v1026_v26  ;;  %v1003_v31 = vadd.f32 %v1436_v27, %v1372_v24  ;;  %v1374_v32 = vpop.f32.mrf.mxu0 }
 0x154   : > { %v1375_v33 = vadd.f32 %v1374_v32, %v1373_v28  ;;  %v1438_v34 = vpop.f32.mrf.mxu1 }
 0x155   : > { %v1027_v35 = vadd.f32 %v1003_v31, %v369_v29  ;;  %v1439_v36 = vadd.f32 %v1438_v34, %v1437_v30  ;;  %v1376_v37 = vpop.f32.mrf.mxu0 }
 0x156   : > { %v1440_v39 = vpop.f32.mrf.mxu1 }
 0x157   : > { %1043 = vst [vmem:[#allocation2 + $0x70] sm:$0xff] %v1027_v35  ;;  %v1008_v40 = vadd.f32 %v1439_v36, %v1375_v33  ;;  %v1377_v41 = vpop.f32.mrf.mxu0 }
 0x158   : > { %v1378_v42 = vadd.f32 %v1377_v41, %v1376_v37  ;;  %v1441_v43 = vpop.f32.mrf.mxu1 }
 0x159   : > { %v1028_v44 = vadd.f32 %v1008_v40, %v370_v38  ;;  %v1442_v45 = vadd.f32 %v1441_v43, %v1440_v39 }
 0x15b   : > { %1044 = vst [vmem:[#allocation2 + $0x78] sm:$0xff] %v1028_v44  ;;  %v1011_v47 = vadd.f32 %v1442_v45, %v1378_v42  ;;  %1049 = sbr.rel (%p1308_p11) target bundleno = 365 (0x16d), region = 63 }
 0x15d   : > { %v1029_v48 = vadd.f32 %v1011_v47, %v371_v46 }
 0x15f   : > { %1045 = vst [vmem:[#allocation2 + $0x28] sm:$0xff] %v1029_v48 }
 0x160   : > { %v1050_v49 = vld [vmem:[#allocation2 + $0x30] sm:$0xff]  ;;  %v1309_v50 = vld [vmem:[%s1881_s2] ss:$0 sm:$0xff]  ;;  %v1052_v54 = vld [vmem:[#allocation2 + $0x58] sm:$0xff] }
 0x161   : > { %v1051_v51 = vld [vmem:[#allocation2] sm:$0xff]  ;;  %v1073_v52 = vadd.f32 %v1309_v50, %v1050_v49  ;;  %v1053_v55 = vld [vmem:[#allocation2 + $0x18] sm:$0xff]  ;;  %v1054_v56 = vld [vmem:[#allocation2 + $0x50] sm:$0xff]  ;;  %v1075_v57 = vadd.f32 %v1309_v50, %v1052_v54 }
 0x162   : > { %v1074_v53 = vadd.f32 %v1309_v50, %v1051_v51  ;;  %v1076_v58 = vadd.f32 %v1309_v50, %v1053_v55  ;;  %v1077_v59 = vadd.f32 %v1309_v50, %v1054_v56  ;;  %v1055_v60 = vld [vmem:[#allocation2 + $0x68] sm:$0xff]  ;;  %v1058_v3 = vld [vmem:[#allocation2 + $0x40] sm:$0xff]  ;;  %v1060_v5 = vld [vmem:[#allocation2 + $0x10] sm:$0xff] }
 0x163   : > { %v1056_v61 = vld [vmem:[#allocation2 + $0x8] sm:$0xff]  ;;  %v1089_v63 = vmax.f32 %v1073_v52, 0.0  ;;  %v1078_v1 = vadd.f32 %v1309_v50, %v1055_v60  ;;  %v1059_v4 = vld [vmem:[#allocation2 + $0x20] sm:$0xff]  ;;  %v1091_v6 = vmax.f32 %v1075_v57, 0.0  ;;  %v1061_v10 = vld [vmem:[#allocation2 + $0x38] sm:$0xff]  ;;  %v1081_v15 = vadd.f32 %v1309_v50, %v1058_v3 }
 0x164   : > { %v1057_v62 = vld [vmem:[#allocation2 + $0x48] sm:$0xff]  ;;  %v1090_v0 = vmax.f32 %v1074_v53, 0.0  ;;  %v1079_v2 = vadd.f32 %v1309_v50, %v1056_v61  ;;  %v1092_v7 = vmax.f32 %v1076_v58, 0.0  ;;  %v1093_v8 = vmax.f32 %v1077_v59, 0.0  ;;  %v1062_v11 = vld [vmem:[#allocation2 + $0x60] sm:$0xff]  ;;  %v1063_v12 = vld [vmem:[#allocation2 + $0x70] sm:$0xff] }
 0x165   : > { %v1080_v9 = vadd.f32 %v1309_v50, %v1057_v62  ;;  %1105 = vst [vmem:[%s1882_s3] sm:$0xff] %v1089_v63  ;;  %v1094_v13 = vmax.f32 %v1078_v1, 0.0  ;;  %v1082_v16 = vadd.f32 %v1309_v50, %v1059_v4  ;;  %v1064_v17 = vld [vmem:[#allocation2 + $0x78] sm:$0xff]  ;;  %1107 = vst [vmem:[%s1882_s3 + $0x10] sm:$0xff] %v1091_v6  ;;  %v1083_v20 = vadd.f32 %v1309_v50, %v1060_v5 }
 0x166   : > { %1106 = vst [vmem:[%s1882_s3 + $0x8] sm:$0xff] %v1090_v0  ;;  %v1095_v14 = vmax.f32 %v1079_v2, 0.0  ;;  %v1065_v18 = vld [vmem:[#allocation2 + $0x28] sm:$0xff]  ;;  %1108 = vst [vmem:[%s1882_s3 + $0x18] sm:$0xff] %v1092_v7  ;;  %v1084_v21 = vadd.f32 %v1309_v50, %v1061_v10  ;;  %v1085_v22 = vadd.f32 %v1309_v50, %v1062_v11  ;;  %v1097_v23 = vmax.f32 %v1081_v15, 0.0 }
 0x167   : > { %1109 = vst [vmem:[%s1882_s3 + $0x20] sm:$0xff] %v1093_v8  ;;  %v1096_v19 = vmax.f32 %v1080_v9, 0.0  ;;  %1110 = vst [vmem:[%s1882_s3 + $0x28] sm:$0xff] %v1094_v13  ;;  %v1098_v24 = vmax.f32 %v1082_v16, 0.0  ;;  %v1086_v25 = vadd.f32 %v1309_v50, %v1063_v12  ;;  %v1087_v26 = vadd.f32 %v1309_v50, %v1064_v17 }
 0x168   : > { %1111 = vst [vmem:[%s1882_s3 + $0x30] sm:$0xff] %v1095_v14  ;;  %v1099_v27 = vmax.f32 %v1083_v20, 0.0  ;;  %v1100_v28 = vmax.f32 %v1084_v21, 0.0  ;;  %v1101_v29 = vmax.f32 %v1085_v22, 0.0  ;;  %v1088_v30 = vadd.f32 %v1309_v50, %v1065_v18  ;;  %1113 = vst [vmem:[%s1882_s3 + $0x40] sm:$0xff] %v1097_v23 }
 0x169   : > { %1112 = vst [vmem:[%s1882_s3 + $0x38] sm:$0xff] %v1096_v19  ;;  %1114 = vst [vmem:[%s1882_s3 + $0x48] sm:$0xff] %v1098_v24  ;;  %v1102_v31 = vmax.f32 %v1086_v25, 0.0  ;;  %v1103_v32 = vmax.f32 %v1087_v26, 0.0 }
 0x16a   : > { %1115 = vst [vmem:[%s1882_s3 + $0x50] sm:$0xff] %v1099_v27  ;;  %1116 = vst [vmem:[%s1882_s3 + $0x58] sm:$0xff] %v1100_v28  ;;  %v1104_v33 = vmax.f32 %v1088_v30, 0.0 }
 0x16b   : > { %1117 = vst [vmem:[%s1882_s3 + $0x60] sm:$0xff] %v1101_v29  ;;  %1118 = vst [vmem:[%s1882_s3 + $0x68] sm:$0xff] %v1102_v31 }
 0x16c   : > { %1119 = vst [vmem:[%s1882_s3 + $0x70] sm:$0xff] %v1103_v32  ;;  %1120 = vst [vmem:[%s1882_s3 + $0x78] sm:$0xff] %v1104_v33 }
 0x16d PF: > { %s13_s16 = sadd.s32 1, %s1602_s16   ;;  %s1883_s12 = smov %s1590_s13 }
 0x16e   : > { %p10_p12 = scmp.ge.s32.totalorder %s13_s16, 4   ;;  %s1884_s13 = smov %s1660_s20 }
 0x16f   : > { %s1885_s14 = smov %s1598_s15  ;;  %s1886_s15 = smov %s1888_s17 }
 0x170   :  { %12 = sbr.rel (!%p10_p12) target bundleno = 3 (0x3), region = 104 }

// kernel: unter_forward.16
= control target key start
LH: loop header
LB: loop body
LE: loop exit
PB: predicated region body
PF: predicated region fallthrough
CT: control target
= control target key end

     0   :  { %s1352_s12 = smov 0   ;;  %s1354_s13 = smov 0   ;;  %s1522_s0 = inlined_call_operand.vmem [shape: bf16[32,1536], index: 0, kind: input, shape index: {}]   ;;  %s1523_s1 = inlined_call_operand.vmem [shape: bf16[1536,256], index: 1, kind: input, shape index: {}]   ;;  %s1524_s2 = inlined_call_operand.vmem [shape: f32[1,256], index: 2, kind: input, shape index: {}]   ;;  %s1525_s3 = inlined_call_operand.vmem [shape: f32[32,256], index: 3, kind: output, shape index: {}]  }
   0x1   :  { %s1356_s14 = smov 0   ;;  %s1358_s15 = smov 0  }
   0x2   :  { %s1360_s16 = smov 0  }
   0x3 LB: > { %s25_s17 = sadd.s32 1, %s1325_s15  ;;  %p48_p1 = scmp.ne.s32.totalorder %s1317_s13, %s1313_s12  ;;  %s1329_s16 = sphi %s1360_s16, %s13_s16   ;;  %s1325_s15 = sphi %s1358_s15, %s1529_s15   ;;  %s1321_s14 = sphi %s1356_s14, %s1528_s14   ;;  %s1317_s13 = sphi %s1354_s13, %s1527_s13   ;;  %s1313_s12 = sphi %s1352_s12, %s1526_s12  }
   0x4   : > { %p26_p0 = scmp.ge.s32.totalorder %s25_s17, 3  ;;  %p49_p2 = scmp.eq.s32.totalorder %s1329_s16, 0 }
   0x5   : > { %s41_s19 = sadd.s32 1, %s1317_s13  ;;  %p1053_p5 = scmp.ge.s32.totalorder %s1329_s16, 3 }
   0x6   : > { %s1531_s17 = smov (%p26_p0, %s25_s17), 0  ;;  %p50_p3 = por %p49_p2, %p48_p1 }
   0x7   : > { %s37_s18 = ssub.s32 %s1325_s15, %s1531_s17  ;;  %164 = sbr.rel (%p1053_p5) target bundleno = 20 (0x14), region = 20 }
   0x8   : > { %p39_p4 = scmp.eq.s32.totalorder %s37_s18, 0 }
   0xa   : > { %s1387_s20 = scalar_select %p39_p4, %s1317_s13, %s41_s19  }
   0xc   : > { %167 = sbr.rel (!%p50_p3) target bundleno = 20 (0x14), region = 24  ;;  %s169_s21 = sand.u32 (%p50_p3), 1, %s1317_s13  }
   0xd   : > { %s1140_s22 = sshll.u32 (%p50_p3), %s1325_s15, 4  ;;  %s1054_s23 = sshll.u32 (%p50_p3), %s169_s21, 6 }
   0xe   : > { %s177_s26 = scalar_lea.vmem (%p50_p3), %s1522_s0, %s1140_s22  ;;  %s171_s27 = scalar_lea.vmem (%p50_p3), [#allocation3], %s1054_s23 }
   0xf   : > { %v190_v0 = vld [vmem:[%s177_s26] sm:$0xff] (%p50_p3)  ;;  %v192_v1 = vld [vmem:[%s177_s26 + $0x8] sm:$0xff] (%p50_p3)  ;;  %v194_v2 = vld [vmem:[%s177_s26 + $0x30] sm:$0xff] (%p50_p3) }
  0x10   : > { %191 = vst [vmem:[%s171_s27] sm:$0xff] (%p50_p3), %v190_v0  ;;  %193 = vst [vmem:[%s171_s27 + $0x8] sm:$0xff] (%p50_p3), %v192_v1  ;;  %v196_v3 = vld [vmem:[%s177_s26 + $0x38] sm:$0xff] (%p50_p3)  ;;  %v198_v4 = vld [vmem:[%s177_s26 + $0x60] sm:$0xff] (%p50_p3) }
  0x11   : > { %195 = vst [vmem:[%s171_s27 + $0x10] sm:$0xff] %v194_v2  ;;  %v200_v5 = vld [vmem:[%s177_s26 + $0x68] sm:$0xff]  ;;  %197 = vst [vmem:[%s171_s27 + $0x18] sm:$0xff] %v196_v3  ;;  %v202_v6 = vld [vmem:[%s177_s26 + $0x90] sm:$0xff] }
  0x12   : > { %199 = vst [vmem:[%s171_s27 + $0x20] sm:$0xff] %v198_v4  ;;  %201 = vst [vmem:[%s171_s27 + $0x28] sm:$0xff] %v200_v5  ;;  %v204_v7 = vld [vmem:[%s177_s26 + $0x98] sm:$0xff] }
  0x13   : > { %203 = vst [vmem:[%s171_s27 + $0x30] sm:$0xff] %v202_v6  ;;  %205 = vst [vmem:[%s171_s27 + $0x38] sm:$0xff] %v204_v7 }
  0x14 PF: > { %p1057_p6 = scmp.ge.s32.totalorder %s1329_s16, 1  ;;  %p225_p7 = scmp.lt.s32.totalorder %s1329_s16, 4 }
  0x16   : > { %p226_p8 = pnand %p1057_p6, %p225_p7 }
  0x17   : > { %s232_s28 = sand.u32 (!%p226_p8), 1, %s1313_s12   ;;  %s1059_s29 = sshll.u32 (!%p226_p8), %s1321_s14, 6 }
  0x18   : > { %229 = sbr.rel (%p226_p8) target bundleno = 333 (0x14d), region = 51  ;;  %s1058_s30 = sshll.u32 (!%p226_p8), %s232_s28, 6 }
  0x19   : > { %p278_p9 = scmp.lt.s32.totalorder (!%p226_p8), %s1059_s29, 191  ;;  %s1404_s8 = scalar_lea.vmem (!%p226_p8), [#allocation3], %s1058_s30 }
  0x1a   : > { %p1062_p10 = scmp.ne.s32.totalorder (!%p226_p8), %s1321_s14, 0 }
  0x1d   : > { %s1533_s29 = smov (!%p278_p9, %s1059_s29), 191  ;;  %308 = sbr.rel (%p1062_p10) target bundleno = 39 (0x27), region = 59 }
  0x1e   : > { %s1141_s4 = sshll.u32 %s1533_s29, 3 }
  0x1f   : > { %s1402_s7 = scalar_lea.vmem %s1523_s1, %s1141_s4 }
  0x22   : > { %v1331_v8 = vmov 0.0  }
  0x23   : > { %309 = vst [vmem:[#allocation2 + $0x30] sm:$0xff] %v1331_v8  ;;  %310 = vst [vmem:[#allocation2] sm:$0xff] %v1331_v8 }
  0x24   : > { %311 = vst [vmem:[#allocation2 + $0x18] sm:$0xff] %v1331_v8  ;;  %312 = vst [vmem:[#allocation2 + $0x10] sm:$0xff] %v1331_v8 }
  0x25   : > { %313 = vst [vmem:[#allocation2 + $0x8] sm:$0xff] %v1331_v8  ;;  %314 = vst [vmem:[#allocation2 + $0x20] sm:$0xff] %v1331_v8 }
  0x26   : > { %315 = vst [vmem:[#allocation2 + $0x28] sm:$0xff] %v1331_v8  ;;  %316 = vst [vmem:[#allocation2 + $0x38] sm:$0xff] %v1331_v8 }
  0x27 PF: > { %v1183_v9 = vld [vmem:[%s1402_s7 + $0x74] ss:$8 sps:$4 sm:$0xff]   ;;  %v1187_v11 = vld [vmem:[%s1402_s7 + $0x70] ss:$8 sps:$4 sm:$0xff]   ;;  %v1189_v13 = vld [vmem:[%s1402_s7 + $0x64] ss:$8 sps:$4 sm:$0xff]  }
  0x28   : > { %v1185_v10 = vld [vmem:[%s1402_s7 + $0x174] ss:$8 sps:$4 sm:$0xff]   ;;  %757 = vmatprep.subr.bf16.mxu0 %v1183_v9  ;;  %v1188_v12 = vld [vmem:[%s1402_s7 + $0x170] ss:$8 sps:$4 sm:$0xff]   ;;  %v1191_v14 = vld [vmem:[%s1402_s7 + $0x164] ss:$8 sps:$4 sm:$0xff]  }
  0x29   : > { %810 = vmatprep.subr.bf16.mxu1 %v1185_v10  ;;  %758 = vmatpush1.bf16.msra.mxu0 %v1187_v11  ;;  %v1193_v15 = vld [vmem:[%s1402_s7 + $0x60] ss:$8 sps:$4 sm:$0xff]   ;;  %v1195_v17 = vld [vmem:[%s1402_s7 + $0x54] ss:$8 sps:$4 sm:$0xff]   ;;  %v1199_v19 = vld [vmem:[%s1402_s7 + $0x50] ss:$8 sps:$4 sm:$0xff]  }
  0x2a   : > { %811 = vmatpush1.bf16.msra.mxu1 %v1188_v12  ;;  %759 = vmatprep.subr.bf16.mxu0 %v1189_v13  ;;  %v1194_v16 = vld [vmem:[%s1402_s7 + $0x160] ss:$8 sps:$4 sm:$0xff]   ;;  %v1197_v18 = vld [vmem:[%s1402_s7 + $0x154] ss:$8 sps:$4 sm:$0xff]   ;;  %v1200_v20 = vld [vmem:[%s1402_s7 + $0x150] ss:$8 sps:$4 sm:$0xff]  }
  0x2b   : > { %812 = vmatprep.subr.bf16.mxu1 %v1191_v14  ;;  %v1201_v21 = vld [vmem:[%s1402_s7 + $0x44] ss:$8 sps:$4 sm:$0xff]   ;;  %v1205_v23 = vld [vmem:[%s1402_s7 + $0x40] ss:$8 sps:$4 sm:$0xff]   ;;  %v1207_v25 = vld [vmem:[%s1402_s7 + $0x34] ss:$8 sps:$4 sm:$0xff]  }
  0x2c   : > { %v1203_v22 = vld [vmem:[%s1402_s7 + $0x144] ss:$8 sps:$4 sm:$0xff]   ;;  %v1206_v24 = vld [vmem:[%s1402_s7 + $0x140] ss:$8 sps:$4 sm:$0xff]   ;;  %v1209_v26 = vld [vmem:[%s1402_s7 + $0x134] ss:$8 sps:$4 sm:$0xff]  }
  0x2d   : > { %760 = vmatpush1.bf16.msra.mxu0 %v1193_v15  ;;  %v1211_v27 = vld [vmem:[%s1402_s7 + $0x30] ss:$8 sps:$4 sm:$0xff]   ;;  %v1213_v29 = vld [vmem:[%s1402_s7 + $0x24] ss:$8 sps:$4 sm:$0xff]   ;;  %v1217_v31 = vld [vmem:[%s1402_s7 + $0x20] ss:$8 sps:$4 sm:$0xff]  }
  0x2e   : > { %813 = vmatpush1.bf16.msra.mxu1 %v1194_v16  ;;  %761 = vmatprep.subr.bf16.mxu0 %v1195_v17  ;;  %v1212_v28 = vld [vmem:[%s1402_s7 + $0x130] ss:$8 sps:$4 sm:$0xff]   ;;  %v1215_v30 = vld [vmem:[%s1402_s7 + $0x124] ss:$8 sps:$4 sm:$0xff]   ;;  %v1218_v32 = vld [vmem:[%s1402_s7 + $0x120] ss:$8 sps:$4 sm:$0xff]  }
  0x2f   : > { %814 = vmatprep.subr.bf16.mxu1 %v1197_v18  ;;  %v1219_v33 = vld [vmem:[%s1402_s7 + $0x14] ss:$8 sps:$4 sm:$0xff]   ;;  %v1223_v35 = vld [vmem:[%s1402_s7 + $0x10] ss:$8 sps:$4 sm:$0xff]   ;;  %v1225_v37 = vld [vmem:[%s1402_s7 + $0x4] ss:$8 sps:$4 sm:$0xff]  }
  0x30   : > { %v1221_v34 = vld [vmem:[%s1402_s7 + $0x114] ss:$8 sps:$4 sm:$0xff]   ;;  %v1224_v36 = vld [vmem:[%s1402_s7 + $0x110] ss:$8 sps:$4 sm:$0xff]   ;;  %v1227_v38 = vld [vmem:[%s1402_s7 + $0x104] ss:$8 sps:$4 sm:$0xff]  }
  0x31   : > { %762 = vmatpush1.bf16.msra.mxu0 %v1199_v19  ;;  %v1229_v39 = vld [vmem:[%s1402_s7] ss:$8 sps:$4 sm:$0xff]   ;;  %v1231_v41 = vld [vmem:[%s1402_s7 + $0xf4] ss:$8 sps:$4 sm:$0xff]   ;;  %v1235_v43 = vld [vmem:[%s1402_s7 + $0xf0] ss:$8 sps:$4 sm:$0xff]  }
  0x32   : > { %815 = vmatpush1.bf16.msra.mxu1 %v1200_v20  ;;  %763 = vmatprep.subr.bf16.mxu0 %v1201_v21  ;;  %v1230_v40 = vld [vmem:[%s1402_s7 + $0x100] ss:$8 sps:$4 sm:$0xff]   ;;  %v1233_v42 = vld [vmem:[%s1402_s7 + $0x1f4] ss:$8 sps:$4 sm:$0xff]   ;;  %v1236_v44 = vld [vmem:[%s1402_s7 + $0x1f0] ss:$8 sps:$4 sm:$0xff]  }
  0x33   : > { %816 = vmatprep.subr.bf16.mxu1 %v1203_v22  ;;  %v1237_v45 = vld [vmem:[%s1402_s7 + $0xe4] ss:$8 sps:$4 sm:$0xff]   ;;  %v1241_v47 = vld [vmem:[%s1402_s7 + $0xe0] ss:$8 sps:$4 sm:$0xff]   ;;  %v1243_v49 = vld [vmem:[%s1402_s7 + $0xd4] ss:$8 sps:$4 sm:$0xff]  }
  0x34   : > { %v1239_v46 = vld [vmem:[%s1402_s7 + $0x1e4] ss:$8 sps:$4 sm:$0xff]   ;;  %v1242_v48 = vld [vmem:[%s1402_s7 + $0x1e0] ss:$8 sps:$4 sm:$0xff]   ;;  %v1245_v50 = vld [vmem:[%s1402_s7 + $0x1d4] ss:$8 sps:$4 sm:$0xff]  }
  0x35   : > { %764 = vmatpush1.bf16.msra.mxu0 %v1205_v23  ;;  %v1247_v51 = vld [vmem:[%s1402_s7 + $0xd0] ss:$8 sps:$4 sm:$0xff]   ;;  %v1249_v53 = vld [vmem:[%s1402_s7 + $0xc4] ss:$8 sps:$4 sm:$0xff]   ;;  %v1253_v55 = vld [vmem:[%s1402_s7 + $0xc0] ss:$8 sps:$4 sm:$0xff]  }
  0x36   : > { %817 = vmatpush1.bf16.msra.mxu1 %v1206_v24  ;;  %765 = vmatprep.subr.bf16.mxu0 %v1207_v25  ;;  %v1248_v52 = vld [vmem:[%s1402_s7 + $0x1d0] ss:$8 sps:$4 sm:$0xff]   ;;  %v1251_v54 = vld [vmem:[%s1402_s7 + $0x1c4] ss:$8 sps:$4 sm:$0xff]   ;;  %v1254_v56 = vld [vmem:[%s1402_s7 + $0x1c0] ss:$8 sps:$4 sm:$0xff]  }
  0x37   : > { %818 = vmatprep.subr.bf16.mxu1 %v1209_v26  ;;  %v1255_v57 = vld [vmem:[%s1402_s7 + $0xb4] ss:$8 sps:$4 sm:$0xff]   ;;  %v1259_v61 = vld [vmem:[%s1402_s7 + $0xb0] ss:$8 sps:$4 sm:$0xff]   ;;  %v1261_v63 = vld [vmem:[%s1402_s7 + $0xa4] ss:$8 sps:$4 sm:$0xff]  }
  0x38   : > { %v1281_v58 = vld [vmem:[%s1404_s8 + $0x4] ss:$16 sps:$4 sm:$0xff]   ;;  %v1284_v60 = vld [vmem:[%s1404_s8 + $0xc] ss:$16 sps:$4 sm:$0xff]   ;;  %v1260_v62 = vld [vmem:[%s1402_s7 + $0x1b0] ss:$8 sps:$4 sm:$0xff]  }
  0x39   : > { %766 = vmatpush1.bf16.msra.mxu0 %v1211_v27  ;;  %v1257_v59 = vld [vmem:[%s1402_s7 + $0x1b4] ss:$8 sps:$4 sm:$0xff]   ;;  %789 = vmatprep.mubr.bf16.mxu0 %v1281_v58  ;;  %v1263_v0 = vld [vmem:[%s1402_s7 + $0x1a4] ss:$8 sps:$4 sm:$0xff]   ;;  %v1265_v1 = vld [vmem:[%s1402_s7 + $0xa0] ss:$8 sps:$4 sm:$0xff]  }
  0x3a   : > { %819 = vmatpush1.bf16.msra.mxu1 %v1212_v28  ;;  %767 = vmatprep.subr.bf16.mxu0 %v1213_v29  ;;  %v1266_v2 = vld [vmem:[%s1402_s7 + $0x1a0] ss:$8 sps:$4 sm:$0xff]   ;;  %v1267_v3 = vld [vmem:[%s1402_s7 + $0x94] ss:$8 sps:$4 sm:$0xff]   ;;  %v1271_v5 = vld [vmem:[%s1402_s7 + $0x90] ss:$8 sps:$4 sm:$0xff]  }
  0x3b   : > { %820 = vmatprep.subr.bf16.mxu1 %v1215_v30  ;;  %842 = vmatprep.mubr.bf16.mxu1 %v1284_v60  ;;  %v1269_v4 = vld [vmem:[%s1402_s7 + $0x194] ss:$8 sps:$4 sm:$0xff]   ;;  %v1272_v6 = vld [vmem:[%s1402_s7 + $0x190] ss:$8 sps:$4 sm:$0xff]   ;;  %v1273_v7 = vld [vmem:[%s1402_s7 + $0x84] ss:$8 sps:$4 sm:$0xff]  }
  0x3c   : > { %v1275_v8 = vld [vmem:[%s1402_s7 + $0x184] ss:$8 sps:$4 sm:$0xff]   ;;  %v1277_v9 = vld [vmem:[%s1402_s7 + $0x80] ss:$8 sps:$4 sm:$0xff]   ;;  %v317_v18 = vld [vmem:[#allocation2 + $0x30] sm:$0xff]  ;;  %p1135_p11 = scmp.ne.s32.totalorder %s1321_s14, 2 }
  0x3d   : > { %768 = vmatpush1.bf16.msra.mxu0 %v1217_v31  ;;  %v1278_v10 = vld [vmem:[%s1402_s7 + $0x180] ss:$8 sps:$4 sm:$0xff]   ;;  %v1285_v13 = vld [vmem:[%s1404_s8 + $0x24] ss:$16 sps:$4 sm:$0xff]   ;;  %v1287_v14 = vld [vmem:[%s1404_s8 + $0x2c] ss:$16 sps:$4 sm:$0xff]  }
  0x3e   : > { %821 = vmatpush1.bf16.msra.mxu1 %v1218_v32  ;;  %769 = vmatprep.subr.bf16.mxu0 %v1219_v33  ;;  %v1279_v11 = vld [vmem:[%s1404_s8] ss:$16 sps:$4 sm:$0xff]   ;;  %v1282_v12 = vld [vmem:[%s1404_s8 + $0x8] ss:$16 sps:$4 sm:$0xff]  }
  0x3f   : > { %822 = vmatprep.subr.bf16.mxu1 %v1221_v34  ;;  %v1289_v15 = vld [vmem:[%s1404_s8 + $0x20] ss:$16 sps:$4 sm:$0xff]   ;;  %v1290_v16 = vld [vmem:[%s1404_s8 + $0x28] ss:$16 sps:$4 sm:$0xff]  }
  0x40   : > { %v318_v22 = vld [vmem:[#allocation2] sm:$0xff]  ;;  %v319_v27 = vld [vmem:[#allocation2 + $0x18] sm:$0xff]  ;;  %v320_v32 = vld [vmem:[#allocation2 + $0x10] sm:$0xff] }
  0x41   : > { %770 = vmatpush1.bf16.msra.mxu0 %v1223_v35 }
  0x42   : > { %823 = vmatpush1.bf16.msra.mxu1 %v1224_v36  ;;  %771 = vmatprep.subr.bf16.mxu0 %v1225_v37  ;;  %v321_v37 = vld [vmem:[#allocation2 + $0x8] sm:$0xff] }
  0x43   : > { %824 = vmatprep.subr.bf16.mxu1 %v1227_v38 }
  0x45   : > { %772 = vmatpush1.bf16.msra.mxu0 %v1229_v39 }
  0x46   : > { %825 = vmatpush1.bf16.msra.mxu1 %v1230_v40  ;;  %773 = vmatprep.subr.bf16.mxu0 %v1231_v41 }
  0x47   : > { %826 = vmatprep.subr.bf16.mxu1 %v1233_v42  ;;  %v322_v42 = vld [vmem:[#allocation2 + $0x20] sm:$0xff] }
  0x49   : > { %774 = vmatpush2.bf16.msra.mxu0 %v1235_v43 }
  0x4a   : > { %827 = vmatpush2.bf16.msra.mxu1 %v1236_v44  ;;  %775 = vmatprep.subr.bf16.mxu0 %v1237_v45 }
  0x4b   : > { %828 = vmatprep.subr.bf16.mxu1 %v1239_v46 }
  0x4d   : > { %776 = vmatpush2.bf16.msra.mxu0 %v1241_v47  ;;  %v323_v47 = vld [vmem:[#allocation2 + $0x28] sm:$0xff] }
  0x4e   : > { %829 = vmatpush2.bf16.msra.mxu1 %v1242_v48  ;;  %777 = vmatprep.subr.bf16.mxu0 %v1243_v49 }
  0x4f   : > { %830 = vmatprep.subr.bf16.mxu1 %v1245_v50 }
  0x51   : > { %778 = vmatpush2.bf16.msra.mxu0 %v1247_v51 }
  0x52   : > { %831 = vmatpush2.bf16.msra.mxu1 %v1248_v52  ;;  %779 = vmatprep.subr.bf16.mxu0 %v1249_v53  ;;  %v324_v52 = vld [vmem:[#allocation2 + $0x38] sm:$0xff] }
  0x53   : > { %832 = vmatprep.subr.bf16.mxu1 %v1251_v54 }
  0x55   : > { %780 = vmatpush2.bf16.msra.mxu0 %v1253_v55 }
  0x56   : > { %833 = vmatpush2.bf16.msra.mxu1 %v1254_v56  ;;  %781 = vmatprep.subr.bf16.mxu0 %v1255_v57 }
  0x57   : > { %834 = vmatprep.subr.bf16.mxu1 %v1257_v59 }
  0x59   : > { %782 = vmatpush2.bf16.msra.mxu0 %v1259_v61 }
  0x5a   : > { %835 = vmatpush2.bf16.msra.mxu1 %v1260_v62  ;;  %783 = vmatprep.subr.bf16.mxu0 %v1261_v63 }
  0x5b   : > { %836 = vmatprep.subr.bf16.mxu1 %v1263_v0 }
  0x5d   : > { %784 = vmatpush2.bf16.msra.mxu0 %v1265_v1 }
  0x5e   : > { %837 = vmatpush2.bf16.msra.mxu1 %v1266_v2  ;;  %785 = vmatprep.subr.bf16.mxu0 %v1267_v3 }
  0x5f   : > { %838 = vmatprep.subr.bf16.mxu1 %v1269_v4 }
  0x61   : > { %786 = vmatpush2.bf16.msra.mxu0 %v1271_v5 }
  0x62   : > { %839 = vmatpush2.bf16.msra.mxu1 %v1272_v6  ;;  %787 = vmatprep.subr.bf16.mxu0 %v1273_v7 }
  0x63   : > { %840 = vmatprep.subr.bf16.mxu1 %v1275_v8 }
  0x65   : > { %788 = vmatpush2.bf16.msra.mxu0 %v1277_v9 }
  0x66   : > { %841 = vmatpush2.bf16.msra.mxu1 %v1278_v10 }
  0x68   : > { %790 = vmatmul.mubr.bf16.vlgmr.msra.gmra.mxu0 %v1279_v11 }
  0x69   : > { %843 = vmatmul.mubr.bf16.vlgmr.msra.gmra.mxu1 %v1282_v12  ;;  %799 = vmatprep.mubr.bf16.mxu0 %v1285_v13 }
  0x6a   : > { %852 = vmatprep.mubr.bf16.mxu1 %v1287_v14 }
  0x70   : > { %800 = vmatmul.mubr.bf16.gmra.mxu0 %v1289_v15 }
  0x71   : > { %853 = vmatmul.mubr.bf16.gmra.mxu1 %v1290_v16 }
 0x128   : > { %v791_v17 = vpop.f32.mrf.mxu0 }
 0x129   : > { %v844_v19 = vpop.f32.mrf.mxu1 }
 0x12a   : > { %v845_v20 = vadd.f32 %v844_v19, %v791_v17  ;;  %v793_v21 = vpop.f32.mrf.mxu0 }
 0x12b   : > { %v846_v23 = vpop.f32.mrf.mxu1 }
 0x12c   : > { %v863_v24 = vadd.f32 %v845_v20, %v317_v18  ;;  %v847_v25 = vadd.f32 %v846_v23, %v793_v21  ;;  %v795_v26 = vpop.f32.mrf.mxu0 }
 0x12d   : > { %v848_v28 = vpop.f32.mrf.mxu1 }
 0x12e   : > { %871 = vst [vmem:[#allocation2 + $0x30] sm:$0xff] %v863_v24  ;;  %v864_v29 = vadd.f32 %v847_v25, %v318_v22  ;;  %v849_v30 = vadd.f32 %v848_v28, %v795_v26  ;;  %v797_v31 = vpop.f32.mrf.mxu0 }
 0x12f   : > { %v850_v33 = vpop.f32.mrf.mxu1 }
 0x130   : > { %872 = vst [vmem:[#allocation2] sm:$0xff] %v864_v29  ;;  %v865_v34 = vadd.f32 %v849_v30, %v319_v27  ;;  %v851_v35 = vadd.f32 %v850_v33, %v797_v31  ;;  %v801_v36 = vpop.f32.mrf.mxu0 }
 0x131   : > { %v854_v38 = vpop.f32.mrf.mxu1 }
 0x132   : > { %873 = vst [vmem:[#allocation2 + $0x18] sm:$0xff] %v865_v34  ;;  %v866_v39 = vadd.f32 %v851_v35, %v320_v32  ;;  %v855_v40 = vadd.f32 %v854_v38, %v801_v36  ;;  %v803_v41 = vpop.f32.mrf.mxu0 }
 0x133   : > { %v856_v43 = vpop.f32.mrf.mxu1 }
 0x134   : > { %874 = vst [vmem:[#allocation2 + $0x10] sm:$0xff] %v866_v39  ;;  %v867_v44 = vadd.f32 %v855_v40, %v321_v37  ;;  %v857_v45 = vadd.f32 %v856_v43, %v803_v41  ;;  %v805_v46 = vpop.f32.mrf.mxu0 }
 0x135   : > { %v858_v48 = vpop.f32.mrf.mxu1 }
 0x136   : > { %875 = vst [vmem:[#allocation2 + $0x8] sm:$0xff] %v867_v44  ;;  %v868_v49 = vadd.f32 %v857_v45, %v322_v42  ;;  %v859_v50 = vadd.f32 %v858_v48, %v805_v46  ;;  %v807_v51 = vpop.f32.mrf.mxu0 }
 0x137   : > { %v860_v53 = vpop.f32.mrf.mxu1 }
 0x138   : > { %876 = vst [vmem:[#allocation2 + $0x20] sm:$0xff] %v868_v49  ;;  %v869_v54 = vadd.f32 %v859_v50, %v323_v47  ;;  %v861_v55 = vadd.f32 %v860_v53, %v807_v51  ;;  %882 = sbr.rel (%p1135_p11) target bundleno = 333 (0x14d), region = 63 }
 0x13a   : > { %877 = vst [vmem:[#allocation2 + $0x28] sm:$0xff] %v869_v54  ;;  %v870_v56 = vadd.f32 %v861_v55, %v324_v52 }
 0x13c   : > { %878 = vst [vmem:[#allocation2 + $0x38] sm:$0xff] %v870_v56 }
 0x13d   : > { %v893_v57 = vlaneseq  ;;  %v891_v59 = vld [vmem:[%s1524_s2] sm:$0x3]  ;;  %v883_v60 = vld [vmem:[#allocation2 + $0x30] sm:$0xff]  ;;  %v885_v0 = vld [vmem:[#allocation2 + $0x18] sm:$0xff] }
 0x13e   : > { %v884_v62 = vld [vmem:[#allocation2] sm:$0xff]  ;;  %v886_v1 = vld [vmem:[#allocation2 + $0x10] sm:$0xff]  ;;  %v887_v2 = vld [vmem:[#allocation2 + $0x8] sm:$0xff] }
 0x13f   : > { %v894_v58 = vshrl.u32 %v893_v57, 7  ;;  %v888_v5 = vld [vmem:[#allocation2 + $0x20] sm:$0xff] }
 0x141   : > { %v895_v61 = vsub.s32 0, %v894_v58  ;;  %v899_v63 = vsub.s32 1, %v894_v58  ;;  %v889_v6 = vld [vmem:[#allocation2 + $0x28] sm:$0xff] }
 0x143   : > { %v896_v3 = vrot.slane %v891_v59, %v895_v61  ;;  %v900_v4 = vrot.slane %v891_v59, %v899_v63  ;;  %v890_v7 = vld [vmem:[#allocation2 + $0x38] sm:$0xff] }
 0x145   : > { %v903_v8 = vadd.f32 %v896_v3, %v883_v60  ;;  %v904_v9 = vadd.f32 %v900_v4, %v884_v62  ;;  %v905_v10 = vadd.f32 %v896_v3, %v885_v0  ;;  %v906_v11 = vadd.f32 %v900_v4, %v886_v1 }
 0x146   : > { %v907_v12 = vadd.f32 %v896_v3, %v887_v2  ;;  %v908_v13 = vadd.f32 %v900_v4, %v888_v5  ;;  %v909_v14 = vadd.f32 %v896_v3, %v889_v6  ;;  %v910_v15 = vadd.f32 %v900_v4, %v890_v7 }
 0x147   : > { %v911_v16 = vmax.f32 %v903_v8, 0.0  ;;  %v912_v17 = vmax.f32 %v904_v9, 0.0  ;;  %v913_v18 = vmax.f32 %v905_v10, 0.0  ;;  %v914_v19 = vmax.f32 %v906_v11, 0.0 }
 0x148   : > { %v915_v20 = vmax.f32 %v907_v12, 0.0  ;;  %v916_v21 = vmax.f32 %v908_v13, 0.0  ;;  %v917_v22 = vmax.f32 %v909_v14, 0.0  ;;  %v918_v23 = vmax.f32 %v910_v15, 0.0 }
 0x149   : > { %919 = vst [vmem:[%s1525_s3] sm:$0xff] %v911_v16  ;;  %920 = vst [vmem:[%s1525_s3 + $0x8] sm:$0xff] %v912_v17 }
 0x14a   : > { %921 = vst [vmem:[%s1525_s3 + $0x10] sm:$0xff] %v913_v18  ;;  %922 = vst [vmem:[%s1525_s3 + $0x18] sm:$0xff] %v914_v19 }
 0x14b   : > { %923 = vst [vmem:[%s1525_s3 + $0x20] sm:$0xff] %v915_v20  ;;  %924 = vst [vmem:[%s1525_s3 + $0x28] sm:$0xff] %v916_v21 }
 0x14c   : > { %925 = vst [vmem:[%s1525_s3 + $0x30] sm:$0xff] %v917_v22  ;;  %926 = vst [vmem:[%s1525_s3 + $0x38] sm:$0xff] %v918_v23 }
 0x14d PF: > { %s13_s16 = sadd.s32 1, %s1329_s16   ;;  %s1526_s12 = smov %s1317_s13 }
 0x14e   : > { %p10_p12 = scmp.ge.s32.totalorder %s13_s16, 5   ;;  %s1527_s13 = smov %s1387_s20 }
 0x14f   : > { %s1528_s14 = smov %s1325_s15  ;;  %s1529_s15 = smov %s1531_s17 }
 0x150   :  { %12 = sbr.rel (!%p10_p12) target bundleno = 3 (0x3), region = 104 }

// kernel: unter_forward.21
= control target key start
LH: loop header
LB: loop body
LE: loop exit
PB: predicated region body
PF: predicated region fallthrough
CT: control target
= control target key end

     0   :  { %s987_s12 = smov 0   ;;  %s1213_s0 = inlined_call_operand.vmem [shape: f32[2,16,256], index: 0, kind: input, shape index: {}]   ;;  %s1214_s1 = inlined_call_operand.vmem [shape: bf16[256,512], index: 1, kind: input, shape index: {}]   ;;  %s1215_s2 = inlined_call_operand.vmem [shape: f32[1,512], index: 2, kind: input, shape index: {}]   ;;  %s1216_s3 = inlined_call_operand.vmem [shape: f32[2,4,2,4,256], index: 3, kind: output, shape index: {}]  }
   0x1 LB: > { %s771_s13 = sadd.s32 4294967295, %s965_s12   ;;  %p775_p0 = scmp.ge.s32.totalorder %s965_s12, 1  ;;  %s965_s12 = sphi %s987_s12, %s13_s12  }
   0x2   : > { %p137_p1 = scmp.lt.s32.totalorder %s965_s12, 3 }
   0x4   : > { %p138_p2 = pnand %p775_p0, %p137_p1 }
   0x5   : > { %p161_p3 = scmp.lt.s32.totalorder (!%p138_p2), %s771_s13, 1 }
   0x6   : > { %141 = sbr.rel (%p138_p2) target bundleno = 284 (0x11c), region = 32 }
   0xb   : > { %v863_v0 = vld [vmem:[%s1214_s1 + $0xe4] ss:$16 sps:$4 sm:$0xff]   ;;  %v865_v1 = vld [vmem:[%s1214_s1 + $0xec] ss:$16 sps:$4 sm:$0xff]   ;;  %v867_v2 = vld [vmem:[%s1214_s1 + $0xe0] ss:$16 sps:$4 sm:$0xff]  }
   0xc   : > { %583 = vmatprep.subr.bf16.mxu0 %v863_v0  ;;  %v868_v3 = vld [vmem:[%s1214_s1 + $0xe8] ss:$16 sps:$4 sm:$0xff]   ;;  %626 = vmatprep.subr.bf16.mxu1 %v865_v1  ;;  %v869_v4 = vld [vmem:[%s1214_s1 + $0xc4] ss:$16 sps:$4 sm:$0xff]   ;;  %v871_v5 = vld [vmem:[%s1214_s1 + $0xcc] ss:$16 sps:$4 sm:$0xff]  }
   0xd   : > { %584 = vmatpush1.bf16.msra.mxu0 %v867_v2  ;;  %627 = vmatpush1.bf16.msra.mxu1 %v868_v3  ;;  %v873_v6 = vld [vmem:[%s1214_s1 + $0xc0] ss:$16 sps:$4 sm:$0xff]   ;;  %v874_v7 = vld [vmem:[%s1214_s1 + $0xc8] ss:$16 sps:$4 sm:$0xff]   ;;  %v875_v8 = vld [vmem:[%s1214_s1 + $0xa4] ss:$16 sps:$4 sm:$0xff]  }
   0xe   : > { %585 = vmatprep.subr.bf16.mxu0 %v869_v4  ;;  %628 = vmatprep.subr.bf16.mxu1 %v871_v5  ;;  %v877_v9 = vld [vmem:[%s1214_s1 + $0xac] ss:$16 sps:$4 sm:$0xff]   ;;  %v879_v10 = vld [vmem:[%s1214_s1 + $0xa0] ss:$16 sps:$4 sm:$0xff]   ;;  %v880_v11 = vld [vmem:[%s1214_s1 + $0xa8] ss:$16 sps:$4 sm:$0xff]  }
   0xf   : > { %v881_v12 = vld [vmem:[%s1214_s1 + $0x84] ss:$16 sps:$4 sm:$0xff]   ;;  %v883_v13 = vld [vmem:[%s1214_s1 + $0x8c] ss:$16 sps:$4 sm:$0xff]   ;;  %v885_v14 = vld [vmem:[%s1214_s1 + $0x80] ss:$16 sps:$4 sm:$0xff]  }
  0x10   : > { %v886_v15 = vld [vmem:[%s1214_s1 + $0x88] ss:$16 sps:$4 sm:$0xff]   ;;  %v887_v16 = vld [vmem:[%s1214_s1 + $0x64] ss:$16 sps:$4 sm:$0xff]   ;;  %v889_v17 = vld [vmem:[%s1214_s1 + $0x6c] ss:$16 sps:$4 sm:$0xff]  }
  0x11   : > { %586 = vmatpush1.bf16.msra.mxu0 %v873_v6  ;;  %629 = vmatpush1.bf16.msra.mxu1 %v874_v7  ;;  %v891_v18 = vld [vmem:[%s1214_s1 + $0x60] ss:$16 sps:$4 sm:$0xff]   ;;  %v892_v19 = vld [vmem:[%s1214_s1 + $0x68] ss:$16 sps:$4 sm:$0xff]   ;;  %v893_v20 = vld [vmem:[%s1214_s1 + $0x44] ss:$16 sps:$4 sm:$0xff]   ;;  %v243_v6 = vlaneseq }
  0x12   : > { %587 = vmatprep.subr.bf16.mxu0 %v875_v8  ;;  %630 = vmatprep.subr.bf16.mxu1 %v877_v9  ;;  %v895_v21 = vld [vmem:[%s1214_s1 + $0x4c] ss:$16 sps:$4 sm:$0xff]   ;;  %v897_v22 = vld [vmem:[%s1214_s1 + $0x40] ss:$16 sps:$4 sm:$0xff]   ;;  %v898_v23 = vld [vmem:[%s1214_s1 + $0x48] ss:$16 sps:$4 sm:$0xff]  }
  0x13   : > { %v899_v24 = vld [vmem:[%s1214_s1 + $0x24] ss:$16 sps:$4 sm:$0xff]   ;;  %v901_v25 = vld [vmem:[%s1214_s1 + $0x2c] ss:$16 sps:$4 sm:$0xff]   ;;  %v903_v26 = vld [vmem:[%s1214_s1 + $0x20] ss:$16 sps:$4 sm:$0xff]  }
  0x14   : > { %v904_v27 = vld [vmem:[%s1214_s1 + $0x28] ss:$16 sps:$4 sm:$0xff]   ;;  %v905_v28 = vld [vmem:[%s1214_s1 + $0x4] ss:$16 sps:$4 sm:$0xff]   ;;  %v907_v29 = vld [vmem:[%s1214_s1 + $0xc] ss:$16 sps:$4 sm:$0xff]  }
  0x15   : > { %588 = vmatpush1.bf16.msra.mxu0 %v879_v10  ;;  %631 = vmatpush1.bf16.msra.mxu1 %v880_v11  ;;  %v909_v30 = vld [vmem:[%s1214_s1] ss:$16 sps:$4 sm:$0xff]   ;;  %v910_v31 = vld [vmem:[%s1214_s1 + $0x8] ss:$16 sps:$4 sm:$0xff]   ;;  %v911_v32 = vld [vmem:[%s1214_s1 + $0x1e4] ss:$16 sps:$4 sm:$0xff]  }
  0x16   : > { %589 = vmatprep.subr.bf16.mxu0 %v881_v12  ;;  %632 = vmatprep.subr.bf16.mxu1 %v883_v13  ;;  %v913_v33 = vld [vmem:[%s1214_s1 + $0x1ec] ss:$16 sps:$4 sm:$0xff]   ;;  %v915_v34 = vld [vmem:[%s1214_s1 + $0x1e0] ss:$16 sps:$4 sm:$0xff]   ;;  %v916_v35 = vld [vmem:[%s1214_s1 + $0x1e8] ss:$16 sps:$4 sm:$0xff]  }
  0x17   : > { %v917_v36 = vld [vmem:[%s1214_s1 + $0x1c4] ss:$16 sps:$4 sm:$0xff]   ;;  %s1218_s13 = smov (!%p161_p3, %s771_s13), 1  ;;  %v919_v37 = vld [vmem:[%s1214_s1 + $0x1cc] ss:$16 sps:$4 sm:$0xff]   ;;  %v244_v7 = vshrl.u32 %v243_v6, 7 }
  0x18   : > { %v921_v38 = vld [vmem:[%s1214_s1 + $0x1c0] ss:$16 sps:$4 sm:$0xff]   ;;  %v922_v39 = vld [vmem:[%s1214_s1 + $0x1c8] ss:$16 sps:$4 sm:$0xff]   ;;  %v923_v40 = vld [vmem:[%s1214_s1 + $0x1a4] ss:$16 sps:$4 sm:$0xff]  }
  0x19   : > { %590 = vmatpush1.bf16.msra.mxu0 %v885_v14  ;;  %633 = vmatpush1.bf16.msra.mxu1 %v886_v15  ;;  %s853_s21 = sshll.u32 %s1218_s13, 5  ;;  %v925_v41 = vld [vmem:[%s1214_s1 + $0x1ac] ss:$16 sps:$4 sm:$0xff]   ;;  %v927_v42 = vld [vmem:[%s1214_s1 + $0x1a0] ss:$16 sps:$4 sm:$0xff]   ;;  %v245_v8 = vsub.s32 0, %v244_v7 }
  0x1a   : > { %591 = vmatprep.subr.bf16.mxu0 %v887_v16  ;;  %634 = vmatprep.subr.bf16.mxu1 %v889_v17  ;;  %v928_v43 = vld [vmem:[%s1214_s1 + $0x1a8] ss:$16 sps:$4 sm:$0xff]   ;;  %s1137_s30 = scalar_lea.vmem %s1213_s0, %s853_s21  ;;  %v929_v44 = vld [vmem:[%s1214_s1 + $0x184] ss:$16 sps:$4 sm:$0xff]   ;;  %v931_v45 = vld [vmem:[%s1214_s1 + $0x18c] ss:$16 sps:$4 sm:$0xff]  }
  0x1b   : > { %v172_v46 = vld [vmem:[%s1137_s30 + $0x8] sm:$0xff]  ;;  %v174_v47 = vld [vmem:[%s1137_s30 + $0x18] sm:$0xff]  ;;  %v933_v48 = vld [vmem:[%s1214_s1 + $0x180] ss:$16 sps:$4 sm:$0xff]   ;;  %v253_v9 = vsub.s32 2, %v244_v7  ;;  %v249_v11 = vsub.s32 1, %v244_v7 }
  0x1c   : > { %v934_v49 = vld [vmem:[%s1214_s1 + $0x188] ss:$16 sps:$4 sm:$0xff]   ;;  %v176_v50 = vpack.c.bf16 %v174_v47, %v172_v46  ;;  %v935_v51 = vld [vmem:[%s1214_s1 + $0x164] ss:$16 sps:$4 sm:$0xff]   ;;  %v937_v52 = vld [vmem:[%s1214_s1 + $0x16c] ss:$16 sps:$4 sm:$0xff]  }
  0x1d   : > { %592 = vmatpush1.bf16.msra.mxu0 %v891_v18  ;;  %635 = vmatpush1.bf16.msra.mxu1 %v892_v19  ;;  %v939_v53 = vld [vmem:[%s1214_s1 + $0x160] ss:$16 sps:$4 sm:$0xff]   ;;  %v940_v54 = vld [vmem:[%s1214_s1 + $0x168] ss:$16 sps:$4 sm:$0xff]   ;;  %v941_v55 = vld [vmem:[%s1214_s1 + $0x144] ss:$16 sps:$4 sm:$0xff]  }
  0x1e   : > { %593 = vmatprep.subr.bf16.mxu0 %v893_v20  ;;  %636 = vmatprep.subr.bf16.mxu1 %v895_v21  ;;  %v943_v56 = vld [vmem:[%s1214_s1 + $0x14c] ss:$16 sps:$4 sm:$0xff]   ;;  %v945_v57 = vld [vmem:[%s1214_s1 + $0x140] ss:$16 sps:$4 sm:$0xff]   ;;  %v946_v58 = vld [vmem:[%s1214_s1 + $0x148] ss:$16 sps:$4 sm:$0xff]  }
  0x1f   : > { %615 = vmatprep.mubr.bf16.mxu0 %v176_v50  ;;  %658 = vmatprep.mubr.bf16.mxu1 %v176_v50  ;;  %v947_v59 = vld [vmem:[%s1214_s1 + $0x124] ss:$16 sps:$4 sm:$0xff]   ;;  %v949_v60 = vld [vmem:[%s1214_s1 + $0x12c] ss:$16 sps:$4 sm:$0xff]   ;;  %v951_v61 = vld [vmem:[%s1214_s1 + $0x120] ss:$16 sps:$4 sm:$0xff]  }
  0x20   : > { %v952_v62 = vld [vmem:[%s1214_s1 + $0x128] ss:$16 sps:$4 sm:$0xff]   ;;  %v953_v63 = vld [vmem:[%s1214_s1 + $0x104] ss:$16 sps:$4 sm:$0xff]   ;;  %v955_v0 = vld [vmem:[%s1214_s1 + $0x10c] ss:$16 sps:$4 sm:$0xff]  }
  0x21   : > { %594 = vmatpush1.bf16.msra.mxu0 %v897_v22  ;;  %637 = vmatpush1.bf16.msra.mxu1 %v898_v23  ;;  %v957_v1 = vld [vmem:[%s1214_s1 + $0x100] ss:$16 sps:$4 sm:$0xff]   ;;  %v958_v2 = vld [vmem:[%s1214_s1 + $0x108] ss:$16 sps:$4 sm:$0xff]   ;;  %v257_v12 = vsub.s32 3, %v244_v7 }
  0x22   : > { %595 = vmatprep.subr.bf16.mxu0 %v899_v24  ;;  %638 = vmatprep.subr.bf16.mxu1 %v901_v25  ;;  %v171_v3 = vld [vmem:[%s1137_s30] sm:$0xff]  ;;  %v173_v4 = vld [vmem:[%s1137_s30 + $0x10] sm:$0xff]  ;;  %s854_s30 = sshll.u32 %s1218_s13, 6 }
  0x23   : > { %v175_v5 = vpack.c.bf16 %v173_v4, %v171_v3  ;;  %v241_v10 = vld [vmem:[%s1215_s2] sm:$0xf]  ;;  %s170_s26 = scalar_lea.vmem %s1216_s3, %s854_s30 }
  0x24   : > { %v246_v13 = vrot.slane %v241_v10, %v245_v8  ;;  %v254_v14 = vrot.slane %v241_v10, %v253_v9  ;;  %v250_v15 = vrot.slane %v241_v10, %v249_v11  ;;  %v258_v16 = vrot.slane %v241_v10, %v257_v12 }
  0x25   : > { %596 = vmatpush1.bf16.msra.mxu0 %v903_v26  ;;  %639 = vmatpush1.bf16.msra.mxu1 %v904_v27 }
  0x26   : > { %597 = vmatprep.subr.bf16.mxu0 %v905_v28  ;;  %640 = vmatprep.subr.bf16.mxu1 %v907_v29 }
  0x29   : > { %598 = vmatpush1.bf16.msra.mxu0 %v909_v30  ;;  %641 = vmatpush1.bf16.msra.mxu1 %v910_v31 }
  0x2a   : > { %599 = vmatprep.subr.bf16.mxu0 %v911_v32  ;;  %642 = vmatprep.subr.bf16.mxu1 %v913_v33 }
  0x2d   : > { %600 = vmatpush2.bf16.msra.mxu0 %v915_v34  ;;  %643 = vmatpush2.bf16.msra.mxu1 %v916_v35 }
  0x2e   : > { %601 = vmatprep.subr.bf16.mxu0 %v917_v36  ;;  %644 = vmatprep.subr.bf16.mxu1 %v919_v37 }
  0x31   : > { %602 = vmatpush2.bf16.msra.mxu0 %v921_v38  ;;  %645 = vmatpush2.bf16.msra.mxu1 %v922_v39 }
  0x32   : > { %603 = vmatprep.subr.bf16.mxu0 %v923_v40  ;;  %646 = vmatprep.subr.bf16.mxu1 %v925_v41 }
  0x35   : > { %604 = vmatpush2.bf16.msra.mxu0 %v927_v42  ;;  %647 = vmatpush2.bf16.msra.mxu1 %v928_v43 }
  0x36   : > { %605 = vmatprep.subr.bf16.mxu0 %v929_v44  ;;  %648 = vmatprep.subr.bf16.mxu1 %v931_v45 }
  0x39   : > { %606 = vmatpush2.bf16.msra.mxu0 %v933_v48  ;;  %649 = vmatpush2.bf16.msra.mxu1 %v934_v49 }
  0x3a   : > { %607 = vmatprep.subr.bf16.mxu0 %v935_v51  ;;  %650 = vmatprep.subr.bf16.mxu1 %v937_v52 }
  0x3d   : > { %608 = vmatpush2.bf16.msra.mxu0 %v939_v53  ;;  %651 = vmatpush2.bf16.msra.mxu1 %v940_v54 }
  0x3e   : > { %609 = vmatprep.subr.bf16.mxu0 %v941_v55  ;;  %652 = vmatprep.subr.bf16.mxu1 %v943_v56 }
  0x41   : > { %610 = vmatpush2.bf16.msra.mxu0 %v945_v57  ;;  %653 = vmatpush2.bf16.msra.mxu1 %v946_v58 }
  0x42   : > { %611 = vmatprep.subr.bf16.mxu0 %v947_v59  ;;  %654 = vmatprep.subr.bf16.mxu1 %v949_v60 }
  0x45   : > { %612 = vmatpush2.bf16.msra.mxu0 %v951_v61  ;;  %655 = vmatpush2.bf16.msra.mxu1 %v952_v62 }
  0x46   : > { %613 = vmatprep.subr.bf16.mxu0 %v953_v63  ;;  %656 = vmatprep.subr.bf16.mxu1 %v955_v0 }
  0x49   : > { %614 = vmatpush2.bf16.msra.mxu0 %v957_v1  ;;  %657 = vmatpush2.bf16.msra.mxu1 %v958_v2 }
  0x4c   : > { %616 = vmatmul.mubr.bf16.vlgmr.msra.gmra.mxu0 %v175_v5  ;;  %659 = vmatmul.mubr.bf16.vlgmr.msra.gmra.mxu1 %v175_v5 }
 0x10c   : > { %v617_v17 = vpop.f32.mrf.mxu0  ;;  %v660_v18 = vpop.f32.mrf.mxu1 }
 0x10d   : > { %v618_v19 = vadd.f32 %v617_v17, %v246_v13  ;;  %v661_v20 = vadd.f32 %v660_v18, %v254_v14 }
 0x10e   : > { %v619_v21 = vpop.f32.mrf.mxu0  ;;  %v662_v22 = vpop.f32.mrf.mxu1 }
 0x10f   : > { %v620_v23 = vadd.f32 %v619_v21, %v250_v15  ;;  %v663_v24 = vadd.f32 %v662_v22, %v258_v16  ;;  %v669_v27 = vmax.f32 %v618_v19, 0.0  ;;  %v671_v28 = vmax.f32 %v661_v20, 0.0 }
 0x110   : > { %v621_v25 = vpop.f32.mrf.mxu0  ;;  %v664_v26 = vpop.f32.mrf.mxu1 }
 0x111   : > { %v670_v29 = vmax.f32 %v620_v23, 0.0  ;;  %v672_v30 = vmax.f32 %v663_v24, 0.0  ;;  %v622_v31 = vadd.f32 %v621_v25, %v246_v13  ;;  %v665_v32 = vadd.f32 %v664_v26, %v254_v14 }
 0x112   : > { %v623_v33 = vpop.f32.mrf.mxu0  ;;  %v666_v34 = vpop.f32.mrf.mxu1 }
 0x113   : > { %v679_v35 = vcombine.low %v669_v27, %v670_v29  ;;  %v688_v36 = vcombine.high %v669_v27, %v670_v29  ;;  %v684_v37 = vcombine.low %v671_v28, %v672_v30  ;;  %v692_v38 = vcombine.high %v671_v28, %v672_v30 }
 0x114   : > { %v624_v39 = vadd.f32 %v623_v33, %v250_v15  ;;  %v667_v40 = vadd.f32 %v666_v34, %v258_v16  ;;  %v673_v41 = vmax.f32 %v622_v31, 0.0  ;;  %v675_v42 = vmax.f32 %v665_v32, 0.0 }
 0x115   : > { %681 = vst [vmem:[%s170_s26] sm:$0xff] %v679_v35  ;;  %845 = vst [vmem:[%s170_s26 + $0x10] sm:$0xff] %v688_v36 }
 0x116   : > { %844 = vst [vmem:[%s170_s26 + $0x8] sm:$0xff] %v684_v37  ;;  %846 = vst [vmem:[%s170_s26 + $0x18] sm:$0xff] %v692_v38  ;;  %v674_v43 = vmax.f32 %v624_v39, 0.0  ;;  %v676_v44 = vmax.f32 %v667_v40, 0.0 }
 0x118   : > { %v698_v45 = vcombine.low %v673_v41, %v674_v43  ;;  %v708_v46 = vcombine.high %v673_v41, %v674_v43  ;;  %v704_v47 = vcombine.low %v675_v42, %v676_v44  ;;  %v712_v48 = vcombine.high %v675_v42, %v676_v44 }
 0x11a   : > { %847 = vst [vmem:[%s170_s26 + $0x20] sm:$0xff] %v698_v45  ;;  %849 = vst [vmem:[%s170_s26 + $0x30] sm:$0xff] %v708_v46 }
 0x11b   : > { %848 = vst [vmem:[%s170_s26 + $0x28] sm:$0xff] %v704_v47  ;;  %850 = vst [vmem:[%s170_s26 + $0x38] sm:$0xff] %v712_v48 }
 0x11c PF: > { %s13_s12 = sadd.s32 1, %s965_s12  }
 0x11d   : > { %p10_p4 = scmp.ge.s32.totalorder %s13_s12, 4  }
 0x11f   :  { %12 = sbr.rel (!%p10_p4) target bundleno = 1 (0x1), region = 69 }

// kernel: unter_forward.22
= control target key start
LH: loop header
LB: loop body
LE: loop exit
PB: predicated region body
PF: predicated region fallthrough
CT: control target
= control target key end

     0   :  { %s589_s12 = smov 0   ;;  %s683_s0 = inlined_call_operand.vmem [shape: f32[2,64,128], index: 0, kind: input, shape index: {}]   ;;  %s684_s1 = inlined_call_operand.vmem [shape: bf16[128,256], index: 1, kind: input, shape index: {}]   ;;  %s685_s2 = inlined_call_operand.vmem [shape: f32[1,256], index: 2, kind: input, shape index: {}]   ;;  %s686_s3 = inlined_call_operand.vmem [shape: f32[2,8,2,8,128], index: 3, kind: output, shape index: {}]  }
   0x1 LB: > { %s467_s13 = sadd.s32 4294967295, %s566_s12   ;;  %p471_p0 = scmp.ge.s32.totalorder %s566_s12, 1  ;;  %s566_s12 = sphi %s589_s12, %s13_s12  }
   0x2   : > { %p137_p1 = scmp.lt.s32.totalorder %s566_s12, 3 }
   0x4   : > { %p138_p2 = pnand %p471_p0, %p137_p1 }
   0x5   : > { %p161_p3 = scmp.lt.s32.totalorder (!%p138_p2), %s467_s13, 1 }
   0x6   : > { %141 = sbr.rel (%p138_p2) target bundleno = 257 (0x101), region = 32 }
   0xb   : > { %v536_v0 = vld [vmem:[%s684_s1 + $0x74] ss:$8 sps:$4 sm:$0xff]   ;;  %v538_v1 = vld [vmem:[%s684_s1 + $0x70] ss:$8 sps:$4 sm:$0xff]   ;;  %v568_v2 = vmov 0   ;;  %s688_s13 = smov (!%p161_p3, %s467_s13), 1  ;;  %v202_v29 = vlaneseq }
   0xc   : > { %324 = vmatprep.mubr.bf16.mxu0 %v568_v2  ;;  %344 = vmatprep.mubr.bf16.mxu1 %v568_v2  ;;  %v539_v3 = vld [vmem:[%s684_s1 + $0x64] ss:$8 sps:$4 sm:$0xff]   ;;  %v541_v4 = vld [vmem:[%s684_s1 + $0x60] ss:$8 sps:$4 sm:$0xff]   ;;  %v542_v5 = vld [vmem:[%s684_s1 + $0x54] ss:$8 sps:$4 sm:$0xff]  }
   0xd   : > { %292 = vmatprep.subr.bf16.mxu0 %v536_v0  ;;  %511 = vmatprep.subr.bf16.mxu1 %v536_v0  ;;  %v544_v6 = vld [vmem:[%s684_s1 + $0x50] ss:$8 sps:$4 sm:$0xff]   ;;  %v545_v7 = vld [vmem:[%s684_s1 + $0x44] ss:$8 sps:$4 sm:$0xff]   ;;  %v547_v8 = vld [vmem:[%s684_s1 + $0x40] ss:$8 sps:$4 sm:$0xff]  }
   0xe   : > { %293 = vmatpush1.bf16.msra.mxu0 %v538_v1  ;;  %519 = vmatpush1.bf16.msra.mxu1 %v538_v1  ;;  %v548_v9 = vld [vmem:[%s684_s1 + $0x34] ss:$8 sps:$4 sm:$0xff]   ;;  %v550_v10 = vld [vmem:[%s684_s1 + $0x30] ss:$8 sps:$4 sm:$0xff]   ;;  %v551_v11 = vld [vmem:[%s684_s1 + $0x24] ss:$8 sps:$4 sm:$0xff]  }
   0xf   : > { %294 = vmatprep.subr.bf16.mxu0 %v539_v3  ;;  %512 = vmatprep.subr.bf16.mxu1 %v539_v3  ;;  %v553_v12 = vld [vmem:[%s684_s1 + $0x20] ss:$8 sps:$4 sm:$0xff]   ;;  %v554_v13 = vld [vmem:[%s684_s1 + $0x14] ss:$8 sps:$4 sm:$0xff]   ;;  %s509_s15 = sshll.u32 %s688_s13, 6  ;;  %v203_v30 = vshrl.u32 %v202_v29, 7 }
  0x10   : > { %v556_v14 = vld [vmem:[%s684_s1 + $0x10] ss:$8 sps:$4 sm:$0xff]   ;;  %s165_s20 = scalar_lea.vmem %s683_s0, %s509_s15  ;;  %v557_v15 = vld [vmem:[%s684_s1 + $0x4] ss:$8 sps:$4 sm:$0xff]   ;;  %v559_v16 = vld [vmem:[%s684_s1] ss:$8 sps:$4 sm:$0xff]  }
  0x11   : > { %v172_v17 = vld [vmem:[%s165_s20] sm:$0xff]  ;;  %v173_v18 = vld [vmem:[%s165_s20 + $0x8] sm:$0xff]  ;;  %v174_v23 = vld [vmem:[%s165_s20 + $0x10] sm:$0xff]  ;;  %v204_v31 = vsub.s32 0, %v203_v30  ;;  %v208_v33 = vsub.s32 1, %v203_v30  ;;  %s510_s27 = sshll.u32 %s688_s13, 7 }
  0x12   : > { %295 = vmatpush1.bf16.msra.mxu0 %v541_v4  ;;  %520 = vmatpush1.bf16.msra.mxu1 %v541_v4  ;;  %v176_v19 = vld [vmem:[%s165_s20 + $0x20] sm:$0xff]  ;;  %v177_v20 = vld [vmem:[%s165_s20 + $0x28] sm:$0xff]  ;;  %v180_v21 = vpack.c.bf16 %v173_v18, %v172_v17  ;;  %v175_v24 = vld [vmem:[%s165_s20 + $0x18] sm:$0xff]  ;;  %s662_s30 = scalar_lea.vmem %s686_s3, %s510_s27 }
  0x13   : > { %296 = vmatprep.subr.bf16.mxu0 %v542_v5  ;;  %513 = vmatprep.subr.bf16.mxu1 %v542_v5  ;;  %v182_v22 = vpack.c.bf16 %v177_v20, %v176_v19  ;;  %v178_v25 = vld [vmem:[%s165_s20 + $0x30] sm:$0xff]  ;;  %v179_v26 = vld [vmem:[%s165_s20 + $0x38] sm:$0xff]  ;;  %v181_v27 = vpack.c.bf16 %v175_v24, %v174_v23  ;;  %v200_v32 = vld [vmem:[%s685_s2] sm:$0x3] }
  0x14   : > { %v183_v28 = vpack.c.bf16 %v179_v26, %v178_v25  ;;  %v205_v34 = vrot.slane %v200_v32, %v204_v31  ;;  %v209_v35 = vrot.slane %v200_v32, %v208_v33 }
  0x16   : > { %297 = vmatpush1.bf16.msra.mxu0 %v544_v6  ;;  %521 = vmatpush1.bf16.msra.mxu1 %v544_v6 }
  0x17   : > { %298 = vmatprep.subr.bf16.mxu0 %v545_v7  ;;  %514 = vmatprep.subr.bf16.mxu1 %v545_v7 }
  0x1a   : > { %299 = vmatpush1.bf16.msra.mxu0 %v547_v8  ;;  %522 = vmatpush1.bf16.msra.mxu1 %v547_v8 }
  0x1b   : > { %300 = vmatprep.subr.bf16.mxu0 %v548_v9  ;;  %515 = vmatprep.subr.bf16.mxu1 %v548_v9 }
  0x1e   : > { %301 = vmatpush1.bf16.msra.mxu0 %v550_v10  ;;  %523 = vmatpush1.bf16.msra.mxu1 %v550_v10 }
  0x1f   : > { %302 = vmatprep.subr.bf16.mxu0 %v551_v11  ;;  %516 = vmatprep.subr.bf16.mxu1 %v551_v11 }
  0x22   : > { %303 = vmatpush1.bf16.msra.mxu0 %v553_v12  ;;  %524 = vmatpush1.bf16.msra.mxu1 %v553_v12 }
  0x23   : > { %304 = vmatprep.subr.bf16.mxu0 %v554_v13  ;;  %517 = vmatprep.subr.bf16.mxu1 %v554_v13 }
  0x26   : > { %305 = vmatpush1.bf16.msra.mxu0 %v556_v14  ;;  %525 = vmatpush1.bf16.msra.mxu1 %v556_v14 }
  0x27   : > { %306 = vmatprep.subr.bf16.mxu0 %v557_v15  ;;  %518 = vmatprep.subr.bf16.mxu1 %v557_v15 }
  0x2a   : > { %307 = vmatpush1.bf16.msra.mxu0 %v559_v16  ;;  %526 = vmatpush1.bf16.msra.mxu1 %v559_v16 }
  0x2d   : > { %325 = vmatmul.mubr.bf16.vlgmr.msra.gmra.mxu0 %v180_v21  ;;  %345 = vmatmul.mubr.bf16.vlgmr.msra.gmra.mxu1 %v182_v22 }
  0x2e   : > { %334 = vmatprep.mubr.bf16.mxu0 %v568_v2  ;;  %354 = vmatprep.mubr.bf16.mxu1 %v568_v2 }
  0x35   : > { %335 = vmatmul.mubr.bf16.gmra.mxu0 %v181_v27  ;;  %355 = vmatmul.mubr.bf16.gmra.mxu1 %v183_v28 }
  0xed   : > { %v326_v36 = vpop.f32.mrf.mxu0  ;;  %v346_v37 = vpop.f32.mrf.mxu1 }
  0xee   : > { %v327_v38 = vadd.f32 %v326_v36, %v205_v34  ;;  %v347_v39 = vadd.f32 %v346_v37, %v205_v34 }
  0xef   : > { %v328_v40 = vpop.f32.mrf.mxu0  ;;  %v348_v41 = vpop.f32.mrf.mxu1 }
  0xf0   : > { %v365_v42 = vmax.f32 %v327_v38, 0.0  ;;  %v373_v43 = vmax.f32 %v347_v39, 0.0  ;;  %v329_v44 = vadd.f32 %v328_v40, %v209_v35  ;;  %v349_v45 = vadd.f32 %v348_v41, %v209_v35 }
  0xf1   : > { %v330_v46 = vpop.f32.mrf.mxu0  ;;  %v350_v47 = vpop.f32.mrf.mxu1 }
  0xf2   : > { %381 = vst [vmem:[%s662_s30] sm:$0xff] %v365_v42  ;;  %499 = vst [vmem:[%s662_s30 + $0x40] sm:$0xff] %v373_v43  ;;  %v366_v48 = vmax.f32 %v329_v44, 0.0  ;;  %v374_v49 = vmax.f32 %v349_v45, 0.0  ;;  %v331_v50 = vadd.f32 %v330_v46, %v205_v34  ;;  %v351_v51 = vadd.f32 %v350_v47, %v205_v34 }
  0xf3   : > { %v332_v52 = vpop.f32.mrf.mxu0  ;;  %v352_v53 = vpop.f32.mrf.mxu1 }
  0xf4   : > { %492 = vst [vmem:[%s662_s30 + $0x8] sm:$0xff] %v366_v48  ;;  %500 = vst [vmem:[%s662_s30 + $0x48] sm:$0xff] %v374_v49  ;;  %v367_v54 = vmax.f32 %v331_v50, 0.0  ;;  %v375_v55 = vmax.f32 %v351_v51, 0.0  ;;  %v333_v56 = vadd.f32 %v332_v52, %v209_v35  ;;  %v353_v57 = vadd.f32 %v352_v53, %v209_v35 }
  0xf5   : > { %v336_v58 = vpop.f32.mrf.mxu0  ;;  %v356_v59 = vpop.f32.mrf.mxu1 }
  0xf6   : > { %493 = vst [vmem:[%s662_s30 + $0x10] sm:$0xff] %v367_v54  ;;  %501 = vst [vmem:[%s662_s30 + $0x50] sm:$0xff] %v375_v55  ;;  %v368_v60 = vmax.f32 %v333_v56, 0.0  ;;  %v376_v61 = vmax.f32 %v353_v57, 0.0  ;;  %v337_v62 = vadd.f32 %v336_v58, %v205_v34  ;;  %v357_v63 = vadd.f32 %v356_v59, %v205_v34 }
  0xf7   : > { %v338_v0 = vpop.f32.mrf.mxu0  ;;  %v358_v1 = vpop.f32.mrf.mxu1 }
  0xf8   : > { %494 = vst [vmem:[%s662_s30 + $0x18] sm:$0xff] %v368_v60  ;;  %502 = vst [vmem:[%s662_s30 + $0x58] sm:$0xff] %v376_v61  ;;  %v369_v2 = vmax.f32 %v337_v62, 0.0  ;;  %v377_v3 = vmax.f32 %v357_v63, 0.0  ;;  %v339_v4 = vadd.f32 %v338_v0, %v209_v35  ;;  %v359_v5 = vadd.f32 %v358_v1, %v209_v35 }
  0xf9   : > { %v340_v6 = vpop.f32.mrf.mxu0  ;;  %v360_v7 = vpop.f32.mrf.mxu1 }
  0xfa   : > { %495 = vst [vmem:[%s662_s30 + $0x20] sm:$0xff] %v369_v2  ;;  %503 = vst [vmem:[%s662_s30 + $0x60] sm:$0xff] %v377_v3  ;;  %v370_v8 = vmax.f32 %v339_v4, 0.0  ;;  %v378_v9 = vmax.f32 %v359_v5, 0.0  ;;  %v341_v10 = vadd.f32 %v340_v6, %v205_v34  ;;  %v361_v11 = vadd.f32 %v360_v7, %v205_v34 }
  0xfb   : > { %v342_v12 = vpop.f32.mrf.mxu0  ;;  %v362_v13 = vpop.f32.mrf.mxu1 }
  0xfc   : > { %496 = vst [vmem:[%s662_s30 + $0x28] sm:$0xff] %v370_v8  ;;  %504 = vst [vmem:[%s662_s30 + $0x68] sm:$0xff] %v378_v9  ;;  %v371_v14 = vmax.f32 %v341_v10, 0.0  ;;  %v379_v15 = vmax.f32 %v361_v11, 0.0  ;;  %v343_v16 = vadd.f32 %v342_v12, %v209_v35  ;;  %v363_v17 = vadd.f32 %v362_v13, %v209_v35 }
  0xfe   : > { %497 = vst [vmem:[%s662_s30 + $0x30] sm:$0xff] %v371_v14  ;;  %505 = vst [vmem:[%s662_s30 + $0x70] sm:$0xff] %v379_v15  ;;  %v372_v18 = vmax.f32 %v343_v16, 0.0  ;;  %v380_v19 = vmax.f32 %v363_v17, 0.0 }
 0x100   : > { %498 = vst [vmem:[%s662_s30 + $0x38] sm:$0xff] %v372_v18  ;;  %506 = vst [vmem:[%s662_s30 + $0x78] sm:$0xff] %v380_v19 }
 0x101 PF: > { %s13_s12 = sadd.s32 1, %s566_s12  }
 0x102   : > { %p10_p4 = scmp.ge.s32.totalorder %s13_s12, 4  }
 0x104   :  { %12 = sbr.rel (!%p10_p4) target bundleno = 1 (0x1), region = 77 }

// kernel: unter_forward.17
= control target key start
LH: loop header
LB: loop body
LE: loop exit
PB: predicated region body
PF: predicated region fallthrough
CT: control target
= control target key end

     0   :  { %s4940_s25 = smov 0   ;;  %s6129_s0 = inlined_call_operand.vmem [shape: f32[2,16,256], index: 0, kind: input, shape index: {}]   ;;  %s6130_s1 = inlined_call_operand.vmem [shape: bf16[256,768], index: 1, kind: input, shape index: {}]   ;;  %s6131_s2 = inlined_call_operand.vmem [shape: f32[1,768], index: 2, kind: input, shape index: {}]   ;;  %s6132_s3 = inlined_call_operand.vmem [shape: bf16[256,256], index: 3, kind: input, shape index: {}]   ;;  %s6133_s4 = inlined_call_operand.vmem [shape: f32[1,256], index: 4, kind: input, shape index: {}]   ;;  %s6134_s5 = inlined_call_operand.vmem [shape: f32[1,256], index: 5, kind: input, shape index: {}]   ;;  %s6135_s6 = inlined_call_operand.vmem [shape: f32[1,256], index: 6, kind: input, shape index: {}]   ;;  %s6136_s7 = inlined_call_operand.vmem [shape: bf16[256,512], index: 7, kind: input, shape index: {}]   ;;  %s6137_s8 = inlined_call_operand.vmem [shape: f32[1,512], index: 8, kind: input, shape index: {}]   ;;  %s6138_s9 = inlined_call_operand.vmem [shape: bf16[512,256], index: 9, kind: input, shape index: {}]   ;;  %s6139_s10 = inlined_call_operand.vmem [shape: f32[1,256], index: 10, kind: input, shape index: {}]   ;;  %s6140_s11 = inlined_call_operand.vmem [shape: f32[1,256], index: 11, kind: input, shape index: {}]   ;;  %s6141_s12 = inlined_call_operand.vmem [shape: f32[1,256], index: 12, kind: input, shape index: {}]   ;;  %s6142_s13 = inlined_call_operand.vmem [shape: f32[2,16,256], index: 13, kind: output, shape index: {}]  }
   0x1 LB: > { %s3961_s26 = sadd.s32 4294967295, %s4862_s25   ;;  %p3965_p0 = scmp.ge.s32.totalorder %s4862_s25, 1  ;;  %s4862_s25 = sphi %s4940_s25, %s23_s25  }
   0x2   : > { %p387_p1 = scmp.lt.s32.totalorder %s4862_s25, 3 }
   0x4   : > { %p388_p2 = pnand %p3965_p0, %p387_p1 }
   0x5   : > { %p431_p3 = scmp.lt.s32.totalorder (!%p388_p2), %s3961_s26, 1  ;;  %s4866_s14 = smov (!%p388_p2), 96  }
   0x6   : > { %391 = sbr.rel (%p388_p2) target bundleno = 6091 (0x17cb), region = 72  ;;  %s4867_s16 = smov (!%p388_p2), 64  }
   0x7   : > { %s4869_s22 = smov (!%p388_p2), 32  }
   0xb   : > { %v4396_v0 = vld [vmem:[%s6130_s1 + $0x15c] ss:$24 sps:$4 sm:$0xff]   ;;  %v4398_v1 = vld [vmem:[%s6130_s1 + $0x158] ss:$24 sps:$4 sm:$0xff]   ;;  %v4402_v4 = vld [vmem:[%s6130_s1 + $0x12c] ss:$24 sps:$4 sm:$0xff]  }
   0xc   : > { %1099 = vmatprep.subr.bf16.mxu1 %v4396_v0  ;;  %v4399_v2 = vld [vmem:[%s6130_s1 + $0x154] ss:$24 sps:$4 sm:$0xff]   ;;  %v4401_v3 = vld [vmem:[%s6130_s1 + $0x150] ss:$24 sps:$4 sm:$0xff]   ;;  %v4405_v6 = vld [vmem:[%s6130_s1 + $0x124] ss:$24 sps:$4 sm:$0xff]  }
   0xd   : > { %1100 = vmatpush1.bf16.msra.mxu1 %v4398_v1  ;;  %v4404_v5 = vld [vmem:[%s6130_s1 + $0x128] ss:$24 sps:$4 sm:$0xff]   ;;  %1056 = vmatprep.subr.bf16.mxu0 %v4399_v2  ;;  %v4408_v8 = vld [vmem:[%s6130_s1 + $0xfc] ss:$24 sps:$4 sm:$0xff]   ;;  %v4410_v9 = vld [vmem:[%s6130_s1 + $0xf8] ss:$24 sps:$4 sm:$0xff]  }
   0xe   : > { %1057 = vmatpush1.bf16.msra.mxu0 %v4401_v3  ;;  %1101 = vmatprep.subr.bf16.mxu1 %v4402_v4  ;;  %v4407_v7 = vld [vmem:[%s6130_s1 + $0x120] ss:$24 sps:$4 sm:$0xff]   ;;  %v4411_v10 = vld [vmem:[%s6130_s1 + $0xf4] ss:$24 sps:$4 sm:$0xff]   ;;  %v4413_v12 = vld [vmem:[%s6130_s1 + $0xf0] ss:$24 sps:$4 sm:$0xff]  }
   0xf   : > { %1058 = vmatprep.subr.bf16.mxu0 %v4405_v6  ;;  %v4414_v11 = vld [vmem:[%s6130_s1 + $0xcc] ss:$24 sps:$4 sm:$0xff]   ;;  %v4416_v14 = vld [vmem:[%s6130_s1 + $0xc8] ss:$24 sps:$4 sm:$0xff]   ;;  %v4420_v15 = vld [vmem:[%s6130_s1 + $0x9c] ss:$24 sps:$4 sm:$0xff]  }
  0x10   : > { %v4417_v13 = vld [vmem:[%s6130_s1 + $0xc4] ss:$24 sps:$4 sm:$0xff]   ;;  %v4419_v16 = vld [vmem:[%s6130_s1 + $0xc0] ss:$24 sps:$4 sm:$0xff]   ;;  %v4423_v17 = vld [vmem:[%s6130_s1 + $0x94] ss:$24 sps:$4 sm:$0xff]  }
  0x11   : > { %1102 = vmatpush1.bf16.msra.mxu1 %v4404_v5  ;;  %v4422_v18 = vld [vmem:[%s6130_s1 + $0x98] ss:$24 sps:$4 sm:$0xff]   ;;  %v4426_v19 = vld [vmem:[%s6130_s1 + $0x6c] ss:$24 sps:$4 sm:$0xff]   ;;  %v4428_v22 = vld [vmem:[%s6130_s1 + $0x68] ss:$24 sps:$4 sm:$0xff]  }
  0x12   : > { %1103 = vmatprep.subr.bf16.mxu1 %v4408_v8  ;;  %1059 = vmatpush1.bf16.msra.mxu0 %v4407_v7  ;;  %v4425_v20 = vld [vmem:[%s6130_s1 + $0x90] ss:$24 sps:$4 sm:$0xff]   ;;  %v4429_v21 = vld [vmem:[%s6130_s1 + $0x64] ss:$24 sps:$4 sm:$0xff]   ;;  %v4431_v24 = vld [vmem:[%s6130_s1 + $0x60] ss:$24 sps:$4 sm:$0xff]   ;;  %v546_v7 = vlaneseq }
  0x13   : > { %1060 = vmatprep.subr.bf16.mxu0 %v4411_v10  ;;  %v4432_v23 = vld [vmem:[%s6130_s1 + $0x3c] ss:$24 sps:$4 sm:$0xff]   ;;  %v4434_v26 = vld [vmem:[%s6130_s1 + $0x38] ss:$24 sps:$4 sm:$0xff]   ;;  %v4438_v27 = vld [vmem:[%s6130_s1 + $0xc] ss:$24 sps:$4 sm:$0xff]  }
  0x14   : > { %v4435_v25 = vld [vmem:[%s6130_s1 + $0x34] ss:$24 sps:$4 sm:$0xff]   ;;  %v4437_v28 = vld [vmem:[%s6130_s1 + $0x30] ss:$24 sps:$4 sm:$0xff]   ;;  %v4441_v29 = vld [vmem:[%s6130_s1 + $0x4] ss:$24 sps:$4 sm:$0xff]  }
  0x15   : > { %1104 = vmatpush1.bf16.msra.mxu1 %v4410_v9  ;;  %v4440_v30 = vld [vmem:[%s6130_s1 + $0x8] ss:$24 sps:$4 sm:$0xff]   ;;  %v4444_v31 = vld [vmem:[%s6130_s1 + $0x2dc] ss:$24 sps:$4 sm:$0xff]   ;;  %v4446_v34 = vld [vmem:[%s6130_s1 + $0x2d8] ss:$24 sps:$4 sm:$0xff]  }
  0x16   : > { %1105 = vmatprep.subr.bf16.mxu1 %v4414_v11  ;;  %1061 = vmatpush1.bf16.msra.mxu0 %v4413_v12  ;;  %v4443_v32 = vld [vmem:[%s6130_s1] ss:$24 sps:$4 sm:$0xff]   ;;  %v4447_v33 = vld [vmem:[%s6130_s1 + $0x2d4] ss:$24 sps:$4 sm:$0xff]   ;;  %s6144_s26 = smov (!%p431_p3, %s3961_s26), 1  ;;  %v4864_v6 = vmov 0.0  }
  0x17   : > { %1062 = vmatprep.subr.bf16.mxu0 %v4417_v13  ;;  %v4450_v35 = vld [vmem:[%s6130_s1 + $0x2ac] ss:$24 sps:$4 sm:$0xff]   ;;  %v4449_v36 = vld [vmem:[%s6130_s1 + $0x2d0] ss:$24 sps:$4 sm:$0xff]   ;;  %v4456_v39 = vld [vmem:[%s6130_s1 + $0x27c] ss:$24 sps:$4 sm:$0xff]  }
  0x18   : > { %v4453_v37 = vld [vmem:[%s6130_s1 + $0x2a4] ss:$24 sps:$4 sm:$0xff]   ;;  %v4452_v38 = vld [vmem:[%s6130_s1 + $0x2a8] ss:$24 sps:$4 sm:$0xff]   ;;  %s4252_s15 = sshll.u32 %s6144_s26, 5  ;;  %vm4865_vm0 = vmmov 0  }
  0x19   : > { %1106 = vmatpush1.bf16.msra.mxu1 %v4416_v14  ;;  %v4455_v40 = vld [vmem:[%s6130_s1 + $0x2a0] ss:$24 sps:$4 sm:$0xff]   ;;  %v4459_v41 = vld [vmem:[%s6130_s1 + $0x274] ss:$24 sps:$4 sm:$0xff]   ;;  %s5089_s24 = scalar_lea.vmem %s6129_s0, %s4252_s15  ;;  %v4461_v44 = vld [vmem:[%s6130_s1 + $0x270] ss:$24 sps:$4 sm:$0xff]  }
  0x1a   : > { %1107 = vmatprep.subr.bf16.mxu1 %v4420_v15  ;;  %1063 = vmatpush1.bf16.msra.mxu0 %v4419_v16  ;;  %v4458_v42 = vld [vmem:[%s6130_s1 + $0x278] ss:$24 sps:$4 sm:$0xff]   ;;  %v4462_v43 = vld [vmem:[%s6130_s1 + $0x24c] ss:$24 sps:$4 sm:$0xff]   ;;  %v4464_v48 = vld [vmem:[%s6130_s1 + $0x248] ss:$24 sps:$4 sm:$0xff]  }
  0x1b   : > { %1064 = vmatprep.subr.bf16.mxu0 %v4423_v17  ;;  %v4465_v45 = vld [vmem:[%s6130_s1 + $0x244] ss:$24 sps:$4 sm:$0xff]   ;;  %v443_v46 = vld [vmem:[%s5089_s24 + $0x8] sm:$0xff]  ;;  %v4467_v49 = vld [vmem:[%s6130_s1 + $0x240] ss:$24 sps:$4 sm:$0xff]   ;;  %v5165_v8 = vshrl.u32 %v546_v7, 7 }
  0x1c   : > { %v445_v47 = vld [vmem:[%s5089_s24 + $0x18] sm:$0xff]  ;;  %v4471_v52 = vld [vmem:[%s6130_s1 + $0x214] ss:$24 sps:$4 sm:$0xff]   ;;  %v4473_v55 = vld [vmem:[%s6130_s1 + $0x210] ss:$24 sps:$4 sm:$0xff]   ;;  %vm1188_vm1 = vcmask 261120  }
  0x1d   : > { %1108 = vmatpush1.bf16.msra.mxu1 %v4422_v18  ;;  %v4468_v50 = vld [vmem:[%s6130_s1 + $0x21c] ss:$24 sps:$4 sm:$0xff]   ;;  %v447_v51 = vpack.c.bf16 %v445_v47, %v443_v46  ;;  %v4470_v53 = vld [vmem:[%s6130_s1 + $0x218] ss:$24 sps:$4 sm:$0xff]   ;;  %v4474_v54 = vld [vmem:[%s6130_s1 + $0x1ec] ss:$24 sps:$4 sm:$0xff]  }
  0x1e   : > { %1109 = vmatprep.subr.bf16.mxu1 %v4426_v19  ;;  %1065 = vmatpush1.bf16.msra.mxu0 %v4425_v20  ;;  %v4477_v56 = vld [vmem:[%s6130_s1 + $0x1e4] ss:$24 sps:$4 sm:$0xff]   ;;  %v4476_v57 = vld [vmem:[%s6130_s1 + $0x1e8] ss:$24 sps:$4 sm:$0xff]   ;;  %v4483_v60 = vld [vmem:[%s6130_s1 + $0x1b4] ss:$24 sps:$4 sm:$0xff]  }
  0x1f   : > { %1066 = vmatprep.subr.bf16.mxu0 %v4429_v21  ;;  %1131 = vmatprep.mubr.bf16.mxu1 %v447_v51  ;;  %v4480_v58 = vld [vmem:[%s6130_s1 + $0x1bc] ss:$24 sps:$4 sm:$0xff]   ;;  %v4479_v59 = vld [vmem:[%s6130_s1 + $0x1e0] ss:$24 sps:$4 sm:$0xff]   ;;  %v4486_v62 = vld [vmem:[%s6130_s1 + $0x18c] ss:$24 sps:$4 sm:$0xff]  }
  0x20   : > { %1088 = vmatprep.mubr.bf16.mxu0 %v447_v51  ;;  %v4482_v61 = vld [vmem:[%s6130_s1 + $0x1b8] ss:$24 sps:$4 sm:$0xff]   ;;  %v4489_v0 = vld [vmem:[%s6130_s1 + $0x184] ss:$24 sps:$4 sm:$0xff]   ;;  %v4488_v1 = vld [vmem:[%s6130_s1 + $0x188] ss:$24 sps:$4 sm:$0xff]  }
  0x21   : > { %1110 = vmatpush1.bf16.msra.mxu1 %v4428_v22  ;;  %v4485_v63 = vld [vmem:[%s6130_s1 + $0x1b0] ss:$24 sps:$4 sm:$0xff]   ;;  %v442_v2 = vld [vmem:[%s5089_s24] sm:$0xff]  ;;  %v556_v9 = vsub.s32 2, %v5165_v8  ;;  %v5179_v15 = vsub.s32 0, %v5165_v8  ;;  %vm1238_vm2 = vcmask 130048  }
  0x22   : > { %1111 = vmatprep.subr.bf16.mxu1 %v4432_v23  ;;  %1067 = vmatpush1.bf16.msra.mxu0 %v4431_v24  ;;  %v444_v3 = vld [vmem:[%s5089_s24 + $0x10] sm:$0xff]  ;;  %v4491_v4 = vld [vmem:[%s6130_s1 + $0x180] ss:$24 sps:$4 sm:$0xff]   ;;  %v4524_v47 = vld [vmem:[%s6130_s1 + $0x284] ss:$24 sps:$4 sm:$0xff]  }
  0x23   : > { %1068 = vmatprep.subr.bf16.mxu0 %v4435_v25  ;;  %v5158_v5 = vpack.c.bf16 %v444_v3, %v442_v2  ;;  %v5171_v10 = vld [vmem:[%s6131_s2] sm:$0x3f]  ;;  %v4519_v46 = vld [vmem:[%s6130_s1 + $0x2b0] ss:$24 sps:$4 sm:$0xff]  }
  0x24   : > { %v557_v12 = vrot.slane %v5171_v10, %v556_v9  ;;  %v549_v20 = vrot.slane %v5171_v10, %v5179_v15 }
  0x25   : > { %1112 = vmatpush1.bf16.msra.mxu1 %v4434_v26 }
  0x26   : > { %1113 = vmatprep.subr.bf16.mxu1 %v4438_v27  ;;  %1069 = vmatpush1.bf16.msra.mxu0 %v4437_v28  ;;  %v4492_v27 = vld [vmem:[%s6130_s1 + $0x160] ss:$24 sps:$4 sm:$0xff]   ;;  %v4494_v28 = vld [vmem:[%s6130_s1 + $0x164] ss:$24 sps:$4 sm:$0xff]  }
  0x27   : > { %1070 = vmatprep.subr.bf16.mxu0 %v4441_v29  ;;  %v4497_v29 = vld [vmem:[%s6130_s1 + $0x134] ss:$24 sps:$4 sm:$0xff]  }
  0x29   : > { %1114 = vmatpush1.bf16.msra.mxu1 %v4440_v30  ;;  %v4495_v30 = vld [vmem:[%s6130_s1 + $0x130] ss:$24 sps:$4 sm:$0xff]  }
  0x2a   : > { %1115 = vmatprep.subr.bf16.mxu1 %v4444_v31  ;;  %1071 = vmatpush1.bf16.msra.mxu0 %v4443_v32  ;;  %v4500_v31 = vld [vmem:[%s6130_s1 + $0x104] ss:$24 sps:$4 sm:$0xff]   ;;  %v4498_v32 = vld [vmem:[%s6130_s1 + $0x100] ss:$24 sps:$4 sm:$0xff]  }
  0x2b   : > { %1072 = vmatprep.subr.bf16.mxu0 %v4447_v33  ;;  %v4503_v33 = vld [vmem:[%s6130_s1 + $0xd4] ss:$24 sps:$4 sm:$0xff]  }
  0x2d   : > { %1116 = vmatpush2.bf16.msra.mxu1 %v4446_v34  ;;  %v4501_v34 = vld [vmem:[%s6130_s1 + $0xd0] ss:$24 sps:$4 sm:$0xff]  }
  0x2e   : > { %1117 = vmatprep.subr.bf16.mxu1 %v4450_v35  ;;  %1073 = vmatpush2.bf16.msra.mxu0 %v4449_v36  ;;  %v4506_v35 = vld [vmem:[%s6130_s1 + $0xa4] ss:$24 sps:$4 sm:$0xff]   ;;  %v4504_v36 = vld [vmem:[%s6130_s1 + $0xa0] ss:$24 sps:$4 sm:$0xff]  }
  0x2f   : > { %1074 = vmatprep.subr.bf16.mxu0 %v4453_v37  ;;  %v4509_v37 = vld [vmem:[%s6130_s1 + $0x74] ss:$24 sps:$4 sm:$0xff]  }
  0x31   : > { %1118 = vmatpush2.bf16.msra.mxu1 %v4452_v38  ;;  %v4507_v38 = vld [vmem:[%s6130_s1 + $0x70] ss:$24 sps:$4 sm:$0xff]  }
  0x32   : > { %1119 = vmatprep.subr.bf16.mxu1 %v4456_v39  ;;  %1075 = vmatpush2.bf16.msra.mxu0 %v4455_v40  ;;  %v4512_v39 = vld [vmem:[%s6130_s1 + $0x44] ss:$24 sps:$4 sm:$0xff]   ;;  %v4510_v40 = vld [vmem:[%s6130_s1 + $0x40] ss:$24 sps:$4 sm:$0xff]  }
  0x33   : > { %1076 = vmatprep.subr.bf16.mxu0 %v4459_v41  ;;  %v4515_v41 = vld [vmem:[%s6130_s1 + $0x14] ss:$24 sps:$4 sm:$0xff]  }
  0x35   : > { %1120 = vmatpush2.bf16.msra.mxu1 %v4458_v42  ;;  %v4513_v42 = vld [vmem:[%s6130_s1 + $0x10] ss:$24 sps:$4 sm:$0xff]  }
  0x36   : > { %1121 = vmatprep.subr.bf16.mxu1 %v4462_v43  ;;  %1077 = vmatpush2.bf16.msra.mxu0 %v4461_v44  ;;  %v4518_v43 = vld [vmem:[%s6130_s1 + $0x2e4] ss:$24 sps:$4 sm:$0xff]   ;;  %v4516_v44 = vld [vmem:[%s6130_s1 + $0x2e0] ss:$24 sps:$4 sm:$0xff]  }
  0x37   : > { %1078 = vmatprep.subr.bf16.mxu0 %v4465_v45  ;;  %v4521_v45 = vld [vmem:[%s6130_s1 + $0x2b4] ss:$24 sps:$4 sm:$0xff]  }
  0x39   : > { %1122 = vmatpush2.bf16.msra.mxu1 %v4464_v48  ;;  %v4522_v48 = vld [vmem:[%s6130_s1 + $0x280] ss:$24 sps:$4 sm:$0xff]  }
  0x3a   : > { %1123 = vmatprep.subr.bf16.mxu1 %v4468_v50  ;;  %1079 = vmatpush2.bf16.msra.mxu0 %v4467_v49  ;;  %v4527_v49 = vld [vmem:[%s6130_s1 + $0x254] ss:$24 sps:$4 sm:$0xff]   ;;  %v4525_v50 = vld [vmem:[%s6130_s1 + $0x250] ss:$24 sps:$4 sm:$0xff]  }
  0x3b   : > { %1080 = vmatprep.subr.bf16.mxu0 %v4471_v52  ;;  %v4528_v52 = vld [vmem:[%s6130_s1 + $0x220] ss:$24 sps:$4 sm:$0xff]  }
  0x3d   : > { %1124 = vmatpush2.bf16.msra.mxu1 %v4470_v53  ;;  %v4533_v53 = vld [vmem:[%s6130_s1 + $0x1f4] ss:$24 sps:$4 sm:$0xff]  }
  0x3e   : > { %1125 = vmatprep.subr.bf16.mxu1 %v4474_v54  ;;  %1081 = vmatpush2.bf16.msra.mxu0 %v4473_v55  ;;  %v4531_v54 = vld [vmem:[%s6130_s1 + $0x1f0] ss:$24 sps:$4 sm:$0xff]   ;;  %v4536_v55 = vld [vmem:[%s6130_s1 + $0x1c4] ss:$24 sps:$4 sm:$0xff]  }
  0x3f   : > { %1082 = vmatprep.subr.bf16.mxu0 %v4477_v56  ;;  %v4534_v56 = vld [vmem:[%s6130_s1 + $0x1c0] ss:$24 sps:$4 sm:$0xff]  }
  0x41   : > { %1126 = vmatpush2.bf16.msra.mxu1 %v4476_v57  ;;  %v4539_v57 = vld [vmem:[%s6130_s1 + $0x194] ss:$24 sps:$4 sm:$0xff]  }
  0x42   : > { %1127 = vmatprep.subr.bf16.mxu1 %v4480_v58  ;;  %1083 = vmatpush2.bf16.msra.mxu0 %v4479_v59  ;;  %v4537_v58 = vld [vmem:[%s6130_s1 + $0x190] ss:$24 sps:$4 sm:$0xff]  }
  0x43   : > { %1084 = vmatprep.subr.bf16.mxu0 %v4483_v60 }
  0x45   : > { %1128 = vmatpush2.bf16.msra.mxu1 %v4482_v61 }
  0x46   : > { %1129 = vmatprep.subr.bf16.mxu1 %v4486_v62  ;;  %1085 = vmatpush2.bf16.msra.mxu0 %v4485_v63 }
  0x47   : > { %1086 = vmatprep.subr.bf16.mxu0 %v4489_v0 }
  0x49   : > { %1130 = vmatpush2.bf16.msra.mxu1 %v4488_v1 }
  0x4a   : > { %1087 = vmatpush2.bf16.msra.mxu0 %v4491_v4  ;;  %4286 = vmatprep.subr.bf16.mxu1 %v4864_v6 }
  0x4b   : > { %1142 = vmatprep.subr.bf16.mxu0 %v4494_v28 }
  0x4c   : > { %1132 = vmatmul.mubr.bf16.vlgmr.msra.gmra.mxu1 %v5158_v5 }
  0x4d   : > { %1089 = vmatmul.mubr.bf16.vlgmr.msra.gmra.mxu0 %v5158_v5  ;;  %4288 = vmatprep.mubr.msk.bf16.mxu1 %vm4865_vm0, %v4864_v6 }
  0x4e   : > { %1174 = vmatprep.mubr.bf16.mxu0 %v447_v51  ;;  %1143 = vmatpush1.bf16.msra.mxu0 %v4492_v27  ;;  %v4530_v51 = vld [vmem:[%s6130_s1 + $0x224] ss:$24 sps:$4 sm:$0xff]  }
  0x4f   : > { %1144 = vmatprep.subr.bf16.mxu0 %v4497_v29 }
  0x52   : > { %1145 = vmatpush1.bf16.msra.mxu0 %v4495_v30 }
  0x53   : > { %1146 = vmatprep.subr.bf16.mxu0 %v4500_v31 }
  0x56   : > { %1147 = vmatpush1.bf16.msra.mxu0 %v4498_v32 }
  0x57   : > { %1148 = vmatprep.subr.bf16.mxu0 %v4503_v33 }
  0x5a   : > { %1149 = vmatpush1.bf16.msra.mxu0 %v4501_v34 }
  0x5b   : > { %1150 = vmatprep.subr.bf16.mxu0 %v4506_v35 }
  0x5e   : > { %1151 = vmatpush1.bf16.msra.mxu0 %v4504_v36 }
  0x5f   : > { %1152 = vmatprep.subr.bf16.mxu0 %v4509_v37 }
  0x62   : > { %1153 = vmatpush1.bf16.msra.mxu0 %v4507_v38 }
  0x63   : > { %1154 = vmatprep.subr.bf16.mxu0 %v4512_v39 }
  0x66   : > { %1155 = vmatpush1.bf16.msra.mxu0 %v4510_v40 }
  0x67   : > { %1156 = vmatprep.subr.bf16.mxu0 %v4515_v41 }
  0x6a   : > { %1157 = vmatpush1.bf16.msra.mxu0 %v4513_v42 }
  0x6b   : > { %1158 = vmatprep.subr.bf16.mxu0 %v4518_v43 }
  0x6e   : > { %1159 = vmatpush2.bf16.msra.mxu0 %v4516_v44 }
  0x6f   : > { %1160 = vmatprep.subr.bf16.mxu0 %v4521_v45 }
  0x72   : > { %1161 = vmatpush2.bf16.msra.mxu0 %v4519_v46 }
  0x73   : > { %1162 = vmatprep.subr.bf16.mxu0 %v4524_v47 }
  0x76   : > { %1163 = vmatpush2.bf16.msra.mxu0 %v4522_v48 }
  0x77   : > { %1164 = vmatprep.subr.bf16.mxu0 %v4527_v49 }
  0x7a   : > { %1165 = vmatpush2.bf16.msra.mxu0 %v4525_v50 }
  0x7b   : > { %1166 = vmatprep.subr.bf16.mxu0 %v4530_v51 }
  0x7e   : > { %1167 = vmatpush2.bf16.msra.mxu0 %v4528_v52 }
  0x7f   : > { %1168 = vmatprep.subr.bf16.mxu0 %v4533_v53 }
  0x82   : > { %1169 = vmatpush2.bf16.msra.mxu0 %v4531_v54 }
  0x83   : > { %1170 = vmatprep.subr.bf16.mxu0 %v4536_v55 }
  0x86   : > { %1171 = vmatpush2.bf16.msra.mxu0 %v4534_v56 }
  0x87   : > { %1172 = vmatprep.subr.bf16.mxu0 %v4539_v57 }
  0x8a   : > { %1173 = vmatpush2.bf16.msra.mxu0 %v4537_v58 }
  0x8d   : > { %1175 = vmatmul.mubr.bf16.vlgmr.msra.gmra.mxu0 %v5158_v5 }
 0x10c   : > { %v1133_v11 = vpop.f32.mrf.mxu1 }
 0x10d   : > { %v1090_v14 = vpop.f32.mrf.mxu0  ;;  %v1134_v17 = vadd.f32 %v1133_v11, %v557_v12 }
 0x10e   : > { %v5176_v13 = vpop.f32.mrf.mxu1  ;;  %v1091_v24 = vadd.f32 %v1090_v14, %v549_v20 }
 0x10f   : > { %v5181_v19 = vpop.f32.mrf.mxu0 }
 0x110   : > { %v1137_v16 = vpop.f32.mrf.mxu1 }
 0x111   : > { %v1138_v18 = vadd.f32 %v1137_v16, %v557_v12  ;;  %v1094_v23 = vpop.f32.mrf.mxu0 }
 0x112   : > { %v1095_v25 = vadd.f32 %v1094_v23, %v549_v20  ;;  %v5293_v59 = vpop.f32.mrf.mxu1  ;;  %v564_v23 = vsub.s32 4, %v5165_v8 }
 0x113   : > { %v5185_v21 = vpack.c.bf16 %v1138_v18, %v1134_v17 }
 0x114   : > { %v5190_v26 = vpack.c.bf16 %v1095_v25, %v1091_v24  ;;  %v565_v25 = vrot.slane %v5171_v10, %v564_v23  ;;  %v4548_v23 = vld [vmem:[%s6132_s3 + $0x14] ss:$8 sps:$4 sm:$0xff]  }
 0x115   : > { %v1193_v22 = vsel %vm1188_vm1, %v5185_v21, 0 }
 0x116   : > { %4287 = vmatpush3.bf16.xpose.msra.mxu1 %v1193_v22  ;;  %v5301_v22 = vpop.f32.mrf.mxu0 }
 0x117   : > { %4292 = vmatprep.subr.bf16.mxu1 %v4864_v6 }
 0x11d   : > { %4289 = vmatmul.mubr.msk.bf16.vlgmr.msra.gmra.mxu1 %vm1188_vm1, %v5190_v26 }
 0x11e   : > { %4294 = vmatprep.mubr.msk.bf16.mxu1 %vm4865_vm0, %v4864_v6 }
 0x14d   : > { %v1176_v24 = vpop.f32.mrf.mxu0 }
 0x14e   : > { %v1177_v28 = vadd.f32 %v1176_v24, %v565_v25  ;;  %v4868_v24 = vmov 0  }
 0x14f   : > { %v5305_v27 = vpop.f32.mrf.mxu0  ;;  %1757 = vmatprep.mubr.bf16.mxu0 %v4868_v24 }
 0x151   : > { %v1180_v29 = vpop.f32.mrf.mxu0 }
 0x152   : > { %v1181_v30 = vadd.f32 %v1180_v29, %v565_v25 }
 0x154   : > { %v5307_v31 = vpack.c.bf16 %v1181_v30, %v1177_v28  ;;  %v4546_v30 = vld [vmem:[%s6132_s3 + $0x10] ss:$8 sps:$4 sm:$0xff]  }
 0x156   : > { %4293 = vmatpush3.bf16.msra.mxu1 %v5307_v31 }
 0x157   : > { %4298 = vmatprep.subr.bf16.mxu1 %v4864_v6 }
 0x1dd   : > { %v1229_v60 = vpop.f32.mrf.mxu1 }
 0x1de   : > { %v1236_v61 = vmul.f32 0.17677669, %v1229_v60 }
 0x1df   : > { %v4290_v62 = vpop.f32.mrf.mxu1 }
 0x1e0   : > { %v1239_v63 = vsel %vm1238_vm2, %v1236_v61, -inf }
 0x1e1   : > { %1240 = vmax.xlane.f32.xlu0 %v1239_v63  ;;  %v1232_v0 = vpop.f32.mrf.mxu1 }
 0x1e2   : > { %v1237_v1 = vmul.f32 0.17677669, %v1232_v0 }
 0x1e3   : > { %v4291_v2 = vpop.f32.mrf.mxu1 }
 0x1e4   : > { %v1242_v3 = vsel %vm1238_vm2, %v1237_v1, -inf }
 0x1e5   : > { %1243 = vmax.xlane.f32.xlu0 %v1242_v3  ;;  %v4542_v3 = vld [vmem:[%s6132_s3 + $0x34] ss:$8 sps:$4 sm:$0xff]  }
 0x1fb   : > { %1315 = vrot.lane.b32.xlu0 %v5185_v21, %s4866_s14 }
 0x26a   : > { %v1241_v4 = vpop.xlane.xlu0 %1240 }
 0x26b   : > { %v1245_v5 = vsub.f32 %v1236_v61, %v1241_v4 }
 0x26d   : > { %v1247_v7 = vmul.f32 1.442695, %v1245_v5 }
 0x26e   : > { %v1244_v11 = vpop.xlane.xlu0 %1243 }
 0x26f   : > { %4780 = vpow2.f32 %v1247_v7  ;;  %v1246_v12 = vsub.f32 %v1237_v1, %v1244_v11 }
 0x271   : > { %v1249_v14 = vmul.f32 1.442695, %v1246_v12 }
 0x272   : > { %v1316_v38 = vpop.permute.xlu0 %1315 }
 0x273   : > { %4782 = vpow2.f32 %v1249_v14  ;;  %v1321_v40 = vsel %vm1188_vm1, %v1316_v38, 0 }
 0x27c   : > { %v4781_v16 = vpop.eup %4780 }
 0x27d   : > { %v1251_v17 = vsel %vm1238_vm2, %v4781_v16, 0.0 }
 0x27e   : > { %1252 = vadd.xlane.f32.xlu1 %v1251_v17 }
 0x280   : > { %v4783_v18 = vpop.eup %4782 }
 0x281   : > { %v1254_v20 = vsel %vm1238_vm2, %v4783_v18, 0.0 }
 0x282   : > { %1255 = vadd.xlane.f32.xlu1 %v1254_v20  ;;  %v4543_v20 = vld [vmem:[%s6132_s3 + $0x20] ss:$8 sps:$4 sm:$0xff]  }
 0x293   : > { %1312 = vrot.lane.b32.xlu1 %v5190_v26, %s4866_s14 }
 0x307   : > { %v1253_v32 = vpop.xlane.xlu1 %1252 }
 0x308   : > { %4784 = vrcp.f32 %v1253_v32 }
 0x30b   : > { %v1256_v33 = vpop.xlane.xlu1 %1255 }
 0x30c   : > { %4786 = vrcp.f32 %v1256_v33  ;;  %v4551_v33 = vld [vmem:[%s6132_s3 + $0x4] ss:$8 sps:$4 sm:$0xff]  }
 0x30f   : > { %v1313_v41 = vpop.permute.xlu1 %1312 }
 0x315   : > { %v4785_v34 = vpop.eup %4784 }
 0x316   : > { %v1259_v36 = vmul.f32 %v4785_v34, %v4781_v16  ;;  %v4540_v16 = vld [vmem:[%s6132_s3 + $0x30] ss:$8 sps:$4 sm:$0xff]  }
 0x319   : > { %v4787_v35 = vpop.eup %4786 }
 0x31a   : > { %v1260_v37 = vmul.f32 %v4787_v35, %v4783_v18  ;;  %v4545_v18 = vld [vmem:[%s6132_s3 + $0x24] ss:$8 sps:$4 sm:$0xff]   ;;  %v4549_v35 = vld [vmem:[%s6132_s3] ss:$8 sps:$4 sm:$0xff]  }
 0x31c   : > { %v1261_v39 = vpack.c.bf16 %v1260_v37, %v1259_v36 }
 0x31e   : > { %4295 = vmatmul.mubr.msk.bf16.vlgmr.msra.gmra.mxu1 %vm1238_vm2, %v1261_v39 }
 0x31f   : > { %4299 = vmatpush3.bf16.xpose.msra.mxu1 %v1321_v40  ;;  %4300 = vmatprep.mubr.msk.bf16.mxu1 %vm4865_vm0, %v4864_v6 }
 0x320   : > { %4304 = vmatprep.subr.bf16.mxu1 %v4864_v6 }
 0x326   : > { %4301 = vmatmul.mubr.msk.bf16.vlgmr.msra.gmra.mxu1 %vm1188_vm1, %v1313_v41 }
 0x327   : > { %4306 = vmatprep.mubr.msk.bf16.mxu1 %vm4865_vm0, %v4864_v6 }
 0x3de   : > { %v5321_v42 = vpop.f32.mrf.mxu1 }
 0x3e0   : > { %v4296_v43 = vpop.f32.mrf.mxu1 }
 0x3e2   : > { %v5323_v44 = vpop.f32.mrf.mxu1 }
 0x3e3   : > { %v1306_v45 = vpack.c.bf16 %v5323_v44, %v5321_v42 }
 0x3e4   : > { %v4297_v46 = vpop.f32.mrf.mxu1 }
 0x3e6   : > { %v1357_v47 = vpop.f32.mrf.mxu1 }
 0x3e7   : > { %v1364_v48 = vmul.f32 0.17677669, %v1357_v47 }
 0x3e8   : > { %v4302_v49 = vpop.f32.mrf.mxu1 }
 0x3e9   : > { %v1366_v50 = vsel %vm1238_vm2, %v1364_v48, -inf }
 0x3ea   : > { %1367 = vmax.xlane.f32.xlu1 %v1366_v50  ;;  %v1360_v51 = vpop.f32.mrf.mxu1 }
 0x3eb   : > { %v1365_v52 = vmul.f32 0.17677669, %v1360_v51 }
 0x3ec   : > { %v4303_v53 = vpop.f32.mrf.mxu1 }
 0x3ed   : > { %v1369_v54 = vsel %vm1238_vm2, %v1365_v52, -inf }
 0x3ee   : > { %1370 = vmax.xlane.f32.xlu0 %v1369_v54 }
 0x473   : > { %v1368_v55 = vpop.xlane.xlu1 %1367 }
 0x474   : > { %v1372_v56 = vsub.f32 %v1364_v48, %v1368_v55 }
 0x476   : > { %v1374_v57 = vmul.f32 1.442695, %v1372_v56 }
 0x477   : > { %v1371_v58 = vpop.xlane.xlu0 %1370 }
 0x478   : > { %4788 = vpow2.f32 %v1374_v57  ;;  %v1373_v60 = vsub.f32 %v1365_v52, %v1371_v58 }
 0x47a   : > { %v1376_v61 = vmul.f32 1.442695, %v1373_v60 }
 0x47c   : > { %4790 = vpow2.f32 %v1376_v61 }
 0x485   : > { %v4789_v62 = vpop.eup %4788 }
 0x486   : > { %v1378_v63 = vsel %vm1238_vm2, %v4789_v62, 0.0 }
 0x487   : > { %1379 = vadd.xlane.f32.xlu0 %v1378_v63 }
 0x489   : > { %v4791_v0 = vpop.eup %4790 }
 0x48a   : > { %v1381_v1 = vsel %vm1238_vm2, %v4791_v0, 0.0 }
 0x48b   : > { %1382 = vadd.xlane.f32.xlu1 %v1381_v1 }
 0x49c   : > { %1576 = vrot.lane.b32.xlu1 %v5185_v21, %s4867_s16 }
 0x49d   : > { %1390 = vrot.lane.b32.xlu0 %v5307_v31, %s4866_s14 }
 0x4a0   : > { %1574 = vrot.lane.b32.xlu1 %v5190_v26, %s4867_s16 }
 0x510   : > { %v1380_v2 = vpop.xlane.xlu0 %1379 }
 0x511   : > { %4792 = vrcp.f32 %v1380_v2 }
 0x514   : > { %v1383_v4 = vpop.xlane.xlu1 %1382  ;;  %v1391_v5 = vpop.permute.xlu0 %1390 }
 0x515   : > { %4794 = vrcp.f32 %v1383_v4  ;;  %4305 = vmatpush3.bf16.msra.mxu1 %v1391_v5 }
 0x516   : > { %1477 = vmatprep.subr.bf16.mxu1 %v4542_v3 }
 0x518   : > { %v1577_v36 = vpop.permute.xlu1 %1576 }
 0x519   : > { %v1582_v37 = vsel %vm1188_vm1, %v1577_v36, 0 }
 0x51c   : > { %v1575_v38 = vpop.permute.xlu1 %1574 }
 0x51e   : > { %v4793_v7 = vpop.eup %4792 }
 0x51f   : > { %v1386_v12 = vmul.f32 %v4793_v7, %v4789_v62 }
 0x522   : > { %v4795_v11 = vpop.eup %4794 }
 0x523   : > { %v1387_v14 = vmul.f32 %v4795_v11, %v4791_v0  ;;  %v4554_v11 = vld [vmem:[%s6132_s3 + $0x54] ss:$8 sps:$4 sm:$0xff]  }
 0x524   : > { %1737 = vmatprep.subr.bf16.mxu0 %v4554_v11 }
 0x525   : > { %v1388_v17 = vpack.c.bf16 %v1387_v14, %v1386_v12 }
 0x527   : > { %4307 = vmatmul.mubr.msk.bf16.vlgmr.msra.gmra.mxu1 %vm1238_vm2, %v1388_v17 }
 0x528   : > { %1478 = vmatpush1.bf16.msra.mxu1 %v4540_v16  ;;  %1497 = vmatprep.mubr.bf16.mxu1 %v4868_v24 }
 0x529   : > { %1479 = vmatprep.subr.bf16.mxu1 %v4545_v18 }
 0x52c   : > { %1480 = vmatpush1.bf16.msra.mxu1 %v4543_v20 }
 0x52d   : > { %1543 = vmatprep.subr.bf16.mxu1 %v4548_v23 }
 0x5e7   : > { %v1430_v25 = vpop.f32.mrf.mxu1 }
 0x5e9   : > { %v4308_v28 = vpop.f32.mrf.mxu1 }
 0x5eb   : > { %v1433_v29 = vpop.f32.mrf.mxu1 }
 0x5ec   : > { %v1437_v32 = vpack.c.bf16 %v1433_v29, %v1430_v25  ;;  %v4555_v29 = vld [vmem:[%s6132_s3 + $0x40] ss:$8 sps:$4 sm:$0xff]  }
 0x5ed   : > { %v4309_v34 = vpop.f32.mrf.mxu1 }
 0x5ee   : > { %4074 = vmatmul.mubr.msk.bf16.vlgmr.msra.gmra.mxu1 %vm1188_vm1, %v1437_v32 }
 0x5ef   : > { %1544 = vmatpush1.bf16.msra.mxu1 %v4546_v30  ;;  %1563 = vmatprep.mubr.bf16.mxu1 %v4868_v24  ;;  %v4557_v30 = vld [vmem:[%s6132_s3 + $0x44] ss:$8 sps:$4 sm:$0xff]  }
 0x5f0   : > { %1545 = vmatprep.subr.bf16.mxu1 %v4551_v33 }
 0x5f3   : > { %1546 = vmatpush1.bf16.msra.mxu1 %v4549_v35 }
 0x5f4   : > { %4310 = vmatprep.subr.bf16.mxu1 %v4864_v6 }
 0x5f6   : > { %4079 = vmatmul.mubr.msk.bf16.vlgmr.msra.gmra.mxu1 %vm1188_vm1, %v1306_v45 }
 0x5f7   : > { %4311 = vmatpush3.bf16.xpose.msra.mxu1 %v1582_v37  ;;  %4312 = vmatprep.mubr.msk.bf16.mxu1 %vm4865_vm0, %v4864_v6 }
 0x5f8   : > { %4316 = vmatprep.subr.bf16.mxu1 %v4864_v6 }
 0x5fe   : > { %4313 = vmatmul.mubr.msk.bf16.vlgmr.msra.gmra.mxu1 %vm1188_vm1, %v1575_v38 }
 0x5ff   : > { %4318 = vmatprep.mubr.msk.bf16.mxu1 %vm4865_vm0, %v4864_v6 }
 0x6ae   : > { %v1499_v39 = vpop.f32.mrf.mxu1 }
 0x6b0   : > { %v1501_v40 = vpop.f32.mrf.mxu1 }
 0x6b2   : > { %v1503_v41 = vpop.f32.mrf.mxu1 }
 0x6b4   : > { %v1505_v43 = vpop.f32.mrf.mxu1 }
 0x6b6   : > { %v1565_v46 = vpop.f32.mrf.mxu1 }
 0x6b7   : > { %v5378_v42 = vadd.f32 %v1565_v46, %v1499_v39 }
 0x6b8   : > { %v1567_v44 = vpop.f32.mrf.mxu1 }
 0x6b9   : > { %v5380_v45 = vadd.f32 %v1567_v44, %v1501_v40 }
 0x6ba   : > { %v1569_v47 = vpop.f32.mrf.mxu1 }
 0x6bb   : > { %v5382_v48 = vadd.f32 %v1569_v47, %v1503_v41 }
 0x6bc   : > { %v1571_v49 = vpop.f32.mrf.mxu1 }
 0x6bd   : > { %v5384_v50 = vadd.f32 %v1571_v49, %v1505_v43 }
 0x6be   : > { %v1618_v51 = vpop.f32.mrf.mxu1 }
 0x6bf   : > { %v1625_v52 = vmul.f32 0.17677669, %v1618_v51 }
 0x6c0   : > { %v4314_v53 = vpop.f32.mrf.mxu1 }
 0x6c1   : > { %v1627_v54 = vsel %vm1238_vm2, %v1625_v52, -inf }
 0x6c2   : > { %1628 = vmax.xlane.f32.xlu1 %v1627_v54  ;;  %v1621_v55 = vpop.f32.mrf.mxu1 }
 0x6c3   : > { %v1626_v56 = vmul.f32 0.17677669, %v1621_v55 }
 0x6c4   : > { %v4315_v57 = vpop.f32.mrf.mxu1 }
 0x6c5   : > { %v1630_v58 = vsel %vm1238_vm2, %v1626_v56, -inf }
 0x6c6   : > { %1631 = vmax.xlane.f32.xlu0 %v1630_v58 }
 0x6d3   : > { %1650 = vrot.lane.b32.xlu1 %v5307_v31, %s4867_s16 }
 0x6d7   : > { %1772 = vrot.lane.b32.xlu1 %v5190_v26, %s4869_s22  ;;  %v4552_v26 = vld [vmem:[%s6132_s3 + $0x50] ss:$8 sps:$4 sm:$0xff]  }
 0x6d8   : > { %1738 = vmatpush1.bf16.msra.mxu0 %v4552_v26 }
 0x6d9   : > { %1739 = vmatprep.subr.bf16.mxu0 %v4557_v30 }
 0x6dc   : > { %1740 = vmatpush1.bf16.msra.mxu0 %v4555_v29 }
 0x6dd   : > { %4328 = vmatprep.subr.bf16.mxu0 %v4864_v6 }
 0x74b   : > { %v1629_v60 = vpop.xlane.xlu1 %1628 }
 0x74c   : > { %v1633_v61 = vsub.f32 %v1625_v52, %v1629_v60  ;;  %v5424_v60 = vsub.s32 1, %v5165_v8 }
 0x74e   : > { %v1635_v62 = vmul.f32 1.442695, %v1633_v61  ;;  %v553_v61 = vrot.slane %v5171_v10, %v5424_v60 }
 0x74f   : > { %v1651_v63 = vpop.permute.xlu1 %1650  ;;  %v1632_v0 = vpop.xlane.xlu0 %1631 }
 0x750   : > { %4796 = vpow2.f32 %v1635_v62  ;;  %v1634_v1 = vsub.f32 %v1626_v56, %v1632_v0  ;;  %4317 = vmatpush3.bf16.msra.mxu1 %v1651_v63  ;;  %v1093_v62 = vadd.f32 %v5181_v19, %v553_v61  ;;  %v1097_v63 = vadd.f32 %v5301_v22, %v553_v61 }
 0x751   : > { %4322 = vmatprep.subr.bf16.mxu1 %v4864_v6 }
 0x752   : > { %v1637_v2 = vmul.f32 1.442695, %v1634_v1  ;;  %v5432_v0 = vpack.c.bf16 %v1097_v63, %v1093_v62  ;;  %v1182_v1 = vpop.f32.mrf.mxu0 }
 0x753   : > { %v1773_v28 = vpop.permute.xlu1 %1772 }
 0x754   : > { %4798 = vpow2.f32 %v1637_v2 }
 0x75d   : > { %v4797_v3 = vpop.eup %4796 }
 0x75e   : > { %v1639_v4 = vsel %vm1238_vm2, %v4797_v3, 0.0 }
 0x75f   : > { %1640 = vadd.xlane.f32.xlu0 %v1639_v4 }
 0x761   : > { %v4799_v5 = vpop.eup %4798 }
 0x762   : > { %v1642_v7 = vsel %vm1238_vm2, %v4799_v5, 0.0 }
 0x763   : > { %1643 = vadd.xlane.f32.xlu0 %v1642_v7  ;;  %v4560_v7 = vld [vmem:[%s6132_s3 + $0x74] ss:$8 sps:$4 sm:$0xff]  }
 0x779   : > { %1774 = vrot.lane.b32.xlu0 %v5185_v21, %s4869_s22 }
 0x7e8   : > { %v1641_v12 = vpop.xlane.xlu0 %1640 }
 0x7e9   : > { %4800 = vrcp.f32 %v1641_v12 }
 0x7ec   : > { %v1644_v14 = vpop.xlane.xlu0 %1643 }
 0x7ed   : > { %4802 = vrcp.f32 %v1644_v14 }
 0x7f0   : > { %v1775_v23 = vpop.permute.xlu0 %1774 }
 0x7f1   : > { %v1780_v25 = vsel %vm1188_vm1, %v1775_v23, 0 }
 0x7f6   : > { %v4801_v16 = vpop.eup %4800 }
 0x7f7   : > { %v1647_v18 = vmul.f32 %v4801_v16, %v4797_v3 }
 0x7fa   : > { %v4803_v17 = vpop.eup %4802 }
 0x7fb   : > { %v1648_v20 = vmul.f32 %v4803_v17, %v4799_v5 }
 0x7fd   : > { %v1649_v21 = vpack.c.bf16 %v1648_v20, %v1647_v18 }
 0x7ff   : > { %4319 = vmatmul.mubr.msk.bf16.vlgmr.msra.gmra.mxu1 %vm1238_vm2, %v1649_v21 }
 0x800   : > { %4323 = vmatpush3.bf16.xpose.msra.mxu1 %v1780_v25  ;;  %4324 = vmatprep.mubr.msk.bf16.mxu1 %vm4865_vm0, %v4864_v6 }
 0x801   : > { %1935 = vmatprep.subr.bf16.mxu1 %v4560_v7  ;;  %v4566_v7 = vld [vmem:[%s6132_s3 + $0x94] ss:$8 sps:$4 sm:$0xff]  }
 0x807   : > { %4325 = vmatmul.mubr.msk.bf16.vlgmr.msra.gmra.mxu1 %vm1188_vm1, %v1773_v28  ;;  %v568_v28 = vsub.s32 5, %v5165_v8 }
 0x808   : > { %1955 = vmatprep.mubr.bf16.mxu1 %v4868_v24 }
 0x809   : > { %v569_v29 = vrot.slane %v5171_v10, %v568_v28 }
 0x8bf   : > { %v1690_v32 = vpop.f32.mrf.mxu1 }
 0x8c1   : > { %v4320_v33 = vpop.f32.mrf.mxu1 }
 0x8c2   : > { %v1179_v33 = vadd.f32 %v5305_v27, %v569_v29 }
 0x8c3   : > { %v1693_v34 = vpop.f32.mrf.mxu1 }
 0x8c4   : > { %v1697_v35 = vpack.c.bf16 %v1693_v34, %v1690_v32  ;;  %v1183_v34 = vadd.f32 %v1182_v1, %v569_v29 }
 0x8c5   : > { %v4321_v36 = vpop.f32.mrf.mxu1 }
 0x8c6   : > { %4086 = vmatmul.mubr.msk.bf16.vlgmr.msra.gmra.mxu0 %vm1188_vm1, %v1697_v35 }
 0x8c7   : > { %v1816_v37 = vpop.f32.mrf.mxu1  ;;  %4330 = vmatprep.mubr.msk.bf16.mxu0 %vm4865_vm0, %v4864_v6 }
 0x8c8   : > { %v1823_v38 = vmul.f32 0.17677669, %v1816_v37 }
 0x8c9   : > { %v4326_v39 = vpop.f32.mrf.mxu1 }
 0x8ca   : > { %v1825_v40 = vsel %vm1238_vm2, %v1823_v38, -inf }
 0x8cb   : > { %1826 = vmax.xlane.f32.xlu1 %v1825_v40  ;;  %v1819_v41 = vpop.f32.mrf.mxu1 }
 0x8cc   : > { %v1824_v43 = vmul.f32 0.17677669, %v1819_v41 }
 0x8cd   : > { %v4327_v46 = vpop.f32.mrf.mxu1 }
 0x8ce   : > { %v1828_v44 = vsel %vm1238_vm2, %v1824_v43, -inf }
 0x8cf   : > { %1829 = vmax.xlane.f32.xlu0 %v1828_v44 }
 0x954   : > { %v1827_v47 = vpop.xlane.xlu1 %1826 }
 0x955   : > { %v1831_v49 = vsub.f32 %v1823_v38, %v1827_v47  ;;  %v5480_v38 = vpack.c.bf16 %v1183_v34, %v1179_v33 }
 0x957   : > { %v1833_v51 = vmul.f32 1.442695, %v1831_v49 }
 0x958   : > { %v1830_v52 = vpop.xlane.xlu0 %1829 }
 0x959   : > { %4804 = vpow2.f32 %v1833_v51  ;;  %v1832_v53 = vsub.f32 %v1824_v43, %v1830_v52 }
 0x95b   : > { %v1835_v54 = vmul.f32 1.442695, %v1832_v53 }
 0x95d   : > { %4806 = vpow2.f32 %v1835_v54 }
 0x966   : > { %v4805_v55 = vpop.eup %4804 }
 0x967   : > { %v1837_v56 = vsel %vm1238_vm2, %v4805_v55, 0.0 }
 0x968   : > { %1838 = vadd.xlane.f32.xlu0 %v1837_v56 }
 0x96a   : > { %v4807_v57 = vpop.eup %4806 }
 0x96b   : > { %v1840_v58 = vsel %vm1238_vm2, %v4807_v57, 0.0 }
 0x96c   : > { %1841 = vadd.xlane.f32.xlu1 %v1840_v58 }
 0x97e   : > { %1848 = vrot.lane.b32.xlu0 %v5307_v31, %s4869_s22  ;;  %v4558_v31 = vld [vmem:[%s6132_s3 + $0x70] ss:$8 sps:$4 sm:$0xff]  }
 0x97f   : > { %1936 = vmatpush1.bf16.msra.mxu1 %v4558_v31  ;;  %v4564_v31 = vld [vmem:[%s6132_s3 + $0x90] ss:$8 sps:$4 sm:$0xff]  }
 0x982   : > { %2165 = vrot.lane.b32.xlu0 %v5432_v0, %s4866_s14 }
 0x986   : > { %v1759_v2 = vpop.f32.mrf.mxu0 }
 0x987   : > { %v5437_v3 = vadd.f32 %v1759_v2, %v5378_v42 }
 0x988   : > { %v1761_v4 = vpop.f32.mrf.mxu0 }
 0x989   : > { %v5440_v5 = vadd.f32 %v1761_v4, %v5380_v45  ;;  %v560_v45 = vsub.s32 3, %v5165_v8 }
 0x98a   : > { %v1763_v19 = vpop.f32.mrf.mxu0 }
 0x98b   : > { %v5443_v22 = vadd.f32 %v1763_v19, %v5382_v48  ;;  %v561_v48 = vrot.slane %v5171_v10, %v560_v45 }
 0x98c   : > { %v5477_v30 = vpop.f32.mrf.mxu0 }
 0x98d   : > { %v1140_v12 = vadd.f32 %v5293_v59, %v561_v48  ;;  %v1136_v16 = vadd.f32 %v5176_v13, %v561_v48  ;;  %v4563_v13 = vld [vmem:[%s6132_s3 + $0x64] ss:$8 sps:$4 sm:$0xff]   ;;  %v4561_v59 = vld [vmem:[%s6132_s3 + $0x60] ss:$8 sps:$4 sm:$0xff]  }
 0x98e   : > { %1937 = vmatprep.subr.bf16.mxu1 %v4563_v13 }
 0x98f   : > { %v5458_v18 = vpack.c.bf16 %v1140_v12, %v1136_v16  ;;  %1938 = vmatpush1.bf16.msra.mxu1 %v4561_v59 }
 0x990   : > { %4340 = vmatprep.subr.bf16.mxu1 %v4864_v6 }
 0x991   : > { %v1977_v25 = vsel %vm1188_vm1, %v5458_v18, 0 }
 0x9f1   : > { %v1839_v42 = vpop.xlane.xlu0 %1838 }
 0x9f2   : > { %4808 = vrcp.f32 %v1839_v42 }
 0x9f5   : > { %v1842_v26 = vpop.xlane.xlu1 %1841  ;;  %v1849_v11 = vpop.permute.xlu0 %1848 }
 0x9f6   : > { %4810 = vrcp.f32 %v1842_v26  ;;  %4329 = vmatpush3.bf16.msra.mxu0 %v1849_v11 }
 0x9f7   : > { %4334 = vmatprep.subr.bf16.mxu0 %v4864_v6 }
 0x9f9   : > { %v2166_v16 = vpop.permute.xlu0 %2165 }
 0x9ff   : > { %v4809_v14 = vpop.eup %4808 }
 0xa00   : > { %v1845_v20 = vmul.f32 %v4809_v14, %v4805_v55 }
 0xa03   : > { %v4811_v17 = vpop.eup %4810 }
 0xa04   : > { %v1846_v23 = vmul.f32 %v4811_v17, %v4807_v57  ;;  %v4567_v17 = vld [vmem:[%s6132_s3 + $0x80] ss:$8 sps:$4 sm:$0xff]  }
 0xa06   : > { %v1847_v21 = vpack.c.bf16 %v1846_v23, %v1845_v20  ;;  %v4569_v20 = vld [vmem:[%s6132_s3 + $0x84] ss:$8 sps:$4 sm:$0xff]  }
 0xa08   : > { %4331 = vmatmul.mubr.msk.bf16.vlgmr.msra.gmra.mxu0 %vm1238_vm2, %v1847_v21 }
 0xa09   : > { %4335 = vmatpush3.bf16.xpose.msra.mxu0 %v1977_v25  ;;  %4336 = vmatprep.mubr.msk.bf16.mxu0 %vm4865_vm0, %v4864_v6 }
 0xa0a   : > { %2129 = vmatprep.subr.bf16.mxu0 %v4566_v7 }
 0xa10   : > { %4337 = vmatmul.mubr.msk.bf16.vlgmr.msra.gmra.mxu0 %vm1188_vm1, %v5432_v0 }
 0xa11   : > { %2149 = vmatprep.mubr.bf16.mxu0 %v4868_v24  ;;  %2130 = vmatpush1.bf16.msra.mxu0 %v4564_v31 }
 0xa12   : > { %2131 = vmatprep.subr.bf16.mxu0 %v4569_v20 }
 0xa15   : > { %2132 = vmatpush1.bf16.msra.mxu0 %v4567_v17 }
 0xa16   : > { %4352 = vmatprep.subr.bf16.mxu0 %v4864_v6 }
 0xac8   : > { %v1888_v32 = vpop.f32.mrf.mxu0 }
 0xaca   : > { %v4332_v35 = vpop.f32.mrf.mxu0 }
 0xacc   : > { %v1891_v36 = vpop.f32.mrf.mxu0 }
 0xacd   : > { %v1895_v37 = vpack.c.bf16 %v1891_v36, %v1888_v32 }
 0xace   : > { %v4333_v39 = vpop.f32.mrf.mxu0 }
 0xacf   : > { %4093 = vmatmul.mubr.msk.bf16.vlgmr.msra.gmra.mxu1 %vm1188_vm1, %v1895_v37 }
 0xad0   : > { %4341 = vmatpush3.bf16.msra.mxu1 %v5480_v38  ;;  %v2013_v40 = vpop.f32.mrf.mxu0  ;;  %4342 = vmatprep.mubr.msk.bf16.mxu1 %vm4865_vm0, %v4864_v6 }
 0xad1   : > { %v2020_v10 = vmul.f32 0.17677669, %v2013_v40  ;;  %4346 = vmatprep.subr.bf16.mxu1 %v4864_v6 }
 0xad2   : > { %v4338_v41 = vpop.f32.mrf.mxu0 }
 0xad3   : > { %v2022_v27 = vsel %vm1238_vm2, %v2020_v10, -inf }
 0xad4   : > { %2023 = vmax.xlane.f32.xlu1 %v2022_v27  ;;  %v2016_v43 = vpop.f32.mrf.mxu0 }
 0xad5   : > { %v2021_v46 = vmul.f32 0.17677669, %v2016_v43 }
 0xad6   : > { %v4339_v44 = vpop.f32.mrf.mxu0 }
 0xad7   : > { %v2025_v47 = vsel %vm1238_vm2, %v2021_v46, -inf }
 0xad8   : > { %2026 = vmax.xlane.f32.xlu1 %v2025_v47 }
 0xb5d   : > { %v2024_v49 = vpop.xlane.xlu1 %2023 }
 0xb5e   : > { %v2028_v51 = vsub.f32 %v2020_v10, %v2024_v49 }
 0xb60   : > { %v2030_v52 = vmul.f32 1.442695, %v2028_v51 }
 0xb61   : > { %v2027_v53 = vpop.xlane.xlu1 %2026 }
 0xb62   : > { %4812 = vpow2.f32 %v2030_v52  ;;  %v2029_v54 = vsub.f32 %v2021_v46, %v2027_v53 }
 0xb64   : > { %v2032_v55 = vmul.f32 1.442695, %v2029_v54 }
 0xb66   : > { %4814 = vpow2.f32 %v2032_v55 }
 0xb6f   : > { %v4813_v56 = vpop.eup %4812 }
 0xb70   : > { %v2034_v57 = vsel %vm1238_vm2, %v4813_v56, 0.0 }
 0xb71   : > { %2035 = vadd.xlane.f32.xlu1 %v2034_v57 }
 0xb73   : > { %v4815_v58 = vpop.eup %4814 }
 0xb74   : > { %v2037_v61 = vsel %vm1238_vm2, %v4815_v58, 0.0 }
 0xb75   : > { %2038 = vadd.xlane.f32.xlu1 %v2037_v61  ;;  %v4572_v61 = vld [vmem:[%s6132_s3 + $0xb4] ss:$8 sps:$4 sm:$0xff]  }
 0xb86   : > { %2168 = vrot.lane.b32.xlu1 %v5458_v18, %s4866_s14 }
 0xb8f   : > { %v1957_v62 = vpop.f32.mrf.mxu1 }
 0xb90   : > { %v5494_v63 = vadd.f32 %v1957_v62, %v5437_v3 }
 0xb91   : > { %v1959_v1 = vpop.f32.mrf.mxu1 }
 0xb92   : > { %v5497_v2 = vadd.f32 %v1959_v1, %v5440_v5 }
 0xb93   : > { %v1961_v4 = vpop.f32.mrf.mxu1 }
 0xb94   : > { %v5500_v19 = vadd.f32 %v1961_v4, %v5443_v22 }
 0xb95   : > { %v5521_v23 = vpop.f32.mrf.mxu1 }
 0xbfa   : > { %v2036_v3 = vpop.xlane.xlu1 %2035 }
 0xbfb   : > { %4816 = vrcp.f32 %v2036_v3 }
 0xbfe   : > { %v2039_v42 = vpop.xlane.xlu1 %2038 }
 0xbff   : > { %4818 = vrcp.f32 %v2039_v42 }
 0xc02   : > { %v2169_v22 = vpop.permute.xlu1 %2168 }
 0xc03   : > { %v2174_v14 = vsel %vm1188_vm1, %v2169_v22, 0 }
 0xc08   : > { %v4817_v5 = vpop.eup %4816 }
 0xc09   : > { %v2042_v11 = vmul.f32 %v4817_v5, %v4813_v56 }
 0xc0c   : > { %v4819_v26 = vpop.eup %4818 }
 0xc0d   : > { %v2043_v48 = vmul.f32 %v4819_v26, %v4815_v58  ;;  %v4570_v58 = vld [vmem:[%s6132_s3 + $0xb0] ss:$8 sps:$4 sm:$0xff]   ;;  %v4573_v26 = vld [vmem:[%s6132_s3 + $0xa0] ss:$8 sps:$4 sm:$0xff]  }
 0xc0f   : > { %v2044_v12 = vpack.c.bf16 %v2043_v48, %v2042_v11  ;;  %v4575_v11 = vld [vmem:[%s6132_s3 + $0xa4] ss:$8 sps:$4 sm:$0xff]  }
 0xc11   : > { %4343 = vmatmul.mubr.msk.bf16.vlgmr.msra.gmra.mxu1 %vm1238_vm2, %v2044_v12 }
 0xc12   : > { %4347 = vmatpush3.bf16.xpose.msra.mxu1 %v2174_v14  ;;  %4348 = vmatprep.mubr.msk.bf16.mxu1 %vm4865_vm0, %v4864_v6 }
 0xc13   : > { %2330 = vmatprep.subr.bf16.mxu1 %v4572_v61 }
 0xc19   : > { %4349 = vmatmul.mubr.msk.bf16.vlgmr.msra.gmra.mxu1 %vm1188_vm1, %v2166_v16 }
 0xc1a   : > { %2350 = vmatprep.mubr.bf16.mxu1 %v4868_v24  ;;  %2331 = vmatpush1.bf16.msra.mxu1 %v4570_v58 }
 0xc1b   : > { %2332 = vmatprep.subr.bf16.mxu1 %v4575_v11 }
 0xc1e   : > { %2333 = vmatpush1.bf16.msra.mxu1 %v4573_v26 }
 0xc1f   : > { %4364 = vmatprep.subr.bf16.mxu1 %v4864_v6 }
 0xcd1   : > { %v2082_v21 = vpop.f32.mrf.mxu1 }
 0xcd3   : > { %v4344_v25 = vpop.f32.mrf.mxu1 }
 0xcd5   : > { %v2085_v13 = vpop.f32.mrf.mxu1 }
 0xcd6   : > { %v2089_v59 = vpack.c.bf16 %v2085_v13, %v2082_v21 }
 0xcd7   : > { %v4345_v28 = vpop.f32.mrf.mxu1 }
 0xcd8   : > { %4100 = vmatmul.mubr.msk.bf16.vlgmr.msra.gmra.mxu0 %vm1188_vm1, %v2089_v59 }
 0xcd9   : > { %v2210_v29 = vpop.f32.mrf.mxu1  ;;  %4354 = vmatprep.mubr.msk.bf16.mxu0 %vm4865_vm0, %v4864_v6 }
 0xcda   : > { %v2217_v32 = vmul.f32 0.17677669, %v2210_v29 }
 0xcdb   : > { %v4350_v33 = vpop.f32.mrf.mxu1 }
 0xcdc   : > { %v2219_v34 = vsel %vm1238_vm2, %v2217_v32, -inf }
 0xcdd   : > { %2220 = vmax.xlane.f32.xlu0 %v2219_v34  ;;  %v2213_v35 = vpop.f32.mrf.mxu1 }
 0xcde   : > { %v2218_v36 = vmul.f32 0.17677669, %v2213_v35 }
 0xcdf   : > { %v4351_v37 = vpop.f32.mrf.mxu1 }
 0xce0   : > { %v2222_v39 = vsel %vm1238_vm2, %v2218_v36, -inf }
 0xce1   : > { %2223 = vmax.xlane.f32.xlu1 %v2222_v39 }
 0xcf2   : > { %2367 = vrot.lane.b32.xlu1 %v5458_v18, %s4867_s16 }
 0xcf6   : > { %2365 = vrot.lane.b32.xlu1 %v5432_v0, %s4867_s16 }
 0xd66   : > { %v2221_v40 = vpop.xlane.xlu0 %2220 }
 0xd67   : > { %v2225_v10 = vsub.f32 %v2217_v32, %v2221_v40 }
 0xd69   : > { %v2227_v41 = vmul.f32 1.442695, %v2225_v10 }
 0xd6a   : > { %v2224_v27 = vpop.xlane.xlu1 %2223 }
 0xd6b   : > { %4820 = vpow2.f32 %v2227_v41  ;;  %v2226_v43 = vsub.f32 %v2218_v36, %v2224_v27 }
 0xd6d   : > { %v2229_v46 = vmul.f32 1.442695, %v2226_v43 }
 0xd6e   : > { %v2368_v7 = vpop.permute.xlu1 %2367 }
 0xd6f   : > { %4822 = vpow2.f32 %v2229_v46  ;;  %v2373_v42 = vsel %vm1188_vm1, %v2368_v7, 0 }
 0xd72   : > { %v2366_v5 = vpop.permute.xlu1 %2365 }
 0xd78   : > { %v4821_v44 = vpop.eup %4820 }
 0xd79   : > { %v2231_v47 = vsel %vm1238_vm2, %v4821_v44, 0.0 }
 0xd7a   : > { %2232 = vadd.xlane.f32.xlu0 %v2231_v47 }
 0xd7c   : > { %v4823_v49 = vpop.eup %4822 }
 0xd7d   : > { %v2234_v51 = vsel %vm1238_vm2, %v4823_v49, 0.0 }
 0xd7e   : > { %2235 = vadd.xlane.f32.xlu0 %v2234_v51  ;;  %v4578_v51 = vld [vmem:[%s6132_s3 + $0xd4] ss:$8 sps:$4 sm:$0xff]  }
 0xd94   : > { %2243 = vrot.lane.b32.xlu0 %v5480_v38, %s4866_s14  ;;  %s440_s14 = scalar_lea.vmem %s6142_s13, %s4252_s15 }
 0xd98   : > { %v2151_v52 = vpop.f32.mrf.mxu0 }
 0xd99   : > { %v5537_v53 = vadd.f32 %v2151_v52, %v5494_v63 }
 0xd9a   : > { %v2153_v54 = vpop.f32.mrf.mxu0 }
 0xd9b   : > { %v5540_v55 = vadd.f32 %v2153_v54, %v5497_v2 }
 0xd9c   : > { %v2155_v56 = vpop.f32.mrf.mxu0 }
 0xd9d   : > { %v5543_v57 = vadd.f32 %v2155_v56, %v5500_v19 }
 0xd9e   : > { %v5565_v48 = vpop.f32.mrf.mxu0 }
 0xe03   : > { %v2233_v62 = vpop.xlane.xlu0 %2232 }
 0xe04   : > { %4824 = vrcp.f32 %v2233_v62 }
 0xe07   : > { %v2236_v63 = vpop.xlane.xlu0 %2235 }
 0xe08   : > { %4826 = vrcp.f32 %v2236_v63 }
 0xe0b   : > { %v2244_v1 = vpop.permute.xlu0 %2243 }
 0xe0c   : > { %4353 = vmatpush3.bf16.msra.mxu0 %v2244_v1 }
 0xe0d   : > { %4358 = vmatprep.subr.bf16.mxu0 %v4864_v6 }
 0xe11   : > { %v4825_v2 = vpop.eup %4824 }
 0xe12   : > { %v2239_v19 = vmul.f32 %v4825_v2, %v4821_v44  ;;  %v4579_v2 = vld [vmem:[%s6132_s3 + $0xc0] ss:$8 sps:$4 sm:$0xff]  }
 0xe15   : > { %v4827_v4 = vpop.eup %4826 }
 0xe16   : > { %v2240_v31 = vmul.f32 %v4827_v4, %v4823_v49  ;;  %v4576_v49 = vld [vmem:[%s6132_s3 + $0xd0] ss:$8 sps:$4 sm:$0xff]   ;;  %v4581_v4 = vld [vmem:[%s6132_s3 + $0xc4] ss:$8 sps:$4 sm:$0xff]  }
 0xe18   : > { %v2241_v3 = vpack.c.bf16 %v2240_v31, %v2239_v19 }
 0xe1a   : > { %4355 = vmatmul.mubr.msk.bf16.vlgmr.msra.gmra.mxu0 %vm1238_vm2, %v2241_v3 }
 0xe1b   : > { %4359 = vmatpush3.bf16.xpose.msra.mxu0 %v2373_v42  ;;  %4360 = vmatprep.mubr.msk.bf16.mxu0 %vm4865_vm0, %v4864_v6 }
 0xe1c   : > { %2528 = vmatprep.subr.bf16.mxu0 %v4578_v51 }
 0xe22   : > { %4361 = vmatmul.mubr.msk.bf16.vlgmr.msra.gmra.mxu0 %vm1188_vm1, %v2366_v5 }
 0xe23   : > { %2548 = vmatprep.mubr.bf16.mxu0 %v4868_v24  ;;  %2529 = vmatpush1.bf16.msra.mxu0 %v4576_v49 }
 0xe24   : > { %2530 = vmatprep.subr.bf16.mxu0 %v4581_v4 }
 0xe27   : > { %2531 = vmatpush1.bf16.msra.mxu0 %v4579_v2 }
 0xe28   : > { %4376 = vmatprep.subr.bf16.mxu0 %v4864_v6 }
 0xeda   : > { %v2283_v22 = vpop.f32.mrf.mxu0 }
 0xedc   : > { %v4356_v12 = vpop.f32.mrf.mxu0 }
 0xede   : > { %v2286_v14 = vpop.f32.mrf.mxu0 }
 0xedf   : > { %v2290_v16 = vpack.c.bf16 %v2286_v14, %v2283_v22 }
 0xee0   : > { %v4357_v17 = vpop.f32.mrf.mxu0 }
 0xee1   : > { %4107 = vmatmul.mubr.msk.bf16.vlgmr.msra.gmra.mxu1 %vm1188_vm1, %v2290_v16 }
 0xee2   : > { %v2409_v20 = vpop.f32.mrf.mxu0  ;;  %4366 = vmatprep.mubr.msk.bf16.mxu1 %vm4865_vm0, %v4864_v6 }
 0xee3   : > { %v2416_v21 = vmul.f32 0.17677669, %v2409_v20 }
 0xee4   : > { %v4362_v25 = vpop.f32.mrf.mxu0 }
 0xee5   : > { %v2418_v13 = vsel %vm1238_vm2, %v2416_v21, -inf }
 0xee6   : > { %2419 = vmax.xlane.f32.xlu0 %v2418_v13  ;;  %v2412_v59 = vpop.f32.mrf.mxu0 }
 0xee7   : > { %v2417_v28 = vmul.f32 0.17677669, %v2412_v59 }
 0xee8   : > { %v4363_v29 = vpop.f32.mrf.mxu0 }
 0xee9   : > { %v2421_v32 = vsel %vm1238_vm2, %v2417_v28, -inf }
 0xeea   : > { %2422 = vmax.xlane.f32.xlu1 %v2421_v32 }
 0xefb   : > { %2565 = vrot.lane.b32.xlu1 %v5458_v18, %s4869_s22 }
 0xeff   : > { %2563 = vrot.lane.b32.xlu1 %v5432_v0, %s4869_s22 }
 0xf6f   : > { %v2420_v33 = vpop.xlane.xlu0 %2419 }
 0xf70   : > { %v2424_v34 = vsub.f32 %v2416_v21, %v2420_v33 }
 0xf72   : > { %v2426_v35 = vmul.f32 1.442695, %v2424_v34 }
 0xf73   : > { %v2423_v36 = vpop.xlane.xlu1 %2422 }
 0xf74   : > { %4828 = vpow2.f32 %v2426_v35  ;;  %v2425_v37 = vsub.f32 %v2417_v28, %v2423_v36 }
 0xf76   : > { %v2428_v39 = vmul.f32 1.442695, %v2425_v37  ;;  %v4582_v37 = vld [vmem:[%s6132_s3 + $0xf0] ss:$8 sps:$4 sm:$0xff]  }
 0xf77   : > { %v2566_v61 = vpop.permute.xlu1 %2565 }
 0xf78   : > { %4830 = vpow2.f32 %v2428_v39  ;;  %v2571_v63 = vsel %vm1188_vm1, %v2566_v61, 0  ;;  %v4584_v39 = vld [vmem:[%s6132_s3 + $0xf4] ss:$8 sps:$4 sm:$0xff]   ;;  %v1771_v61 = vadd.f32 %v5477_v30, %v5384_v50 }
 0xf7b   : > { %v2564_v1 = vpop.permute.xlu1 %2563 }
 0xf81   : > { %v4829_v40 = vpop.eup %4828 }
 0xf82   : > { %v2430_v10 = vsel %vm1238_vm2, %v4829_v40, 0.0 }
 0xf83   : > { %2431 = vadd.xlane.f32.xlu0 %v2430_v10 }
 0xf85   : > { %v4831_v41 = vpop.eup %4830 }
 0xf86   : > { %v2433_v27 = vsel %vm1238_vm2, %v4831_v41, 0.0 }
 0xf87   : > { %2434 = vadd.xlane.f32.xlu0 %v2433_v27 }
 0xf9d   : > { %2441 = vrot.lane.b32.xlu0 %v5480_v38, %s4867_s16 }
 0xfa1   : > { %v2352_v0 = vpop.f32.mrf.mxu1 }
 0xfa2   : > { %v5581_v18 = vadd.f32 %v2352_v0, %v5537_v53 }
 0xfa3   : > { %v2354_v43 = vpop.f32.mrf.mxu1 }
 0xfa4   : > { %v5584_v46 = vadd.f32 %v2354_v43, %v5540_v55 }
 0xfa5   : > { %v2356_v44 = vpop.f32.mrf.mxu1 }
 0xfa6   : > { %v5587_v47 = vadd.f32 %v2356_v44, %v5543_v57 }
 0xfa7   : > { %v5609_v19 = vpop.f32.mrf.mxu1 }
0x100c   : > { %v2432_v52 = vpop.xlane.xlu0 %2431 }
0x100d   : > { %4832 = vrcp.f32 %v2432_v52 }
0x1010   : > { %v2435_v53 = vpop.xlane.xlu0 %2434 }
0x1011   : > { %4834 = vrcp.f32 %v2435_v53 }
0x1014   : > { %v2442_v54 = vpop.permute.xlu0 %2441 }
0x1015   : > { %4365 = vmatpush3.bf16.msra.mxu1 %v2442_v54 }
0x1016   : > { %4370 = vmatprep.subr.bf16.mxu1 %v4864_v6 }
0x101a   : > { %v4833_v55 = vpop.eup %4832 }
0x101b   : > { %v2438_v57 = vmul.f32 %v4833_v55, %v4829_v40 }
0x101e   : > { %v4835_v56 = vpop.eup %4834 }
0x101f   : > { %v2439_v58 = vmul.f32 %v4835_v56, %v4831_v41 }
0x1021   : > { %v2440_v62 = vpack.c.bf16 %v2439_v58, %v2438_v57  ;;  %v2761_v58 = vld [vmem:[%s6133_s4] sm:$0x3] }
0x1023   : > { %4367 = vmatmul.mubr.msk.bf16.vlgmr.msra.gmra.mxu1 %vm1238_vm2, %v2440_v62  ;;  %v1969_v62 = vadd.f32 %v5521_v23, %v1771_v61  ;;  %v4630_v61 = vld [vmem:[%s6136_s7] ss:$16 sps:$4 sm:$0xff]  }
0x1024   : > { %4371 = vmatpush3.bf16.xpose.msra.mxu1 %v2571_v63  ;;  %4372 = vmatprep.mubr.msk.bf16.mxu1 %vm4865_vm0, %v4864_v6  ;;  %v2766_v63 = vrot.slane %v2761_v58, %v5179_v15 }
0x1025   : > { %2726 = vmatprep.subr.bf16.mxu1 %v4584_v39  ;;  %v2163_v2 = vadd.f32 %v5565_v48, %v1969_v62  ;;  %v4600_v39 = vld [vmem:[%s6136_s7 + $0xa0] ss:$16 sps:$4 sm:$0xff]   ;;  %v4633_v62 = vld [vmem:[%s6136_s7 + $0x8] ss:$16 sps:$4 sm:$0xff]  }
0x102b   : > { %4373 = vmatmul.mubr.msk.bf16.vlgmr.msra.gmra.mxu1 %vm1188_vm1, %v2564_v1 }
0x102c   : > { %2746 = vmatprep.mubr.bf16.mxu1 %v4868_v24  ;;  %2727 = vmatpush1.bf16.msra.mxu1 %v4582_v37  ;;  %v4605_v37 = vld [vmem:[%s6136_s7 + $0xac] ss:$16 sps:$4 sm:$0xff]  }
0x10e3   : > { %v2481_v31 = vpop.f32.mrf.mxu1 }
0x10e5   : > { %v4368_v7 = vpop.f32.mrf.mxu1 }
0x10e7   : > { %v2484_v3 = vpop.f32.mrf.mxu1 }
0x10e8   : > { %v2488_v42 = vpack.c.bf16 %v2484_v3, %v2481_v31  ;;  %v2770_v31 = vrot.slane %v2761_v58, %v5424_v60  ;;  %v2364_v3 = vadd.f32 %v5609_v19, %v2163_v2  ;;  %v4635_v58 = vld [vmem:[%s6136_s7 + $0xc] ss:$16 sps:$4 sm:$0xff]   ;;  %v4636_v2 = vld [vmem:[%s6136_s7 + $0x1e0] ss:$16 sps:$4 sm:$0xff]  }
0x10e9   : > { %v4369_v5 = vpop.f32.mrf.mxu1 }
0x10ea   : > { %4114 = vmatmul.mubr.msk.bf16.vlgmr.msra.gmra.mxu0 %vm1188_vm1, %v2488_v42 }
0x10eb   : > { %v2607_v24 = vpop.f32.mrf.mxu1  ;;  %4378 = vmatprep.mubr.msk.bf16.mxu0 %vm4865_vm0, %v4864_v6 }
0x10ec   : > { %v2614_v26 = vmul.f32 0.17677669, %v2607_v24 }
0x10ed   : > { %v4374_v11 = vpop.f32.mrf.mxu1 }
0x10ee   : > { %v2616_v22 = vsel %vm1238_vm2, %v2614_v26, -inf }
0x10ef   : > { %2617 = vmax.xlane.f32.xlu1 %v2616_v22  ;;  %v2610_v12 = vpop.f32.mrf.mxu1 }
0x10f0   : > { %v2615_v14 = vmul.f32 0.17677669, %v2610_v12  ;;  %v4852_v12 = vld [vmem:[%s5089_s24] sm:$0xff] }
0x10f1   : > { %v4375_v16 = vpop.f32.mrf.mxu1 }
0x10f2   : > { %v2619_v17 = vsel %vm1238_vm2, %v2615_v14, -inf }
0x10f3   : > { %2620 = vmax.xlane.f32.xlu0 %v2619_v17 }
0x1100   : > { %2639 = vrot.lane.b32.xlu1 %v5480_v38, %s4869_s22 }
0x1178   : > { %v2618_v20 = vpop.xlane.xlu1 %2617 }
0x1179   : > { %v2622_v21 = vsub.f32 %v2614_v26, %v2618_v20  ;;  %v4854_v20 = vld [vmem:[%s5089_s24 + $0x10] sm:$0xff] }
0x117b   : > { %v2624_v25 = vmul.f32 1.442695, %v2622_v21 }
0x117c   : > { %v2640_v13 = vpop.permute.xlu1 %2639  ;;  %v2621_v59 = vpop.xlane.xlu0 %2620 }
0x117d   : > { %4836 = vpow2.f32 %v2624_v25  ;;  %v2623_v6 = vsub.f32 %v2615_v14, %v2621_v59  ;;  %4377 = vmatpush3.bf16.msra.mxu0 %v2640_v13  ;;  %v4853_v14 = vld [vmem:[%s5089_s24 + $0x8] sm:$0xff]  ;;  %v4855_v25 = vld [vmem:[%s5089_s24 + $0x18] sm:$0xff] }
0x117f   : > { %v2626_v28 = vmul.f32 1.442695, %v2623_v6  ;;  %v4588_v6 = vld [vmem:[%s6136_s7 + $0xe0] ss:$16 sps:$4 sm:$0xff]  }
0x1181   : > { %4838 = vpow2.f32 %v2626_v28  ;;  %v4590_v28 = vld [vmem:[%s6136_s7 + $0xe4] ss:$16 sps:$4 sm:$0xff]  }
0x1182   : > { %3254 = vmatprep.subr.bf16.mxu0 %v4590_v28  ;;  %v4657_v28 = vld [vmem:[%s6136_s7 + $0x188] ss:$16 sps:$4 sm:$0xff]  }
0x118a   : > { %v4837_v29 = vpop.eup %4836 }
0x118b   : > { %v2628_v32 = vsel %vm1238_vm2, %v4837_v29, 0.0 }
0x118c   : > { %2629 = vadd.xlane.f32.xlu0 %v2628_v32  ;;  %v4593_v32 = vld [vmem:[%s6136_s7 + $0xec] ss:$16 sps:$4 sm:$0xff]  }
0x118e   : > { %v4839_v33 = vpop.eup %4838 }
0x118f   : > { %v2631_v34 = vsel %vm1238_vm2, %v4839_v33, 0.0 }
0x1190   : > { %2632 = vadd.xlane.f32.xlu0 %v2631_v34  ;;  %v4599_v34 = vld [vmem:[%s6136_s7 + $0xcc] ss:$16 sps:$4 sm:$0xff]  }
0x11aa   : > { %v2550_v35 = vpop.f32.mrf.mxu0 }
0x11ab   : > { %v2559_v38 = vadd.f32 %v2550_v35, %v5581_v18  ;;  %v4594_v35 = vld [vmem:[%s6136_s7 + $0xc0] ss:$16 sps:$4 sm:$0xff]  }
0x11ac   : > { %v2552_v36 = vpop.f32.mrf.mxu0 }
0x11ad   : > { %v2560_v40 = vadd.f32 %v2552_v36, %v5584_v46  ;;  %v4585_v46 = vld [vmem:[%s6132_s3 + $0xe0] ss:$8 sps:$4 sm:$0xff]   ;;  %v4602_v36 = vld [vmem:[%s6136_s7 + $0xa4] ss:$16 sps:$4 sm:$0xff]  }
0x11ae   : > { %v2554_v10 = vpop.f32.mrf.mxu0 }
0x11af   : > { %v2561_v41 = vadd.f32 %v2554_v10, %v5587_v47  ;;  %v4587_v47 = vld [vmem:[%s6132_s3 + $0xe4] ss:$8 sps:$4 sm:$0xff]  }
0x11b0   : > { %2728 = vmatprep.subr.bf16.mxu1 %v4587_v47  ;;  %v2556_v52 = vpop.f32.mrf.mxu0  ;;  %v4608_v10 = vld [vmem:[%s6136_s7 + $0x84] ss:$16 sps:$4 sm:$0xff]   ;;  %v4618_v47 = vld [vmem:[%s6136_s7 + $0x40] ss:$16 sps:$4 sm:$0xff]  }
0x11b1   : > { %2729 = vmatpush1.bf16.msra.mxu1 %v4585_v46  ;;  %v2562_v50 = vadd.f32 %v2556_v52, %v2364_v3  ;;  %v4623_v46 = vld [vmem:[%s6136_s7 + $0x4c] ss:$16 sps:$4 sm:$0xff]   ;;  %v4621_v52 = vld [vmem:[%s6136_s7 + $0x48] ss:$16 sps:$4 sm:$0xff]  }
0x11b2   : > { %3297 = vmatprep.subr.bf16.mxu1 %v4593_v32  ;;  %v4662_v32 = vld [vmem:[%s6136_s7 + $0x164] ss:$16 sps:$4 sm:$0xff]  }
0x1215   : > { %v2630_v27 = vpop.xlane.xlu0 %2629 }
0x1216   : > { %4840 = vrcp.f32 %v2630_v27  ;;  %v4606_v27 = vld [vmem:[%s6136_s7 + $0x80] ss:$16 sps:$4 sm:$0xff]  }
0x1219   : > { %v2633_v0 = vpop.xlane.xlu0 %2632 }
0x121a   : > { %4842 = vrcp.f32 %v2633_v0  ;;  %v4609_v0 = vld [vmem:[%s6136_s7 + $0x88] ss:$16 sps:$4 sm:$0xff]  }
0x1223   : > { %v4841_v18 = vpop.eup %4840 }
0x1224   : > { %v2636_v44 = vmul.f32 %v4841_v18, %v4837_v29  ;;  %v4591_v29 = vld [vmem:[%s6136_s7 + $0xe8] ss:$16 sps:$4 sm:$0xff]   ;;  %v4614_v18 = vld [vmem:[%s6136_s7 + $0x64] ss:$16 sps:$4 sm:$0xff]  }
0x1227   : > { %v4843_v43 = vpop.eup %4842 }
0x1228   : > { %v2637_v49 = vmul.f32 %v4843_v43, %v4839_v33  ;;  %v4596_v33 = vld [vmem:[%s6136_s7 + $0xc4] ss:$16 sps:$4 sm:$0xff]   ;;  %v4617_v43 = vld [vmem:[%s6136_s7 + $0x6c] ss:$16 sps:$4 sm:$0xff]  }
0x122a   : > { %v2638_v51 = vpack.c.bf16 %v2637_v49, %v2636_v44  ;;  %v4612_v44 = vld [vmem:[%s6136_s7 + $0x60] ss:$16 sps:$4 sm:$0xff]   ;;  %v4615_v49 = vld [vmem:[%s6136_s7 + $0x68] ss:$16 sps:$4 sm:$0xff]  }
0x122c   : > { %4379 = vmatmul.mubr.msk.bf16.vlgmr.msra.gmra.mxu0 %vm1238_vm2, %v2638_v51  ;;  %v4620_v51 = vld [vmem:[%s6136_s7 + $0x44] ss:$16 sps:$4 sm:$0xff]  }
0x122d   : > { %3255 = vmatpush1.bf16.msra.mxu0 %v4588_v6  ;;  %v4654_v6 = vld [vmem:[%s6136_s7 + $0x180] ss:$16 sps:$4 sm:$0xff]  }
0x122e   : > { %3256 = vmatprep.subr.bf16.mxu0 %v4596_v33  ;;  %v4665_v33 = vld [vmem:[%s6136_s7 + $0x16c] ss:$16 sps:$4 sm:$0xff]  }
0x1231   : > { %3257 = vmatpush1.bf16.msra.mxu0 %v4594_v35  ;;  %v4663_v35 = vld [vmem:[%s6136_s7 + $0x168] ss:$16 sps:$4 sm:$0xff]  }
0x1232   : > { %3258 = vmatprep.subr.bf16.mxu0 %v4602_v36  ;;  %v4671_v36 = vld [vmem:[%s6136_s7 + $0x14c] ss:$16 sps:$4 sm:$0xff]  }
0x1235   : > { %3259 = vmatpush1.bf16.msra.mxu0 %v4600_v39  ;;  %v4669_v39 = vld [vmem:[%s6136_s7 + $0x148] ss:$16 sps:$4 sm:$0xff]  }
0x1236   : > { %3260 = vmatprep.subr.bf16.mxu0 %v4608_v10  ;;  %v4677_v10 = vld [vmem:[%s6136_s7 + $0x12c] ss:$16 sps:$4 sm:$0xff]  }
0x1239   : > { %3261 = vmatpush1.bf16.msra.mxu0 %v4606_v27  ;;  %v4675_v27 = vld [vmem:[%s6136_s7 + $0x128] ss:$16 sps:$4 sm:$0xff]  }
0x123a   : > { %3262 = vmatprep.subr.bf16.mxu0 %v4614_v18  ;;  %v4683_v18 = vld [vmem:[%s6136_s7 + $0x10c] ss:$16 sps:$4 sm:$0xff]  }
0x123d   : > { %3263 = vmatpush1.bf16.msra.mxu0 %v4612_v44  ;;  %v4681_v44 = vld [vmem:[%s6136_s7 + $0x108] ss:$16 sps:$4 sm:$0xff]  }
0x123e   : > { %3264 = vmatprep.subr.bf16.mxu0 %v4620_v51  ;;  %v4689_v51 = vld [vmem:[%s6138_s9 + $0x174] ss:$8 sps:$4 sm:$0xff]  }
0x1241   : > { %3265 = vmatpush1.bf16.msra.mxu0 %v4618_v47 }
0x12ec   : > { %v2679_v53 = vpop.f32.mrf.mxu0 }
0x12ee   : > { %v4380_v54 = vpop.f32.mrf.mxu0 }
0x12ef   : > { %v4629_v54 = vld [vmem:[%s6136_s7 + $0x2c] ss:$16 sps:$4 sm:$0xff]  }
0x12f0   : > { %v2682_v55 = vpop.f32.mrf.mxu0 }
0x12f1   : > { %v2686_v56 = vpack.c.bf16 %v2682_v55, %v2679_v53  ;;  %v4626_v53 = vld [vmem:[%s6136_s7 + $0x24] ss:$16 sps:$4 sm:$0xff]   ;;  %v4624_v55 = vld [vmem:[%s6136_s7 + $0x20] ss:$16 sps:$4 sm:$0xff]  }
0x12f2   : > { %v4381_v57 = vpop.f32.mrf.mxu0  ;;  %3266 = vmatprep.subr.bf16.mxu0 %v4626_v53 }
0x12f3   : > { %4121 = vmatmul.mubr.msk.bf16.vlgmr.msra.gmra.mxu1 %vm1188_vm1, %v2686_v56  ;;  %v4627_v56 = vld [vmem:[%s6136_s7 + $0x28] ss:$16 sps:$4 sm:$0xff]   ;;  %v4632_v57 = vld [vmem:[%s6136_s7 + $0x4] ss:$16 sps:$4 sm:$0xff]   ;;  %3267 = vmatpush1.bf16.msra.mxu0 %v4624_v55 }
0x12f4   : > { %3298 = vmatpush1.bf16.msra.mxu1 %v4591_v29  ;;  %3268 = vmatprep.subr.bf16.mxu0 %v4632_v57  ;;  %v4659_v29 = vld [vmem:[%s6136_s7 + $0x18c] ss:$16 sps:$4 sm:$0xff]  }
0x12f5   : > { %3299 = vmatprep.subr.bf16.mxu1 %v4599_v34  ;;  %v4660_v34 = vld [vmem:[%s6136_s7 + $0x160] ss:$16 sps:$4 sm:$0xff]  }
0x12f7   : > { %3269 = vmatpush1.bf16.msra.mxu0 %v4630_v61 }
0x13b3   : > { %v2748_v1 = vpop.f32.mrf.mxu1 }
0x13b4   : > { %v2757_v4 = vadd.f32 %v2748_v1, %v2559_v38  ;;  %v4597_v38 = vld [vmem:[%s6136_s7 + $0xc8] ss:$16 sps:$4 sm:$0xff]   ;;  %v4641_v1 = vld [vmem:[%s6136_s7 + $0x1ec] ss:$16 sps:$4 sm:$0xff]  }
0x13b5   : > { %v2750_v7 = vpop.f32.mrf.mxu1  ;;  %3300 = vmatpush1.bf16.msra.mxu1 %v4597_v38  ;;  %v4668_v38 = vld [vmem:[%s6136_s7 + $0x144] ss:$16 sps:$4 sm:$0xff]  }
0x13b6   : > { %v2773_v42 = vadd.f32 %v2766_v63, %v2757_v4  ;;  %v2758_v5 = vadd.f32 %v2750_v7, %v2560_v40  ;;  %v4603_v40 = vld [vmem:[%s6136_s7 + $0xa8] ss:$16 sps:$4 sm:$0xff]   ;;  %3301 = vmatprep.subr.bf16.mxu1 %v4605_v37  ;;  %v4666_v37 = vld [vmem:[%s6136_s7 + $0x140] ss:$16 sps:$4 sm:$0xff]  }
0x13b7   : > { %v2752_v24 = vpop.f32.mrf.mxu1  ;;  %v4639_v4 = vld [vmem:[%s6136_s7 + $0x1e8] ss:$16 sps:$4 sm:$0xff]  }
0x13b8   : > { %v2774_v30 = vadd.f32 %v2770_v31, %v2758_v5  ;;  %v2759_v23 = vadd.f32 %v2752_v24, %v2561_v41  ;;  %v5648_v48 = vadd.f32 %v4852_v12, %v2773_v42  ;;  %v4611_v41 = vld [vmem:[%s6136_s7 + $0x8c] ss:$16 sps:$4 sm:$0xff]  }
0x13b9   : > { %v2754_v26 = vpop.f32.mrf.mxu1  ;;  %3302 = vmatpush1.bf16.msra.mxu1 %v4603_v40  ;;  %v4674_v40 = vld [vmem:[%s6136_s7 + $0x124] ss:$16 sps:$4 sm:$0xff]  }
0x13ba   : > { %v2775_v11 = vadd.f32 %v2766_v63, %v2759_v23  ;;  %v2760_v22 = vadd.f32 %v2754_v26, %v2562_v50  ;;  %v5651_v16 = vadd.f32 %v4853_v14, %v2774_v30  ;;  %3303 = vmatprep.subr.bf16.mxu1 %v4611_v41  ;;  %v4638_v63 = vld [vmem:[%s6136_s7 + $0x1e4] ss:$16 sps:$4 sm:$0xff]   ;;  %v4672_v41 = vld [vmem:[%s6136_s7 + $0x120] ss:$16 sps:$4 sm:$0xff]  }
0x13bb   : > { %3270 = vmatprep.subr.bf16.mxu0 %v4638_v63  ;;  %v4644_v14 = vld [vmem:[%s6136_s7 + $0x1c4] ss:$16 sps:$4 sm:$0xff]  }
0x13bc   : > { %v2776_v17 = vadd.f32 %v2770_v31, %v2760_v22  ;;  %v2783_v19 = vadd.f32 %v5651_v16, %v5648_v48  ;;  %v5656_v21 = vadd.f32 %v4854_v20, %v2775_v11  ;;  %3271 = vmatpush2.bf16.msra.mxu0 %v4636_v2  ;;  %v4650_v20 = vld [vmem:[%s6136_s7 + $0x1a4] ss:$16 sps:$4 sm:$0xff]  }
0x13bd   : > { %3304 = vmatpush1.bf16.msra.mxu1 %v4609_v0  ;;  %3272 = vmatprep.subr.bf16.mxu0 %v4644_v14  ;;  %v4680_v0 = vld [vmem:[%s6136_s7 + $0x104] ss:$16 sps:$4 sm:$0xff]   ;;  %v4687_v14 = vld [vmem:[%s6138_s9 + $0x170] ss:$8 sps:$4 sm:$0xff]  }
0x13be   : > { %2784 = vadd.xlane.f32.xlu0 %v2783_v19  ;;  %v5659_v13 = vadd.f32 %v4855_v25, %v2776_v17  ;;  %3305 = vmatprep.subr.bf16.mxu1 %v4617_v43  ;;  %v4642_v17 = vld [vmem:[%s6136_s7 + $0x1c0] ss:$16 sps:$4 sm:$0xff]   ;;  %v4645_v19 = vld [vmem:[%s6136_s7 + $0x1c8] ss:$16 sps:$4 sm:$0xff]  }
0x13bf   : > { %v4648_v25 = vld [vmem:[%s6136_s7 + $0x1a0] ss:$16 sps:$4 sm:$0xff]  }
0x13c0   : > { %v2786_v59 = vadd.f32 %v5659_v13, %v5656_v21  ;;  %3273 = vmatpush2.bf16.msra.mxu0 %v4642_v17  ;;  %v4678_v43 = vld [vmem:[%s6136_s7 + $0x100] ss:$16 sps:$4 sm:$0xff]   ;;  %v4695_v17 = vld [vmem:[%s6138_s9 + $0x164] ss:$8 sps:$4 sm:$0xff]  }
0x13c1   : > { %3306 = vmatpush1.bf16.msra.mxu1 %v4615_v49  ;;  %3274 = vmatprep.subr.bf16.mxu0 %v4650_v20  ;;  %v4686_v49 = vld [vmem:[%s6138_s9 + $0x74] ss:$8 sps:$4 sm:$0xff]   ;;  %v4693_v20 = vld [vmem:[%s6138_s9 + $0x160] ss:$8 sps:$4 sm:$0xff]  }
0x13c2   : > { %2787 = vadd.xlane.f32.xlu0 %v2786_v59  ;;  %3307 = vmatprep.subr.bf16.mxu1 %v4623_v46  ;;  %v4656_v59 = vld [vmem:[%s6136_s7 + $0x184] ss:$16 sps:$4 sm:$0xff]  }
0x13c4   : > { %3275 = vmatpush2.bf16.msra.mxu0 %v4648_v25  ;;  %v4701_v25 = vld [vmem:[%s6138_s9 + $0x154] ss:$8 sps:$4 sm:$0xff]  }
0x13c5   : > { %3308 = vmatpush1.bf16.msra.mxu1 %v4621_v52  ;;  %3276 = vmatprep.subr.bf16.mxu0 %v4656_v59  ;;  %v4699_v59 = vld [vmem:[%s6138_s9 + $0x150] ss:$8 sps:$4 sm:$0xff]  }
0x13c6   : > { %3309 = vmatprep.subr.bf16.mxu1 %v4629_v54 }
0x13c8   : > { %3277 = vmatpush2.bf16.msra.mxu0 %v4654_v6  ;;  %v4704_v6 = vld [vmem:[%s6138_s9 + $0x44] ss:$8 sps:$4 sm:$0xff]  }
0x13c9   : > { %3310 = vmatpush1.bf16.msra.mxu1 %v4627_v56  ;;  %3278 = vmatprep.subr.bf16.mxu0 %v4662_v32  ;;  %v2781_v56 = vld [vmem:[%s6134_s5] sm:$0x3] }
0x13ca   : > { %3311 = vmatprep.subr.bf16.mxu1 %v4635_v58  ;;  %v2782_v58 = vld [vmem:[%s6135_s6] sm:$0x3]  ;;  %v2824_v63 = vrot.slane %v2781_v56, %v5424_v60 }
0x13cb   : > { %v4705_v32 = vld [vmem:[%s6138_s9 + $0x140] ss:$8 sps:$4 sm:$0xff]  }
0x13cc   : > { %3279 = vmatpush2.bf16.msra.mxu0 %v4660_v34  ;;  %v4713_v34 = vld [vmem:[%s6138_s9 + $0x134] ss:$8 sps:$4 sm:$0xff]  }
0x13cd   : > { %3312 = vmatpush1.bf16.msra.mxu1 %v4633_v62  ;;  %3280 = vmatprep.subr.bf16.mxu0 %v4668_v38  ;;  %v2820_v62 = vrot.slane %v2781_v56, %v5179_v15  ;;  %v4711_v38 = vld [vmem:[%s6138_s9 + $0x130] ss:$8 sps:$4 sm:$0xff]   ;;  %v4741_v56 = vld [vmem:[%s6138_s9 + $0x1e0] ss:$8 sps:$4 sm:$0xff]  }
0x13ce   : > { %3313 = vmatprep.subr.bf16.mxu1 %v4641_v1 }
0x13d0   : > { %3281 = vmatpush2.bf16.msra.mxu0 %v4666_v37  ;;  %v4719_v37 = vld [vmem:[%s6138_s9 + $0x124] ss:$8 sps:$4 sm:$0xff]  }
0x13d1   : > { %3314 = vmatpush2.bf16.msra.mxu1 %v4639_v4  ;;  %3282 = vmatprep.subr.bf16.mxu0 %v4674_v40  ;;  %v2835_v4 = vrot.slane %v2782_v58, %v5179_v15  ;;  %v4717_v40 = vld [vmem:[%s6138_s9 + $0x120] ss:$8 sps:$4 sm:$0xff]  }
0x13d4   : > { %3283 = vmatpush2.bf16.msra.mxu0 %v4672_v41  ;;  %v4725_v41 = vld [vmem:[%s6138_s9 + $0x114] ss:$8 sps:$4 sm:$0xff]  }
0x13d5   : > { %3284 = vmatprep.subr.bf16.mxu0 %v4680_v0  ;;  %v4723_v0 = vld [vmem:[%s6138_s9 + $0x110] ss:$8 sps:$4 sm:$0xff]  }
0x13d8   : > { %3285 = vmatpush2.bf16.msra.mxu0 %v4678_v43  ;;  %v4731_v43 = vld [vmem:[%s6138_s9 + $0x104] ss:$8 sps:$4 sm:$0xff]  }
0x13d9   : > { %3748 = vmatprep.subr.bf16.mxu0 %v4686_v49  ;;  %v4729_v49 = vld [vmem:[%s6138_s9 + $0x100] ss:$8 sps:$4 sm:$0xff]  }
0x1447   : > { %v2785_v31 = vpop.xlane.xlu0 %2784 }
0x1448   : > { %v2790_v7 = vmul.f32 0.00390625, %v2785_v31  ;;  %v2839_v31 = vrot.slane %v2782_v58, %v5424_v60  ;;  %v4749_v58 = vld [vmem:[%s6138_s9 + $0x1d4] ss:$8 sps:$4 sm:$0xff]  }
0x144a   : > { %v5772_v3 = vsub.f32 %v5648_v48, %v2790_v7  ;;  %v5775_v42 = vsub.f32 %v5651_v16, %v2790_v7  ;;  %v4647_v16 = vld [vmem:[%s6136_s7 + $0x1cc] ss:$16 sps:$4 sm:$0xff]  }
0x144b   : > { %v2788_v5 = vpop.xlane.xlu0 %2787  ;;  %3315 = vmatprep.subr.bf16.mxu1 %v4647_v16  ;;  %v4692_v16 = vld [vmem:[%s6138_s9 + $0x64] ss:$8 sps:$4 sm:$0xff]  }
0x144c   : > { %v2791_v24 = vmul.f32 0.00390625, %v2788_v5  ;;  %v2796_v50 = vmul.f32 %v5772_v3, %v5772_v3  ;;  %v2797_v30 = vmul.f32 %v5775_v42, %v5775_v42  ;;  %3316 = vmatpush2.bf16.msra.mxu1 %v4645_v19  ;;  %v4690_v19 = vld [vmem:[%s6138_s9 + $0x60] ss:$8 sps:$4 sm:$0xff]  }
0x144e   : > { %v5782_v23 = vsub.f32 %v5656_v21, %v2791_v24  ;;  %v5785_v26 = vsub.f32 %v5659_v13, %v2791_v24  ;;  %v2800_v11 = vadd.f32 %v2797_v30, %v2796_v50  ;;  %v4653_v21 = vld [vmem:[%s6136_s7 + $0x1ac] ss:$16 sps:$4 sm:$0xff]   ;;  %v4651_v13 = vld [vmem:[%s6136_s7 + $0x1a8] ss:$16 sps:$4 sm:$0xff]  }
0x144f   : > { %3317 = vmatprep.subr.bf16.mxu1 %v4653_v21  ;;  %v4698_v21 = vld [vmem:[%s6138_s9 + $0x54] ss:$8 sps:$4 sm:$0xff]  }
0x1450   : > { %2801 = vadd.xlane.f32.xlu0 %v2800_v11  ;;  %v2798_v22 = vmul.f32 %v5782_v23, %v5782_v23  ;;  %v2799_v12 = vmul.f32 %v5785_v26, %v5785_v26  ;;  %3318 = vmatpush2.bf16.msra.mxu1 %v4651_v13  ;;  %v4696_v13 = vld [vmem:[%s6138_s9 + $0x50] ss:$8 sps:$4 sm:$0xff]  }
0x1451   : > { %3319 = vmatprep.subr.bf16.mxu1 %v4659_v29  ;;  %v4702_v29 = vld [vmem:[%s6138_s9 + $0x40] ss:$8 sps:$4 sm:$0xff]  }
0x1452   : > { %v2803_v48 = vadd.f32 %v2799_v12, %v2798_v22 }
0x1454   : > { %2804 = vadd.xlane.f32.xlu0 %v2803_v48  ;;  %3320 = vmatpush2.bf16.msra.mxu1 %v4657_v28  ;;  %v4707_v28 = vld [vmem:[%s6138_s9 + $0x144] ss:$8 sps:$4 sm:$0xff]  }
0x1455   : > { %3321 = vmatprep.subr.bf16.mxu1 %v4665_v33  ;;  %v4710_v33 = vld [vmem:[%s6138_s9 + $0x34] ss:$8 sps:$4 sm:$0xff]  }
0x1458   : > { %3322 = vmatpush2.bf16.msra.mxu1 %v4663_v35  ;;  %v4708_v35 = vld [vmem:[%s6138_s9 + $0x30] ss:$8 sps:$4 sm:$0xff]  }
0x1459   : > { %3323 = vmatprep.subr.bf16.mxu1 %v4671_v36  ;;  %v4716_v36 = vld [vmem:[%s6138_s9 + $0x24] ss:$8 sps:$4 sm:$0xff]  }
0x145c   : > { %3324 = vmatpush2.bf16.msra.mxu1 %v4669_v39  ;;  %v4714_v39 = vld [vmem:[%s6138_s9 + $0x20] ss:$8 sps:$4 sm:$0xff]  }
0x145d   : > { %3325 = vmatprep.subr.bf16.mxu1 %v4677_v10  ;;  %v4722_v10 = vld [vmem:[%s6138_s9 + $0x14] ss:$8 sps:$4 sm:$0xff]  }
0x1460   : > { %3326 = vmatpush2.bf16.msra.mxu1 %v4675_v27  ;;  %v4720_v27 = vld [vmem:[%s6138_s9 + $0x10] ss:$8 sps:$4 sm:$0xff]  }
0x1461   : > { %3327 = vmatprep.subr.bf16.mxu1 %v4683_v18  ;;  %v4728_v18 = vld [vmem:[%s6138_s9 + $0x4] ss:$8 sps:$4 sm:$0xff]  }
0x1464   : > { %3328 = vmatpush2.bf16.msra.mxu1 %v4681_v44  ;;  %v4726_v44 = vld [vmem:[%s6138_s9] ss:$8 sps:$4 sm:$0xff]  }
0x1465   : > { %3791 = vmatprep.subr.bf16.mxu1 %v4689_v51  ;;  %v4734_v51 = vld [vmem:[%s6138_s9 + $0xf4] ss:$8 sps:$4 sm:$0xff]  }
0x14d9   : > { %v2802_v46 = vpop.xlane.xlu0 %2801 }
0x14da   : > { %v2806_v47 = vmul.f32 0.00390625, %v2802_v46  ;;  %v4737_v46 = vld [vmem:[%s6138_s9 + $0x1f4] ss:$8 sps:$4 sm:$0xff]  }
0x14dc   : > { %v2808_v52 = vadd.f32 1e-05, %v2806_v47  ;;  %v4732_v47 = vld [vmem:[%s6138_s9 + $0xf0] ss:$8 sps:$4 sm:$0xff]  }
0x14dd   : > { %v2805_v53 = vpop.xlane.xlu0 %2804 }
0x14de   : > { %4844 = vrsqrt.f32 %v2808_v52  ;;  %v2807_v54 = vmul.f32 0.00390625, %v2805_v53  ;;  %v4735_v52 = vld [vmem:[%s6138_s9 + $0x1f0] ss:$8 sps:$4 sm:$0xff]   ;;  %v4740_v53 = vld [vmem:[%s6138_s9 + $0xe4] ss:$8 sps:$4 sm:$0xff]  }
0x14e0   : > { %v2809_v55 = vadd.f32 1e-05, %v2807_v54  ;;  %v4743_v54 = vld [vmem:[%s6138_s9 + $0x1e4] ss:$8 sps:$4 sm:$0xff]  }
0x14e2   : > { %4846 = vrsqrt.f32 %v2809_v55  ;;  %v4738_v55 = vld [vmem:[%s6138_s9 + $0xe0] ss:$8 sps:$4 sm:$0xff]  }
0x14eb   : > { %v4845_v57 = vpop.eup %4844 }
0x14ec   : > { %v2813_v61 = vmul.f32 %v4845_v57, %v5775_v42  ;;  %v2812_v1 = vmul.f32 %v4845_v57, %v5772_v3  ;;  %v4746_v57 = vld [vmem:[%s6138_s9 + $0xd4] ss:$8 sps:$4 sm:$0xff]  }
0x14ee   : > { %v2828_v5 = vmul.f32 %v2824_v63, %v2813_v61  ;;  %v2827_v50 = vmul.f32 %v2820_v62, %v2812_v1  ;;  %v4744_v61 = vld [vmem:[%s6138_s9 + $0xd0] ss:$8 sps:$4 sm:$0xff]   ;;  %v4755_v1 = vld [vmem:[%s6138_s9 + $0x1c4] ss:$8 sps:$4 sm:$0xff]  }
0x14ef   : > { %v4847_v2 = vpop.eup %4846 }
0x14f0   : > { %v2815_v7 = vmul.f32 %v4847_v2, %v5785_v26  ;;  %v2814_v24 = vmul.f32 %v4847_v2, %v5782_v23  ;;  %v5895_v42 = vadd.f32 %v2839_v31, %v2828_v5  ;;  %v5899_v12 = vadd.f32 %v2835_v4, %v2827_v50  ;;  %v4684_v23 = vld [vmem:[%s6138_s9 + $0x70] ss:$8 sps:$4 sm:$0xff]   ;;  %v4750_v2 = vld [vmem:[%s6138_s9 + $0xc0] ss:$8 sps:$4 sm:$0xff]   ;;  %v4764_v50 = vld [vmem:[%s6138_s9 + $0xa4] ss:$8 sps:$4 sm:$0xff]  }
0x14f1   : > { %v4756_v5 = vld [vmem:[%s6138_s9 + $0xb0] ss:$8 sps:$4 sm:$0xff]  }
0x14f2   : > { %v2830_v30 = vmul.f32 %v2824_v63, %v2815_v7  ;;  %v2829_v11 = vmul.f32 %v2820_v62, %v2814_v24  ;;  %v4747_v62 = vld [vmem:[%s6138_s9 + $0x1d0] ss:$8 sps:$4 sm:$0xff]   ;;  %v4752_v63 = vld [vmem:[%s6138_s9 + $0xc4] ss:$8 sps:$4 sm:$0xff]   ;;  %v4761_v7 = vld [vmem:[%s6138_s9 + $0x1b4] ss:$8 sps:$4 sm:$0xff]  }
0x14f3   : > { %v4759_v24 = vld [vmem:[%s6138_s9 + $0x1b0] ss:$8 sps:$4 sm:$0xff]  }
0x14f4   : > { %v5897_v22 = vadd.f32 %v2839_v31, %v2830_v30  ;;  %v5901_v3 = vadd.f32 %v2835_v4, %v2829_v11  ;;  %v4753_v4 = vld [vmem:[%s6138_s9 + $0x1c0] ss:$8 sps:$4 sm:$0xff]   ;;  %v4758_v31 = vld [vmem:[%s6138_s9 + $0xb4] ss:$8 sps:$4 sm:$0xff]   ;;  %v4767_v30 = vld [vmem:[%s6138_s9 + $0x1a4] ss:$8 sps:$4 sm:$0xff]  }
0x14f5   : > { %v4762_v11 = vld [vmem:[%s6138_s9 + $0xa0] ss:$8 sps:$4 sm:$0xff]  }
0x14f6   : > { %v2847_v48 = vpack.c.bf16 %v5897_v22, %v5895_v42  ;;  %v2846_v26 = vpack.c.bf16 %v5901_v3, %v5899_v12 }
0x14f8   : > { %3286 = vmatprep.mubr.bf16.mxu0 %v2847_v48  ;;  %3329 = vmatprep.mubr.bf16.mxu1 %v2847_v48  ;;  %v4765_v48 = vld [vmem:[%s6138_s9 + $0x1a0] ss:$8 sps:$4 sm:$0xff]  }
0x14f9   : > { %3287 = vmatmul.mubr.bf16.vlgmr.msra.gmra.mxu0 %v2846_v26  ;;  %3330 = vmatmul.mubr.bf16.vlgmr.msra.gmra.mxu1 %v2846_v26  ;;  %v4770_v26 = vld [vmem:[%s6138_s9 + $0x94] ss:$8 sps:$4 sm:$0xff]  }
0x14fa   : > { %3749 = vmatpush1.bf16.msra.mxu0 %v4684_v23  ;;  %3792 = vmatpush1.bf16.msra.mxu1 %v4687_v14  ;;  %v4773_v23 = vld [vmem:[%s6138_s9 + $0x194] ss:$8 sps:$4 sm:$0xff]   ;;  %v4768_v14 = vld [vmem:[%s6138_s9 + $0x90] ss:$8 sps:$4 sm:$0xff]  }
0x14fb   : > { %3750 = vmatprep.subr.bf16.mxu0 %v4692_v16  ;;  %3793 = vmatprep.subr.bf16.mxu1 %v4695_v17  ;;  %v4771_v16 = vld [vmem:[%s6138_s9 + $0x190] ss:$8 sps:$4 sm:$0xff]   ;;  %v4776_v17 = vld [vmem:[%s6138_s9 + $0x84] ss:$8 sps:$4 sm:$0xff]  }
0x14fe   : > { %3751 = vmatpush1.bf16.msra.mxu0 %v4690_v19  ;;  %3794 = vmatpush1.bf16.msra.mxu1 %v4693_v20  ;;  %v4779_v19 = vld [vmem:[%s6138_s9 + $0x184] ss:$8 sps:$4 sm:$0xff]   ;;  %v4774_v20 = vld [vmem:[%s6138_s9 + $0x80] ss:$8 sps:$4 sm:$0xff]  }
0x14ff   : > { %3752 = vmatprep.subr.bf16.mxu0 %v4698_v21  ;;  %3795 = vmatprep.subr.bf16.mxu1 %v4701_v25  ;;  %v4777_v21 = vld [vmem:[%s6138_s9 + $0x180] ss:$8 sps:$4 sm:$0xff]  }
0x1500   : > { %v2912_v25 = vld [vmem:[%s6137_s8] sm:$0xf] }
0x1502   : > { %3753 = vmatpush1.bf16.msra.mxu0 %v4696_v13  ;;  %3796 = vmatpush1.bf16.msra.mxu1 %v4699_v59 }
0x1503   : > { %3754 = vmatprep.subr.bf16.mxu0 %v4704_v6  ;;  %3797 = vmatprep.subr.bf16.mxu1 %v4707_v28  ;;  %v2921_v6 = vrot.slane %v2912_v25, %v5424_v60  ;;  %v2929_v28 = vrot.slane %v2912_v25, %v560_v45 }
0x1506   : > { %3755 = vmatpush1.bf16.msra.mxu0 %v4702_v29  ;;  %3798 = vmatpush1.bf16.msra.mxu1 %v4705_v32  ;;  %v2917_v29 = vrot.slane %v2912_v25, %v5179_v15  ;;  %v2925_v32 = vrot.slane %v2912_v25, %v556_v9 }
0x1507   : > { %3756 = vmatprep.subr.bf16.mxu0 %v4710_v33  ;;  %3799 = vmatprep.subr.bf16.mxu1 %v4713_v34 }
0x150a   : > { %3757 = vmatpush1.bf16.msra.mxu0 %v4708_v35  ;;  %3800 = vmatpush1.bf16.msra.mxu1 %v4711_v38 }
0x150b   : > { %3758 = vmatprep.subr.bf16.mxu0 %v4716_v36  ;;  %3801 = vmatprep.subr.bf16.mxu1 %v4719_v37 }
0x150e   : > { %3759 = vmatpush1.bf16.msra.mxu0 %v4714_v39  ;;  %3802 = vmatpush1.bf16.msra.mxu1 %v4717_v40 }
0x150f   : > { %3760 = vmatprep.subr.bf16.mxu0 %v4722_v10  ;;  %3803 = vmatprep.subr.bf16.mxu1 %v4725_v41 }
0x1512   : > { %3761 = vmatpush1.bf16.msra.mxu0 %v4720_v27  ;;  %3804 = vmatpush1.bf16.msra.mxu1 %v4723_v0 }
0x1513   : > { %3762 = vmatprep.subr.bf16.mxu0 %v4728_v18  ;;  %3805 = vmatprep.subr.bf16.mxu1 %v4731_v43 }
0x1516   : > { %3763 = vmatpush1.bf16.msra.mxu0 %v4726_v44  ;;  %3806 = vmatpush1.bf16.msra.mxu1 %v4729_v49 }
0x1517   : > { %3764 = vmatprep.subr.bf16.mxu0 %v4734_v51  ;;  %3807 = vmatprep.subr.bf16.mxu1 %v4737_v46 }
0x151a   : > { %3765 = vmatpush2.bf16.msra.mxu0 %v4732_v47  ;;  %3808 = vmatpush2.bf16.msra.mxu1 %v4735_v52 }
0x151b   : > { %3766 = vmatprep.subr.bf16.mxu0 %v4740_v53  ;;  %3809 = vmatprep.subr.bf16.mxu1 %v4743_v54 }
0x151e   : > { %3767 = vmatpush2.bf16.msra.mxu0 %v4738_v55  ;;  %3810 = vmatpush2.bf16.msra.mxu1 %v4741_v56  ;;  %v3416_v56 = vld [vmem:[%s6139_s10] sm:$0x3] }
0x151f   : > { %3768 = vmatprep.subr.bf16.mxu0 %v4746_v57  ;;  %3811 = vmatprep.subr.bf16.mxu1 %v4749_v58  ;;  %v3421_v57 = vrot.slane %v3416_v56, %v5179_v15  ;;  %v3425_v58 = vrot.slane %v3416_v56, %v5424_v60 }
0x1522   : > { %3769 = vmatpush2.bf16.msra.mxu0 %v4744_v61  ;;  %3812 = vmatpush2.bf16.msra.mxu1 %v4747_v62 }
0x1523   : > { %3770 = vmatprep.subr.bf16.mxu0 %v4752_v63  ;;  %3813 = vmatprep.subr.bf16.mxu1 %v4755_v1 }
0x1526   : > { %3771 = vmatpush2.bf16.msra.mxu0 %v4750_v2  ;;  %3814 = vmatpush2.bf16.msra.mxu1 %v4753_v4 }
0x1527   : > { %3772 = vmatprep.subr.bf16.mxu0 %v4758_v31  ;;  %3815 = vmatprep.subr.bf16.mxu1 %v4761_v7 }
0x152a   : > { %3773 = vmatpush2.bf16.msra.mxu0 %v4756_v5  ;;  %3816 = vmatpush2.bf16.msra.mxu1 %v4759_v24 }
0x152b   : > { %3774 = vmatprep.subr.bf16.mxu0 %v4764_v50  ;;  %3817 = vmatprep.subr.bf16.mxu1 %v4767_v30 }
0x152e   : > { %3775 = vmatpush2.bf16.msra.mxu0 %v4762_v11  ;;  %3818 = vmatpush2.bf16.msra.mxu1 %v4765_v48 }
0x152f   : > { %3776 = vmatprep.subr.bf16.mxu0 %v4770_v26  ;;  %3819 = vmatprep.subr.bf16.mxu1 %v4773_v23 }
0x1532   : > { %3777 = vmatpush2.bf16.msra.mxu0 %v4768_v14  ;;  %3820 = vmatpush2.bf16.msra.mxu1 %v4771_v16 }
0x1533   : > { %3778 = vmatprep.subr.bf16.mxu0 %v4776_v17  ;;  %3821 = vmatprep.subr.bf16.mxu1 %v4779_v19 }
0x1536   : > { %3779 = vmatpush2.bf16.msra.mxu0 %v4774_v20  ;;  %3822 = vmatpush2.bf16.msra.mxu1 %v4777_v21 }
0x15b9   : > { %v3288_v13 = vpop.f32.mrf.mxu0  ;;  %v3331_v59 = vpop.f32.mrf.mxu1 }
0x15ba   : > { %v3289_v10 = vadd.f32 %v3288_v13, %v2917_v29  ;;  %v3332_v41 = vadd.f32 %v3331_v59, %v2925_v32 }
0x15bb   : > { %v3290_v33 = vpop.f32.mrf.mxu0  ;;  %v3333_v34 = vpop.f32.mrf.mxu1 }
0x15bc   : > { %v3291_v36 = vadd.f32 %v3290_v33, %v2921_v6  ;;  %v3334_v37 = vadd.f32 %v3333_v34, %v2929_v28  ;;  %v3340_v46 = vmax.f32 %v3289_v10, 0.0  ;;  %v3342_v47 = vmax.f32 %v3332_v41, 0.0  ;;  %v3838_v41 = vld [vmem:[%s6140_s11] sm:$0x3] }
0x15bd   : > { %v3292_v35 = vpop.f32.mrf.mxu0  ;;  %v3335_v38 = vpop.f32.mrf.mxu1 }
0x15be   : > { %v3293_v39 = vadd.f32 %v3292_v35, %v2917_v29  ;;  %v3336_v40 = vadd.f32 %v3335_v38, %v2925_v32  ;;  %v3341_v49 = vmax.f32 %v3291_v36, 0.0  ;;  %v3343_v51 = vmax.f32 %v3334_v37, 0.0 }
0x15bf   : > { %v3294_v27 = vpop.f32.mrf.mxu0  ;;  %v3337_v0 = vpop.f32.mrf.mxu1 }
0x15c0   : > { %v3295_v18 = vadd.f32 %v3294_v27, %v2921_v6  ;;  %v3338_v43 = vadd.f32 %v3337_v0, %v2929_v28  ;;  %v3344_v45 = vmax.f32 %v3293_v39, 0.0  ;;  %v3346_v44 = vmax.f32 %v3336_v40, 0.0  ;;  %v3839_v27 = vld [vmem:[%s6141_s12] sm:$0x3] }
0x15c1   : > { %v3876_v0 = vrot.slane %v3838_v41, %v5179_v15 }
0x15c2   : > { %v3345_v8 = vmax.f32 %v3295_v18, 0.0  ;;  %v3347_v9 = vmax.f32 %v3338_v43, 0.0  ;;  %v3348_v54 = vpack.c.bf16 %v3344_v45, %v3340_v46  ;;  %v3350_v55 = vpack.c.bf16 %v3346_v44, %v3342_v47 }
0x15c3   : > { %v3880_v18 = vrot.slane %v3838_v41, %v5424_v60  ;;  %v3891_v45 = vrot.slane %v3839_v27, %v5179_v15  ;;  %v3895_v44 = vrot.slane %v3839_v27, %v5424_v60 }
0x15c4   : > { %v3349_v52 = vpack.c.bf16 %v3345_v8, %v3341_v49  ;;  %v3351_v53 = vpack.c.bf16 %v3347_v9, %v3343_v51 }
0x15c6   : > { %3780 = vmatprep.mubr.bf16.mxu0 %v3349_v52  ;;  %3823 = vmatprep.mubr.bf16.mxu1 %v3351_v53 }
0x15c7   : > { %3781 = vmatmul.mubr.bf16.vlgmr.msra.gmra.mxu0 %v3348_v54  ;;  %3824 = vmatmul.mubr.bf16.vlgmr.msra.gmra.mxu1 %v3350_v55 }
0x1687   : > { %v3782_v61 = vpop.f32.mrf.mxu0  ;;  %v3825_v62 = vpop.f32.mrf.mxu1 }
0x1688   : > { %v3783_v63 = vadd.f32 %v3782_v61, %v3421_v57 }
0x1689   : > { %v3784_v1 = vpop.f32.mrf.mxu0  ;;  %v3827_v2 = vpop.f32.mrf.mxu1 }
0x168a   : > { %v3826_v4 = vadd.f32 %v3825_v62, %v3783_v63  ;;  %v3785_v31 = vadd.f32 %v3784_v1, %v3425_v58 }
0x168b   : > { %v3786_v7 = vpop.f32.mrf.mxu0  ;;  %v3829_v5 = vpop.f32.mrf.mxu1 }
0x168c   : > { %v3828_v24 = vadd.f32 %v3827_v2, %v3785_v31  ;;  %v3787_v50 = vadd.f32 %v3786_v7, %v3421_v57  ;;  %v3834_v11 = vadd.f32 %v3826_v4, %v5899_v12 }
0x168d   : > { %v3788_v30 = vpop.f32.mrf.mxu0  ;;  %v3831_v14 = vpop.f32.mrf.mxu1 }
0x168e   : > { %v3835_v48 = vadd.f32 %v3828_v24, %v5895_v42  ;;  %v3830_v26 = vadd.f32 %v3829_v5, %v3787_v50  ;;  %v3789_v23 = vadd.f32 %v3788_v30, %v3425_v58 }
0x1690   : > { %v3832_v16 = vadd.f32 %v3831_v14, %v3789_v23  ;;  %v3840_v17 = vadd.f32 %v3835_v48, %v3834_v11  ;;  %v3836_v19 = vadd.f32 %v3830_v26, %v5901_v3 }
0x1692   : > { %v3837_v20 = vadd.f32 %v3832_v16, %v5897_v22  ;;  %3841 = vadd.xlane.f32.xlu1 %v3840_v17 }
0x1694   : > { %v3843_v21 = vadd.f32 %v3837_v20, %v3836_v19 }
0x1696   : > { %3844 = vadd.xlane.f32.xlu0 %v3843_v21 }
0x171b   : > { %v3842_v25 = vpop.xlane.xlu1 %3841 }
0x171c   : > { %v3846_v13 = vmul.f32 0.00390625, %v3842_v25 }
0x171e   : > { %v3848_v59 = vsub.f32 %v3834_v11, %v3846_v13  ;;  %v3849_v6 = vsub.f32 %v3835_v48, %v3846_v13 }
0x171f   : > { %v3845_v28 = vpop.xlane.xlu0 %3844 }
0x1720   : > { %v3847_v12 = vmul.f32 0.00390625, %v3845_v28  ;;  %v3852_v29 = vmul.f32 %v3848_v59, %v3848_v59  ;;  %v3853_v42 = vmul.f32 %v3849_v6, %v3849_v6 }
0x1722   : > { %v3850_v32 = vsub.f32 %v3836_v19, %v3847_v12  ;;  %v3851_v33 = vsub.f32 %v3837_v20, %v3847_v12  ;;  %v3856_v34 = vadd.f32 %v3853_v42, %v3852_v29 }
0x1724   : > { %3857 = vadd.xlane.f32.xlu0 %v3856_v34  ;;  %v3854_v35 = vmul.f32 %v3850_v32, %v3850_v32  ;;  %v3855_v38 = vmul.f32 %v3851_v33, %v3851_v33 }
0x1726   : > { %v3859_v3 = vadd.f32 %v3855_v38, %v3854_v35 }
0x1728   : > { %3860 = vadd.xlane.f32.xlu0 %v3859_v3 }
0x17ad   : > { %v3858_v22 = vpop.xlane.xlu0 %3857 }
0x17ae   : > { %v3862_v36 = vmul.f32 0.00390625, %v3858_v22 }
0x17b0   : > { %v3864_v37 = vadd.f32 1e-05, %v3862_v36 }
0x17b1   : > { %v3861_v39 = vpop.xlane.xlu0 %3860 }
0x17b2   : > { %4848 = vrsqrt.f32 %v3864_v37  ;;  %v3863_v40 = vmul.f32 0.00390625, %v3861_v39 }
0x17b4   : > { %v3865_v10 = vadd.f32 1e-05, %v3863_v40 }
0x17b6   : > { %4850 = vrsqrt.f32 %v3865_v10 }
0x17bf   : > { %v4849_v43 = vpop.eup %4848 }
0x17c0   : > { %v3868_v49 = vmul.f32 %v4849_v43, %v3848_v59  ;;  %v3869_v51 = vmul.f32 %v4849_v43, %v3849_v6 }
0x17c2   : > { %v3883_v8 = vmul.f32 %v3876_v0, %v3868_v49  ;;  %v3884_v9 = vmul.f32 %v3880_v18, %v3869_v51 }
0x17c3   : > { %v4851_v46 = vpop.eup %4850 }
0x17c4   : > { %v3898_v47 = vadd.f32 %v3891_v45, %v3883_v8  ;;  %v3899_v52 = vadd.f32 %v3895_v44, %v3884_v9  ;;  %v3870_v53 = vmul.f32 %v4851_v46, %v3850_v32  ;;  %v3871_v54 = vmul.f32 %v4851_v46, %v3851_v33 }
0x17c6   : > { %3902 = vst [vmem:[%s440_s14] sm:$0xff] %v3898_v47  ;;  %3903 = vst [vmem:[%s440_s14 + $0x8] sm:$0xff] %v3899_v52  ;;  %v3885_v55 = vmul.f32 %v3876_v0, %v3870_v53  ;;  %v3886_v15 = vmul.f32 %v3880_v18, %v3871_v54 }
0x17c8   : > { %v3900_v56 = vadd.f32 %v3891_v45, %v3885_v55  ;;  %v3901_v60 = vadd.f32 %v3895_v44, %v3886_v15 }
0x17ca   : > { %3904 = vst [vmem:[%s440_s14 + $0x10] sm:$0xff] %v3900_v56  ;;  %3905 = vst [vmem:[%s440_s14 + $0x18] sm:$0xff] %v3901_v60 }
0x17cb PF: > { %s23_s25 = sadd.s32 1, %s4862_s25  }
0x17cc   : > { %p20_p4 = scmp.ge.s32.totalorder %s23_s25, 4  }
0x17ce   :  { %22 = sbr.rel (!%p20_p4) target bundleno = 1 (0x1), region = 102 }

// kernel: unter_forward.19
= control target key start
LH: loop header
LB: loop body
LE: loop exit
PB: predicated region body
PF: predicated region fallthrough
CT: control target
= control target key end

     0   :  { %18 = vsyncpa [#allocation3], 0  ;;  %s6299_s0 = inlined_call_operand.vmem [shape: f32[2,16,256], index: 0, kind: input, shape index: {}]   ;;  %s6300_s1 = inlined_call_operand.vmem [shape: bf16[256,768], index: 1, kind: input, shape index: {}]   ;;  %s6301_s2 = inlined_call_operand.vmem [shape: f32[1,768], index: 2, kind: input, shape index: {}]   ;;  %s6302_s3 = inlined_call_operand.vmem [shape: bf16[256,256], index: 3, kind: input, shape index: {}]   ;;  %s6303_s4 = inlined_call_operand.vmem [shape: f32[1,256], index: 4, kind: input, shape index: {}]   ;;  %s6304_s5 = inlined_call_operand.vmem [shape: f32[1,256], index: 5, kind: input, shape index: {}]   ;;  %s6305_s6 = inlined_call_operand.vmem [shape: f32[1,256], index: 6, kind: input, shape index: {}]   ;;  %s6306_s7 = inlined_call_operand.vmem [shape: bf16[256,512], index: 7, kind: input, shape index: {}]   ;;  %s6307_s8 = inlined_call_operand.vmem [shape: f32[1,512], index: 8, kind: input, shape index: {}]   ;;  %s6308_s9 = inlined_call_operand.vmem [shape: bf16[512,256], index: 9, kind: input, shape index: {}]   ;;  %s6309_s10 = inlined_call_operand.vmem [shape: f32[1,256], index: 10, kind: input, shape index: {}]   ;;  %s6310_s11 = inlined_call_operand.hbm [shape: f32[1,256], index: 11, kind: input, shape index: {}]   ;;  %s6311_s12 = inlined_call_operand.hbm [shape: f32[1,256], index: 12, kind: input, shape index: {}]   ;;  %s6312_s13 = inlined_call_operand.vmem [shape: f32[2,16,256], index: 13, kind: output, shape index: {}]  }
   0x1   :  { %19 = vsyncpa [#allocation5], 0  ;;  %s5075_s25 = smov 0  }
   0x2 LB: > { %s5081_s26 = sadd.s32 4294967295, %s4995_s25   ;;  %p4011_p0 = scmp.ge.s32.totalorder %s4995_s25, 1  ;;  %s4995_s25 = sphi %s5075_s25, %s25_s25  }
   0x3   : > { %p334_p1 = scmp.lt.s32.totalorder %s4995_s25, 3  ;;  %p6313_p2 = scmp.eq.s32.totalorder %s5081_s26, 0 }
   0x4   : > { %s4997_s28 = smov [#allocation2]   ;;  %s4998_s30 = smov [#allocation4]  }
   0x5   : > { %p5086_p3 = pnand %p4011_p0, %p334_p1  ;;  %s377_s29 = sshll.u32 %s4997_s28, 4  ;;  %s378_s29 = int_to_ptr.vmem [resolvable:$true] %s377_s29 }
   0x6   : > { %s388_s14 = sshll.u32 %s4998_s30, 4  ;;  %s4940_s16 = scalar_lea.vmem %s378_s29, 32  ;;  %s389_s14 = int_to_ptr.vmem [resolvable:$true] %s388_s14 }
   0x7   : > { %s6315_s27 = scalar_select %p5086_p3, 1, 0 }
   0x8   : > { %p4442_p4 = pneg %p5086_p3  ;;  %p4941_p7 = scmp.ne.s32.totalorder %s378_s29, %s4940_s16 }
   0x9   : > { %p4948_p10 = scmp.lt.s32.totalorder %s378_s29, %s378_s29  ;;  %p4949_p11 = scmp.lt.s32.totalorder %s4940_s16, %s4940_s16 }
   0xa   : > { %p5094_p5 = pnand %p6313_p2, %p4442_p4 }
   0xb   : > { %p4950_p12 = por %p4949_p11, %p4948_p10 }
   0xc   : > { %p4931_p6 = pneg %p5094_p5 }
   0xe   : > { %p4943_p8 = pnand %p4941_p7, %p4931_p6 }
  0x10   : > { %p4944_p9 = pneg %p4943_p8 }
  0x12   : > { %p4951_p13 = pnand %p4950_p12, %p4944_p9 }
  0x14   : > { %4954 = shalt.err (!%p4951_p13)
}
  0x15   : > { %4445 = dma.hbm_to_vmem [thread:$0]  (!%p5094_p5), %s6310_s11, 32, %s378_s29, [#allocation3]  }
  0x16   : > { %s4966_s19 = scalar_lea.vmem %s389_s14, 32  ;;  %p4974_p7 = scmp.lt.s32.totalorder %s389_s14, %s389_s14 }
  0x17   : > { %p4967_p0 = scmp.ne.s32.totalorder %s389_s14, %s4966_s19  ;;  %p4975_p8 = scmp.lt.s32.totalorder %s4966_s19, %s4966_s19 }
  0x19   : > { %p4969_p1 = pnand %p4967_p0, %p4931_p6  ;;  %p4976_p2 = por %p4975_p8, %p4974_p7 }
  0x1b   : > { %p4970_p4 = pneg %p4969_p1 }
  0x1d   : > { %p4977_p3 = pnand %p4976_p2, %p4970_p4 }
  0x1f   : > { %4980 = shalt.err (!%p4977_p3)
}
  0x20   : > { %4448 = dma.hbm_to_vmem [thread:$0]  (!%p5094_p5), %s6311_s12, 32, %s389_s14, [#allocation5]  }
  0x21   : > { %p6317_p9 = scmp.ne.s32.totalorder %s6315_s27, 0 }
  0x22   : > { %p6318_p10 = scmp.eq.s32.totalorder (!%p6317_p9), %s5081_s26, 0 }
  0x23   : > { %409 = sbr.rel (%p6317_p9) target bundleno = 6125 (0x17ed), region = 72 }
  0x28   : > { %4986 = dma.done.wait (%p6318_p10), [#allocation3], 32   ;;  %p6319_p6 = pmov %p6318_p10 }
  0x2a   : > { %4988 = vsyncadd (%p6319_p6), [#allocation3], 4294967264  ;;  %p6320_p11 = pmov %p6319_p6 }
  0x2b   : > { %p6321_p2 = pmov %p6319_p6 }
  0x2c   : > { %4990 = dma.done.wait (%p6320_p11), [#allocation5], 32  }
  0x2d   : > { %4992 = vsyncadd (%p6321_p2), [#allocation5], 4294967264  ;;  %v4469_v0 = vld [vmem:[%s6300_s1 + $0x15c] ss:$24 sps:$4 sm:$0xff]   ;;  %v4471_v1 = vld [vmem:[%s6300_s1 + $0x158] ss:$24 sps:$4 sm:$0xff]  }
  0x2e   : > { %1125 = vmatprep.subr.bf16.mxu1 %v4469_v0  ;;  %v4472_v2 = vld [vmem:[%s6300_s1 + $0x154] ss:$24 sps:$4 sm:$0xff]   ;;  %v4474_v3 = vld [vmem:[%s6300_s1 + $0x150] ss:$24 sps:$4 sm:$0xff]   ;;  %v4478_v6 = vld [vmem:[%s6300_s1 + $0x124] ss:$24 sps:$4 sm:$0xff]  }
  0x2f   : > { %1126 = vmatpush1.bf16.msra.mxu1 %v4471_v1  ;;  %v4475_v4 = vld [vmem:[%s6300_s1 + $0x12c] ss:$24 sps:$4 sm:$0xff]   ;;  %v4477_v5 = vld [vmem:[%s6300_s1 + $0x128] ss:$24 sps:$4 sm:$0xff]   ;;  %1082 = vmatprep.subr.bf16.mxu0 %v4472_v2  ;;  %v4481_v8 = vld [vmem:[%s6300_s1 + $0xfc] ss:$24 sps:$4 sm:$0xff]  }
  0x30   : > { %1083 = vmatpush1.bf16.msra.mxu0 %v4474_v3  ;;  %1127 = vmatprep.subr.bf16.mxu1 %v4475_v4  ;;  %v4480_v7 = vld [vmem:[%s6300_s1 + $0x120] ss:$24 sps:$4 sm:$0xff]   ;;  %v4484_v10 = vld [vmem:[%s6300_s1 + $0xf4] ss:$24 sps:$4 sm:$0xff]   ;;  %v4486_v12 = vld [vmem:[%s6300_s1 + $0xf0] ss:$24 sps:$4 sm:$0xff]  }
  0x31   : > { %1084 = vmatprep.subr.bf16.mxu0 %v4478_v6  ;;  %v4483_v9 = vld [vmem:[%s6300_s1 + $0xf8] ss:$24 sps:$4 sm:$0xff]   ;;  %v4487_v11 = vld [vmem:[%s6300_s1 + $0xcc] ss:$24 sps:$4 sm:$0xff]   ;;  %v4489_v14 = vld [vmem:[%s6300_s1 + $0xc8] ss:$24 sps:$4 sm:$0xff]  }
  0x32   : > { %v4490_v13 = vld [vmem:[%s6300_s1 + $0xc4] ss:$24 sps:$4 sm:$0xff]   ;;  %v4492_v16 = vld [vmem:[%s6300_s1 + $0xc0] ss:$24 sps:$4 sm:$0xff]   ;;  %v4496_v17 = vld [vmem:[%s6300_s1 + $0x94] ss:$24 sps:$4 sm:$0xff]  }
  0x33   : > { %1128 = vmatpush1.bf16.msra.mxu1 %v4477_v5  ;;  %v4493_v15 = vld [vmem:[%s6300_s1 + $0x9c] ss:$24 sps:$4 sm:$0xff]   ;;  %v4495_v18 = vld [vmem:[%s6300_s1 + $0x98] ss:$24 sps:$4 sm:$0xff]   ;;  %v4499_v19 = vld [vmem:[%s6300_s1 + $0x6c] ss:$24 sps:$4 sm:$0xff]  }
  0x34   : > { %1129 = vmatprep.subr.bf16.mxu1 %v4481_v8  ;;  %1085 = vmatpush1.bf16.msra.mxu0 %v4480_v7  ;;  %v4498_v20 = vld [vmem:[%s6300_s1 + $0x90] ss:$24 sps:$4 sm:$0xff]   ;;  %v4502_v21 = vld [vmem:[%s6300_s1 + $0x64] ss:$24 sps:$4 sm:$0xff]   ;;  %v4504_v24 = vld [vmem:[%s6300_s1 + $0x60] ss:$24 sps:$4 sm:$0xff]   ;;  %v572_v7 = vlaneseq }
  0x35   : > { %1086 = vmatprep.subr.bf16.mxu0 %v4484_v10  ;;  %v4501_v22 = vld [vmem:[%s6300_s1 + $0x68] ss:$24 sps:$4 sm:$0xff]   ;;  %v4505_v23 = vld [vmem:[%s6300_s1 + $0x3c] ss:$24 sps:$4 sm:$0xff]   ;;  %v4507_v26 = vld [vmem:[%s6300_s1 + $0x38] ss:$24 sps:$4 sm:$0xff]  }
  0x36   : > { %v4508_v25 = vld [vmem:[%s6300_s1 + $0x34] ss:$24 sps:$4 sm:$0xff]   ;;  %v4510_v28 = vld [vmem:[%s6300_s1 + $0x30] ss:$24 sps:$4 sm:$0xff]   ;;  %v4514_v29 = vld [vmem:[%s6300_s1 + $0x4] ss:$24 sps:$4 sm:$0xff]  }
  0x37   : > { %1130 = vmatpush1.bf16.msra.mxu1 %v4483_v9  ;;  %v4511_v27 = vld [vmem:[%s6300_s1 + $0xc] ss:$24 sps:$4 sm:$0xff]   ;;  %v4513_v30 = vld [vmem:[%s6300_s1 + $0x8] ss:$24 sps:$4 sm:$0xff]   ;;  %v4517_v31 = vld [vmem:[%s6300_s1 + $0x2dc] ss:$24 sps:$4 sm:$0xff]  }
  0x38   : > { %1131 = vmatprep.subr.bf16.mxu1 %v4487_v11  ;;  %1087 = vmatpush1.bf16.msra.mxu0 %v4486_v12  ;;  %p457_p3 = scmp.lt.s32.totalorder %s5081_s26, 1  ;;  %v4516_v32 = vld [vmem:[%s6300_s1] ss:$24 sps:$4 sm:$0xff]   ;;  %v4520_v33 = vld [vmem:[%s6300_s1 + $0x2d4] ss:$24 sps:$4 sm:$0xff]   ;;  %v4999_v6 = vmov 0.0  }
  0x39   : > { %1088 = vmatprep.subr.bf16.mxu0 %v4490_v13  ;;  %v4519_v34 = vld [vmem:[%s6300_s1 + $0x2d8] ss:$24 sps:$4 sm:$0xff]   ;;  %v4523_v35 = vld [vmem:[%s6300_s1 + $0x2ac] ss:$24 sps:$4 sm:$0xff]   ;;  %v4525_v38 = vld [vmem:[%s6300_s1 + $0x2a8] ss:$24 sps:$4 sm:$0xff]  }
  0x3a   : > { %s6323_s26 = smov (!%p457_p3, %s5081_s26), 1  ;;  %v4522_v36 = vld [vmem:[%s6300_s1 + $0x2d0] ss:$24 sps:$4 sm:$0xff]   ;;  %v4526_v37 = vld [vmem:[%s6300_s1 + $0x2a4] ss:$24 sps:$4 sm:$0xff]   ;;  %vm5000_vm0 = vmmov 0  }
  0x3b   : > { %1132 = vmatpush1.bf16.msra.mxu1 %v4489_v14  ;;  %v4529_v39 = vld [vmem:[%s6300_s1 + $0x27c] ss:$24 sps:$4 sm:$0xff]   ;;  %s4304_s29 = sshll.u32 %s6323_s26, 5  ;;  %v4528_v40 = vld [vmem:[%s6300_s1 + $0x2a0] ss:$24 sps:$4 sm:$0xff]   ;;  %v5341_v8 = vshrl.u32 %v572_v7, 7 }
  0x3c   : > { %1133 = vmatprep.subr.bf16.mxu1 %v4493_v15  ;;  %1089 = vmatpush1.bf16.msra.mxu0 %v4492_v16  ;;  %v4532_v41 = vld [vmem:[%s6300_s1 + $0x274] ss:$24 sps:$4 sm:$0xff]   ;;  %v4531_v42 = vld [vmem:[%s6300_s1 + $0x278] ss:$24 sps:$4 sm:$0xff]   ;;  %s5265_s21 = scalar_lea.vmem %s6299_s0, %s4304_s29  ;;  %v4538_v45 = vld [vmem:[%s6300_s1 + $0x244] ss:$24 sps:$4 sm:$0xff]   ;;  %s466_s14 = scalar_lea.vmem %s6312_s13, %s4304_s29 }
  0x3d   : > { %1090 = vmatprep.subr.bf16.mxu0 %v4496_v17  ;;  %v4535_v43 = vld [vmem:[%s6300_s1 + $0x24c] ss:$24 sps:$4 sm:$0xff]   ;;  %v4534_v44 = vld [vmem:[%s6300_s1 + $0x270] ss:$24 sps:$4 sm:$0xff]   ;;  %v471_v47 = vld [vmem:[%s5265_s21 + $0x18] sm:$0xff]  ;;  %v582_v9 = vsub.s32 2, %v5341_v8 }
  0x3e   : > { %v469_v46 = vld [vmem:[%s5265_s21 + $0x8] sm:$0xff]  ;;  %v4540_v49 = vld [vmem:[%s6300_s1 + $0x240] ss:$24 sps:$4 sm:$0xff]   ;;  %v4541_v50 = vld [vmem:[%s6300_s1 + $0x21c] ss:$24 sps:$4 sm:$0xff]   ;;  %v5355_v15 = vsub.s32 0, %v5341_v8 }
  0x3f   : > { %1134 = vmatpush1.bf16.msra.mxu1 %v4495_v18  ;;  %v4537_v48 = vld [vmem:[%s6300_s1 + $0x248] ss:$24 sps:$4 sm:$0xff]   ;;  %v473_v51 = vpack.c.bf16 %v471_v47, %v469_v46  ;;  %v4544_v52 = vld [vmem:[%s6300_s1 + $0x214] ss:$24 sps:$4 sm:$0xff]   ;;  %v4543_v53 = vld [vmem:[%s6300_s1 + $0x218] ss:$24 sps:$4 sm:$0xff]  }
  0x40   : > { %1135 = vmatprep.subr.bf16.mxu1 %v4499_v19  ;;  %1091 = vmatpush1.bf16.msra.mxu0 %v4498_v20  ;;  %v4547_v54 = vld [vmem:[%s6300_s1 + $0x1ec] ss:$24 sps:$4 sm:$0xff]   ;;  %v4546_v55 = vld [vmem:[%s6300_s1 + $0x210] ss:$24 sps:$4 sm:$0xff]   ;;  %v4553_v58 = vld [vmem:[%s6300_s1 + $0x1bc] ss:$24 sps:$4 sm:$0xff]  }
  0x41   : > { %1092 = vmatprep.subr.bf16.mxu0 %v4502_v21  ;;  %1157 = vmatprep.mubr.bf16.mxu1 %v473_v51  ;;  %v4550_v56 = vld [vmem:[%s6300_s1 + $0x1e4] ss:$24 sps:$4 sm:$0xff]   ;;  %v4549_v57 = vld [vmem:[%s6300_s1 + $0x1e8] ss:$24 sps:$4 sm:$0xff]   ;;  %v4556_v60 = vld [vmem:[%s6300_s1 + $0x1b4] ss:$24 sps:$4 sm:$0xff]  }
  0x42   : > { %1114 = vmatprep.mubr.bf16.mxu0 %v473_v51  ;;  %v4552_v59 = vld [vmem:[%s6300_s1 + $0x1e0] ss:$24 sps:$4 sm:$0xff]   ;;  %v4559_v62 = vld [vmem:[%s6300_s1 + $0x18c] ss:$24 sps:$4 sm:$0xff]   ;;  %v4558_v63 = vld [vmem:[%s6300_s1 + $0x1b0] ss:$24 sps:$4 sm:$0xff]  }
  0x43   : > { %1136 = vmatpush1.bf16.msra.mxu1 %v4501_v22  ;;  %v4555_v61 = vld [vmem:[%s6300_s1 + $0x1b8] ss:$24 sps:$4 sm:$0xff]   ;;  %v4562_v0 = vld [vmem:[%s6300_s1 + $0x184] ss:$24 sps:$4 sm:$0xff]   ;;  %v4561_v1 = vld [vmem:[%s6300_s1 + $0x188] ss:$24 sps:$4 sm:$0xff]  }
  0x44   : > { %1137 = vmatprep.subr.bf16.mxu1 %v4505_v23  ;;  %1093 = vmatpush1.bf16.msra.mxu0 %v4504_v24  ;;  %v468_v2 = vld [vmem:[%s5265_s21] sm:$0xff]  ;;  %v470_v3 = vld [vmem:[%s5265_s21 + $0x10] sm:$0xff]  ;;  %vm1214_vm1 = vcmask 261120   ;;  %vm1264_vm2 = vcmask 130048   ;;  %s5001_s27 = smov 96   ;;  %s5002_s30 = smov 64  }
  0x45   : > { %1094 = vmatprep.subr.bf16.mxu0 %v4508_v25  ;;  %v4564_v4 = vld [vmem:[%s6300_s1 + $0x180] ss:$24 sps:$4 sm:$0xff]   ;;  %v5334_v5 = vpack.c.bf16 %v470_v3, %v468_v2  ;;  %v4592_v46 = vld [vmem:[%s6300_s1 + $0x2b0] ss:$24 sps:$4 sm:$0xff]   ;;  %v4597_v47 = vld [vmem:[%s6300_s1 + $0x284] ss:$24 sps:$4 sm:$0xff]  }
  0x46   : > { %v5347_v10 = vld [vmem:[%s6301_s2] sm:$0x3f]  ;;  %s5004_s19 = smov 32  }
  0x47   : > { %1138 = vmatpush1.bf16.msra.mxu1 %v4507_v26  ;;  %v583_v12 = vrot.slane %v5347_v10, %v582_v9  ;;  %v575_v20 = vrot.slane %v5347_v10, %v5355_v15 }
  0x48   : > { %1139 = vmatprep.subr.bf16.mxu1 %v4511_v27  ;;  %1095 = vmatpush1.bf16.msra.mxu0 %v4510_v28  ;;  %v4565_v27 = vld [vmem:[%s6300_s1 + $0x160] ss:$24 sps:$4 sm:$0xff]   ;;  %v4567_v28 = vld [vmem:[%s6300_s1 + $0x164] ss:$24 sps:$4 sm:$0xff]  }
  0x49   : > { %1096 = vmatprep.subr.bf16.mxu0 %v4514_v29  ;;  %v4570_v29 = vld [vmem:[%s6300_s1 + $0x134] ss:$24 sps:$4 sm:$0xff]  }
  0x4b   : > { %1140 = vmatpush1.bf16.msra.mxu1 %v4513_v30  ;;  %v4568_v30 = vld [vmem:[%s6300_s1 + $0x130] ss:$24 sps:$4 sm:$0xff]  }
  0x4c   : > { %1141 = vmatprep.subr.bf16.mxu1 %v4517_v31  ;;  %1097 = vmatpush1.bf16.msra.mxu0 %v4516_v32  ;;  %v4573_v31 = vld [vmem:[%s6300_s1 + $0x104] ss:$24 sps:$4 sm:$0xff]   ;;  %v4571_v32 = vld [vmem:[%s6300_s1 + $0x100] ss:$24 sps:$4 sm:$0xff]  }
  0x4d   : > { %1098 = vmatprep.subr.bf16.mxu0 %v4520_v33  ;;  %v4576_v33 = vld [vmem:[%s6300_s1 + $0xd4] ss:$24 sps:$4 sm:$0xff]  }
  0x4f   : > { %1142 = vmatpush2.bf16.msra.mxu1 %v4519_v34  ;;  %v4574_v34 = vld [vmem:[%s6300_s1 + $0xd0] ss:$24 sps:$4 sm:$0xff]  }
  0x50   : > { %1143 = vmatprep.subr.bf16.mxu1 %v4523_v35  ;;  %1099 = vmatpush2.bf16.msra.mxu0 %v4522_v36  ;;  %v4579_v35 = vld [vmem:[%s6300_s1 + $0xa4] ss:$24 sps:$4 sm:$0xff]   ;;  %v4577_v36 = vld [vmem:[%s6300_s1 + $0xa0] ss:$24 sps:$4 sm:$0xff]  }
  0x51   : > { %1100 = vmatprep.subr.bf16.mxu0 %v4526_v37  ;;  %v4582_v37 = vld [vmem:[%s6300_s1 + $0x74] ss:$24 sps:$4 sm:$0xff]  }
  0x53   : > { %1144 = vmatpush2.bf16.msra.mxu1 %v4525_v38  ;;  %v4580_v38 = vld [vmem:[%s6300_s1 + $0x70] ss:$24 sps:$4 sm:$0xff]  }
  0x54   : > { %1145 = vmatprep.subr.bf16.mxu1 %v4529_v39  ;;  %1101 = vmatpush2.bf16.msra.mxu0 %v4528_v40  ;;  %v4585_v39 = vld [vmem:[%s6300_s1 + $0x44] ss:$24 sps:$4 sm:$0xff]   ;;  %v4583_v40 = vld [vmem:[%s6300_s1 + $0x40] ss:$24 sps:$4 sm:$0xff]  }
  0x55   : > { %1102 = vmatprep.subr.bf16.mxu0 %v4532_v41  ;;  %v4588_v41 = vld [vmem:[%s6300_s1 + $0x14] ss:$24 sps:$4 sm:$0xff]  }
  0x57   : > { %1146 = vmatpush2.bf16.msra.mxu1 %v4531_v42  ;;  %v4586_v42 = vld [vmem:[%s6300_s1 + $0x10] ss:$24 sps:$4 sm:$0xff]  }
  0x58   : > { %1147 = vmatprep.subr.bf16.mxu1 %v4535_v43  ;;  %1103 = vmatpush2.bf16.msra.mxu0 %v4534_v44  ;;  %v4591_v43 = vld [vmem:[%s6300_s1 + $0x2e4] ss:$24 sps:$4 sm:$0xff]   ;;  %v4589_v44 = vld [vmem:[%s6300_s1 + $0x2e0] ss:$24 sps:$4 sm:$0xff]  }
  0x59   : > { %1104 = vmatprep.subr.bf16.mxu0 %v4538_v45  ;;  %v4594_v45 = vld [vmem:[%s6300_s1 + $0x2b4] ss:$24 sps:$4 sm:$0xff]  }
  0x5b   : > { %1148 = vmatpush2.bf16.msra.mxu1 %v4537_v48  ;;  %v4595_v48 = vld [vmem:[%s6300_s1 + $0x280] ss:$24 sps:$4 sm:$0xff]  }
  0x5c   : > { %1149 = vmatprep.subr.bf16.mxu1 %v4541_v50  ;;  %1105 = vmatpush2.bf16.msra.mxu0 %v4540_v49  ;;  %v4600_v49 = vld [vmem:[%s6300_s1 + $0x254] ss:$24 sps:$4 sm:$0xff]   ;;  %v4598_v50 = vld [vmem:[%s6300_s1 + $0x250] ss:$24 sps:$4 sm:$0xff]  }
  0x5d   : > { %1106 = vmatprep.subr.bf16.mxu0 %v4544_v52  ;;  %v4601_v52 = vld [vmem:[%s6300_s1 + $0x220] ss:$24 sps:$4 sm:$0xff]  }
  0x5f   : > { %1150 = vmatpush2.bf16.msra.mxu1 %v4543_v53  ;;  %v4606_v53 = vld [vmem:[%s6300_s1 + $0x1f4] ss:$24 sps:$4 sm:$0xff]  }
  0x60   : > { %1151 = vmatprep.subr.bf16.mxu1 %v4547_v54  ;;  %1107 = vmatpush2.bf16.msra.mxu0 %v4546_v55  ;;  %v4604_v54 = vld [vmem:[%s6300_s1 + $0x1f0] ss:$24 sps:$4 sm:$0xff]   ;;  %v4609_v55 = vld [vmem:[%s6300_s1 + $0x1c4] ss:$24 sps:$4 sm:$0xff]  }
  0x61   : > { %1108 = vmatprep.subr.bf16.mxu0 %v4550_v56  ;;  %v4607_v56 = vld [vmem:[%s6300_s1 + $0x1c0] ss:$24 sps:$4 sm:$0xff]  }
  0x63   : > { %1152 = vmatpush2.bf16.msra.mxu1 %v4549_v57  ;;  %v4612_v57 = vld [vmem:[%s6300_s1 + $0x194] ss:$24 sps:$4 sm:$0xff]  }
  0x64   : > { %1153 = vmatprep.subr.bf16.mxu1 %v4553_v58  ;;  %1109 = vmatpush2.bf16.msra.mxu0 %v4552_v59  ;;  %v4610_v58 = vld [vmem:[%s6300_s1 + $0x190] ss:$24 sps:$4 sm:$0xff]  }
  0x65   : > { %1110 = vmatprep.subr.bf16.mxu0 %v4556_v60 }
  0x67   : > { %1154 = vmatpush2.bf16.msra.mxu1 %v4555_v61 }
  0x68   : > { %1155 = vmatprep.subr.bf16.mxu1 %v4559_v62  ;;  %1111 = vmatpush2.bf16.msra.mxu0 %v4558_v63 }
  0x69   : > { %1112 = vmatprep.subr.bf16.mxu0 %v4562_v0 }
  0x6b   : > { %1156 = vmatpush2.bf16.msra.mxu1 %v4561_v1 }
  0x6c   : > { %1113 = vmatpush2.bf16.msra.mxu0 %v4564_v4  ;;  %4338 = vmatprep.subr.bf16.mxu1 %v4999_v6 }
  0x6d   : > { %1168 = vmatprep.subr.bf16.mxu0 %v4567_v28 }
  0x6e   : > { %1158 = vmatmul.mubr.bf16.vlgmr.msra.gmra.mxu1 %v5334_v5 }
  0x6f   : > { %1115 = vmatmul.mubr.bf16.vlgmr.msra.gmra.mxu0 %v5334_v5  ;;  %4340 = vmatprep.mubr.msk.bf16.mxu1 %vm5000_vm0, %v4999_v6 }
  0x70   : > { %1200 = vmatprep.mubr.bf16.mxu0 %v473_v51  ;;  %1169 = vmatpush1.bf16.msra.mxu0 %v4565_v27  ;;  %v4603_v51 = vld [vmem:[%s6300_s1 + $0x224] ss:$24 sps:$4 sm:$0xff]  }
  0x71   : > { %1170 = vmatprep.subr.bf16.mxu0 %v4570_v29 }
  0x74   : > { %1171 = vmatpush1.bf16.msra.mxu0 %v4568_v30 }
  0x75   : > { %1172 = vmatprep.subr.bf16.mxu0 %v4573_v31 }
  0x78   : > { %1173 = vmatpush1.bf16.msra.mxu0 %v4571_v32 }
  0x79   : > { %1174 = vmatprep.subr.bf16.mxu0 %v4576_v33 }
  0x7c   : > { %1175 = vmatpush1.bf16.msra.mxu0 %v4574_v34 }
  0x7d   : > { %1176 = vmatprep.subr.bf16.mxu0 %v4579_v35 }
  0x80   : > { %1177 = vmatpush1.bf16.msra.mxu0 %v4577_v36 }
  0x81   : > { %1178 = vmatprep.subr.bf16.mxu0 %v4582_v37 }
  0x84   : > { %1179 = vmatpush1.bf16.msra.mxu0 %v4580_v38 }
  0x85   : > { %1180 = vmatprep.subr.bf16.mxu0 %v4585_v39 }
  0x88   : > { %1181 = vmatpush1.bf16.msra.mxu0 %v4583_v40 }
  0x89   : > { %1182 = vmatprep.subr.bf16.mxu0 %v4588_v41 }
  0x8c   : > { %1183 = vmatpush1.bf16.msra.mxu0 %v4586_v42 }
  0x8d   : > { %1184 = vmatprep.subr.bf16.mxu0 %v4591_v43 }
  0x90   : > { %1185 = vmatpush2.bf16.msra.mxu0 %v4589_v44 }
  0x91   : > { %1186 = vmatprep.subr.bf16.mxu0 %v4594_v45 }
  0x94   : > { %1187 = vmatpush2.bf16.msra.mxu0 %v4592_v46 }
  0x95   : > { %1188 = vmatprep.subr.bf16.mxu0 %v4597_v47 }
  0x98   : > { %1189 = vmatpush2.bf16.msra.mxu0 %v4595_v48 }
  0x99   : > { %1190 = vmatprep.subr.bf16.mxu0 %v4600_v49 }
  0x9c   : > { %1191 = vmatpush2.bf16.msra.mxu0 %v4598_v50 }
  0x9d   : > { %1192 = vmatprep.subr.bf16.mxu0 %v4603_v51 }
  0xa0   : > { %1193 = vmatpush2.bf16.msra.mxu0 %v4601_v52 }
  0xa1   : > { %1194 = vmatprep.subr.bf16.mxu0 %v4606_v53 }
  0xa4   : > { %1195 = vmatpush2.bf16.msra.mxu0 %v4604_v54 }
  0xa5   : > { %1196 = vmatprep.subr.bf16.mxu0 %v4609_v55 }
  0xa8   : > { %1197 = vmatpush2.bf16.msra.mxu0 %v4607_v56 }
  0xa9   : > { %1198 = vmatprep.subr.bf16.mxu0 %v4612_v57 }
  0xac   : > { %1199 = vmatpush2.bf16.msra.mxu0 %v4610_v58 }
  0xaf   : > { %1201 = vmatmul.mubr.bf16.vlgmr.msra.gmra.mxu0 %v5334_v5 }
 0x12e   : > { %v1159_v11 = vpop.f32.mrf.mxu1 }
 0x12f   : > { %v1116_v14 = vpop.f32.mrf.mxu0  ;;  %v1160_v17 = vadd.f32 %v1159_v11, %v583_v12 }
 0x130   : > { %v5352_v13 = vpop.f32.mrf.mxu1  ;;  %v1117_v24 = vadd.f32 %v1116_v14, %v575_v20 }
 0x131   : > { %v5357_v19 = vpop.f32.mrf.mxu0 }
 0x132   : > { %v1163_v16 = vpop.f32.mrf.mxu1 }
 0x133   : > { %v1164_v18 = vadd.f32 %v1163_v16, %v583_v12  ;;  %v1120_v23 = vpop.f32.mrf.mxu0 }
 0x134   : > { %v1121_v25 = vadd.f32 %v1120_v23, %v575_v20  ;;  %v5469_v59 = vpop.f32.mrf.mxu1  ;;  %v590_v23 = vsub.s32 4, %v5341_v8 }
 0x135   : > { %v5361_v21 = vpack.c.bf16 %v1164_v18, %v1160_v17 }
 0x136   : > { %v5366_v26 = vpack.c.bf16 %v1121_v25, %v1117_v24  ;;  %v591_v25 = vrot.slane %v5347_v10, %v590_v23  ;;  %v4621_v23 = vld [vmem:[%s6302_s3 + $0x14] ss:$8 sps:$4 sm:$0xff]  }
 0x137   : > { %v1219_v22 = vsel %vm1214_vm1, %v5361_v21, 0 }
 0x138   : > { %4339 = vmatpush3.bf16.xpose.msra.mxu1 %v1219_v22  ;;  %v5477_v22 = vpop.f32.mrf.mxu0 }
 0x139   : > { %4344 = vmatprep.subr.bf16.mxu1 %v4999_v6 }
 0x13f   : > { %4341 = vmatmul.mubr.msk.bf16.vlgmr.msra.gmra.mxu1 %vm1214_vm1, %v5366_v26 }
 0x140   : > { %4346 = vmatprep.mubr.msk.bf16.mxu1 %vm5000_vm0, %v4999_v6 }
 0x16f   : > { %v1202_v24 = vpop.f32.mrf.mxu0 }
 0x170   : > { %v1203_v28 = vadd.f32 %v1202_v24, %v591_v25  ;;  %v5003_v24 = vmov 0  }
 0x171   : > { %v5481_v27 = vpop.f32.mrf.mxu0  ;;  %1783 = vmatprep.mubr.bf16.mxu0 %v5003_v24 }
 0x173   : > { %v1206_v29 = vpop.f32.mrf.mxu0 }
 0x174   : > { %v1207_v30 = vadd.f32 %v1206_v29, %v591_v25 }
 0x176   : > { %v5483_v31 = vpack.c.bf16 %v1207_v30, %v1203_v28  ;;  %v4619_v30 = vld [vmem:[%s6302_s3 + $0x10] ss:$8 sps:$4 sm:$0xff]  }
 0x178   : > { %4345 = vmatpush3.bf16.msra.mxu1 %v5483_v31 }
 0x179   : > { %4350 = vmatprep.subr.bf16.mxu1 %v4999_v6 }
 0x1ff   : > { %v1255_v60 = vpop.f32.mrf.mxu1 }
 0x200   : > { %v1262_v61 = vmul.f32 0.17677669, %v1255_v60 }
 0x201   : > { %v4342_v62 = vpop.f32.mrf.mxu1 }
 0x202   : > { %v1265_v63 = vsel %vm1264_vm2, %v1262_v61, -inf }
 0x203   : > { %1266 = vmax.xlane.f32.xlu0 %v1265_v63  ;;  %v1258_v0 = vpop.f32.mrf.mxu1 }
 0x204   : > { %v1263_v1 = vmul.f32 0.17677669, %v1258_v0 }
 0x205   : > { %v4343_v2 = vpop.f32.mrf.mxu1 }
 0x206   : > { %v1268_v3 = vsel %vm1264_vm2, %v1263_v1, -inf }
 0x207   : > { %1269 = vmax.xlane.f32.xlu0 %v1268_v3  ;;  %v4615_v3 = vld [vmem:[%s6302_s3 + $0x34] ss:$8 sps:$4 sm:$0xff]  }
 0x21d   : > { %1341 = vrot.lane.b32.xlu0 %v5361_v21, %s5001_s27 }
 0x28c   : > { %v1267_v4 = vpop.xlane.xlu0 %1266 }
 0x28d   : > { %v1271_v5 = vsub.f32 %v1262_v61, %v1267_v4 }
 0x28f   : > { %v1273_v7 = vmul.f32 1.442695, %v1271_v5 }
 0x290   : > { %v1270_v11 = vpop.xlane.xlu0 %1269 }
 0x291   : > { %4853 = vpow2.f32 %v1273_v7  ;;  %v1272_v12 = vsub.f32 %v1263_v1, %v1270_v11 }
 0x293   : > { %v1275_v14 = vmul.f32 1.442695, %v1272_v12 }
 0x294   : > { %v1342_v38 = vpop.permute.xlu0 %1341 }
 0x295   : > { %4855 = vpow2.f32 %v1275_v14  ;;  %v1347_v40 = vsel %vm1214_vm1, %v1342_v38, 0 }
 0x29e   : > { %v4854_v16 = vpop.eup %4853 }
 0x29f   : > { %v1277_v17 = vsel %vm1264_vm2, %v4854_v16, 0.0 }
 0x2a0   : > { %1278 = vadd.xlane.f32.xlu1 %v1277_v17 }
 0x2a2   : > { %v4856_v18 = vpop.eup %4855 }
 0x2a3   : > { %v1280_v20 = vsel %vm1264_vm2, %v4856_v18, 0.0 }
 0x2a4   : > { %1281 = vadd.xlane.f32.xlu1 %v1280_v20  ;;  %v4616_v20 = vld [vmem:[%s6302_s3 + $0x20] ss:$8 sps:$4 sm:$0xff]  }
 0x2b5   : > { %1338 = vrot.lane.b32.xlu1 %v5366_v26, %s5001_s27 }
 0x329   : > { %v1279_v32 = vpop.xlane.xlu1 %1278 }
 0x32a   : > { %4857 = vrcp.f32 %v1279_v32 }
 0x32d   : > { %v1282_v33 = vpop.xlane.xlu1 %1281 }
 0x32e   : > { %4859 = vrcp.f32 %v1282_v33  ;;  %v4624_v33 = vld [vmem:[%s6302_s3 + $0x4] ss:$8 sps:$4 sm:$0xff]  }
 0x331   : > { %v1339_v41 = vpop.permute.xlu1 %1338 }
 0x337   : > { %v4858_v34 = vpop.eup %4857 }
 0x338   : > { %v1285_v36 = vmul.f32 %v4858_v34, %v4854_v16  ;;  %v4613_v16 = vld [vmem:[%s6302_s3 + $0x30] ss:$8 sps:$4 sm:$0xff]  }
 0x33b   : > { %v4860_v35 = vpop.eup %4859 }
 0x33c   : > { %v1286_v37 = vmul.f32 %v4860_v35, %v4856_v18  ;;  %v4618_v18 = vld [vmem:[%s6302_s3 + $0x24] ss:$8 sps:$4 sm:$0xff]   ;;  %v4622_v35 = vld [vmem:[%s6302_s3] ss:$8 sps:$4 sm:$0xff]  }
 0x33e   : > { %v1287_v39 = vpack.c.bf16 %v1286_v37, %v1285_v36 }
 0x340   : > { %4347 = vmatmul.mubr.msk.bf16.vlgmr.msra.gmra.mxu1 %vm1264_vm2, %v1287_v39 }
 0x341   : > { %4351 = vmatpush3.bf16.xpose.msra.mxu1 %v1347_v40  ;;  %4352 = vmatprep.mubr.msk.bf16.mxu1 %vm5000_vm0, %v4999_v6 }
 0x342   : > { %4356 = vmatprep.subr.bf16.mxu1 %v4999_v6 }
 0x348   : > { %4353 = vmatmul.mubr.msk.bf16.vlgmr.msra.gmra.mxu1 %vm1214_vm1, %v1339_v41 }
 0x349   : > { %4358 = vmatprep.mubr.msk.bf16.mxu1 %vm5000_vm0, %v4999_v6 }
 0x400   : > { %v5497_v42 = vpop.f32.mrf.mxu1 }
 0x402   : > { %v4348_v43 = vpop.f32.mrf.mxu1 }
 0x404   : > { %v5499_v44 = vpop.f32.mrf.mxu1 }
 0x405   : > { %v1332_v45 = vpack.c.bf16 %v5499_v44, %v5497_v42 }
 0x406   : > { %v4349_v46 = vpop.f32.mrf.mxu1 }
 0x408   : > { %v1383_v47 = vpop.f32.mrf.mxu1 }
 0x409   : > { %v1390_v48 = vmul.f32 0.17677669, %v1383_v47 }
 0x40a   : > { %v4354_v49 = vpop.f32.mrf.mxu1 }
 0x40b   : > { %v1392_v50 = vsel %vm1264_vm2, %v1390_v48, -inf }
 0x40c   : > { %1393 = vmax.xlane.f32.xlu1 %v1392_v50  ;;  %v1386_v51 = vpop.f32.mrf.mxu1 }
 0x40d   : > { %v1391_v52 = vmul.f32 0.17677669, %v1386_v51 }
 0x40e   : > { %v4355_v53 = vpop.f32.mrf.mxu1 }
 0x40f   : > { %v1395_v54 = vsel %vm1264_vm2, %v1391_v52, -inf }
 0x410   : > { %1396 = vmax.xlane.f32.xlu0 %v1395_v54 }
 0x495   : > { %v1394_v55 = vpop.xlane.xlu1 %1393 }
 0x496   : > { %v1398_v56 = vsub.f32 %v1390_v48, %v1394_v55 }
 0x498   : > { %v1400_v57 = vmul.f32 1.442695, %v1398_v56 }
 0x499   : > { %v1397_v58 = vpop.xlane.xlu0 %1396 }
 0x49a   : > { %4861 = vpow2.f32 %v1400_v57  ;;  %v1399_v60 = vsub.f32 %v1391_v52, %v1397_v58 }
 0x49c   : > { %v1402_v61 = vmul.f32 1.442695, %v1399_v60 }
 0x49e   : > { %4863 = vpow2.f32 %v1402_v61 }
 0x4a7   : > { %v4862_v62 = vpop.eup %4861 }
 0x4a8   : > { %v1404_v63 = vsel %vm1264_vm2, %v4862_v62, 0.0 }
 0x4a9   : > { %1405 = vadd.xlane.f32.xlu0 %v1404_v63 }
 0x4ab   : > { %v4864_v0 = vpop.eup %4863 }
 0x4ac   : > { %v1407_v1 = vsel %vm1264_vm2, %v4864_v0, 0.0 }
 0x4ad   : > { %1408 = vadd.xlane.f32.xlu1 %v1407_v1 }
 0x4be   : > { %1602 = vrot.lane.b32.xlu1 %v5361_v21, %s5002_s30 }
 0x4bf   : > { %1416 = vrot.lane.b32.xlu0 %v5483_v31, %s5001_s27 }
 0x4c2   : > { %1600 = vrot.lane.b32.xlu1 %v5366_v26, %s5002_s30 }
 0x532   : > { %v1406_v2 = vpop.xlane.xlu0 %1405 }
 0x533   : > { %4865 = vrcp.f32 %v1406_v2 }
 0x536   : > { %v1409_v4 = vpop.xlane.xlu1 %1408  ;;  %v1417_v5 = vpop.permute.xlu0 %1416 }
 0x537   : > { %4867 = vrcp.f32 %v1409_v4  ;;  %4357 = vmatpush3.bf16.msra.mxu1 %v1417_v5 }
 0x538   : > { %1503 = vmatprep.subr.bf16.mxu1 %v4615_v3 }
 0x53a   : > { %v1603_v36 = vpop.permute.xlu1 %1602 }
 0x53b   : > { %v1608_v37 = vsel %vm1214_vm1, %v1603_v36, 0 }
 0x53e   : > { %v1601_v38 = vpop.permute.xlu1 %1600 }
 0x540   : > { %v4866_v7 = vpop.eup %4865 }
 0x541   : > { %v1412_v12 = vmul.f32 %v4866_v7, %v4862_v62 }
 0x544   : > { %v4868_v11 = vpop.eup %4867 }
 0x545   : > { %v1413_v14 = vmul.f32 %v4868_v11, %v4864_v0  ;;  %v4627_v11 = vld [vmem:[%s6302_s3 + $0x54] ss:$8 sps:$4 sm:$0xff]  }
 0x546   : > { %1763 = vmatprep.subr.bf16.mxu0 %v4627_v11 }
 0x547   : > { %v1414_v17 = vpack.c.bf16 %v1413_v14, %v1412_v12 }
 0x549   : > { %4359 = vmatmul.mubr.msk.bf16.vlgmr.msra.gmra.mxu1 %vm1264_vm2, %v1414_v17 }
 0x54a   : > { %1504 = vmatpush1.bf16.msra.mxu1 %v4613_v16  ;;  %1523 = vmatprep.mubr.bf16.mxu1 %v5003_v24 }
 0x54b   : > { %1505 = vmatprep.subr.bf16.mxu1 %v4618_v18 }
 0x54e   : > { %1506 = vmatpush1.bf16.msra.mxu1 %v4616_v20 }
 0x54f   : > { %1569 = vmatprep.subr.bf16.mxu1 %v4621_v23 }
 0x609   : > { %v1456_v25 = vpop.f32.mrf.mxu1 }
 0x60b   : > { %v4360_v28 = vpop.f32.mrf.mxu1 }
 0x60d   : > { %v1459_v29 = vpop.f32.mrf.mxu1 }
 0x60e   : > { %v1463_v32 = vpack.c.bf16 %v1459_v29, %v1456_v25  ;;  %v4628_v29 = vld [vmem:[%s6302_s3 + $0x40] ss:$8 sps:$4 sm:$0xff]  }
 0x60f   : > { %v4361_v34 = vpop.f32.mrf.mxu1 }
 0x610   : > { %4126 = vmatmul.mubr.msk.bf16.vlgmr.msra.gmra.mxu1 %vm1214_vm1, %v1463_v32 }
 0x611   : > { %1570 = vmatpush1.bf16.msra.mxu1 %v4619_v30  ;;  %1589 = vmatprep.mubr.bf16.mxu1 %v5003_v24  ;;  %v4630_v30 = vld [vmem:[%s6302_s3 + $0x44] ss:$8 sps:$4 sm:$0xff]  }
 0x612   : > { %1571 = vmatprep.subr.bf16.mxu1 %v4624_v33 }
 0x615   : > { %1572 = vmatpush1.bf16.msra.mxu1 %v4622_v35 }
 0x616   : > { %4362 = vmatprep.subr.bf16.mxu1 %v4999_v6 }
 0x618   : > { %4131 = vmatmul.mubr.msk.bf16.vlgmr.msra.gmra.mxu1 %vm1214_vm1, %v1332_v45 }
 0x619   : > { %4363 = vmatpush3.bf16.xpose.msra.mxu1 %v1608_v37  ;;  %4364 = vmatprep.mubr.msk.bf16.mxu1 %vm5000_vm0, %v4999_v6 }
 0x61a   : > { %4368 = vmatprep.subr.bf16.mxu1 %v4999_v6 }
 0x620   : > { %4365 = vmatmul.mubr.msk.bf16.vlgmr.msra.gmra.mxu1 %vm1214_vm1, %v1601_v38 }
 0x621   : > { %4370 = vmatprep.mubr.msk.bf16.mxu1 %vm5000_vm0, %v4999_v6 }
 0x6d0   : > { %v1525_v39 = vpop.f32.mrf.mxu1 }
 0x6d2   : > { %v1527_v40 = vpop.f32.mrf.mxu1 }
 0x6d4   : > { %v1529_v41 = vpop.f32.mrf.mxu1 }
 0x6d6   : > { %v1531_v43 = vpop.f32.mrf.mxu1 }
 0x6d8   : > { %v1591_v46 = vpop.f32.mrf.mxu1 }
 0x6d9   : > { %v5554_v42 = vadd.f32 %v1591_v46, %v1525_v39 }
 0x6da   : > { %v1593_v44 = vpop.f32.mrf.mxu1 }
 0x6db   : > { %v5556_v45 = vadd.f32 %v1593_v44, %v1527_v40 }
 0x6dc   : > { %v1595_v47 = vpop.f32.mrf.mxu1 }
 0x6dd   : > { %v5558_v48 = vadd.f32 %v1595_v47, %v1529_v41 }
 0x6de   : > { %v1597_v49 = vpop.f32.mrf.mxu1 }
 0x6df   : > { %v5560_v50 = vadd.f32 %v1597_v49, %v1531_v43 }
 0x6e0   : > { %v1644_v51 = vpop.f32.mrf.mxu1 }
 0x6e1   : > { %v1651_v52 = vmul.f32 0.17677669, %v1644_v51 }
 0x6e2   : > { %v4366_v53 = vpop.f32.mrf.mxu1 }
 0x6e3   : > { %v1653_v54 = vsel %vm1264_vm2, %v1651_v52, -inf }
 0x6e4   : > { %1654 = vmax.xlane.f32.xlu1 %v1653_v54  ;;  %v1647_v55 = vpop.f32.mrf.mxu1 }
 0x6e5   : > { %v1652_v56 = vmul.f32 0.17677669, %v1647_v55 }
 0x6e6   : > { %v4367_v57 = vpop.f32.mrf.mxu1 }
 0x6e7   : > { %v1656_v58 = vsel %vm1264_vm2, %v1652_v56, -inf }
 0x6e8   : > { %1657 = vmax.xlane.f32.xlu0 %v1656_v58 }
 0x6f5   : > { %1676 = vrot.lane.b32.xlu1 %v5483_v31, %s5002_s30 }
 0x6f9   : > { %1798 = vrot.lane.b32.xlu1 %v5366_v26, %s5004_s19  ;;  %v4625_v26 = vld [vmem:[%s6302_s3 + $0x50] ss:$8 sps:$4 sm:$0xff]  }
 0x6fa   : > { %1764 = vmatpush1.bf16.msra.mxu0 %v4625_v26 }
 0x6fb   : > { %1765 = vmatprep.subr.bf16.mxu0 %v4630_v30 }
 0x6fe   : > { %1766 = vmatpush1.bf16.msra.mxu0 %v4628_v29 }
 0x6ff   : > { %4380 = vmatprep.subr.bf16.mxu0 %v4999_v6 }
 0x76d   : > { %v1655_v60 = vpop.xlane.xlu1 %1654 }
 0x76e   : > { %v1659_v61 = vsub.f32 %v1651_v52, %v1655_v60  ;;  %v5600_v60 = vsub.s32 1, %v5341_v8 }
 0x770   : > { %v1661_v62 = vmul.f32 1.442695, %v1659_v61  ;;  %v579_v61 = vrot.slane %v5347_v10, %v5600_v60 }
 0x771   : > { %v1677_v63 = vpop.permute.xlu1 %1676  ;;  %v1658_v0 = vpop.xlane.xlu0 %1657 }
 0x772   : > { %4869 = vpow2.f32 %v1661_v62  ;;  %v1660_v1 = vsub.f32 %v1652_v56, %v1658_v0  ;;  %4369 = vmatpush3.bf16.msra.mxu1 %v1677_v63  ;;  %v1119_v62 = vadd.f32 %v5357_v19, %v579_v61  ;;  %v1123_v63 = vadd.f32 %v5477_v22, %v579_v61 }
 0x773   : > { %4374 = vmatprep.subr.bf16.mxu1 %v4999_v6 }
 0x774   : > { %v1663_v2 = vmul.f32 1.442695, %v1660_v1  ;;  %v5608_v0 = vpack.c.bf16 %v1123_v63, %v1119_v62  ;;  %v1208_v1 = vpop.f32.mrf.mxu0 }
 0x775   : > { %v1799_v28 = vpop.permute.xlu1 %1798 }
 0x776   : > { %4871 = vpow2.f32 %v1663_v2 }
 0x77f   : > { %v4870_v3 = vpop.eup %4869 }
 0x780   : > { %v1665_v4 = vsel %vm1264_vm2, %v4870_v3, 0.0 }
 0x781   : > { %1666 = vadd.xlane.f32.xlu0 %v1665_v4 }
 0x783   : > { %v4872_v5 = vpop.eup %4871 }
 0x784   : > { %v1668_v7 = vsel %vm1264_vm2, %v4872_v5, 0.0 }
 0x785   : > { %1669 = vadd.xlane.f32.xlu0 %v1668_v7  ;;  %v4633_v7 = vld [vmem:[%s6302_s3 + $0x74] ss:$8 sps:$4 sm:$0xff]  }
 0x79b   : > { %1800 = vrot.lane.b32.xlu0 %v5361_v21, %s5004_s19 }
 0x80a   : > { %v1667_v12 = vpop.xlane.xlu0 %1666 }
 0x80b   : > { %4873 = vrcp.f32 %v1667_v12 }
 0x80e   : > { %v1670_v14 = vpop.xlane.xlu0 %1669 }
 0x80f   : > { %4875 = vrcp.f32 %v1670_v14 }
 0x812   : > { %v1801_v23 = vpop.permute.xlu0 %1800 }
 0x813   : > { %v1806_v25 = vsel %vm1214_vm1, %v1801_v23, 0 }
 0x818   : > { %v4874_v16 = vpop.eup %4873 }
 0x819   : > { %v1673_v18 = vmul.f32 %v4874_v16, %v4870_v3 }
 0x81c   : > { %v4876_v17 = vpop.eup %4875 }
 0x81d   : > { %v1674_v20 = vmul.f32 %v4876_v17, %v4872_v5 }
 0x81f   : > { %v1675_v21 = vpack.c.bf16 %v1674_v20, %v1673_v18 }
 0x821   : > { %4371 = vmatmul.mubr.msk.bf16.vlgmr.msra.gmra.mxu1 %vm1264_vm2, %v1675_v21 }
 0x822   : > { %4375 = vmatpush3.bf16.xpose.msra.mxu1 %v1806_v25  ;;  %4376 = vmatprep.mubr.msk.bf16.mxu1 %vm5000_vm0, %v4999_v6 }
 0x823   : > { %1961 = vmatprep.subr.bf16.mxu1 %v4633_v7  ;;  %v4639_v7 = vld [vmem:[%s6302_s3 + $0x94] ss:$8 sps:$4 sm:$0xff]  }
 0x829   : > { %4377 = vmatmul.mubr.msk.bf16.vlgmr.msra.gmra.mxu1 %vm1214_vm1, %v1799_v28  ;;  %v594_v28 = vsub.s32 5, %v5341_v8 }
 0x82a   : > { %1981 = vmatprep.mubr.bf16.mxu1 %v5003_v24 }
 0x82b   : > { %v595_v29 = vrot.slane %v5347_v10, %v594_v28 }
 0x8e1   : > { %v1716_v32 = vpop.f32.mrf.mxu1 }
 0x8e3   : > { %v4372_v33 = vpop.f32.mrf.mxu1 }
 0x8e4   : > { %v1205_v33 = vadd.f32 %v5481_v27, %v595_v29 }
 0x8e5   : > { %v1719_v34 = vpop.f32.mrf.mxu1 }
 0x8e6   : > { %v1723_v35 = vpack.c.bf16 %v1719_v34, %v1716_v32  ;;  %v1209_v34 = vadd.f32 %v1208_v1, %v595_v29 }
 0x8e7   : > { %v4373_v36 = vpop.f32.mrf.mxu1 }
 0x8e8   : > { %4138 = vmatmul.mubr.msk.bf16.vlgmr.msra.gmra.mxu0 %vm1214_vm1, %v1723_v35 }
 0x8e9   : > { %v1842_v37 = vpop.f32.mrf.mxu1  ;;  %4382 = vmatprep.mubr.msk.bf16.mxu0 %vm5000_vm0, %v4999_v6 }
 0x8ea   : > { %v1849_v38 = vmul.f32 0.17677669, %v1842_v37 }
 0x8eb   : > { %v4378_v39 = vpop.f32.mrf.mxu1 }
 0x8ec   : > { %v1851_v40 = vsel %vm1264_vm2, %v1849_v38, -inf }
 0x8ed   : > { %1852 = vmax.xlane.f32.xlu1 %v1851_v40  ;;  %v1845_v41 = vpop.f32.mrf.mxu1 }
 0x8ee   : > { %v1850_v43 = vmul.f32 0.17677669, %v1845_v41 }
 0x8ef   : > { %v4379_v46 = vpop.f32.mrf.mxu1 }
 0x8f0   : > { %v1854_v44 = vsel %vm1264_vm2, %v1850_v43, -inf }
 0x8f1   : > { %1855 = vmax.xlane.f32.xlu0 %v1854_v44 }
 0x976   : > { %v1853_v47 = vpop.xlane.xlu1 %1852 }
 0x977   : > { %v1857_v49 = vsub.f32 %v1849_v38, %v1853_v47  ;;  %v5656_v38 = vpack.c.bf16 %v1209_v34, %v1205_v33 }
 0x979   : > { %v1859_v51 = vmul.f32 1.442695, %v1857_v49 }
 0x97a   : > { %v1856_v52 = vpop.xlane.xlu0 %1855 }
 0x97b   : > { %4877 = vpow2.f32 %v1859_v51  ;;  %v1858_v53 = vsub.f32 %v1850_v43, %v1856_v52 }
 0x97d   : > { %v1861_v54 = vmul.f32 1.442695, %v1858_v53 }
 0x97f   : > { %4879 = vpow2.f32 %v1861_v54 }
 0x988   : > { %v4878_v55 = vpop.eup %4877 }
 0x989   : > { %v1863_v56 = vsel %vm1264_vm2, %v4878_v55, 0.0 }
 0x98a   : > { %1864 = vadd.xlane.f32.xlu0 %v1863_v56 }
 0x98c   : > { %v4880_v57 = vpop.eup %4879 }
 0x98d   : > { %v1866_v58 = vsel %vm1264_vm2, %v4880_v57, 0.0 }
 0x98e   : > { %1867 = vadd.xlane.f32.xlu1 %v1866_v58 }
 0x9a0   : > { %1874 = vrot.lane.b32.xlu0 %v5483_v31, %s5004_s19  ;;  %v4631_v31 = vld [vmem:[%s6302_s3 + $0x70] ss:$8 sps:$4 sm:$0xff]  }
 0x9a1   : > { %1962 = vmatpush1.bf16.msra.mxu1 %v4631_v31  ;;  %v4637_v31 = vld [vmem:[%s6302_s3 + $0x90] ss:$8 sps:$4 sm:$0xff]  }
 0x9a4   : > { %2191 = vrot.lane.b32.xlu0 %v5608_v0, %s5001_s27 }
 0x9a8   : > { %v1785_v2 = vpop.f32.mrf.mxu0 }
 0x9a9   : > { %v5613_v3 = vadd.f32 %v1785_v2, %v5554_v42 }
 0x9aa   : > { %v1787_v4 = vpop.f32.mrf.mxu0 }
 0x9ab   : > { %v5616_v5 = vadd.f32 %v1787_v4, %v5556_v45  ;;  %v586_v45 = vsub.s32 3, %v5341_v8 }
 0x9ac   : > { %v1789_v19 = vpop.f32.mrf.mxu0 }
 0x9ad   : > { %v5619_v22 = vadd.f32 %v1789_v19, %v5558_v48  ;;  %v587_v48 = vrot.slane %v5347_v10, %v586_v45 }
 0x9ae   : > { %v5653_v30 = vpop.f32.mrf.mxu0 }
 0x9af   : > { %v1166_v12 = vadd.f32 %v5469_v59, %v587_v48  ;;  %v1162_v16 = vadd.f32 %v5352_v13, %v587_v48  ;;  %v4636_v13 = vld [vmem:[%s6302_s3 + $0x64] ss:$8 sps:$4 sm:$0xff]   ;;  %v4634_v59 = vld [vmem:[%s6302_s3 + $0x60] ss:$8 sps:$4 sm:$0xff]  }
 0x9b0   : > { %1963 = vmatprep.subr.bf16.mxu1 %v4636_v13 }
 0x9b1   : > { %v5634_v18 = vpack.c.bf16 %v1166_v12, %v1162_v16  ;;  %1964 = vmatpush1.bf16.msra.mxu1 %v4634_v59 }
 0x9b2   : > { %4392 = vmatprep.subr.bf16.mxu1 %v4999_v6 }
 0x9b3   : > { %v2003_v25 = vsel %vm1214_vm1, %v5634_v18, 0 }
 0xa13   : > { %v1865_v42 = vpop.xlane.xlu0 %1864 }
 0xa14   : > { %4881 = vrcp.f32 %v1865_v42 }
 0xa17   : > { %v1868_v26 = vpop.xlane.xlu1 %1867  ;;  %v1875_v11 = vpop.permute.xlu0 %1874 }
 0xa18   : > { %4883 = vrcp.f32 %v1868_v26  ;;  %4381 = vmatpush3.bf16.msra.mxu0 %v1875_v11 }
 0xa19   : > { %4386 = vmatprep.subr.bf16.mxu0 %v4999_v6 }
 0xa1b   : > { %v2192_v16 = vpop.permute.xlu0 %2191 }
 0xa21   : > { %v4882_v14 = vpop.eup %4881 }
 0xa22   : > { %v1871_v20 = vmul.f32 %v4882_v14, %v4878_v55 }
 0xa25   : > { %v4884_v17 = vpop.eup %4883 }
 0xa26   : > { %v1872_v23 = vmul.f32 %v4884_v17, %v4880_v57  ;;  %v4640_v17 = vld [vmem:[%s6302_s3 + $0x80] ss:$8 sps:$4 sm:$0xff]  }
 0xa28   : > { %v1873_v21 = vpack.c.bf16 %v1872_v23, %v1871_v20  ;;  %v4642_v20 = vld [vmem:[%s6302_s3 + $0x84] ss:$8 sps:$4 sm:$0xff]  }
 0xa2a   : > { %4383 = vmatmul.mubr.msk.bf16.vlgmr.msra.gmra.mxu0 %vm1264_vm2, %v1873_v21 }
 0xa2b   : > { %4387 = vmatpush3.bf16.xpose.msra.mxu0 %v2003_v25  ;;  %4388 = vmatprep.mubr.msk.bf16.mxu0 %vm5000_vm0, %v4999_v6 }
 0xa2c   : > { %2155 = vmatprep.subr.bf16.mxu0 %v4639_v7 }
 0xa32   : > { %4389 = vmatmul.mubr.msk.bf16.vlgmr.msra.gmra.mxu0 %vm1214_vm1, %v5608_v0 }
 0xa33   : > { %2175 = vmatprep.mubr.bf16.mxu0 %v5003_v24  ;;  %2156 = vmatpush1.bf16.msra.mxu0 %v4637_v31 }
 0xa34   : > { %2157 = vmatprep.subr.bf16.mxu0 %v4642_v20 }
 0xa37   : > { %2158 = vmatpush1.bf16.msra.mxu0 %v4640_v17 }
 0xa38   : > { %4404 = vmatprep.subr.bf16.mxu0 %v4999_v6 }
 0xaea   : > { %v1914_v32 = vpop.f32.mrf.mxu0 }
 0xaec   : > { %v4384_v35 = vpop.f32.mrf.mxu0 }
 0xaee   : > { %v1917_v36 = vpop.f32.mrf.mxu0 }
 0xaef   : > { %v1921_v37 = vpack.c.bf16 %v1917_v36, %v1914_v32 }
 0xaf0   : > { %v4385_v39 = vpop.f32.mrf.mxu0 }
 0xaf1   : > { %4145 = vmatmul.mubr.msk.bf16.vlgmr.msra.gmra.mxu1 %vm1214_vm1, %v1921_v37 }
 0xaf2   : > { %4393 = vmatpush3.bf16.msra.mxu1 %v5656_v38  ;;  %v2039_v40 = vpop.f32.mrf.mxu0  ;;  %4394 = vmatprep.mubr.msk.bf16.mxu1 %vm5000_vm0, %v4999_v6 }
 0xaf3   : > { %v2046_v10 = vmul.f32 0.17677669, %v2039_v40  ;;  %4398 = vmatprep.subr.bf16.mxu1 %v4999_v6 }
 0xaf4   : > { %v4390_v41 = vpop.f32.mrf.mxu0 }
 0xaf5   : > { %v2048_v27 = vsel %vm1264_vm2, %v2046_v10, -inf }
 0xaf6   : > { %2049 = vmax.xlane.f32.xlu1 %v2048_v27  ;;  %v2042_v43 = vpop.f32.mrf.mxu0 }
 0xaf7   : > { %v2047_v46 = vmul.f32 0.17677669, %v2042_v43 }
 0xaf8   : > { %v4391_v44 = vpop.f32.mrf.mxu0 }
 0xaf9   : > { %v2051_v47 = vsel %vm1264_vm2, %v2047_v46, -inf }
 0xafa   : > { %2052 = vmax.xlane.f32.xlu1 %v2051_v47 }
 0xb7f   : > { %v2050_v49 = vpop.xlane.xlu1 %2049 }
 0xb80   : > { %v2054_v51 = vsub.f32 %v2046_v10, %v2050_v49 }
 0xb82   : > { %v2056_v52 = vmul.f32 1.442695, %v2054_v51 }
 0xb83   : > { %v2053_v53 = vpop.xlane.xlu1 %2052 }
 0xb84   : > { %4885 = vpow2.f32 %v2056_v52  ;;  %v2055_v54 = vsub.f32 %v2047_v46, %v2053_v53 }
 0xb86   : > { %v2058_v55 = vmul.f32 1.442695, %v2055_v54 }
 0xb88   : > { %4887 = vpow2.f32 %v2058_v55 }
 0xb91   : > { %v4886_v56 = vpop.eup %4885 }
 0xb92   : > { %v2060_v57 = vsel %vm1264_vm2, %v4886_v56, 0.0 }
 0xb93   : > { %2061 = vadd.xlane.f32.xlu1 %v2060_v57 }
 0xb95   : > { %v4888_v58 = vpop.eup %4887 }
 0xb96   : > { %v2063_v61 = vsel %vm1264_vm2, %v4888_v58, 0.0 }
 0xb97   : > { %2064 = vadd.xlane.f32.xlu1 %v2063_v61  ;;  %v4645_v61 = vld [vmem:[%s6302_s3 + $0xb4] ss:$8 sps:$4 sm:$0xff]  }
 0xba8   : > { %2194 = vrot.lane.b32.xlu1 %v5634_v18, %s5001_s27 }
 0xbb1   : > { %v1983_v62 = vpop.f32.mrf.mxu1 }
 0xbb2   : > { %v5670_v63 = vadd.f32 %v1983_v62, %v5613_v3 }
 0xbb3   : > { %v1985_v1 = vpop.f32.mrf.mxu1 }
 0xbb4   : > { %v5673_v2 = vadd.f32 %v1985_v1, %v5616_v5 }
 0xbb5   : > { %v1987_v4 = vpop.f32.mrf.mxu1 }
 0xbb6   : > { %v5676_v19 = vadd.f32 %v1987_v4, %v5619_v22 }
 0xbb7   : > { %v5697_v23 = vpop.f32.mrf.mxu1 }
 0xc1c   : > { %v2062_v3 = vpop.xlane.xlu1 %2061 }
 0xc1d   : > { %4889 = vrcp.f32 %v2062_v3 }
 0xc20   : > { %v2065_v42 = vpop.xlane.xlu1 %2064 }
 0xc21   : > { %4891 = vrcp.f32 %v2065_v42 }
 0xc24   : > { %v2195_v22 = vpop.permute.xlu1 %2194 }
 0xc25   : > { %v2200_v14 = vsel %vm1214_vm1, %v2195_v22, 0 }
 0xc2a   : > { %v4890_v5 = vpop.eup %4889 }
 0xc2b   : > { %v2068_v11 = vmul.f32 %v4890_v5, %v4886_v56 }
 0xc2e   : > { %v4892_v26 = vpop.eup %4891 }
 0xc2f   : > { %v2069_v48 = vmul.f32 %v4892_v26, %v4888_v58  ;;  %v4643_v58 = vld [vmem:[%s6302_s3 + $0xb0] ss:$8 sps:$4 sm:$0xff]   ;;  %v4646_v26 = vld [vmem:[%s6302_s3 + $0xa0] ss:$8 sps:$4 sm:$0xff]  }
 0xc31   : > { %v2070_v12 = vpack.c.bf16 %v2069_v48, %v2068_v11  ;;  %v4648_v11 = vld [vmem:[%s6302_s3 + $0xa4] ss:$8 sps:$4 sm:$0xff]  }
 0xc33   : > { %4395 = vmatmul.mubr.msk.bf16.vlgmr.msra.gmra.mxu1 %vm1264_vm2, %v2070_v12 }
 0xc34   : > { %4399 = vmatpush3.bf16.xpose.msra.mxu1 %v2200_v14  ;;  %4400 = vmatprep.mubr.msk.bf16.mxu1 %vm5000_vm0, %v4999_v6 }
 0xc35   : > { %2356 = vmatprep.subr.bf16.mxu1 %v4645_v61 }
 0xc3b   : > { %4401 = vmatmul.mubr.msk.bf16.vlgmr.msra.gmra.mxu1 %vm1214_vm1, %v2192_v16 }
 0xc3c   : > { %2376 = vmatprep.mubr.bf16.mxu1 %v5003_v24  ;;  %2357 = vmatpush1.bf16.msra.mxu1 %v4643_v58 }
 0xc3d   : > { %2358 = vmatprep.subr.bf16.mxu1 %v4648_v11 }
 0xc40   : > { %2359 = vmatpush1.bf16.msra.mxu1 %v4646_v26 }
 0xc41   : > { %4416 = vmatprep.subr.bf16.mxu1 %v4999_v6 }
 0xcf3   : > { %v2108_v21 = vpop.f32.mrf.mxu1 }
 0xcf5   : > { %v4396_v25 = vpop.f32.mrf.mxu1 }
 0xcf7   : > { %v2111_v13 = vpop.f32.mrf.mxu1 }
 0xcf8   : > { %v2115_v59 = vpack.c.bf16 %v2111_v13, %v2108_v21 }
 0xcf9   : > { %v4397_v28 = vpop.f32.mrf.mxu1 }
 0xcfa   : > { %4152 = vmatmul.mubr.msk.bf16.vlgmr.msra.gmra.mxu0 %vm1214_vm1, %v2115_v59 }
 0xcfb   : > { %v2236_v29 = vpop.f32.mrf.mxu1  ;;  %4406 = vmatprep.mubr.msk.bf16.mxu0 %vm5000_vm0, %v4999_v6 }
 0xcfc   : > { %v2243_v32 = vmul.f32 0.17677669, %v2236_v29 }
 0xcfd   : > { %v4402_v33 = vpop.f32.mrf.mxu1 }
 0xcfe   : > { %v2245_v34 = vsel %vm1264_vm2, %v2243_v32, -inf }
 0xcff   : > { %2246 = vmax.xlane.f32.xlu0 %v2245_v34  ;;  %v2239_v35 = vpop.f32.mrf.mxu1 }
 0xd00   : > { %v2244_v36 = vmul.f32 0.17677669, %v2239_v35 }
 0xd01   : > { %v4403_v37 = vpop.f32.mrf.mxu1 }
 0xd02   : > { %v2248_v39 = vsel %vm1264_vm2, %v2244_v36, -inf }
 0xd03   : > { %2249 = vmax.xlane.f32.xlu1 %v2248_v39 }
 0xd14   : > { %2393 = vrot.lane.b32.xlu1 %v5634_v18, %s5002_s30 }
 0xd18   : > { %2391 = vrot.lane.b32.xlu1 %v5608_v0, %s5002_s30 }
 0xd88   : > { %v2247_v40 = vpop.xlane.xlu0 %2246 }
 0xd89   : > { %v2251_v10 = vsub.f32 %v2243_v32, %v2247_v40 }
 0xd8b   : > { %v2253_v41 = vmul.f32 1.442695, %v2251_v10 }
 0xd8c   : > { %v2250_v27 = vpop.xlane.xlu1 %2249 }
 0xd8d   : > { %4893 = vpow2.f32 %v2253_v41  ;;  %v2252_v43 = vsub.f32 %v2244_v36, %v2250_v27 }
 0xd8f   : > { %v2255_v46 = vmul.f32 1.442695, %v2252_v43 }
 0xd90   : > { %v2394_v7 = vpop.permute.xlu1 %2393 }
 0xd91   : > { %4895 = vpow2.f32 %v2255_v46  ;;  %v2399_v42 = vsel %vm1214_vm1, %v2394_v7, 0 }
 0xd94   : > { %v2392_v5 = vpop.permute.xlu1 %2391 }
 0xd9a   : > { %v4894_v44 = vpop.eup %4893 }
 0xd9b   : > { %v2257_v47 = vsel %vm1264_vm2, %v4894_v44, 0.0 }
 0xd9c   : > { %2258 = vadd.xlane.f32.xlu0 %v2257_v47 }
 0xd9e   : > { %v4896_v49 = vpop.eup %4895 }
 0xd9f   : > { %v2260_v51 = vsel %vm1264_vm2, %v4896_v49, 0.0 }
 0xda0   : > { %2261 = vadd.xlane.f32.xlu0 %v2260_v51  ;;  %v4651_v51 = vld [vmem:[%s6302_s3 + $0xd4] ss:$8 sps:$4 sm:$0xff]  }
 0xdb6   : > { %2269 = vrot.lane.b32.xlu0 %v5656_v38, %s5001_s27 }
 0xdba   : > { %v2177_v52 = vpop.f32.mrf.mxu0 }
 0xdbb   : > { %v5713_v53 = vadd.f32 %v2177_v52, %v5670_v63 }
 0xdbc   : > { %v2179_v54 = vpop.f32.mrf.mxu0 }
 0xdbd   : > { %v5716_v55 = vadd.f32 %v2179_v54, %v5673_v2 }
 0xdbe   : > { %v2181_v56 = vpop.f32.mrf.mxu0 }
 0xdbf   : > { %v5719_v57 = vadd.f32 %v2181_v56, %v5676_v19 }
 0xdc0   : > { %v5741_v48 = vpop.f32.mrf.mxu0 }
 0xe25   : > { %v2259_v62 = vpop.xlane.xlu0 %2258 }
 0xe26   : > { %4897 = vrcp.f32 %v2259_v62 }
 0xe29   : > { %v2262_v63 = vpop.xlane.xlu0 %2261 }
 0xe2a   : > { %4899 = vrcp.f32 %v2262_v63 }
 0xe2d   : > { %v2270_v1 = vpop.permute.xlu0 %2269 }
 0xe2e   : > { %4405 = vmatpush3.bf16.msra.mxu0 %v2270_v1 }
 0xe2f   : > { %4410 = vmatprep.subr.bf16.mxu0 %v4999_v6 }
 0xe33   : > { %v4898_v2 = vpop.eup %4897 }
 0xe34   : > { %v2265_v19 = vmul.f32 %v4898_v2, %v4894_v44  ;;  %v4652_v2 = vld [vmem:[%s6302_s3 + $0xc0] ss:$8 sps:$4 sm:$0xff]  }
 0xe37   : > { %v4900_v4 = vpop.eup %4899 }
 0xe38   : > { %v2266_v31 = vmul.f32 %v4900_v4, %v4896_v49  ;;  %v4649_v49 = vld [vmem:[%s6302_s3 + $0xd0] ss:$8 sps:$4 sm:$0xff]   ;;  %v4654_v4 = vld [vmem:[%s6302_s3 + $0xc4] ss:$8 sps:$4 sm:$0xff]  }
 0xe3a   : > { %v2267_v3 = vpack.c.bf16 %v2266_v31, %v2265_v19 }
 0xe3c   : > { %4407 = vmatmul.mubr.msk.bf16.vlgmr.msra.gmra.mxu0 %vm1264_vm2, %v2267_v3 }
 0xe3d   : > { %4411 = vmatpush3.bf16.xpose.msra.mxu0 %v2399_v42  ;;  %4412 = vmatprep.mubr.msk.bf16.mxu0 %vm5000_vm0, %v4999_v6 }
 0xe3e   : > { %2554 = vmatprep.subr.bf16.mxu0 %v4651_v51 }
 0xe44   : > { %4413 = vmatmul.mubr.msk.bf16.vlgmr.msra.gmra.mxu0 %vm1214_vm1, %v2392_v5 }
 0xe45   : > { %2574 = vmatprep.mubr.bf16.mxu0 %v5003_v24  ;;  %2555 = vmatpush1.bf16.msra.mxu0 %v4649_v49 }
 0xe46   : > { %2556 = vmatprep.subr.bf16.mxu0 %v4654_v4 }
 0xe49   : > { %2557 = vmatpush1.bf16.msra.mxu0 %v4652_v2 }
 0xe4a   : > { %4428 = vmatprep.subr.bf16.mxu0 %v4999_v6 }
 0xefc   : > { %v2309_v22 = vpop.f32.mrf.mxu0 }
 0xefe   : > { %v4408_v12 = vpop.f32.mrf.mxu0 }
 0xf00   : > { %v2312_v14 = vpop.f32.mrf.mxu0 }
 0xf01   : > { %v2316_v16 = vpack.c.bf16 %v2312_v14, %v2309_v22 }
 0xf02   : > { %v4409_v17 = vpop.f32.mrf.mxu0 }
 0xf03   : > { %4159 = vmatmul.mubr.msk.bf16.vlgmr.msra.gmra.mxu1 %vm1214_vm1, %v2316_v16 }
 0xf04   : > { %v2435_v20 = vpop.f32.mrf.mxu0  ;;  %4418 = vmatprep.mubr.msk.bf16.mxu1 %vm5000_vm0, %v4999_v6 }
 0xf05   : > { %v2442_v21 = vmul.f32 0.17677669, %v2435_v20 }
 0xf06   : > { %v4414_v25 = vpop.f32.mrf.mxu0 }
 0xf07   : > { %v2444_v13 = vsel %vm1264_vm2, %v2442_v21, -inf }
 0xf08   : > { %2445 = vmax.xlane.f32.xlu0 %v2444_v13  ;;  %v2438_v59 = vpop.f32.mrf.mxu0 }
 0xf09   : > { %v2443_v28 = vmul.f32 0.17677669, %v2438_v59 }
 0xf0a   : > { %v4415_v29 = vpop.f32.mrf.mxu0 }
 0xf0b   : > { %v2447_v32 = vsel %vm1264_vm2, %v2443_v28, -inf }
 0xf0c   : > { %2448 = vmax.xlane.f32.xlu1 %v2447_v32 }
 0xf1d   : > { %2591 = vrot.lane.b32.xlu1 %v5634_v18, %s5004_s19 }
 0xf21   : > { %2589 = vrot.lane.b32.xlu1 %v5608_v0, %s5004_s19 }
 0xf91   : > { %v2446_v33 = vpop.xlane.xlu0 %2445 }
 0xf92   : > { %v2450_v34 = vsub.f32 %v2442_v21, %v2446_v33 }
 0xf94   : > { %v2452_v35 = vmul.f32 1.442695, %v2450_v34 }
 0xf95   : > { %v2449_v36 = vpop.xlane.xlu1 %2448 }
 0xf96   : > { %4901 = vpow2.f32 %v2452_v35  ;;  %v2451_v37 = vsub.f32 %v2443_v28, %v2449_v36 }
 0xf98   : > { %v2454_v39 = vmul.f32 1.442695, %v2451_v37  ;;  %v4655_v37 = vld [vmem:[%s6302_s3 + $0xf0] ss:$8 sps:$4 sm:$0xff]  }
 0xf99   : > { %v2592_v61 = vpop.permute.xlu1 %2591 }
 0xf9a   : > { %4903 = vpow2.f32 %v2454_v39  ;;  %v2597_v63 = vsel %vm1214_vm1, %v2592_v61, 0  ;;  %v4657_v39 = vld [vmem:[%s6302_s3 + $0xf4] ss:$8 sps:$4 sm:$0xff]   ;;  %v1797_v61 = vadd.f32 %v5653_v30, %v5560_v50 }
 0xf9d   : > { %v2590_v1 = vpop.permute.xlu1 %2589 }
 0xfa3   : > { %v4902_v40 = vpop.eup %4901 }
 0xfa4   : > { %v2456_v10 = vsel %vm1264_vm2, %v4902_v40, 0.0 }
 0xfa5   : > { %2457 = vadd.xlane.f32.xlu0 %v2456_v10 }
 0xfa7   : > { %v4904_v41 = vpop.eup %4903 }
 0xfa8   : > { %v2459_v27 = vsel %vm1264_vm2, %v4904_v41, 0.0 }
 0xfa9   : > { %2460 = vadd.xlane.f32.xlu0 %v2459_v27 }
 0xfbf   : > { %2467 = vrot.lane.b32.xlu0 %v5656_v38, %s5002_s30 }
 0xfc3   : > { %v2378_v0 = vpop.f32.mrf.mxu1 }
 0xfc4   : > { %v5757_v18 = vadd.f32 %v2378_v0, %v5713_v53 }
 0xfc5   : > { %v2380_v43 = vpop.f32.mrf.mxu1 }
 0xfc6   : > { %v5760_v46 = vadd.f32 %v2380_v43, %v5716_v55 }
 0xfc7   : > { %v2382_v44 = vpop.f32.mrf.mxu1 }
 0xfc8   : > { %v5763_v47 = vadd.f32 %v2382_v44, %v5719_v57 }
 0xfc9   : > { %v5785_v19 = vpop.f32.mrf.mxu1 }
0x102e   : > { %v2458_v52 = vpop.xlane.xlu0 %2457 }
0x102f   : > { %4905 = vrcp.f32 %v2458_v52 }
0x1032   : > { %v2461_v53 = vpop.xlane.xlu0 %2460 }
0x1033   : > { %4907 = vrcp.f32 %v2461_v53 }
0x1036   : > { %v2468_v54 = vpop.permute.xlu0 %2467 }
0x1037   : > { %4417 = vmatpush3.bf16.msra.mxu1 %v2468_v54 }
0x1038   : > { %4422 = vmatprep.subr.bf16.mxu1 %v4999_v6 }
0x103c   : > { %v4906_v55 = vpop.eup %4905 }
0x103d   : > { %v2464_v57 = vmul.f32 %v4906_v55, %v4902_v40 }
0x1040   : > { %v4908_v56 = vpop.eup %4907 }
0x1041   : > { %v2465_v58 = vmul.f32 %v4908_v56, %v4904_v41 }
0x1043   : > { %v2466_v62 = vpack.c.bf16 %v2465_v58, %v2464_v57  ;;  %v2787_v58 = vld [vmem:[%s6303_s4] sm:$0x3] }
0x1045   : > { %4419 = vmatmul.mubr.msk.bf16.vlgmr.msra.gmra.mxu1 %vm1264_vm2, %v2466_v62  ;;  %v1995_v62 = vadd.f32 %v5697_v23, %v1797_v61  ;;  %v4703_v61 = vld [vmem:[%s6306_s7] ss:$16 sps:$4 sm:$0xff]  }
0x1046   : > { %4423 = vmatpush3.bf16.xpose.msra.mxu1 %v2597_v63  ;;  %4424 = vmatprep.mubr.msk.bf16.mxu1 %vm5000_vm0, %v4999_v6  ;;  %v2792_v63 = vrot.slane %v2787_v58, %v5355_v15 }
0x1047   : > { %2752 = vmatprep.subr.bf16.mxu1 %v4657_v39  ;;  %v2189_v2 = vadd.f32 %v5741_v48, %v1995_v62  ;;  %v4673_v39 = vld [vmem:[%s6306_s7 + $0xa0] ss:$16 sps:$4 sm:$0xff]   ;;  %v4706_v62 = vld [vmem:[%s6306_s7 + $0x8] ss:$16 sps:$4 sm:$0xff]  }
0x104d   : > { %4425 = vmatmul.mubr.msk.bf16.vlgmr.msra.gmra.mxu1 %vm1214_vm1, %v2590_v1 }
0x104e   : > { %2772 = vmatprep.mubr.bf16.mxu1 %v5003_v24  ;;  %2753 = vmatpush1.bf16.msra.mxu1 %v4655_v37  ;;  %v4678_v37 = vld [vmem:[%s6306_s7 + $0xac] ss:$16 sps:$4 sm:$0xff]  }
0x1105   : > { %v2507_v31 = vpop.f32.mrf.mxu1 }
0x1107   : > { %v4420_v7 = vpop.f32.mrf.mxu1 }
0x1109   : > { %v2510_v3 = vpop.f32.mrf.mxu1 }
0x110a   : > { %v2514_v42 = vpack.c.bf16 %v2510_v3, %v2507_v31  ;;  %v2796_v31 = vrot.slane %v2787_v58, %v5600_v60  ;;  %v2390_v3 = vadd.f32 %v5785_v19, %v2189_v2  ;;  %v4708_v58 = vld [vmem:[%s6306_s7 + $0xc] ss:$16 sps:$4 sm:$0xff]   ;;  %v4709_v2 = vld [vmem:[%s6306_s7 + $0x1e0] ss:$16 sps:$4 sm:$0xff]  }
0x110b   : > { %v4421_v5 = vpop.f32.mrf.mxu1 }
0x110c   : > { %4166 = vmatmul.mubr.msk.bf16.vlgmr.msra.gmra.mxu0 %vm1214_vm1, %v2514_v42 }
0x110d   : > { %v2633_v24 = vpop.f32.mrf.mxu1  ;;  %4430 = vmatprep.mubr.msk.bf16.mxu0 %vm5000_vm0, %v4999_v6 }
0x110e   : > { %v2640_v26 = vmul.f32 0.17677669, %v2633_v24 }
0x110f   : > { %v4426_v11 = vpop.f32.mrf.mxu1 }
0x1110   : > { %v2642_v22 = vsel %vm1264_vm2, %v2640_v26, -inf }
0x1111   : > { %2643 = vmax.xlane.f32.xlu1 %v2642_v22  ;;  %v2636_v12 = vpop.f32.mrf.mxu1 }
0x1112   : > { %v2641_v14 = vmul.f32 0.17677669, %v2636_v12  ;;  %v4925_v12 = vld [vmem:[%s5265_s21] sm:$0xff] }
0x1113   : > { %v4427_v16 = vpop.f32.mrf.mxu1 }
0x1114   : > { %v2645_v17 = vsel %vm1264_vm2, %v2641_v14, -inf }
0x1115   : > { %2646 = vmax.xlane.f32.xlu0 %v2645_v17 }
0x1122   : > { %2665 = vrot.lane.b32.xlu1 %v5656_v38, %s5004_s19 }
0x119a   : > { %v2644_v20 = vpop.xlane.xlu1 %2643 }
0x119b   : > { %v2648_v21 = vsub.f32 %v2640_v26, %v2644_v20  ;;  %v4927_v20 = vld [vmem:[%s5265_s21 + $0x10] sm:$0xff] }
0x119d   : > { %v2650_v25 = vmul.f32 1.442695, %v2648_v21 }
0x119e   : > { %v2666_v13 = vpop.permute.xlu1 %2665  ;;  %v2647_v59 = vpop.xlane.xlu0 %2646 }
0x119f   : > { %4909 = vpow2.f32 %v2650_v25  ;;  %v2649_v6 = vsub.f32 %v2641_v14, %v2647_v59  ;;  %4429 = vmatpush3.bf16.msra.mxu0 %v2666_v13  ;;  %v4926_v14 = vld [vmem:[%s5265_s21 + $0x8] sm:$0xff]  ;;  %v4928_v25 = vld [vmem:[%s5265_s21 + $0x18] sm:$0xff] }
0x11a1   : > { %v2652_v28 = vmul.f32 1.442695, %v2649_v6  ;;  %v4661_v6 = vld [vmem:[%s6306_s7 + $0xe0] ss:$16 sps:$4 sm:$0xff]  }
0x11a3   : > { %4911 = vpow2.f32 %v2652_v28  ;;  %v4663_v28 = vld [vmem:[%s6306_s7 + $0xe4] ss:$16 sps:$4 sm:$0xff]  }
0x11a4   : > { %3280 = vmatprep.subr.bf16.mxu0 %v4663_v28  ;;  %v4730_v28 = vld [vmem:[%s6306_s7 + $0x188] ss:$16 sps:$4 sm:$0xff]  }
0x11ac   : > { %v4910_v29 = vpop.eup %4909 }
0x11ad   : > { %v2654_v32 = vsel %vm1264_vm2, %v4910_v29, 0.0 }
0x11ae   : > { %2655 = vadd.xlane.f32.xlu0 %v2654_v32  ;;  %v4666_v32 = vld [vmem:[%s6306_s7 + $0xec] ss:$16 sps:$4 sm:$0xff]  }
0x11b0   : > { %v4912_v33 = vpop.eup %4911 }
0x11b1   : > { %v2657_v34 = vsel %vm1264_vm2, %v4912_v33, 0.0 }
0x11b2   : > { %2658 = vadd.xlane.f32.xlu0 %v2657_v34  ;;  %v4672_v34 = vld [vmem:[%s6306_s7 + $0xcc] ss:$16 sps:$4 sm:$0xff]  }
0x11cc   : > { %v2576_v35 = vpop.f32.mrf.mxu0 }
0x11cd   : > { %v2585_v38 = vadd.f32 %v2576_v35, %v5757_v18  ;;  %v4667_v35 = vld [vmem:[%s6306_s7 + $0xc0] ss:$16 sps:$4 sm:$0xff]  }
0x11ce   : > { %v2578_v36 = vpop.f32.mrf.mxu0 }
0x11cf   : > { %v2586_v40 = vadd.f32 %v2578_v36, %v5760_v46  ;;  %v4658_v46 = vld [vmem:[%s6302_s3 + $0xe0] ss:$8 sps:$4 sm:$0xff]   ;;  %v4675_v36 = vld [vmem:[%s6306_s7 + $0xa4] ss:$16 sps:$4 sm:$0xff]  }
0x11d0   : > { %v2580_v10 = vpop.f32.mrf.mxu0 }
0x11d1   : > { %v2587_v41 = vadd.f32 %v2580_v10, %v5763_v47  ;;  %v4660_v47 = vld [vmem:[%s6302_s3 + $0xe4] ss:$8 sps:$4 sm:$0xff]  }
0x11d2   : > { %2754 = vmatprep.subr.bf16.mxu1 %v4660_v47  ;;  %v2582_v52 = vpop.f32.mrf.mxu0  ;;  %v4681_v10 = vld [vmem:[%s6306_s7 + $0x84] ss:$16 sps:$4 sm:$0xff]   ;;  %v4691_v47 = vld [vmem:[%s6306_s7 + $0x40] ss:$16 sps:$4 sm:$0xff]  }
0x11d3   : > { %2755 = vmatpush1.bf16.msra.mxu1 %v4658_v46  ;;  %v2588_v50 = vadd.f32 %v2582_v52, %v2390_v3  ;;  %v4696_v46 = vld [vmem:[%s6306_s7 + $0x4c] ss:$16 sps:$4 sm:$0xff]   ;;  %v4694_v52 = vld [vmem:[%s6306_s7 + $0x48] ss:$16 sps:$4 sm:$0xff]  }
0x11d4   : > { %3323 = vmatprep.subr.bf16.mxu1 %v4666_v32  ;;  %v4735_v32 = vld [vmem:[%s6306_s7 + $0x164] ss:$16 sps:$4 sm:$0xff]  }
0x1237   : > { %v2656_v27 = vpop.xlane.xlu0 %2655 }
0x1238   : > { %4913 = vrcp.f32 %v2656_v27  ;;  %v4679_v27 = vld [vmem:[%s6306_s7 + $0x80] ss:$16 sps:$4 sm:$0xff]  }
0x123b   : > { %v2659_v0 = vpop.xlane.xlu0 %2658 }
0x123c   : > { %4915 = vrcp.f32 %v2659_v0  ;;  %v4682_v0 = vld [vmem:[%s6306_s7 + $0x88] ss:$16 sps:$4 sm:$0xff]  }
0x1245   : > { %v4914_v18 = vpop.eup %4913 }
0x1246   : > { %v2662_v44 = vmul.f32 %v4914_v18, %v4910_v29  ;;  %v4664_v29 = vld [vmem:[%s6306_s7 + $0xe8] ss:$16 sps:$4 sm:$0xff]   ;;  %v4687_v18 = vld [vmem:[%s6306_s7 + $0x64] ss:$16 sps:$4 sm:$0xff]  }
0x1249   : > { %v4916_v43 = vpop.eup %4915 }
0x124a   : > { %v2663_v49 = vmul.f32 %v4916_v43, %v4912_v33  ;;  %v4669_v33 = vld [vmem:[%s6306_s7 + $0xc4] ss:$16 sps:$4 sm:$0xff]   ;;  %v4690_v43 = vld [vmem:[%s6306_s7 + $0x6c] ss:$16 sps:$4 sm:$0xff]  }
0x124c   : > { %v2664_v51 = vpack.c.bf16 %v2663_v49, %v2662_v44  ;;  %v4685_v44 = vld [vmem:[%s6306_s7 + $0x60] ss:$16 sps:$4 sm:$0xff]   ;;  %v4688_v49 = vld [vmem:[%s6306_s7 + $0x68] ss:$16 sps:$4 sm:$0xff]  }
0x124e   : > { %4431 = vmatmul.mubr.msk.bf16.vlgmr.msra.gmra.mxu0 %vm1264_vm2, %v2664_v51  ;;  %v4693_v51 = vld [vmem:[%s6306_s7 + $0x44] ss:$16 sps:$4 sm:$0xff]  }
0x124f   : > { %3281 = vmatpush1.bf16.msra.mxu0 %v4661_v6  ;;  %v4727_v6 = vld [vmem:[%s6306_s7 + $0x180] ss:$16 sps:$4 sm:$0xff]  }
0x1250   : > { %3282 = vmatprep.subr.bf16.mxu0 %v4669_v33  ;;  %v4738_v33 = vld [vmem:[%s6306_s7 + $0x16c] ss:$16 sps:$4 sm:$0xff]  }
0x1253   : > { %3283 = vmatpush1.bf16.msra.mxu0 %v4667_v35  ;;  %v4736_v35 = vld [vmem:[%s6306_s7 + $0x168] ss:$16 sps:$4 sm:$0xff]  }
0x1254   : > { %3284 = vmatprep.subr.bf16.mxu0 %v4675_v36  ;;  %v4744_v36 = vld [vmem:[%s6306_s7 + $0x14c] ss:$16 sps:$4 sm:$0xff]  }
0x1257   : > { %3285 = vmatpush1.bf16.msra.mxu0 %v4673_v39  ;;  %v4742_v39 = vld [vmem:[%s6306_s7 + $0x148] ss:$16 sps:$4 sm:$0xff]  }
0x1258   : > { %3286 = vmatprep.subr.bf16.mxu0 %v4681_v10  ;;  %v4750_v10 = vld [vmem:[%s6306_s7 + $0x12c] ss:$16 sps:$4 sm:$0xff]  }
0x125b   : > { %3287 = vmatpush1.bf16.msra.mxu0 %v4679_v27  ;;  %v4748_v27 = vld [vmem:[%s6306_s7 + $0x128] ss:$16 sps:$4 sm:$0xff]  }
0x125c   : > { %3288 = vmatprep.subr.bf16.mxu0 %v4687_v18  ;;  %v4756_v18 = vld [vmem:[%s6306_s7 + $0x10c] ss:$16 sps:$4 sm:$0xff]  }
0x125f   : > { %3289 = vmatpush1.bf16.msra.mxu0 %v4685_v44  ;;  %v4754_v44 = vld [vmem:[%s6306_s7 + $0x108] ss:$16 sps:$4 sm:$0xff]  }
0x1260   : > { %3290 = vmatprep.subr.bf16.mxu0 %v4693_v51  ;;  %v4762_v51 = vld [vmem:[%s6308_s9 + $0x174] ss:$8 sps:$4 sm:$0xff]  }
0x1263   : > { %3291 = vmatpush1.bf16.msra.mxu0 %v4691_v47 }
0x130e   : > { %v2705_v53 = vpop.f32.mrf.mxu0 }
0x1310   : > { %v4432_v54 = vpop.f32.mrf.mxu0 }
0x1311   : > { %v4702_v54 = vld [vmem:[%s6306_s7 + $0x2c] ss:$16 sps:$4 sm:$0xff]  }
0x1312   : > { %v2708_v55 = vpop.f32.mrf.mxu0 }
0x1313   : > { %v2712_v56 = vpack.c.bf16 %v2708_v55, %v2705_v53  ;;  %v4699_v53 = vld [vmem:[%s6306_s7 + $0x24] ss:$16 sps:$4 sm:$0xff]   ;;  %v4697_v55 = vld [vmem:[%s6306_s7 + $0x20] ss:$16 sps:$4 sm:$0xff]  }
0x1314   : > { %v4433_v57 = vpop.f32.mrf.mxu0  ;;  %3292 = vmatprep.subr.bf16.mxu0 %v4699_v53 }
0x1315   : > { %4173 = vmatmul.mubr.msk.bf16.vlgmr.msra.gmra.mxu1 %vm1214_vm1, %v2712_v56  ;;  %v4700_v56 = vld [vmem:[%s6306_s7 + $0x28] ss:$16 sps:$4 sm:$0xff]   ;;  %v4705_v57 = vld [vmem:[%s6306_s7 + $0x4] ss:$16 sps:$4 sm:$0xff]   ;;  %3293 = vmatpush1.bf16.msra.mxu0 %v4697_v55 }
0x1316   : > { %3324 = vmatpush1.bf16.msra.mxu1 %v4664_v29  ;;  %3294 = vmatprep.subr.bf16.mxu0 %v4705_v57  ;;  %v4732_v29 = vld [vmem:[%s6306_s7 + $0x18c] ss:$16 sps:$4 sm:$0xff]  }
0x1317   : > { %3325 = vmatprep.subr.bf16.mxu1 %v4672_v34  ;;  %v4733_v34 = vld [vmem:[%s6306_s7 + $0x160] ss:$16 sps:$4 sm:$0xff]  }
0x1319   : > { %3295 = vmatpush1.bf16.msra.mxu0 %v4703_v61 }
0x13d5   : > { %v2774_v1 = vpop.f32.mrf.mxu1 }
0x13d6   : > { %v2783_v4 = vadd.f32 %v2774_v1, %v2585_v38  ;;  %v4670_v38 = vld [vmem:[%s6306_s7 + $0xc8] ss:$16 sps:$4 sm:$0xff]   ;;  %v4714_v1 = vld [vmem:[%s6306_s7 + $0x1ec] ss:$16 sps:$4 sm:$0xff]  }
0x13d7   : > { %v2776_v7 = vpop.f32.mrf.mxu1  ;;  %3326 = vmatpush1.bf16.msra.mxu1 %v4670_v38  ;;  %v4741_v38 = vld [vmem:[%s6306_s7 + $0x144] ss:$16 sps:$4 sm:$0xff]  }
0x13d8   : > { %v2799_v42 = vadd.f32 %v2792_v63, %v2783_v4  ;;  %v2784_v5 = vadd.f32 %v2776_v7, %v2586_v40  ;;  %v4676_v40 = vld [vmem:[%s6306_s7 + $0xa8] ss:$16 sps:$4 sm:$0xff]   ;;  %3327 = vmatprep.subr.bf16.mxu1 %v4678_v37  ;;  %v4739_v37 = vld [vmem:[%s6306_s7 + $0x140] ss:$16 sps:$4 sm:$0xff]  }
0x13d9   : > { %v2778_v24 = vpop.f32.mrf.mxu1  ;;  %v4712_v4 = vld [vmem:[%s6306_s7 + $0x1e8] ss:$16 sps:$4 sm:$0xff]  }
0x13da   : > { %v2800_v30 = vadd.f32 %v2796_v31, %v2784_v5  ;;  %v2785_v23 = vadd.f32 %v2778_v24, %v2587_v41  ;;  %v5824_v48 = vadd.f32 %v4925_v12, %v2799_v42  ;;  %v4684_v41 = vld [vmem:[%s6306_s7 + $0x8c] ss:$16 sps:$4 sm:$0xff]  }
0x13db   : > { %v2780_v26 = vpop.f32.mrf.mxu1  ;;  %3328 = vmatpush1.bf16.msra.mxu1 %v4676_v40  ;;  %v4747_v40 = vld [vmem:[%s6306_s7 + $0x124] ss:$16 sps:$4 sm:$0xff]  }
0x13dc   : > { %v2801_v11 = vadd.f32 %v2792_v63, %v2785_v23  ;;  %v2786_v22 = vadd.f32 %v2780_v26, %v2588_v50  ;;  %v5827_v16 = vadd.f32 %v4926_v14, %v2800_v30  ;;  %3329 = vmatprep.subr.bf16.mxu1 %v4684_v41  ;;  %v4711_v63 = vld [vmem:[%s6306_s7 + $0x1e4] ss:$16 sps:$4 sm:$0xff]   ;;  %v4745_v41 = vld [vmem:[%s6306_s7 + $0x120] ss:$16 sps:$4 sm:$0xff]  }
0x13dd   : > { %3296 = vmatprep.subr.bf16.mxu0 %v4711_v63  ;;  %v4717_v14 = vld [vmem:[%s6306_s7 + $0x1c4] ss:$16 sps:$4 sm:$0xff]  }
0x13de   : > { %v2802_v17 = vadd.f32 %v2796_v31, %v2786_v22  ;;  %v2809_v19 = vadd.f32 %v5827_v16, %v5824_v48  ;;  %v5832_v21 = vadd.f32 %v4927_v20, %v2801_v11  ;;  %3297 = vmatpush2.bf16.msra.mxu0 %v4709_v2  ;;  %v4723_v20 = vld [vmem:[%s6306_s7 + $0x1a4] ss:$16 sps:$4 sm:$0xff]  }
0x13df   : > { %3330 = vmatpush1.bf16.msra.mxu1 %v4682_v0  ;;  %3298 = vmatprep.subr.bf16.mxu0 %v4717_v14  ;;  %v4753_v0 = vld [vmem:[%s6306_s7 + $0x104] ss:$16 sps:$4 sm:$0xff]   ;;  %v4760_v14 = vld [vmem:[%s6308_s9 + $0x170] ss:$8 sps:$4 sm:$0xff]  }
0x13e0   : > { %2810 = vadd.xlane.f32.xlu0 %v2809_v19  ;;  %v5835_v13 = vadd.f32 %v4928_v25, %v2802_v17  ;;  %3331 = vmatprep.subr.bf16.mxu1 %v4690_v43  ;;  %v4715_v17 = vld [vmem:[%s6306_s7 + $0x1c0] ss:$16 sps:$4 sm:$0xff]   ;;  %v4718_v19 = vld [vmem:[%s6306_s7 + $0x1c8] ss:$16 sps:$4 sm:$0xff]  }
0x13e1   : > { %v4721_v25 = vld [vmem:[%s6306_s7 + $0x1a0] ss:$16 sps:$4 sm:$0xff]  }
0x13e2   : > { %v2812_v59 = vadd.f32 %v5835_v13, %v5832_v21  ;;  %3299 = vmatpush2.bf16.msra.mxu0 %v4715_v17  ;;  %v4751_v43 = vld [vmem:[%s6306_s7 + $0x100] ss:$16 sps:$4 sm:$0xff]   ;;  %v4768_v17 = vld [vmem:[%s6308_s9 + $0x164] ss:$8 sps:$4 sm:$0xff]  }
0x13e3   : > { %3332 = vmatpush1.bf16.msra.mxu1 %v4688_v49  ;;  %3300 = vmatprep.subr.bf16.mxu0 %v4723_v20  ;;  %v4759_v49 = vld [vmem:[%s6308_s9 + $0x74] ss:$8 sps:$4 sm:$0xff]   ;;  %v4766_v20 = vld [vmem:[%s6308_s9 + $0x160] ss:$8 sps:$4 sm:$0xff]  }
0x13e4   : > { %2813 = vadd.xlane.f32.xlu0 %v2812_v59  ;;  %3333 = vmatprep.subr.bf16.mxu1 %v4696_v46  ;;  %v4729_v59 = vld [vmem:[%s6306_s7 + $0x184] ss:$16 sps:$4 sm:$0xff]  }
0x13e6   : > { %3301 = vmatpush2.bf16.msra.mxu0 %v4721_v25  ;;  %v4774_v25 = vld [vmem:[%s6308_s9 + $0x154] ss:$8 sps:$4 sm:$0xff]  }
0x13e7   : > { %3334 = vmatpush1.bf16.msra.mxu1 %v4694_v52  ;;  %3302 = vmatprep.subr.bf16.mxu0 %v4729_v59  ;;  %v4772_v59 = vld [vmem:[%s6308_s9 + $0x150] ss:$8 sps:$4 sm:$0xff]  }
0x13e8   : > { %3335 = vmatprep.subr.bf16.mxu1 %v4702_v54 }
0x13ea   : > { %3303 = vmatpush2.bf16.msra.mxu0 %v4727_v6  ;;  %v4777_v6 = vld [vmem:[%s6308_s9 + $0x44] ss:$8 sps:$4 sm:$0xff]  }
0x13eb   : > { %3336 = vmatpush1.bf16.msra.mxu1 %v4700_v56  ;;  %3304 = vmatprep.subr.bf16.mxu0 %v4735_v32  ;;  %v2807_v56 = vld [vmem:[%s6304_s5] sm:$0x3] }
0x13ec   : > { %3337 = vmatprep.subr.bf16.mxu1 %v4708_v58  ;;  %v2808_v58 = vld [vmem:[%s6305_s6] sm:$0x3]  ;;  %v2850_v63 = vrot.slane %v2807_v56, %v5600_v60 }
0x13ed   : > { %v4778_v32 = vld [vmem:[%s6308_s9 + $0x140] ss:$8 sps:$4 sm:$0xff]  }
0x13ee   : > { %3305 = vmatpush2.bf16.msra.mxu0 %v4733_v34  ;;  %v4786_v34 = vld [vmem:[%s6308_s9 + $0x134] ss:$8 sps:$4 sm:$0xff]  }
0x13ef   : > { %3338 = vmatpush1.bf16.msra.mxu1 %v4706_v62  ;;  %3306 = vmatprep.subr.bf16.mxu0 %v4741_v38  ;;  %v2846_v62 = vrot.slane %v2807_v56, %v5355_v15  ;;  %v4784_v38 = vld [vmem:[%s6308_s9 + $0x130] ss:$8 sps:$4 sm:$0xff]   ;;  %v4814_v56 = vld [vmem:[%s6308_s9 + $0x1e0] ss:$8 sps:$4 sm:$0xff]  }
0x13f0   : > { %3339 = vmatprep.subr.bf16.mxu1 %v4714_v1 }
0x13f2   : > { %3307 = vmatpush2.bf16.msra.mxu0 %v4739_v37  ;;  %v4792_v37 = vld [vmem:[%s6308_s9 + $0x124] ss:$8 sps:$4 sm:$0xff]  }
0x13f3   : > { %3340 = vmatpush2.bf16.msra.mxu1 %v4712_v4  ;;  %3308 = vmatprep.subr.bf16.mxu0 %v4747_v40  ;;  %v2861_v4 = vrot.slane %v2808_v58, %v5355_v15  ;;  %v4790_v40 = vld [vmem:[%s6308_s9 + $0x120] ss:$8 sps:$4 sm:$0xff]  }
0x13f6   : > { %3309 = vmatpush2.bf16.msra.mxu0 %v4745_v41  ;;  %v4798_v41 = vld [vmem:[%s6308_s9 + $0x114] ss:$8 sps:$4 sm:$0xff]  }
0x13f7   : > { %3310 = vmatprep.subr.bf16.mxu0 %v4753_v0  ;;  %v4796_v0 = vld [vmem:[%s6308_s9 + $0x110] ss:$8 sps:$4 sm:$0xff]  }
0x13fa   : > { %3311 = vmatpush2.bf16.msra.mxu0 %v4751_v43  ;;  %v4804_v43 = vld [vmem:[%s6308_s9 + $0x104] ss:$8 sps:$4 sm:$0xff]  }
0x13fb   : > { %3774 = vmatprep.subr.bf16.mxu0 %v4759_v49  ;;  %v4802_v49 = vld [vmem:[%s6308_s9 + $0x100] ss:$8 sps:$4 sm:$0xff]  }
0x1469   : > { %v2811_v31 = vpop.xlane.xlu0 %2810 }
0x146a   : > { %v2816_v7 = vmul.f32 0.00390625, %v2811_v31  ;;  %v2865_v31 = vrot.slane %v2808_v58, %v5600_v60  ;;  %v4822_v58 = vld [vmem:[%s6308_s9 + $0x1d4] ss:$8 sps:$4 sm:$0xff]  }
0x146c   : > { %v5948_v3 = vsub.f32 %v5824_v48, %v2816_v7  ;;  %v5951_v42 = vsub.f32 %v5827_v16, %v2816_v7  ;;  %v4720_v16 = vld [vmem:[%s6306_s7 + $0x1cc] ss:$16 sps:$4 sm:$0xff]  }
0x146d   : > { %v2814_v5 = vpop.xlane.xlu0 %2813  ;;  %3341 = vmatprep.subr.bf16.mxu1 %v4720_v16  ;;  %v4765_v16 = vld [vmem:[%s6308_s9 + $0x64] ss:$8 sps:$4 sm:$0xff]  }
0x146e   : > { %v2817_v24 = vmul.f32 0.00390625, %v2814_v5  ;;  %v2822_v50 = vmul.f32 %v5948_v3, %v5948_v3  ;;  %v2823_v30 = vmul.f32 %v5951_v42, %v5951_v42  ;;  %3342 = vmatpush2.bf16.msra.mxu1 %v4718_v19  ;;  %v4763_v19 = vld [vmem:[%s6308_s9 + $0x60] ss:$8 sps:$4 sm:$0xff]  }
0x1470   : > { %v5958_v23 = vsub.f32 %v5832_v21, %v2817_v24  ;;  %v5961_v26 = vsub.f32 %v5835_v13, %v2817_v24  ;;  %v2826_v11 = vadd.f32 %v2823_v30, %v2822_v50  ;;  %v4726_v21 = vld [vmem:[%s6306_s7 + $0x1ac] ss:$16 sps:$4 sm:$0xff]   ;;  %v4724_v13 = vld [vmem:[%s6306_s7 + $0x1a8] ss:$16 sps:$4 sm:$0xff]  }
0x1471   : > { %3343 = vmatprep.subr.bf16.mxu1 %v4726_v21  ;;  %v4771_v21 = vld [vmem:[%s6308_s9 + $0x54] ss:$8 sps:$4 sm:$0xff]  }
0x1472   : > { %2827 = vadd.xlane.f32.xlu0 %v2826_v11  ;;  %v2824_v22 = vmul.f32 %v5958_v23, %v5958_v23  ;;  %v2825_v12 = vmul.f32 %v5961_v26, %v5961_v26  ;;  %3344 = vmatpush2.bf16.msra.mxu1 %v4724_v13  ;;  %v4769_v13 = vld [vmem:[%s6308_s9 + $0x50] ss:$8 sps:$4 sm:$0xff]  }
0x1473   : > { %3345 = vmatprep.subr.bf16.mxu1 %v4732_v29  ;;  %v4775_v29 = vld [vmem:[%s6308_s9 + $0x40] ss:$8 sps:$4 sm:$0xff]  }
0x1474   : > { %v2829_v48 = vadd.f32 %v2825_v12, %v2824_v22 }
0x1476   : > { %2830 = vadd.xlane.f32.xlu0 %v2829_v48  ;;  %3346 = vmatpush2.bf16.msra.mxu1 %v4730_v28  ;;  %v4780_v28 = vld [vmem:[%s6308_s9 + $0x144] ss:$8 sps:$4 sm:$0xff]  }
0x1477   : > { %3347 = vmatprep.subr.bf16.mxu1 %v4738_v33  ;;  %v4783_v33 = vld [vmem:[%s6308_s9 + $0x34] ss:$8 sps:$4 sm:$0xff]  }
0x147a   : > { %3348 = vmatpush2.bf16.msra.mxu1 %v4736_v35  ;;  %v4781_v35 = vld [vmem:[%s6308_s9 + $0x30] ss:$8 sps:$4 sm:$0xff]  }
0x147b   : > { %3349 = vmatprep.subr.bf16.mxu1 %v4744_v36  ;;  %v4789_v36 = vld [vmem:[%s6308_s9 + $0x24] ss:$8 sps:$4 sm:$0xff]  }
0x147e   : > { %3350 = vmatpush2.bf16.msra.mxu1 %v4742_v39  ;;  %v4787_v39 = vld [vmem:[%s6308_s9 + $0x20] ss:$8 sps:$4 sm:$0xff]  }
0x147f   : > { %3351 = vmatprep.subr.bf16.mxu1 %v4750_v10  ;;  %v4795_v10 = vld [vmem:[%s6308_s9 + $0x14] ss:$8 sps:$4 sm:$0xff]  }
0x1482   : > { %3352 = vmatpush2.bf16.msra.mxu1 %v4748_v27  ;;  %v4793_v27 = vld [vmem:[%s6308_s9 + $0x10] ss:$8 sps:$4 sm:$0xff]  }
0x1483   : > { %3353 = vmatprep.subr.bf16.mxu1 %v4756_v18  ;;  %v4801_v18 = vld [vmem:[%s6308_s9 + $0x4] ss:$8 sps:$4 sm:$0xff]  }
0x1486   : > { %3354 = vmatpush2.bf16.msra.mxu1 %v4754_v44  ;;  %v4799_v44 = vld [vmem:[%s6308_s9] ss:$8 sps:$4 sm:$0xff]  }
0x1487   : > { %3817 = vmatprep.subr.bf16.mxu1 %v4762_v51  ;;  %v4807_v51 = vld [vmem:[%s6308_s9 + $0xf4] ss:$8 sps:$4 sm:$0xff]  }
0x14fb   : > { %v2828_v46 = vpop.xlane.xlu0 %2827 }
0x14fc   : > { %v2832_v47 = vmul.f32 0.00390625, %v2828_v46  ;;  %v4810_v46 = vld [vmem:[%s6308_s9 + $0x1f4] ss:$8 sps:$4 sm:$0xff]  }
0x14fe   : > { %v2834_v52 = vadd.f32 1e-05, %v2832_v47  ;;  %v4805_v47 = vld [vmem:[%s6308_s9 + $0xf0] ss:$8 sps:$4 sm:$0xff]  }
0x14ff   : > { %v2831_v53 = vpop.xlane.xlu0 %2830 }
0x1500   : > { %4917 = vrsqrt.f32 %v2834_v52  ;;  %v2833_v54 = vmul.f32 0.00390625, %v2831_v53  ;;  %v4808_v52 = vld [vmem:[%s6308_s9 + $0x1f0] ss:$8 sps:$4 sm:$0xff]   ;;  %v4813_v53 = vld [vmem:[%s6308_s9 + $0xe4] ss:$8 sps:$4 sm:$0xff]  }
0x1502   : > { %v2835_v55 = vadd.f32 1e-05, %v2833_v54  ;;  %v4816_v54 = vld [vmem:[%s6308_s9 + $0x1e4] ss:$8 sps:$4 sm:$0xff]  }
0x1504   : > { %4919 = vrsqrt.f32 %v2835_v55  ;;  %v4811_v55 = vld [vmem:[%s6308_s9 + $0xe0] ss:$8 sps:$4 sm:$0xff]  }
0x150d   : > { %v4918_v57 = vpop.eup %4917 }
0x150e   : > { %v2839_v61 = vmul.f32 %v4918_v57, %v5951_v42  ;;  %v2838_v1 = vmul.f32 %v4918_v57, %v5948_v3  ;;  %v4819_v57 = vld [vmem:[%s6308_s9 + $0xd4] ss:$8 sps:$4 sm:$0xff]  }
0x1510   : > { %v2854_v5 = vmul.f32 %v2850_v63, %v2839_v61  ;;  %v2853_v50 = vmul.f32 %v2846_v62, %v2838_v1  ;;  %v4817_v61 = vld [vmem:[%s6308_s9 + $0xd0] ss:$8 sps:$4 sm:$0xff]   ;;  %v4828_v1 = vld [vmem:[%s6308_s9 + $0x1c4] ss:$8 sps:$4 sm:$0xff]  }
0x1511   : > { %v4920_v2 = vpop.eup %4919 }
0x1512   : > { %v2841_v7 = vmul.f32 %v4920_v2, %v5961_v26  ;;  %v2840_v24 = vmul.f32 %v4920_v2, %v5958_v23  ;;  %v6071_v42 = vadd.f32 %v2865_v31, %v2854_v5  ;;  %v6075_v12 = vadd.f32 %v2861_v4, %v2853_v50  ;;  %v4757_v23 = vld [vmem:[%s6308_s9 + $0x70] ss:$8 sps:$4 sm:$0xff]   ;;  %v4823_v2 = vld [vmem:[%s6308_s9 + $0xc0] ss:$8 sps:$4 sm:$0xff]   ;;  %v4837_v50 = vld [vmem:[%s6308_s9 + $0xa4] ss:$8 sps:$4 sm:$0xff]  }
0x1513   : > { %v4829_v5 = vld [vmem:[%s6308_s9 + $0xb0] ss:$8 sps:$4 sm:$0xff]  }
0x1514   : > { %v2856_v30 = vmul.f32 %v2850_v63, %v2841_v7  ;;  %v2855_v11 = vmul.f32 %v2846_v62, %v2840_v24  ;;  %v4820_v62 = vld [vmem:[%s6308_s9 + $0x1d0] ss:$8 sps:$4 sm:$0xff]   ;;  %v4825_v63 = vld [vmem:[%s6308_s9 + $0xc4] ss:$8 sps:$4 sm:$0xff]   ;;  %v4834_v7 = vld [vmem:[%s6308_s9 + $0x1b4] ss:$8 sps:$4 sm:$0xff]  }
0x1515   : > { %v4832_v24 = vld [vmem:[%s6308_s9 + $0x1b0] ss:$8 sps:$4 sm:$0xff]  }
0x1516   : > { %v6073_v22 = vadd.f32 %v2865_v31, %v2856_v30  ;;  %v6077_v3 = vadd.f32 %v2861_v4, %v2855_v11  ;;  %v4826_v4 = vld [vmem:[%s6308_s9 + $0x1c0] ss:$8 sps:$4 sm:$0xff]   ;;  %v4831_v31 = vld [vmem:[%s6308_s9 + $0xb4] ss:$8 sps:$4 sm:$0xff]   ;;  %v4840_v30 = vld [vmem:[%s6308_s9 + $0x1a4] ss:$8 sps:$4 sm:$0xff]  }
0x1517   : > { %v4835_v11 = vld [vmem:[%s6308_s9 + $0xa0] ss:$8 sps:$4 sm:$0xff]  }
0x1518   : > { %v2873_v48 = vpack.c.bf16 %v6073_v22, %v6071_v42  ;;  %v2872_v26 = vpack.c.bf16 %v6077_v3, %v6075_v12 }
0x151a   : > { %3312 = vmatprep.mubr.bf16.mxu0 %v2873_v48  ;;  %3355 = vmatprep.mubr.bf16.mxu1 %v2873_v48  ;;  %v4838_v48 = vld [vmem:[%s6308_s9 + $0x1a0] ss:$8 sps:$4 sm:$0xff]  }
0x151b   : > { %3313 = vmatmul.mubr.bf16.vlgmr.msra.gmra.mxu0 %v2872_v26  ;;  %3356 = vmatmul.mubr.bf16.vlgmr.msra.gmra.mxu1 %v2872_v26  ;;  %v4843_v26 = vld [vmem:[%s6308_s9 + $0x94] ss:$8 sps:$4 sm:$0xff]  }
0x151c   : > { %3775 = vmatpush1.bf16.msra.mxu0 %v4757_v23  ;;  %3818 = vmatpush1.bf16.msra.mxu1 %v4760_v14  ;;  %v4846_v23 = vld [vmem:[%s6308_s9 + $0x194] ss:$8 sps:$4 sm:$0xff]   ;;  %v4841_v14 = vld [vmem:[%s6308_s9 + $0x90] ss:$8 sps:$4 sm:$0xff]  }
0x151d   : > { %3776 = vmatprep.subr.bf16.mxu0 %v4765_v16  ;;  %3819 = vmatprep.subr.bf16.mxu1 %v4768_v17  ;;  %v4844_v16 = vld [vmem:[%s6308_s9 + $0x190] ss:$8 sps:$4 sm:$0xff]   ;;  %v4849_v17 = vld [vmem:[%s6308_s9 + $0x84] ss:$8 sps:$4 sm:$0xff]  }
0x1520   : > { %3777 = vmatpush1.bf16.msra.mxu0 %v4763_v19  ;;  %3820 = vmatpush1.bf16.msra.mxu1 %v4766_v20  ;;  %v4852_v19 = vld [vmem:[%s6308_s9 + $0x184] ss:$8 sps:$4 sm:$0xff]   ;;  %v4847_v20 = vld [vmem:[%s6308_s9 + $0x80] ss:$8 sps:$4 sm:$0xff]  }
0x1521   : > { %3778 = vmatprep.subr.bf16.mxu0 %v4771_v21  ;;  %3821 = vmatprep.subr.bf16.mxu1 %v4774_v25  ;;  %v4850_v21 = vld [vmem:[%s6308_s9 + $0x180] ss:$8 sps:$4 sm:$0xff]  }
0x1522   : > { %v2938_v25 = vld [vmem:[%s6307_s8] sm:$0xf] }
0x1524   : > { %3779 = vmatpush1.bf16.msra.mxu0 %v4769_v13  ;;  %3822 = vmatpush1.bf16.msra.mxu1 %v4772_v59 }
0x1525   : > { %3780 = vmatprep.subr.bf16.mxu0 %v4777_v6  ;;  %3823 = vmatprep.subr.bf16.mxu1 %v4780_v28  ;;  %v2947_v6 = vrot.slane %v2938_v25, %v5600_v60  ;;  %v2955_v28 = vrot.slane %v2938_v25, %v586_v45 }
0x1528   : > { %3781 = vmatpush1.bf16.msra.mxu0 %v4775_v29  ;;  %3824 = vmatpush1.bf16.msra.mxu1 %v4778_v32  ;;  %v2943_v29 = vrot.slane %v2938_v25, %v5355_v15  ;;  %v2951_v32 = vrot.slane %v2938_v25, %v582_v9 }
0x1529   : > { %3782 = vmatprep.subr.bf16.mxu0 %v4783_v33  ;;  %3825 = vmatprep.subr.bf16.mxu1 %v4786_v34 }
0x152c   : > { %3783 = vmatpush1.bf16.msra.mxu0 %v4781_v35  ;;  %3826 = vmatpush1.bf16.msra.mxu1 %v4784_v38 }
0x152d   : > { %3784 = vmatprep.subr.bf16.mxu0 %v4789_v36  ;;  %3827 = vmatprep.subr.bf16.mxu1 %v4792_v37 }
0x1530   : > { %3785 = vmatpush1.bf16.msra.mxu0 %v4787_v39  ;;  %3828 = vmatpush1.bf16.msra.mxu1 %v4790_v40 }
0x1531   : > { %3786 = vmatprep.subr.bf16.mxu0 %v4795_v10  ;;  %3829 = vmatprep.subr.bf16.mxu1 %v4798_v41 }
0x1534   : > { %3787 = vmatpush1.bf16.msra.mxu0 %v4793_v27  ;;  %3830 = vmatpush1.bf16.msra.mxu1 %v4796_v0 }
0x1535   : > { %3788 = vmatprep.subr.bf16.mxu0 %v4801_v18  ;;  %3831 = vmatprep.subr.bf16.mxu1 %v4804_v43 }
0x1538   : > { %3789 = vmatpush1.bf16.msra.mxu0 %v4799_v44  ;;  %3832 = vmatpush1.bf16.msra.mxu1 %v4802_v49 }
0x1539   : > { %3790 = vmatprep.subr.bf16.mxu0 %v4807_v51  ;;  %3833 = vmatprep.subr.bf16.mxu1 %v4810_v46 }
0x153c   : > { %3791 = vmatpush2.bf16.msra.mxu0 %v4805_v47  ;;  %3834 = vmatpush2.bf16.msra.mxu1 %v4808_v52 }
0x153d   : > { %3792 = vmatprep.subr.bf16.mxu0 %v4813_v53  ;;  %3835 = vmatprep.subr.bf16.mxu1 %v4816_v54 }
0x1540   : > { %3793 = vmatpush2.bf16.msra.mxu0 %v4811_v55  ;;  %3836 = vmatpush2.bf16.msra.mxu1 %v4814_v56  ;;  %v3442_v56 = vld [vmem:[%s6309_s10] sm:$0x3] }
0x1541   : > { %3794 = vmatprep.subr.bf16.mxu0 %v4819_v57  ;;  %3837 = vmatprep.subr.bf16.mxu1 %v4822_v58  ;;  %v3447_v57 = vrot.slane %v3442_v56, %v5355_v15  ;;  %v3451_v58 = vrot.slane %v3442_v56, %v5600_v60 }
0x1544   : > { %3795 = vmatpush2.bf16.msra.mxu0 %v4817_v61  ;;  %3838 = vmatpush2.bf16.msra.mxu1 %v4820_v62 }
0x1545   : > { %3796 = vmatprep.subr.bf16.mxu0 %v4825_v63  ;;  %3839 = vmatprep.subr.bf16.mxu1 %v4828_v1 }
0x1548   : > { %3797 = vmatpush2.bf16.msra.mxu0 %v4823_v2  ;;  %3840 = vmatpush2.bf16.msra.mxu1 %v4826_v4 }
0x1549   : > { %3798 = vmatprep.subr.bf16.mxu0 %v4831_v31  ;;  %3841 = vmatprep.subr.bf16.mxu1 %v4834_v7 }
0x154c   : > { %3799 = vmatpush2.bf16.msra.mxu0 %v4829_v5  ;;  %3842 = vmatpush2.bf16.msra.mxu1 %v4832_v24 }
0x154d   : > { %3800 = vmatprep.subr.bf16.mxu0 %v4837_v50  ;;  %3843 = vmatprep.subr.bf16.mxu1 %v4840_v30 }
0x1550   : > { %3801 = vmatpush2.bf16.msra.mxu0 %v4835_v11  ;;  %3844 = vmatpush2.bf16.msra.mxu1 %v4838_v48 }
0x1551   : > { %3802 = vmatprep.subr.bf16.mxu0 %v4843_v26  ;;  %3845 = vmatprep.subr.bf16.mxu1 %v4846_v23 }
0x1554   : > { %3803 = vmatpush2.bf16.msra.mxu0 %v4841_v14  ;;  %3846 = vmatpush2.bf16.msra.mxu1 %v4844_v16 }
0x1555   : > { %3804 = vmatprep.subr.bf16.mxu0 %v4849_v17  ;;  %3847 = vmatprep.subr.bf16.mxu1 %v4852_v19 }
0x1558   : > { %3805 = vmatpush2.bf16.msra.mxu0 %v4847_v20  ;;  %3848 = vmatpush2.bf16.msra.mxu1 %v4850_v21 }
0x15db   : > { %v3314_v13 = vpop.f32.mrf.mxu0  ;;  %v3357_v59 = vpop.f32.mrf.mxu1 }
0x15dc   : > { %v3315_v10 = vadd.f32 %v3314_v13, %v2943_v29  ;;  %v3358_v41 = vadd.f32 %v3357_v59, %v2951_v32 }
0x15dd   : > { %v3316_v33 = vpop.f32.mrf.mxu0  ;;  %v3359_v34 = vpop.f32.mrf.mxu1 }
0x15de   : > { %v3317_v36 = vadd.f32 %v3316_v33, %v2947_v6  ;;  %v3360_v37 = vadd.f32 %v3359_v34, %v2955_v28  ;;  %v3366_v46 = vmax.f32 %v3315_v10, 0.0  ;;  %v3368_v47 = vmax.f32 %v3358_v41, 0.0  ;;  %v3864_v41 = vld [vmem:[#allocation2] sm:$0x3] }
0x15df   : > { %v3318_v35 = vpop.f32.mrf.mxu0  ;;  %v3361_v38 = vpop.f32.mrf.mxu1 }
0x15e0   : > { %v3319_v39 = vadd.f32 %v3318_v35, %v2943_v29  ;;  %v3362_v40 = vadd.f32 %v3361_v38, %v2951_v32  ;;  %v3367_v49 = vmax.f32 %v3317_v36, 0.0  ;;  %v3369_v51 = vmax.f32 %v3360_v37, 0.0 }
0x15e1   : > { %v3320_v27 = vpop.f32.mrf.mxu0  ;;  %v3363_v0 = vpop.f32.mrf.mxu1 }
0x15e2   : > { %v3321_v18 = vadd.f32 %v3320_v27, %v2947_v6  ;;  %v3364_v43 = vadd.f32 %v3363_v0, %v2955_v28  ;;  %v3370_v45 = vmax.f32 %v3319_v39, 0.0  ;;  %v3372_v44 = vmax.f32 %v3362_v40, 0.0  ;;  %v3865_v27 = vld [vmem:[#allocation4] sm:$0x3] }
0x15e3   : > { %v3902_v0 = vrot.slane %v3864_v41, %v5355_v15 }
0x15e4   : > { %v3371_v8 = vmax.f32 %v3321_v18, 0.0  ;;  %v3373_v9 = vmax.f32 %v3364_v43, 0.0  ;;  %v3374_v54 = vpack.c.bf16 %v3370_v45, %v3366_v46  ;;  %v3376_v55 = vpack.c.bf16 %v3372_v44, %v3368_v47 }
0x15e5   : > { %v3906_v18 = vrot.slane %v3864_v41, %v5600_v60  ;;  %v3917_v45 = vrot.slane %v3865_v27, %v5355_v15  ;;  %v3921_v44 = vrot.slane %v3865_v27, %v5600_v60 }
0x15e6   : > { %v3375_v52 = vpack.c.bf16 %v3371_v8, %v3367_v49  ;;  %v3377_v53 = vpack.c.bf16 %v3373_v9, %v3369_v51 }
0x15e8   : > { %3806 = vmatprep.mubr.bf16.mxu0 %v3375_v52  ;;  %3849 = vmatprep.mubr.bf16.mxu1 %v3377_v53 }
0x15e9   : > { %3807 = vmatmul.mubr.bf16.vlgmr.msra.gmra.mxu0 %v3374_v54  ;;  %3850 = vmatmul.mubr.bf16.vlgmr.msra.gmra.mxu1 %v3376_v55 }
0x16a9   : > { %v3808_v61 = vpop.f32.mrf.mxu0  ;;  %v3851_v62 = vpop.f32.mrf.mxu1 }
0x16aa   : > { %v3809_v63 = vadd.f32 %v3808_v61, %v3447_v57 }
0x16ab   : > { %v3810_v1 = vpop.f32.mrf.mxu0  ;;  %v3853_v2 = vpop.f32.mrf.mxu1 }
0x16ac   : > { %v3852_v4 = vadd.f32 %v3851_v62, %v3809_v63  ;;  %v3811_v31 = vadd.f32 %v3810_v1, %v3451_v58 }
0x16ad   : > { %v3812_v7 = vpop.f32.mrf.mxu0  ;;  %v3855_v5 = vpop.f32.mrf.mxu1 }
0x16ae   : > { %v3854_v24 = vadd.f32 %v3853_v2, %v3811_v31  ;;  %v3813_v50 = vadd.f32 %v3812_v7, %v3447_v57  ;;  %v3860_v11 = vadd.f32 %v3852_v4, %v6075_v12 }
0x16af   : > { %v3814_v30 = vpop.f32.mrf.mxu0  ;;  %v3857_v14 = vpop.f32.mrf.mxu1 }
0x16b0   : > { %v3861_v48 = vadd.f32 %v3854_v24, %v6071_v42  ;;  %v3856_v26 = vadd.f32 %v3855_v5, %v3813_v50  ;;  %v3815_v23 = vadd.f32 %v3814_v30, %v3451_v58 }
0x16b2   : > { %v3858_v16 = vadd.f32 %v3857_v14, %v3815_v23  ;;  %v3866_v17 = vadd.f32 %v3861_v48, %v3860_v11  ;;  %v3862_v19 = vadd.f32 %v3856_v26, %v6077_v3 }
0x16b4   : > { %v3863_v20 = vadd.f32 %v3858_v16, %v6073_v22  ;;  %3867 = vadd.xlane.f32.xlu1 %v3866_v17 }
0x16b6   : > { %v3869_v21 = vadd.f32 %v3863_v20, %v3862_v19 }
0x16b8   : > { %3870 = vadd.xlane.f32.xlu0 %v3869_v21 }
0x173d   : > { %v3868_v25 = vpop.xlane.xlu1 %3867 }
0x173e   : > { %v3872_v13 = vmul.f32 0.00390625, %v3868_v25 }
0x1740   : > { %v3874_v59 = vsub.f32 %v3860_v11, %v3872_v13  ;;  %v3875_v6 = vsub.f32 %v3861_v48, %v3872_v13 }
0x1741   : > { %v3871_v28 = vpop.xlane.xlu0 %3870 }
0x1742   : > { %v3873_v12 = vmul.f32 0.00390625, %v3871_v28  ;;  %v3878_v29 = vmul.f32 %v3874_v59, %v3874_v59  ;;  %v3879_v42 = vmul.f32 %v3875_v6, %v3875_v6 }
0x1744   : > { %v3876_v32 = vsub.f32 %v3862_v19, %v3873_v12  ;;  %v3877_v33 = vsub.f32 %v3863_v20, %v3873_v12  ;;  %v3882_v34 = vadd.f32 %v3879_v42, %v3878_v29 }
0x1746   : > { %3883 = vadd.xlane.f32.xlu0 %v3882_v34  ;;  %v3880_v35 = vmul.f32 %v3876_v32, %v3876_v32  ;;  %v3881_v38 = vmul.f32 %v3877_v33, %v3877_v33 }
0x1748   : > { %v3885_v3 = vadd.f32 %v3881_v38, %v3880_v35 }
0x174a   : > { %3886 = vadd.xlane.f32.xlu0 %v3885_v3 }
0x17cf   : > { %v3884_v22 = vpop.xlane.xlu0 %3883 }
0x17d0   : > { %v3888_v36 = vmul.f32 0.00390625, %v3884_v22 }
0x17d2   : > { %v3890_v37 = vadd.f32 1e-05, %v3888_v36 }
0x17d3   : > { %v3887_v39 = vpop.xlane.xlu0 %3886 }
0x17d4   : > { %4921 = vrsqrt.f32 %v3890_v37  ;;  %v3889_v40 = vmul.f32 0.00390625, %v3887_v39 }
0x17d6   : > { %v3891_v10 = vadd.f32 1e-05, %v3889_v40 }
0x17d8   : > { %4923 = vrsqrt.f32 %v3891_v10 }
0x17e1   : > { %v4922_v43 = vpop.eup %4921 }
0x17e2   : > { %v3894_v49 = vmul.f32 %v4922_v43, %v3874_v59  ;;  %v3895_v51 = vmul.f32 %v4922_v43, %v3875_v6 }
0x17e4   : > { %v3909_v8 = vmul.f32 %v3902_v0, %v3894_v49  ;;  %v3910_v9 = vmul.f32 %v3906_v18, %v3895_v51 }
0x17e5   : > { %v4924_v46 = vpop.eup %4923 }
0x17e6   : > { %v3924_v47 = vadd.f32 %v3917_v45, %v3909_v8  ;;  %v3925_v52 = vadd.f32 %v3921_v44, %v3910_v9  ;;  %v3896_v53 = vmul.f32 %v4924_v46, %v3876_v32  ;;  %v3897_v54 = vmul.f32 %v4924_v46, %v3877_v33 }
0x17e8   : > { %3928 = vst [vmem:[%s466_s14] sm:$0xff] %v3924_v47  ;;  %3929 = vst [vmem:[%s466_s14 + $0x8] sm:$0xff] %v3925_v52  ;;  %v3911_v55 = vmul.f32 %v3902_v0, %v3896_v53  ;;  %v3912_v15 = vmul.f32 %v3906_v18, %v3897_v54 }
0x17ea   : > { %v3926_v56 = vadd.f32 %v3917_v45, %v3911_v55  ;;  %v3927_v60 = vadd.f32 %v3921_v44, %v3912_v15 }
0x17ec   : > { %3930 = vst [vmem:[%s466_s14 + $0x10] sm:$0xff] %v3926_v56  ;;  %3931 = vst [vmem:[%s466_s14 + $0x18] sm:$0xff] %v3927_v60 }
0x17ed PF: > { %s25_s25 = sadd.s32 1, %s4995_s25  }
0x17ee   : > { %p22_p5 = scmp.ge.s32.totalorder %s25_s25, 4  }
0x17f0   :  { %24 = sbr.rel (!%p22_p5) target bundleno = 2 (0x2), region = 111 }
0x17f5   :  { %3953 = vsyncpa [#allocation3], 1 }
0x17f6   :  { %3955 = vsyncpa [#allocation3 + $0x1], 1 }
0x17f7   :  { %3956 = vsyncpa [#allocation5], 1 }

// kernel: unter_forward.23
= control target key start
LH: loop header
LB: loop body
LE: loop exit
PB: predicated region body
PF: predicated region fallthrough
CT: control target
= control target key end

     0   :  { %8 = vsyncpa [#allocation4], 0  ;;  %s1882_s0 = inlined_call_operand.vmem [shape: bf16[512,128], index: 0, kind: input, shape index: {}]   ;;  %s1883_s1 = inlined_call_operand.vmem [shape: bf16[128,256], index: 1, kind: input, shape index: {}]   ;;  %s1884_s2 = inlined_call_operand.vmem [shape: f32[1,256], index: 2, kind: input, shape index: {}]   ;;  %s1885_s3 = inlined_call_operand.hbm [shape: f32[512,256], index: 3, kind: output, shape index: {}]  }
   0x1   :  { %10 = vsyncpa [#allocation4 + $0x1], 0  ;;  %s1545_s12 = smov 0   ;;  %s1547_s13 = smov 0  }
   0x2   :  { %s1549_s14 = smov 0   ;;  %s1551_s15 = smov 0  }
   0x3   :  { %s1553_s16 = smov 0   ;;  %s1555_s17 = smov 0  }
   0x4 LB: > { %s1279_s18 = sadd.s32 4294967295, %s1519_s17   ;;  %s1280_s19 = sadd.s32 4294967294, %s1519_s17   ;;  %s1519_s17 = sphi %s1555_s17, %s16_s17   ;;  %s1515_s16 = sphi %s1553_s16, %s1892_s16   ;;  %s1511_s15 = sphi %s1551_s15, %s1891_s15   ;;  %s1507_s14 = sphi %s1549_s14, %s1890_s14   ;;  %s1503_s13 = sphi %s1547_s13, %s1889_s13   ;;  %s1499_s12 = sphi %s1545_s12, %s1888_s12  }
   0x5   : > { %s35_s20 = sadd.s32 1, %s1515_s16  ;;  %s126_s21 = sadd.s32 1, %s1507_s14 }
   0x6   : > { %p37_p0 = scmp.ge.s32.totalorder %s35_s20, 2  ;;  %p136_p1 = scmp.ne.s32.totalorder %s1507_s14, %s1503_s13 }
   0x7   : > { %p137_p2 = scmp.eq.s32.totalorder %s1279_s18, 1  ;;  %p142_p3 = scmp.ne.s32.totalorder %s1503_s13, %s1499_s12 }
   0x8   : > { %s1894_s20 = smov (%p37_p0, %s35_s20), 0  ;;  %p143_p5 = scmp.eq.s32.totalorder %s1280_s19, 1 }
   0x9   : > { %p1585_p4 = por %p137_p2, %p136_p1  ;;  %s121_s23 = ssub.s32 %s1515_s16, %s1894_s20 }
   0xa   : > { %p1285_p6 = scmp.ge.s32.totalorder %s1519_s17, 1  ;;  %p124_p7 = scmp.eq.s32.totalorder %s121_s23, 0 }
   0xb   : > { %p1592_p8 = por %p143_p5, %p142_p3  ;;  %p196_p9 = scmp.lt.s32.totalorder %s1519_s17, 3 }
   0xc   : > { %s1598_s25 = scalar_select %p124_p7, %s1507_s14, %s126_s21  }
   0xd   : > { %p197_p10 = pnand %p1285_p6, %p196_p9 }
   0xe   : > { %s1287_s28 = sshll.u32 (!%p197_p10), %s1511_s15, 5  ;;  %s234_s30 = sand.u32 (!%p197_p10), 1, %s1503_s13  }
   0xf   : > { %200 = sbr.rel (%p197_p10) target bundleno = 325 (0x145), region = 32  ;;  %p238_p11 = scmp.lt.s32.totalorder (!%p197_p10), %s1287_s28, 63 }
  0x10   : > { %s1286_s6 = sshll.u32 (!%p197_p10), %s234_s30, 9  ;;  %s1328_s7 = sshll.u32 (!%p197_p10), %s1511_s15, 13 }
  0x11   : > { %s1825_s11 = scalar_lea.hbm (!%p197_p10), %s1885_s3, %s1328_s7  ;;  %s1837_s15 = scalar_lea.sflag (!%p197_p10), [#allocation4], %s234_s30 }
  0x12   : > { %s1522_s19 = smov (!%p197_p10), [#allocation3]  }
  0x13   : > { %s1447_s21 = sshll.u32 (!%p197_p10), %s1522_s19, 4  ;;  %s1448_s21 = int_to_ptr.vmem [resolvable:$false] %s1447_s21 }
  0x14   : > { %v1403_v0 = vld [vmem:[%s1883_s1 + $0x74] ss:$8 sps:$4 sm:$0xff]   ;;  %v1405_v1 = vld [vmem:[%s1883_s1 + $0x70] ss:$8 sps:$4 sm:$0xff]   ;;  %v1521_v2 = vmov 0   ;;  %s1896_s28 = smov (!%p238_p11, %s1287_s28), 63  ;;  %v1012_v33 = vlaneseq }
  0x15   : > { %654 = vmatprep.mubr.bf16.mxu0 %v1521_v2  ;;  %734 = vmatprep.mubr.bf16.mxu1 %v1521_v2  ;;  %v1406_v3 = vld [vmem:[%s1883_s1 + $0x64] ss:$8 sps:$4 sm:$0xff]   ;;  %v1408_v4 = vld [vmem:[%s1883_s1 + $0x60] ss:$8 sps:$4 sm:$0xff]   ;;  %v1409_v5 = vld [vmem:[%s1883_s1 + $0x54] ss:$8 sps:$4 sm:$0xff]  }
  0x16   : > { %622 = vmatprep.subr.bf16.mxu0 %v1403_v0  ;;  %1329 = vmatprep.subr.bf16.mxu1 %v1403_v0  ;;  %s1288_s10 = sshll.u32 %s1896_s28, 2  ;;  %v1411_v6 = vld [vmem:[%s1883_s1 + $0x50] ss:$8 sps:$4 sm:$0xff]   ;;  %v1412_v7 = vld [vmem:[%s1883_s1 + $0x44] ss:$8 sps:$4 sm:$0xff]   ;;  %v1013_v34 = vshrl.u32 %v1012_v33, 7 }
  0x17   : > { %623 = vmatpush1.bf16.msra.mxu0 %v1405_v1  ;;  %1337 = vmatpush1.bf16.msra.mxu1 %v1405_v1  ;;  %s1627_s27 = scalar_lea.vmem %s1882_s0, %s1288_s10  ;;  %v1414_v8 = vld [vmem:[%s1883_s1 + $0x40] ss:$8 sps:$4 sm:$0xff]   ;;  %v1415_v9 = vld [vmem:[%s1883_s1 + $0x34] ss:$8 sps:$4 sm:$0xff]   ;;  %v1417_v10 = vld [vmem:[%s1883_s1 + $0x30] ss:$8 sps:$4 sm:$0xff]  }
  0x18   : > { %624 = vmatprep.subr.bf16.mxu0 %v1406_v3  ;;  %1330 = vmatprep.subr.bf16.mxu1 %v1406_v3  ;;  %v1418_v11 = vld [vmem:[%s1883_s1 + $0x24] ss:$8 sps:$4 sm:$0xff]   ;;  %v1420_v12 = vld [vmem:[%s1883_s1 + $0x20] ss:$8 sps:$4 sm:$0xff]   ;;  %v1421_v13 = vld [vmem:[%s1883_s1 + $0x14] ss:$8 sps:$4 sm:$0xff]  }
  0x19   : > { %v1423_v14 = vld [vmem:[%s1883_s1 + $0x10] ss:$8 sps:$4 sm:$0xff]   ;;  %v1424_v15 = vld [vmem:[%s1883_s1 + $0x4] ss:$8 sps:$4 sm:$0xff]   ;;  %v1426_v16 = vld [vmem:[%s1883_s1] ss:$8 sps:$4 sm:$0xff]  }
  0x1a   : > { %v1427_v17 = vld [vmem:[%s1627_s27] sm:$0xff]   ;;  %v1429_v19 = vld [vmem:[%s1627_s27 + $0x8] sm:$0xff]   ;;  %v1431_v21 = vld [vmem:[%s1627_s27 + $0x10] sm:$0xff]   ;;  %v1014_v35 = vsub.s32 0, %v1013_v34  ;;  %v1018_v37 = vsub.s32 1, %v1013_v34  ;;  %s1449_s23 = scalar_lea.vmem %s1448_s21, 16384 }
  0x1b   : > { %625 = vmatpush1.bf16.msra.mxu0 %v1408_v4  ;;  %1338 = vmatpush1.bf16.msra.mxu1 %v1408_v4  ;;  %v1428_v18 = vld [vmem:[%s1627_s27 + $0x40] sm:$0xff]   ;;  %v1430_v20 = vld [vmem:[%s1627_s27 + $0x48] sm:$0xff]   ;;  %v1432_v22 = vld [vmem:[%s1627_s27 + $0x50] sm:$0xff]  }
  0x1c   : > { %626 = vmatprep.subr.bf16.mxu0 %v1409_v5  ;;  %1331 = vmatprep.subr.bf16.mxu1 %v1409_v5  ;;  %v1433_v23 = vld [vmem:[%s1627_s27 + $0x18] sm:$0xff]   ;;  %v1435_v25 = vld [vmem:[%s1627_s27 + $0x20] sm:$0xff]   ;;  %v1437_v27 = vld [vmem:[%s1627_s27 + $0x28] sm:$0xff]  }
  0x1d   : > { %v1434_v24 = vld [vmem:[%s1627_s27 + $0x58] sm:$0xff]   ;;  %v1436_v26 = vld [vmem:[%s1627_s27 + $0x60] sm:$0xff]   ;;  %v1438_v28 = vld [vmem:[%s1627_s27 + $0x68] sm:$0xff]  }
  0x1e   : > { %v1439_v29 = vld [vmem:[%s1627_s27 + $0x30] sm:$0xff]   ;;  %v1441_v31 = vld [vmem:[%s1627_s27 + $0x38] sm:$0xff]   ;;  %v1010_v36 = vld [vmem:[%s1884_s2] sm:$0x3] }
  0x1f   : > { %627 = vmatpush1.bf16.msra.mxu0 %v1411_v6  ;;  %1339 = vmatpush1.bf16.msra.mxu1 %v1411_v6  ;;  %v1440_v30 = vld [vmem:[%s1627_s27 + $0x70] sm:$0xff]   ;;  %v1442_v32 = vld [vmem:[%s1627_s27 + $0x78] sm:$0xff]   ;;  %v1692_v38 = vrot.slane %v1010_v36, %v1014_v35  ;;  %v1694_v39 = vrot.slane %v1010_v36, %v1018_v37  ;;  %s1698_s27 = scalar_lea.vmem [#allocation3], %s1286_s6 }
  0x20   : > { %628 = vmatprep.subr.bf16.mxu0 %v1412_v7  ;;  %1332 = vmatprep.subr.bf16.mxu1 %v1412_v7  ;;  %s1167_s8 = sshll.u32 %s1698_s27, 4  ;;  %s1827_s8 = int_to_ptr.vmem [resolvable:$true] %s1167_s8 }
  0x21   : > { %s1443_s18 = scalar_lea.vmem %s1827_s8, 8192  ;;  %p1450_p1 = scmp.lt.s32.totalorder %s1827_s8, %s1448_s21 }
  0x22   : > { %p1444_p12 = scmp.ne.s32.totalorder %s1827_s8, %s1443_s18  ;;  %p1451_p2 = scmp.lt.s32.totalorder %s1449_s23, %s1443_s18 }
  0x23   : > { %629 = vmatpush1.bf16.msra.mxu0 %v1414_v8  ;;  %1340 = vmatpush1.bf16.msra.mxu1 %v1414_v8 }
  0x24   : > { %630 = vmatprep.subr.bf16.mxu0 %v1415_v9  ;;  %1333 = vmatprep.subr.bf16.mxu1 %v1415_v9  ;;  %p1445_p13 = pnand %p1444_p12, %p1585_p4  ;;  %p1452_p3 = por %p1451_p2, %p1450_p1 }
  0x26   : > { %p1446_p0 = pneg %p1445_p13 }
  0x27   : > { %631 = vmatpush1.bf16.msra.mxu0 %v1417_v10  ;;  %1341 = vmatpush1.bf16.msra.mxu1 %v1417_v10 }
  0x28   : > { %632 = vmatprep.subr.bf16.mxu0 %v1418_v11  ;;  %1334 = vmatprep.subr.bf16.mxu1 %v1418_v11  ;;  %p1453_p5 = pnand %p1452_p3, %p1446_p0 }
  0x2b   : > { %633 = vmatpush1.bf16.msra.mxu0 %v1420_v12  ;;  %1342 = vmatpush1.bf16.msra.mxu1 %v1420_v12 }
  0x2c   : > { %634 = vmatprep.subr.bf16.mxu0 %v1421_v13  ;;  %1335 = vmatprep.subr.bf16.mxu1 %v1421_v13 }
  0x2f   : > { %635 = vmatpush1.bf16.msra.mxu0 %v1423_v14  ;;  %1343 = vmatpush1.bf16.msra.mxu1 %v1423_v14 }
  0x30   : > { %636 = vmatprep.subr.bf16.mxu0 %v1424_v15  ;;  %1336 = vmatprep.subr.bf16.mxu1 %v1424_v15 }
  0x33   : > { %637 = vmatpush1.bf16.msra.mxu0 %v1426_v16  ;;  %1344 = vmatpush1.bf16.msra.mxu1 %v1426_v16 }
  0x36   : > { %655 = vmatmul.mubr.bf16.vlgmr.msra.gmra.mxu0 %v1427_v17  ;;  %735 = vmatmul.mubr.bf16.vlgmr.msra.gmra.mxu1 %v1428_v18 }
  0x37   : > { %664 = vmatprep.mubr.bf16.mxu0 %v1521_v2  ;;  %744 = vmatprep.mubr.bf16.mxu1 %v1521_v2 }
  0x3e   : > { %665 = vmatmul.mubr.bf16.gmra.mxu0 %v1429_v19  ;;  %745 = vmatmul.mubr.bf16.gmra.mxu1 %v1430_v20 }
  0x3f   : > { %674 = vmatprep.mubr.bf16.mxu0 %v1521_v2  ;;  %754 = vmatprep.mubr.bf16.mxu1 %v1521_v2 }
  0x46   : > { %675 = vmatmul.mubr.bf16.gmra.mxu0 %v1431_v21  ;;  %755 = vmatmul.mubr.bf16.gmra.mxu1 %v1432_v22 }
  0x47   : > { %684 = vmatprep.mubr.bf16.mxu0 %v1521_v2  ;;  %764 = vmatprep.mubr.bf16.mxu1 %v1521_v2 }
  0x4e   : > { %685 = vmatmul.mubr.bf16.gmra.mxu0 %v1433_v23  ;;  %765 = vmatmul.mubr.bf16.gmra.mxu1 %v1434_v24 }
  0x4f   : > { %694 = vmatprep.mubr.bf16.mxu0 %v1521_v2  ;;  %774 = vmatprep.mubr.bf16.mxu1 %v1521_v2 }
  0x56   : > { %695 = vmatmul.mubr.bf16.gmra.mxu0 %v1435_v25  ;;  %775 = vmatmul.mubr.bf16.gmra.mxu1 %v1436_v26 }
  0x57   : > { %704 = vmatprep.mubr.bf16.mxu0 %v1521_v2  ;;  %784 = vmatprep.mubr.bf16.mxu1 %v1521_v2 }
  0x5e   : > { %705 = vmatmul.mubr.bf16.gmra.mxu0 %v1437_v27  ;;  %785 = vmatmul.mubr.bf16.gmra.mxu1 %v1438_v28 }
  0x5f   : > { %714 = vmatprep.mubr.bf16.mxu0 %v1521_v2  ;;  %794 = vmatprep.mubr.bf16.mxu1 %v1521_v2 }
  0x66   : > { %715 = vmatmul.mubr.bf16.gmra.mxu0 %v1439_v29  ;;  %795 = vmatmul.mubr.bf16.gmra.mxu1 %v1440_v30 }
  0x67   : > { %724 = vmatprep.mubr.bf16.mxu0 %v1521_v2  ;;  %804 = vmatprep.mubr.bf16.mxu1 %v1521_v2 }
  0x6e   : > { %725 = vmatmul.mubr.bf16.gmra.mxu0 %v1441_v31  ;;  %805 = vmatmul.mubr.bf16.gmra.mxu1 %v1442_v32 }
  0xf6   : > { %v656_v40 = vpop.f32.mrf.mxu0  ;;  %v736_v41 = vpop.f32.mrf.mxu1 }
  0xf7   : > { %v1022_v42 = vadd.f32 %v1692_v38, %v656_v40  ;;  %v1054_v43 = vadd.f32 %v1692_v38, %v736_v41 }
  0xf8   : > { %v658_v44 = vpop.f32.mrf.mxu0  ;;  %v738_v45 = vpop.f32.mrf.mxu1 }
  0xf9   : > { %1086 = vst [vmem:[%s1698_s27] sm:$0xff] %v1022_v42  ;;  %1118 = vst [vmem:[%s1698_s27 + $0x100] sm:$0xff] %v1054_v43  ;;  %v1023_v46 = vadd.f32 %v1694_v39, %v658_v44  ;;  %v1055_v47 = vadd.f32 %v1694_v39, %v738_v45 }
  0xfa   : > { %v660_v48 = vpop.f32.mrf.mxu0  ;;  %v740_v49 = vpop.f32.mrf.mxu1 }
  0xfb   : > { %1087 = vst [vmem:[%s1698_s27 + $0x8] sm:$0xff] %v1023_v46  ;;  %1119 = vst [vmem:[%s1698_s27 + $0x108] sm:$0xff] %v1055_v47  ;;  %v1024_v50 = vadd.f32 %v1692_v38, %v660_v48  ;;  %v1056_v51 = vadd.f32 %v1692_v38, %v740_v49 }
  0xfc   : > { %v662_v52 = vpop.f32.mrf.mxu0  ;;  %v742_v53 = vpop.f32.mrf.mxu1 }
  0xfd   : > { %1088 = vst [vmem:[%s1698_s27 + $0x10] sm:$0xff] %v1024_v50  ;;  %1120 = vst [vmem:[%s1698_s27 + $0x110] sm:$0xff] %v1056_v51  ;;  %v1025_v54 = vadd.f32 %v1694_v39, %v662_v52  ;;  %v1057_v55 = vadd.f32 %v1694_v39, %v742_v53 }
  0xfe   : > { %v666_v56 = vpop.f32.mrf.mxu0  ;;  %v746_v57 = vpop.f32.mrf.mxu1 }
  0xff   : > { %1089 = vst [vmem:[%s1698_s27 + $0x18] sm:$0xff] %v1025_v54  ;;  %1121 = vst [vmem:[%s1698_s27 + $0x118] sm:$0xff] %v1057_v55  ;;  %v1026_v58 = vadd.f32 %v1692_v38, %v666_v56  ;;  %v1058_v59 = vadd.f32 %v1692_v38, %v746_v57 }
 0x100   : > { %v668_v60 = vpop.f32.mrf.mxu0  ;;  %v748_v61 = vpop.f32.mrf.mxu1 }
 0x101   : > { %1090 = vst [vmem:[%s1698_s27 + $0x20] sm:$0xff] %v1026_v58  ;;  %1122 = vst [vmem:[%s1698_s27 + $0x120] sm:$0xff] %v1058_v59  ;;  %v1027_v62 = vadd.f32 %v1694_v39, %v668_v60  ;;  %v1059_v63 = vadd.f32 %v1694_v39, %v748_v61 }
 0x102   : > { %v670_v0 = vpop.f32.mrf.mxu0  ;;  %v750_v1 = vpop.f32.mrf.mxu1 }
 0x103   : > { %1091 = vst [vmem:[%s1698_s27 + $0x28] sm:$0xff] %v1027_v62  ;;  %1123 = vst [vmem:[%s1698_s27 + $0x128] sm:$0xff] %v1059_v63  ;;  %v1028_v2 = vadd.f32 %v1692_v38, %v670_v0  ;;  %v1060_v3 = vadd.f32 %v1692_v38, %v750_v1 }
 0x104   : > { %v672_v4 = vpop.f32.mrf.mxu0  ;;  %v752_v5 = vpop.f32.mrf.mxu1 }
 0x105   : > { %1092 = vst [vmem:[%s1698_s27 + $0x30] sm:$0xff] %v1028_v2  ;;  %1124 = vst [vmem:[%s1698_s27 + $0x130] sm:$0xff] %v1060_v3  ;;  %v1029_v6 = vadd.f32 %v1694_v39, %v672_v4  ;;  %v1061_v7 = vadd.f32 %v1694_v39, %v752_v5 }
 0x106   : > { %v676_v8 = vpop.f32.mrf.mxu0  ;;  %v756_v9 = vpop.f32.mrf.mxu1 }
 0x107   : > { %1093 = vst [vmem:[%s1698_s27 + $0x38] sm:$0xff] %v1029_v6  ;;  %1125 = vst [vmem:[%s1698_s27 + $0x138] sm:$0xff] %v1061_v7  ;;  %v1030_v10 = vadd.f32 %v1692_v38, %v676_v8  ;;  %v1062_v11 = vadd.f32 %v1692_v38, %v756_v9 }
 0x108   : > { %v678_v12 = vpop.f32.mrf.mxu0  ;;  %v758_v13 = vpop.f32.mrf.mxu1 }
 0x109   : > { %1094 = vst [vmem:[%s1698_s27 + $0x40] sm:$0xff] %v1030_v10  ;;  %1126 = vst [vmem:[%s1698_s27 + $0x140] sm:$0xff] %v1062_v11  ;;  %v1031_v14 = vadd.f32 %v1694_v39, %v678_v12  ;;  %v1063_v15 = vadd.f32 %v1694_v39, %v758_v13 }
 0x10a   : > { %v680_v16 = vpop.f32.mrf.mxu0  ;;  %v760_v17 = vpop.f32.mrf.mxu1 }
 0x10b   : > { %1095 = vst [vmem:[%s1698_s27 + $0x48] sm:$0xff] %v1031_v14  ;;  %1127 = vst [vmem:[%s1698_s27 + $0x148] sm:$0xff] %v1063_v15  ;;  %v1032_v18 = vadd.f32 %v1692_v38, %v680_v16  ;;  %v1064_v19 = vadd.f32 %v1692_v38, %v760_v17 }
 0x10c   : > { %v682_v20 = vpop.f32.mrf.mxu0  ;;  %v762_v21 = vpop.f32.mrf.mxu1 }
 0x10d   : > { %1096 = vst [vmem:[%s1698_s27 + $0x50] sm:$0xff] %v1032_v18  ;;  %1128 = vst [vmem:[%s1698_s27 + $0x150] sm:$0xff] %v1064_v19  ;;  %v1033_v22 = vadd.f32 %v1694_v39, %v682_v20  ;;  %v1065_v23 = vadd.f32 %v1694_v39, %v762_v21 }
 0x10e   : > { %v686_v24 = vpop.f32.mrf.mxu0  ;;  %v766_v25 = vpop.f32.mrf.mxu1 }
 0x10f   : > { %1097 = vst [vmem:[%s1698_s27 + $0x58] sm:$0xff] %v1033_v22  ;;  %1129 = vst [vmem:[%s1698_s27 + $0x158] sm:$0xff] %v1065_v23  ;;  %v1034_v26 = vadd.f32 %v1692_v38, %v686_v24  ;;  %v1066_v27 = vadd.f32 %v1692_v38, %v766_v25 }
 0x110   : > { %v688_v28 = vpop.f32.mrf.mxu0  ;;  %v768_v29 = vpop.f32.mrf.mxu1 }
 0x111   : > { %1098 = vst [vmem:[%s1698_s27 + $0x60] sm:$0xff] %v1034_v26  ;;  %1130 = vst [vmem:[%s1698_s27 + $0x160] sm:$0xff] %v1066_v27  ;;  %v1035_v30 = vadd.f32 %v1694_v39, %v688_v28  ;;  %v1067_v31 = vadd.f32 %v1694_v39, %v768_v29 }
 0x112   : > { %v690_v32 = vpop.f32.mrf.mxu0  ;;  %v770_v33 = vpop.f32.mrf.mxu1 }
 0x113   : > { %1099 = vst [vmem:[%s1698_s27 + $0x68] sm:$0xff] %v1035_v30  ;;  %1131 = vst [vmem:[%s1698_s27 + $0x168] sm:$0xff] %v1067_v31  ;;  %v1036_v34 = vadd.f32 %v1692_v38, %v690_v32  ;;  %v1068_v35 = vadd.f32 %v1692_v38, %v770_v33 }
 0x114   : > { %v692_v36 = vpop.f32.mrf.mxu0  ;;  %v772_v37 = vpop.f32.mrf.mxu1 }
 0x115   : > { %1100 = vst [vmem:[%s1698_s27 + $0x70] sm:$0xff] %v1036_v34  ;;  %1132 = vst [vmem:[%s1698_s27 + $0x170] sm:$0xff] %v1068_v35  ;;  %v1037_v40 = vadd.f32 %v1694_v39, %v692_v36  ;;  %v1069_v41 = vadd.f32 %v1694_v39, %v772_v37 }
 0x116   : > { %v696_v42 = vpop.f32.mrf.mxu0  ;;  %v776_v43 = vpop.f32.mrf.mxu1 }
 0x117   : > { %1101 = vst [vmem:[%s1698_s27 + $0x78] sm:$0xff] %v1037_v40  ;;  %1133 = vst [vmem:[%s1698_s27 + $0x178] sm:$0xff] %v1069_v41  ;;  %v1038_v44 = vadd.f32 %v1692_v38, %v696_v42  ;;  %v1070_v45 = vadd.f32 %v1692_v38, %v776_v43 }
 0x118   : > { %v698_v46 = vpop.f32.mrf.mxu0  ;;  %v778_v47 = vpop.f32.mrf.mxu1 }
 0x119   : > { %1102 = vst [vmem:[%s1698_s27 + $0x80] sm:$0xff] %v1038_v44  ;;  %1134 = vst [vmem:[%s1698_s27 + $0x180] sm:$0xff] %v1070_v45  ;;  %v1039_v48 = vadd.f32 %v1694_v39, %v698_v46  ;;  %v1071_v49 = vadd.f32 %v1694_v39, %v778_v47 }
 0x11a   : > { %v700_v50 = vpop.f32.mrf.mxu0  ;;  %v780_v51 = vpop.f32.mrf.mxu1 }
 0x11b   : > { %1103 = vst [vmem:[%s1698_s27 + $0x88] sm:$0xff] %v1039_v48  ;;  %1135 = vst [vmem:[%s1698_s27 + $0x188] sm:$0xff] %v1071_v49  ;;  %v1040_v52 = vadd.f32 %v1692_v38, %v700_v50  ;;  %v1072_v53 = vadd.f32 %v1692_v38, %v780_v51 }
 0x11c   : > { %v702_v54 = vpop.f32.mrf.mxu0  ;;  %v782_v55 = vpop.f32.mrf.mxu1 }
 0x11d   : > { %1104 = vst [vmem:[%s1698_s27 + $0x90] sm:$0xff] %v1040_v52  ;;  %1136 = vst [vmem:[%s1698_s27 + $0x190] sm:$0xff] %v1072_v53  ;;  %v1041_v56 = vadd.f32 %v1694_v39, %v702_v54  ;;  %v1073_v57 = vadd.f32 %v1694_v39, %v782_v55 }
 0x11e   : > { %v706_v58 = vpop.f32.mrf.mxu0  ;;  %v786_v59 = vpop.f32.mrf.mxu1 }
 0x11f   : > { %1105 = vst [vmem:[%s1698_s27 + $0x98] sm:$0xff] %v1041_v56  ;;  %1137 = vst [vmem:[%s1698_s27 + $0x198] sm:$0xff] %v1073_v57  ;;  %v1042_v60 = vadd.f32 %v1692_v38, %v706_v58  ;;  %v1074_v61 = vadd.f32 %v1692_v38, %v786_v59 }
 0x120   : > { %v708_v62 = vpop.f32.mrf.mxu0  ;;  %v788_v63 = vpop.f32.mrf.mxu1 }
 0x121   : > { %1106 = vst [vmem:[%s1698_s27 + $0xa0] sm:$0xff] %v1042_v60  ;;  %1138 = vst [vmem:[%s1698_s27 + $0x1a0] sm:$0xff] %v1074_v61  ;;  %v1043_v0 = vadd.f32 %v1694_v39, %v708_v62  ;;  %v1075_v1 = vadd.f32 %v1694_v39, %v788_v63 }
 0x122   : > { %v710_v2 = vpop.f32.mrf.mxu0  ;;  %v790_v3 = vpop.f32.mrf.mxu1 }
 0x123   : > { %1107 = vst [vmem:[%s1698_s27 + $0xa8] sm:$0xff] %v1043_v0  ;;  %1139 = vst [vmem:[%s1698_s27 + $0x1a8] sm:$0xff] %v1075_v1  ;;  %v1044_v4 = vadd.f32 %v1692_v38, %v710_v2  ;;  %v1076_v5 = vadd.f32 %v1692_v38, %v790_v3 }
 0x124   : > { %v712_v6 = vpop.f32.mrf.mxu0  ;;  %v792_v7 = vpop.f32.mrf.mxu1 }
 0x125   : > { %1108 = vst [vmem:[%s1698_s27 + $0xb0] sm:$0xff] %v1044_v4  ;;  %1140 = vst [vmem:[%s1698_s27 + $0x1b0] sm:$0xff] %v1076_v5  ;;  %v1045_v8 = vadd.f32 %v1694_v39, %v712_v6  ;;  %v1077_v9 = vadd.f32 %v1694_v39, %v792_v7 }
 0x126   : > { %v716_v10 = vpop.f32.mrf.mxu0  ;;  %v796_v11 = vpop.f32.mrf.mxu1 }
 0x127   : > { %1109 = vst [vmem:[%s1698_s27 + $0xb8] sm:$0xff] %v1045_v8  ;;  %1141 = vst [vmem:[%s1698_s27 + $0x1b8] sm:$0xff] %v1077_v9  ;;  %v1046_v12 = vadd.f32 %v1692_v38, %v716_v10  ;;  %v1078_v13 = vadd.f32 %v1692_v38, %v796_v11 }
 0x128   : > { %v718_v14 = vpop.f32.mrf.mxu0  ;;  %v798_v15 = vpop.f32.mrf.mxu1 }
 0x129   : > { %1110 = vst [vmem:[%s1698_s27 + $0xc0] sm:$0xff] %v1046_v12  ;;  %1142 = vst [vmem:[%s1698_s27 + $0x1c0] sm:$0xff] %v1078_v13  ;;  %v1047_v16 = vadd.f32 %v1694_v39, %v718_v14  ;;  %v1079_v17 = vadd.f32 %v1694_v39, %v798_v15 }
 0x12a   : > { %v720_v18 = vpop.f32.mrf.mxu0  ;;  %v800_v19 = vpop.f32.mrf.mxu1 }
 0x12b   : > { %1111 = vst [vmem:[%s1698_s27 + $0xc8] sm:$0xff] %v1047_v16  ;;  %1143 = vst [vmem:[%s1698_s27 + $0x1c8] sm:$0xff] %v1079_v17  ;;  %v1048_v20 = vadd.f32 %v1692_v38, %v720_v18  ;;  %v1080_v21 = vadd.f32 %v1692_v38, %v800_v19 }
 0x12c   : > { %v722_v22 = vpop.f32.mrf.mxu0  ;;  %v802_v23 = vpop.f32.mrf.mxu1 }
 0x12d   : > { %1112 = vst [vmem:[%s1698_s27 + $0xd0] sm:$0xff] %v1048_v20  ;;  %1144 = vst [vmem:[%s1698_s27 + $0x1d0] sm:$0xff] %v1080_v21  ;;  %v1049_v24 = vadd.f32 %v1694_v39, %v722_v22  ;;  %v1081_v25 = vadd.f32 %v1694_v39, %v802_v23 }
 0x12e   : > { %v726_v26 = vpop.f32.mrf.mxu0  ;;  %v806_v27 = vpop.f32.mrf.mxu1 }
 0x12f   : > { %1113 = vst [vmem:[%s1698_s27 + $0xd8] sm:$0xff] %v1049_v24  ;;  %1145 = vst [vmem:[%s1698_s27 + $0x1d8] sm:$0xff] %v1081_v25  ;;  %v1050_v28 = vadd.f32 %v1692_v38, %v726_v26  ;;  %v1082_v29 = vadd.f32 %v1692_v38, %v806_v27 }
 0x130   : > { %v728_v30 = vpop.f32.mrf.mxu0  ;;  %v808_v31 = vpop.f32.mrf.mxu1 }
 0x131   : > { %1114 = vst [vmem:[%s1698_s27 + $0xe0] sm:$0xff] %v1050_v28  ;;  %1146 = vst [vmem:[%s1698_s27 + $0x1e0] sm:$0xff] %v1082_v29  ;;  %v1051_v32 = vadd.f32 %v1694_v39, %v728_v30  ;;  %v1083_v33 = vadd.f32 %v1694_v39, %v808_v31 }
 0x132   : > { %v730_v34 = vpop.f32.mrf.mxu0  ;;  %v810_v35 = vpop.f32.mrf.mxu1 }
 0x133   : > { %1115 = vst [vmem:[%s1698_s27 + $0xe8] sm:$0xff] %v1051_v32  ;;  %1147 = vst [vmem:[%s1698_s27 + $0x1e8] sm:$0xff] %v1083_v33  ;;  %v1052_v36 = vadd.f32 %v1692_v38, %v730_v34  ;;  %v1084_v37 = vadd.f32 %v1692_v38, %v810_v35 }
 0x134   : > { %v732_v40 = vpop.f32.mrf.mxu0  ;;  %v812_v41 = vpop.f32.mrf.mxu1 }
 0x135   : > { %1116 = vst [vmem:[%s1698_s27 + $0xf0] sm:$0xff] %v1052_v36  ;;  %1148 = vst [vmem:[%s1698_s27 + $0x1f0] sm:$0xff] %v1084_v37  ;;  %v1053_v42 = vadd.f32 %v1694_v39, %v732_v40  ;;  %v1085_v43 = vadd.f32 %v1694_v39, %v812_v41 }
 0x137   : > { %1117 = vst [vmem:[%s1698_s27 + $0xf8] sm:$0xff] %v1053_v42  ;;  %1149 = vst [vmem:[%s1698_s27 + $0x1f8] sm:$0xff] %v1085_v43 }
 0x138   : > { %1456 = shalt.err (!%p1453_p5)
}
 0x139   : > { %s1457_s26 = scalar_lea.hbm %s1825_s11, 8192  ;;  %s1461_s30 = scalar_lea.hbm %s1885_s3, 16384 }
 0x13a   : > { %p1458_p6 = scmp.ne.s32.totalorder %s1825_s11, %s1457_s26  ;;  %p1462_p10 = scmp.lt.s32.totalorder %s1825_s11, %s1885_s3 }
 0x13b   : > { %p1463_p11 = scmp.lt.s32.totalorder %s1461_s30, %s1457_s26 }
 0x13c   : > { %p1459_p7 = pnand %p1458_p6, %p1585_p4 }
 0x13d   : > { %p1464_p12 = por %p1463_p11, %p1462_p10 }
 0x13e   : > { %p1460_p9 = pneg %p1459_p7 }
 0x140   : > { %p1465_p13 = pnand %p1464_p12, %p1460_p9 }
 0x142   : > { %1468 = shalt.err (!%p1465_p13)
}
 0x143   : > { %s1523_s6 = smov 256   ;;  %s1524_s27 = smov 16  }
 0x144   : > { %1345 = dma.vmem_to_hbm [thread:$0]  (%p1585_p4), %s1827_s8, 8192, %s1825_s11, %s1837_s15, %s1523_s6, %s1523_s6, %s1524_s27  }
 0x145 PF: > { %p1351_p0 = scmp.ge.s32.totalorder %s1519_s17, 2  ;;  %s1182_s7 = sand.u32 1, %s1499_s12  }
 0x146   : > { %s1183_s9 = scalar_lea.sflag [#allocation4], %s1182_s7 }
 0x147   : > { %p1348_p1 = pnand %p1351_p0, %p1592_p8 }
 0x149   : > { %p1349_p2 = pneg %p1348_p1 }
 0x14b   : > { %1494 = dma.done.wait (%p1349_p2), %s1183_s9, 8192  }
 0x14c   : > { %1496 = vsyncadd (%p1349_p2), %s1183_s9, 4294959104  ;;  %s16_s17 = sadd.s32 1, %s1519_s17   ;;  %s1888_s12 = smov %s1503_s13 }
 0x14d   : > { %p13_p3 = scmp.ge.s32.totalorder %s16_s17, 4   ;;  %s1889_s13 = smov %s1507_s14 }
 0x14e   : > { %s1890_s14 = smov %s1598_s25  ;;  %s1891_s15 = smov %s1515_s16 }
 0x14f   : > { %s1892_s16 = smov %s1894_s20  ;;  %15 = sbr.rel (!%p13_p3) target bundleno = 4 (0x4), region = 81 }
 0x154   :  { %1188 = vsyncpa [#allocation4], 1 }
 0x155   :  { %1190 = vsyncpa [#allocation4 + $0x1], 1 }

</bundles_post_ra>
